<compile_context>
chip_gen: v7x
topology: tpu7x:2x2x1
jax: 0.10.0
libtpu: 0.0.40
codegen_flags: <defaults>
</compile_context>

<pallas_src>
import functools

import jax
import jax.numpy as jnp
from jax.experimental import pallas as pl
from jax.experimental.pallas import tpu as pltpu


# ---------------------------------------------------------------------------
# Pallas kernel: one (batch element, row tile) per grid step.
# ---------------------------------------------------------------------------
def _basic_block_kernel(ph_ref,     # (s*s, Th+4, Wo+2, Cin) bf16, halo-padded
                        w1_ref,     # (9, Cin, Cp)  bf16  (BN1 scale folded)
                        w2_ref,     # (9, Cp,  Cp)  bf16  (BN2 scale folded)
                        wsc_ref,    # (Cin, Cp)     bf16  (proj conv or identity)
                        b_ref,      # (2, 1, Cp)    f32   [b1, b2 + bsc]
                        o_ref,      # (Th, Wo, Cp)  f32
                        acc1_ref,   # ((Th+2)*Wo, Cp) f32 scratch
                        acc2_ref,   # (Th*Wo, Cp)     f32 scratch
                        y1_ref,     # (Th+2, Wo+2, Cp) bf16 scratch (halo-padded)
                        *, stride):
    s = stride
    Th, Wo, Cp = o_ref.shape
    Cin = ph_ref.shape[-1]
    Hh = Th + 2                 # conv1 rows incl. one halo row each side
    M1 = Hh * Wo
    M2 = Th * Wo
    t = pl.program_id(1)

    # ---- conv1: 9 tap matmuls accumulated in f32 (no concat, no rolls) -----
    for k in range(9):
        dh, dw = k // 3 - 1, k % 3 - 1
        pa, pb = dh % s, dw % s                    # stride phase of this tap
        rh, rw = (dh - pa) // s, (dw - pb) // s    # shift on the output grid
        slab = ph_ref[pa * s + pb, pl.ds(1 + rh, Hh), pl.ds(1 + rw, Wo), :]
        contrib = jnp.dot(slab.reshape(M1, Cin), w1_ref[k],
                          preferred_element_type=jnp.float32)
        if k == 0:
            acc1_ref[...] = contrib
        else:
            acc1_ref[...] += contrib

    # bias + relu, store bf16 into the halo/zero-padded scratch for conv2 taps
    y1 = jnp.maximum(acc1_ref[...] + b_ref[0], 0.0)
    y1_ref[...] = jnp.zeros_like(y1_ref)           # zero pad cols / halo default
    y1_ref[:, pl.ds(1, Wo), :] = y1.reshape(Hh, Wo, Cp).astype(y1_ref.dtype)

    # conv2's zero padding at the image top/bottom: halo rows that fall
    # outside the image must be zero, not the recomputed conv1 value.
    @pl.when(t == 0)
    def _():
        y1_ref[0, :, :] = jnp.zeros((Wo + 2, Cp), y1_ref.dtype)

    @pl.when(t == pl.num_programs(1) - 1)
    def _():
        y1_ref[Hh - 1, :, :] = jnp.zeros((Wo + 2, Cp), y1_ref.dtype)

    # ---- conv2: 9 tap matmuls from the padded y1 scratch --------------------
    for k in range(9):
        rh, rw = k // 3 - 1, k % 3 - 1
        slab = y1_ref[pl.ds(1 + rh, Th), pl.ds(1 + rw, Wo), :]
        contrib = jnp.dot(slab.reshape(M2, Cp), w2_ref[k],
                          preferred_element_type=jnp.float32)
        if k == 0:
            acc2_ref[...] = contrib
        else:
            acc2_ref[...] += contrib

    # ---- shortcut (1x1 proj conv, or identity matrix) + residual + relu -----
    x0 = ph_ref[0, pl.ds(2, Th), pl.ds(1, Wo), :].reshape(M2, Cin)
    sc = jnp.dot(x0, wsc_ref[...], preferred_element_type=jnp.float32)
    out = acc2_ref[...] + b_ref[1] + sc            # b_ref[1] = b2 + bsc
    o_ref[...] = jnp.maximum(out, 0.0).reshape(Th, Wo, Cp).astype(o_ref.dtype)


# ---------------------------------------------------------------------------
# Wrapper (NHWC core; NCHW adaptor for the PyTorch-convention test).
# ---------------------------------------------------------------------------
def _round_up(x, m):
    return (x + m - 1) // m * m


def _fold_bn(gamma, beta, mean, var, eps=1e-5):
    scale = gamma / jnp.sqrt(var + eps)
    return scale, beta - mean * scale


def _pick_row_tile(Ho, Wo, target_elems=2048):
    """Largest divisor of Ho with ~target flattened sublanes per tile."""
    max_rows = max(1, target_elems // max(Wo, 1))
    if Ho <= max_rows:
        return Ho
    best = 1
    for d in range(1, Ho + 1):
        if Ho % d == 0 and d <= max_rows:
            best = d
    return best


def basic_block_pallas_nhwc(x, params, stride, row_tile=None):
    """x: (N, H, W, Cin) -> (N, Ho, Wo, planes)."""
    N, H, W, Cin = x.shape
    planes = params["w1"].shape[0]
    s = stride
    Ho = (H - 1) // s + 1
    Wo = (W - 1) // s + 1
    Cp = _round_up(planes, 128)                    # lane-dense output channels

    if row_tile is None:
        row_tile = _pick_row_tile(Ho, Wo)
    Th = int(row_tile)
    assert Ho % Th == 0, f"row_tile={Th} must divide Ho={Ho}"
    T = Ho // Th

    # ---- stride-phase decomposition: phases[a*s+b] = x[:, a::s, b::s, :] ----
    ph_pad, pw_pad = s * Ho - H, s * Wo - W
    if ph_pad or pw_pad:
        x = jnp.pad(x, ((0, 0), (0, ph_pad), (0, pw_pad), (0, 0)))
    phases = x.reshape(N, Ho, s, Wo, s, Cin).transpose(0, 2, 4, 1, 3, 5)
    phases = phases.reshape(N, s * s, Ho, Wo, Cin)

    # Halo pad (2 zero rows top/bottom, 1 zero col left/right): the conv's
    # zero padding becomes a plain read -> no masks / rolls in-kernel.
    phases = jnp.pad(phases, ((0, 0), (0, 0), (2, 2), (1, 1), (0, 0)))

    # Overlapping row tiles (halo duplicated in HBM; <= 4 extra rows per tile)
    tiles = jnp.stack(
        [phases[:, :, t * Th: t * Th + Th + 4] for t in range(T)], axis=1)
    phases_tiled = tiles.astype(jnp.bfloat16)      # bf16 operands, f32 accum

    # ---- fold BN (f32) into weights, pad out-channels to Cp, cast bf16 ------
    s1, b1 = _fold_bn(params["g1"], params["b1"], params["m1"], params["v1"])
    s2, b2 = _fold_bn(params["g2"], params["b2"], params["m2"], params["v2"])
    w1 = jnp.transpose(params["w1"], (2, 3, 1, 0)).reshape(9, Cin, planes) * s1
    w2 = jnp.transpose(params["w2"], (2, 3, 1, 0)).reshape(9, planes, planes) * s2
    w1 = jnp.pad(w1, ((0, 0), (0, 0), (0, Cp - planes))).astype(jnp.bfloat16)
    w2 = jnp.pad(w2, ((0, 0), (0, Cp - planes), (0, Cp - planes))).astype(jnp.bfloat16)

    if params["wsc"] is not None:
        ssc, bsc = _fold_bn(params["gsc"], params["bsc"],
                            params["msc"], params["vsc"])
        wsc = params["wsc"][:, :, 0, 0].T * ssc            # (Cin, planes)
    else:
        bsc = jnp.zeros((planes,), jnp.float32)
        wsc = jnp.eye(Cin, dtype=jnp.float32)              # identity shortcut
    wsc = jnp.pad(wsc, ((0, 0), (0, Cp - planes))).astype(jnp.bfloat16)

    biases = jnp.stack([
        jnp.pad(b1, (0, Cp - planes)),
        jnp.pad(b2 + bsc, (0, Cp - planes)),               # pre-summed bias
    ]).reshape(2, 1, Cp).astype(jnp.float32)

    kernel = functools.partial(_basic_block_kernel, stride=s)

    grid_spec = pltpu.PrefetchScalarGridSpec(
        num_scalar_prefetch=0,
        grid=(N, T),
        in_specs=[
            pl.BlockSpec((None, None, s * s, Th + 4, Wo + 2, Cin),
                         lambda n, t: (n, t, 0, 0, 0, 0)),
            pl.BlockSpec((9, Cin, Cp), lambda n, t: (0, 0, 0)),
            pl.BlockSpec((9, Cp, Cp), lambda n, t: (0, 0, 0)),
            pl.BlockSpec((Cin, Cp), lambda n, t: (0, 0)),
            pl.BlockSpec((2, 1, Cp), lambda n, t: (0, 0, 0)),
        ],
        out_specs=pl.BlockSpec((None, None, Th, Wo, Cp),
                               lambda n, t: (n, t, 0, 0, 0)),
        scratch_shapes=[
            pltpu.VMEM(((Th + 2) * Wo, Cp), jnp.float32),
            pltpu.VMEM((Th * Wo, Cp), jnp.float32),
            pltpu.VMEM((Th + 2, Wo + 2, Cp), jnp.bfloat16),
        ],
    )

    # Cost hint + VMEM budget derived from actual block / scratch sizes.
    flops = 2 * N * Ho * Wo * Cp * (9 * Cin + 9 * Cp + Cin)
    bytes_accessed = int(phases_tiled.size * 2 + (w1.size + w2.size + wsc.size) * 2
                         + biases.size * 4 + N * Ho * Wo * Cp * 4)
    phase_block = s * s * (Th + 4) * (Wo + 2) * Cin * 2
    out_block = Th * Wo * Cp * 4
    weight_bytes = (w1.size + w2.size + wsc.size) * 2 + biases.size * 4
    scratch_bytes = ((Th + 2) * Wo * Cp * 4 + Th * Wo * Cp * 4
                     + (Th + 2) * (Wo + 2) * Cp * 2)
    vmem_est = 2 * (phase_block + out_block) + 2 * weight_bytes + scratch_bytes
    vmem_limit = int(min(max(2 * vmem_est, 16 * 1024 * 1024), 64 * 1024 * 1024))

    out = pl.pallas_call(
        kernel,
        grid_spec=grid_spec,
        out_shape=jax.ShapeDtypeStruct((N, T, Th, Wo, Cp), jnp.float32),
        compiler_params=pltpu.CompilerParams(
            dimension_semantics=("parallel", "parallel"),
            vmem_limit_bytes=vmem_limit,
        ),
        cost_estimate=pl.CostEstimate(flops=flops, transcendentals=0,
                                      bytes_accessed=bytes_accessed),
    )(phases_tiled, w1, w2, wsc, biases)

    return out.reshape(N, Ho, Wo, Cp)[..., :planes]


def basic_block_pallas(x_nchw, params, stride, row_tile=None):
    """PyTorch-convention adaptor: NCHW in / NCHW out."""
    x = jnp.transpose(x_nchw, (0, 2, 3, 1))
    out = basic_block_pallas_nhwc(x, params, stride, row_tile=row_tile)
    return jnp.transpose(out, (0, 3, 1, 2))


# ---------------------------------------------------------------------------
# Deterministic parameter init (shapes from BasicBlock.__init__)
# ---------------------------------------------------------------------------
def init_params(key, in_planes, planes, stride):
    ks = jax.random.split(key, 20)
    p = {
        "w1": jax.random.normal(ks[0], (planes, in_planes, 3, 3), jnp.float32) * 0.1,
        "g1": jax.random.uniform(ks[1], (planes,), minval=0.8, maxval=1.2),
        "b1": jax.random.normal(ks[2], (planes,)) * 0.1,
        "m1": jax.random.normal(ks[3], (planes,)) * 0.1,
        "v1": jax.random.uniform(ks[4], (planes,), minval=0.5, maxval=1.5),
        "w2": jax.random.normal(ks[5], (planes, planes, 3, 3), jnp.float32) * 0.1,
        "g2": jax.random.uniform(ks[6], (planes,), minval=0.8, maxval=1.2),
        "b2": jax.random.normal(ks[7], (planes,)) * 0.1,
        "m2": jax.random.normal(ks[8], (planes,)) * 0.1,
        "v2": jax.random.uniform(ks[9], (planes,), minval=0.5, maxval=1.5),
    }
    if stride != 1 or in_planes != planes:
        p.update({
            "wsc": jax.random.normal(ks[10], (planes, in_planes, 1, 1), jnp.float32) * 0.1,
            "gsc": jax.random.uniform(ks[11], (planes,), minval=0.8, maxval=1.2),
            "bsc": jax.random.normal(ks[12], (planes,)) * 0.1,
            "msc": jax.random.normal(ks[13], (planes,)) * 0.1,
            "vsc": jax.random.uniform(ks[14], (planes,), minval=0.5, maxval=1.5),
        })
    else:
        p["wsc"] = None
    return p


# ---------------------------------------------------------------------------
# Pure-JAX reference (mirrors the PyTorch forward, BN in eval mode)
# ---------------------------------------------------------------------------
def basic_block_ref(x, p, stride, eps=1e-5):
    def conv(x, w, s, pad):
        return jax.lax.conv_general_dilated(
            x, w, (s, s), ((pad, pad), (pad, pad)),
            dimension_numbers=("NCHW", "OIHW", "NCHW"))

    def bn(x, g, b, m, v):
        r = lambda a: a[None, :, None, None]
        return (x - r(m)) / jnp.sqrt(r(v) + eps) * r(g) + r(b)

    out = jax.nn.relu(bn(conv(x, p["w1"], stride, 1),
                         p["g1"], p["b1"], p["m1"], p["v1"]))
    out = bn(conv(out, p["w2"], 1, 1), p["g2"], p["b2"], p["m2"], p["v2"])
    if p["wsc"] is not None:
        sc = bn(conv(x, p["wsc"], stride, 0),
                p["gsc"], p["bsc"], p["msc"], p["vsc"])
    else:
        sc = x
    return jax.nn.relu(out + sc)


if __name__ == "__main__":
    key = jax.random.PRNGKey(0)
    N, H, W = 2, 16, 16
    # (in_planes, planes, stride, row_tile) -- row_tile chosen to exercise
    # both the single-tile path and the multi-tile halo path.
    configs = [
        (4, 8, 1, None),  # projection shortcut, default tiling (1 row tile)
        (4, 8, 1, 8),     # projection shortcut, 2 row tiles (halo recompute)
        (8, 8, 1, 4),     # identity shortcut, 4 row tiles
        (4, 8, 2, 4),     # strided projection shortcut, 2 row tiles
    ]
    for in_planes, planes, stride, row_tile in configs:
        kx, kp, key = jax.random.split(key, 3)
        x = jax.random.normal(kx, (N, in_planes, H, W), jnp.float32)
        params = init_params(kp, in_planes, planes, stride)

        out = jax.block_until_ready(
            basic_block_pallas(x, params, stride, row_tile=row_tile))
        ref = basic_block_ref(x, params, stride)

        assert out.shape == ref.shape, (out.shape, ref.shape)
        # bf16 MXU operands -> loosened tolerance vs the f32 reference.
        if not bool(jnp.allclose(out, ref, rtol=5e-2, atol=5e-2)):
            err = float(jnp.max(jnp.abs(out - ref)))
            raise AssertionError(
                f"mismatch (in={in_planes}, planes={planes}, stride={stride}, "
                f"row_tile={row_tile}), max abs err = {err}")
    print("KERNEL_OK")
</pallas_src>

<mosaic_0001>
module attributes {stable_mosaic.version = 11 : i64} {
  func.func @_basic_block_kernel(%arg0: i32, %arg1: i32, %arg2: memref<1x1x1x20x18x4xbf16, #tpu.memory_space<vmem>>, %arg3: memref<9x4x128xbf16, #tpu.memory_space<vmem>>, %arg4: memref<9x128x128xbf16, #tpu.memory_space<vmem>>, %arg5: memref<4x128xbf16, #tpu.memory_space<vmem>>, %arg6: memref<2x1x128xf32, #tpu.memory_space<vmem>>, %arg7: memref<1x1x16x16x128xf32, #tpu.memory_space<vmem>>, %arg8: memref<288x128xf32, #tpu.memory_space<vmem>>, %arg9: memref<256x128xf32, #tpu.memory_space<vmem>>, %arg10: memref<18x18x128xbf16, #tpu.memory_space<vmem>>) attributes {dimension_semantics = [#tpu.dimension_semantics<parallel>, #tpu.dimension_semantics<parallel>], iteration_bounds = array<i64: 2, 1>, scalar_prefetch = 0 : i64, scratch_operands = 3 : i64, tpu.core_type = #tpu.core_type<tc>, window_params = [{transform_indices = @transform_0, window_bounds = array<i64: 1, 1, 1, 20, 18, 4>}, {pipeline_mode = #tpu.pipeline_mode<synchronous>, transform_indices = @transform_1, window_bounds = array<i64: 9, 4, 128>}, {pipeline_mode = #tpu.pipeline_mode<synchronous>, transform_indices = @transform_2, window_bounds = array<i64: 9, 128, 128>}, {pipeline_mode = #tpu.pipeline_mode<synchronous>, transform_indices = @transform_3, window_bounds = array<i64: 4, 128>}, {pipeline_mode = #tpu.pipeline_mode<synchronous>, transform_indices = @transform_4, window_bounds = array<i64: 2, 1, 128>}, {transform_indices = @transform_5, window_bounds = array<i64: 1, 1, 16, 16, 128>}]} {
    %c0 = arith.constant 0 : index
    %c0_0 = arith.constant 0 : index
    %c0_1 = arith.constant 0 : index
    %c0_2 = arith.constant 0 : index
    %c0_3 = arith.constant 0 : index
    %c0_4 = arith.constant 0 : index
    %0 = vector.load %arg2[%c0, %c0_0, %c0_1, %c0_2, %c0_3, %c0_4] : memref<1x1x1x20x18x4xbf16, #tpu.memory_space<vmem>>, vector<1x1x1x18x16x4xbf16>
    %1 = vector.shape_cast %0 : vector<1x1x1x18x16x4xbf16> to vector<18x16x4xbf16>
    %2 = vector.shape_cast %1 : vector<18x16x4xbf16> to vector<288x4xbf16>
    %c0_5 = arith.constant 0 : index
    %c0_6 = arith.constant 0 : index
    %c0_7 = arith.constant 0 : index
    %3 = vector.load %arg3[%c0_5, %c0_6, %c0_7] : memref<9x4x128xbf16, #tpu.memory_space<vmem>>, vector<1x4x128xbf16>
    %4 = vector.shape_cast %3 : vector<1x4x128xbf16> to vector<4x128xbf16>
    %cst = arith.constant dense<0.000000e+00> : vector<288x128xf32>
    %5 = tpu.matmul %2, %4, %cst {dimension_numbers = #tpu.dot_dimension_numbers<[1], [0], [0], [1], [0, 0, 1, 1], [], []>} : vector<288x4xbf16>, vector<4x128xbf16>, vector<288x128xf32> -> vector<288x128xf32>
    %c0_8 = arith.constant 0 : index
    %c0_9 = arith.constant 0 : index
    %6 = vector.load %arg8[%c0_8, %c0_9] : memref<288x128xf32, #tpu.memory_space<vmem>>, vector<288x128xf32>
    tpu.vector_store %arg8[%c0_8, %c0_9], %5 {strides = array<i32>} : memref<288x128xf32, #tpu.memory_space<vmem>>, vector<288x128xf32>,
    %c0_10 = arith.constant 0 : index
    %c0_11 = arith.constant 0 : index
    %c0_12 = arith.constant 0 : index
    %c0_13 = arith.constant 0 : index
    %c1 = arith.constant 1 : index
    %c0_14 = arith.constant 0 : index
    %7 = vector.load %arg2[%c0_10, %c0_11, %c0_12, %c0_13, %c1, %c0_14] : memref<1x1x1x20x18x4xbf16, #tpu.memory_space<vmem>>, vector<1x1x1x18x16x4xbf16>
    %8 = vector.shape_cast %7 : vector<1x1x1x18x16x4xbf16> to vector<18x16x4xbf16>
    %9 = vector.shape_cast %8 : vector<18x16x4xbf16> to vector<288x4xbf16>
    %c1_15 = arith.constant 1 : index
    %c0_16 = arith.constant 0 : index
    %c0_17 = arith.constant 0 : index
    %10 = vector.load %arg3[%c1_15, %c0_16, %c0_17] : memref<9x4x128xbf16, #tpu.memory_space<vmem>>, vector<1x4x128xbf16>
    %11 = vector.shape_cast %10 : vector<1x4x128xbf16> to vector<4x128xbf16>
    %cst_18 = arith.constant dense<0.000000e+00> : vector<288x128xf32>
    %12 = tpu.matmul %9, %11, %cst_18 {dimension_numbers = #tpu.dot_dimension_numbers<[1], [0], [0], [1], [0, 0, 1, 1], [], []>} : vector<288x4xbf16>, vector<4x128xbf16>, vector<288x128xf32> -> vector<288x128xf32>
    %c0_19 = arith.constant 0 : index
    %c0_20 = arith.constant 0 : index
    %13 = vector.load %arg8[%c0_19, %c0_20] : memref<288x128xf32, #tpu.memory_space<vmem>>, vector<288x128xf32>
    %14 = arith.addf %13, %12 : vector<288x128xf32>
    %c0_21 = arith.constant 0 : index
    %c0_22 = arith.constant 0 : index
    %15 = vector.load %arg8[%c0_21, %c0_22] : memref<288x128xf32, #tpu.memory_space<vmem>>, vector<288x128xf32>
    tpu.vector_store %arg8[%c0_21, %c0_22], %14 {strides = array<i32>} : memref<288x128xf32, #tpu.memory_space<vmem>>, vector<288x128xf32>,
    %c0_23 = arith.constant 0 : index
    %c0_24 = arith.constant 0 : index
    %c0_25 = arith.constant 0 : index
    %c0_26 = arith.constant 0 : index
    %c2 = arith.constant 2 : index
    %c0_27 = arith.constant 0 : index
    %16 = vector.load %arg2[%c0_23, %c0_24, %c0_25, %c0_26, %c2, %c0_27] : memref<1x1x1x20x18x4xbf16, #tpu.memory_space<vmem>>, vector<1x1x1x18x16x4xbf16>
    %17 = vector.shape_cast %16 : vector<1x1x1x18x16x4xbf16> to vector<18x16x4xbf16>
    %18 = vector.shape_cast %17 : vector<18x16x4xbf16> to vector<288x4xbf16>
    %c2_28 = arith.constant 2 : index
    %c0_29 = arith.constant 0 : index
    %c0_30 = arith.constant 0 : index
    %19 = vector.load %arg3[%c2_28, %c0_29, %c0_30] : memref<9x4x128xbf16, #tpu.memory_space<vmem>>, vector<1x4x128xbf16>
    %20 = vector.shape_cast %19 : vector<1x4x128xbf16> to vector<4x128xbf16>
    %cst_31 = arith.constant dense<0.000000e+00> : vector<288x128xf32>
    %21 = tpu.matmul %18, %20, %cst_31 {dimension_numbers = #tpu.dot_dimension_numbers<[1], [0], [0], [1], [0, 0, 1, 1], [], []>} : vector<288x4xbf16>, vector<4x128xbf16>, vector<288x128xf32> -> vector<288x128xf32>
    %c0_32 = arith.constant 0 : index
    %c0_33 = arith.constant 0 : index
    %22 = vector.load %arg8[%c0_32, %c0_33] : memref<288x128xf32, #tpu.memory_space<vmem>>, vector<288x128xf32>
    %23 = arith.addf %22, %21 : vector<288x128xf32>
    %c0_34 = arith.constant 0 : index
    %c0_35 = arith.constant 0 : index
    %24 = vector.load %arg8[%c0_34, %c0_35] : memref<288x128xf32, #tpu.memory_space<vmem>>, vector<288x128xf32>
    tpu.vector_store %arg8[%c0_34, %c0_35], %23 {strides = array<i32>} : memref<288x128xf32, #tpu.memory_space<vmem>>, vector<288x128xf32>,
    %c0_36 = arith.constant 0 : index
    %c0_37 = arith.constant 0 : index
    %c0_38 = arith.constant 0 : index
    %c1_39 = arith.constant 1 : index
    %c0_40 = arith.constant 0 : index
    %c0_41 = arith.constant 0 : index
    %25 = vector.load %arg2[%c0_36, %c0_37, %c0_38, %c1_39, %c0_40, %c0_41] : memref<1x1x1x20x18x4xbf16, #tpu.memory_space<vmem>>, vector<1x1x1x18x16x4xbf16>
    %26 = vector.shape_cast %25 : vector<1x1x1x18x16x4xbf16> to vector<18x16x4xbf16>
    %27 = vector.shape_cast %26 : vector<18x16x4xbf16> to vector<288x4xbf16>
    %c3 = arith.constant 3 : index
    %c0_42 = arith.constant 0 : index
    %c0_43 = arith.constant 0 : index
    %28 = vector.load %arg3[%c3, %c0_42, %c0_43] : memref<9x4x128xbf16, #tpu.memory_space<vmem>>, vector<1x4x128xbf16>
    %29 = vector.shape_cast %28 : vector<1x4x128xbf16> to vector<4x128xbf16>
    %cst_44 = arith.constant dense<0.000000e+00> : vector<288x128xf32>
    %30 = tpu.matmul %27, %29, %cst_44 {dimension_numbers = #tpu.dot_dimension_numbers<[1], [0], [0], [1], [0, 0, 1, 1], [], []>} : vector<288x4xbf16>, vector<4x128xbf16>, vector<288x128xf32> -> vector<288x128xf32>
    %c0_45 = arith.constant 0 : index
    %c0_46 = arith.constant 0 : index
    %31 = vector.load %arg8[%c0_45, %c0_46] : memref<288x128xf32, #tpu.memory_space<vmem>>, vector<288x128xf32>
    %32 = arith.addf %31, %30 : vector<288x128xf32>
    %c0_47 = arith.constant 0 : index
    %c0_48 = arith.constant 0 : index
    %33 = vector.load %arg8[%c0_47, %c0_48] : memref<288x128xf32, #tpu.memory_space<vmem>>, vector<288x128xf32>
    tpu.vector_store %arg8[%c0_47, %c0_48], %32 {strides = array<i32>} : memref<288x128xf32, #tpu.memory_space<vmem>>, vector<288x128xf32>,
    %c0_49 = arith.constant 0 : index
    %c0_50 = arith.constant 0 : index
    %c0_51 = arith.constant 0 : index
    %c1_52 = arith.constant 1 : index
    %c1_53 = arith.constant 1 : index
    %c0_54 = arith.constant 0 : index
    %34 = vector.load %arg2[%c0_49, %c0_50, %c0_51, %c1_52, %c1_53, %c0_54] : memref<1x1x1x20x18x4xbf16, #tpu.memory_space<vmem>>, vector<1x1x1x18x16x4xbf16>
    %35 = vector.shape_cast %34 : vector<1x1x1x18x16x4xbf16> to vector<18x16x4xbf16>
    %36 = vector.shape_cast %35 : vector<18x16x4xbf16> to vector<288x4xbf16>
    %c4 = arith.constant 4 : index
    %c0_55 = arith.constant 0 : index
    %c0_56 = arith.constant 0 : index
    %37 = vector.load %arg3[%c4, %c0_55, %c0_56] : memref<9x4x128xbf16, #tpu.memory_space<vmem>>, vector<1x4x128xbf16>
    %38 = vector.shape_cast %37 : vector<1x4x128xbf16> to vector<4x128xbf16>
    %cst_57 = arith.constant dense<0.000000e+00> : vector<288x128xf32>
    %39 = tpu.matmul %36, %38, %cst_57 {dimension_numbers = #tpu.dot_dimension_numbers<[1], [0], [0], [1], [0, 0, 1, 1], [], []>} : vector<288x4xbf16>, vector<4x128xbf16>, vector<288x128xf32> -> vector<288x128xf32>
    %c0_58 = arith.constant 0 : index
    %c0_59 = arith.constant 0 : index
    %40 = vector.load %arg8[%c0_58, %c0_59] : memref<288x128xf32, #tpu.memory_space<vmem>>, vector<288x128xf32>
    %41 = arith.addf %40, %39 : vector<288x128xf32>
    %c0_60 = arith.constant 0 : index
    %c0_61 = arith.constant 0 : index
    %42 = vector.load %arg8[%c0_60, %c0_61] : memref<288x128xf32, #tpu.memory_space<vmem>>, vector<288x128xf32>
    tpu.vector_store %arg8[%c0_60, %c0_61], %41 {strides = array<i32>} : memref<288x128xf32, #tpu.memory_space<vmem>>, vector<288x128xf32>,
    %c0_62 = arith.constant 0 : index
    %c0_63 = arith.constant 0 : index
    %c0_64 = arith.constant 0 : index
    %c1_65 = arith.constant 1 : index
    %c2_66 = arith.constant 2 : index
    %c0_67 = arith.constant 0 : index
    %43 = vector.load %arg2[%c0_62, %c0_63, %c0_64, %c1_65, %c2_66, %c0_67] : memref<1x1x1x20x18x4xbf16, #tpu.memory_space<vmem>>, vector<1x1x1x18x16x4xbf16>
    %44 = vector.shape_cast %43 : vector<1x1x1x18x16x4xbf16> to vector<18x16x4xbf16>
    %45 = vector.shape_cast %44 : vector<18x16x4xbf16> to vector<288x4xbf16>
    %c5 = arith.constant 5 : index
    %c0_68 = arith.constant 0 : index
    %c0_69 = arith.constant 0 : index
    %46 = vector.load %arg3[%c5, %c0_68, %c0_69] : memref<9x4x128xbf16, #tpu.memory_space<vmem>>, vector<1x4x128xbf16>
    %47 = vector.shape_cast %46 : vector<1x4x128xbf16> to vector<4x128xbf16>
    %cst_70 = arith.constant dense<0.000000e+00> : vector<288x128xf32>
    %48 = tpu.matmul %45, %47, %cst_70 {dimension_numbers = #tpu.dot_dimension_numbers<[1], [0], [0], [1], [0, 0, 1, 1], [], []>} : vector<288x4xbf16>, vector<4x128xbf16>, vector<288x128xf32> -> vector<288x128xf32>
    %c0_71 = arith.constant 0 : index
    %c0_72 = arith.constant 0 : index
    %49 = vector.load %arg8[%c0_71, %c0_72] : memref<288x128xf32, #tpu.memory_space<vmem>>, vector<288x128xf32>
    %50 = arith.addf %49, %48 : vector<288x128xf32>
    %c0_73 = arith.constant 0 : index
    %c0_74 = arith.constant 0 : index
    %51 = vector.load %arg8[%c0_73, %c0_74] : memref<288x128xf32, #tpu.memory_space<vmem>>, vector<288x128xf32>
    tpu.vector_store %arg8[%c0_73, %c0_74], %50 {strides = array<i32>} : memref<288x128xf32, #tpu.memory_space<vmem>>, vector<288x128xf32>,
    %c0_75 = arith.constant 0 : index
    %c0_76 = arith.constant 0 : index
    %c0_77 = arith.constant 0 : index
    %c2_78 = arith.constant 2 : index
    %c0_79 = arith.constant 0 : index
    %c0_80 = arith.constant 0 : index
    %52 = vector.load %arg2[%c0_75, %c0_76, %c0_77, %c2_78, %c0_79, %c0_80] : memref<1x1x1x20x18x4xbf16, #tpu.memory_space<vmem>>, vector<1x1x1x18x16x4xbf16>
    %53 = vector.shape_cast %52 : vector<1x1x1x18x16x4xbf16> to vector<18x16x4xbf16>
    %54 = vector.shape_cast %53 : vector<18x16x4xbf16> to vector<288x4xbf16>
    %c6 = arith.constant 6 : index
    %c0_81 = arith.constant 0 : index
    %c0_82 = arith.constant 0 : index
    %55 = vector.load %arg3[%c6, %c0_81, %c0_82] : memref<9x4x128xbf16, #tpu.memory_space<vmem>>, vector<1x4x128xbf16>
    %56 = vector.shape_cast %55 : vector<1x4x128xbf16> to vector<4x128xbf16>
    %cst_83 = arith.constant dense<0.000000e+00> : vector<288x128xf32>
    %57 = tpu.matmul %54, %56, %cst_83 {dimension_numbers = #tpu.dot_dimension_numbers<[1], [0], [0], [1], [0, 0, 1, 1], [], []>} : vector<288x4xbf16>, vector<4x128xbf16>, vector<288x128xf32> -> vector<288x128xf32>
    %c0_84 = arith.constant 0 : index
    %c0_85 = arith.constant 0 : index
    %58 = vector.load %arg8[%c0_84, %c0_85] : memref<288x128xf32, #tpu.memory_space<vmem>>, vector<288x128xf32>
    %59 = arith.addf %58, %57 : vector<288x128xf32>
    %c0_86 = arith.constant 0 : index
    %c0_87 = arith.constant 0 : index
    %60 = vector.load %arg8[%c0_86, %c0_87] : memref<288x128xf32, #tpu.memory_space<vmem>>, vector<288x128xf32>
    tpu.vector_store %arg8[%c0_86, %c0_87], %59 {strides = array<i32>} : memref<288x128xf32, #tpu.memory_space<vmem>>, vector<288x128xf32>,
    %c0_88 = arith.constant 0 : index
    %c0_89 = arith.constant 0 : index
    %c0_90 = arith.constant 0 : index
    %c2_91 = arith.constant 2 : index
    %c1_92 = arith.constant 1 : index
    %c0_93 = arith.constant 0 : index
    %61 = vector.load %arg2[%c0_88, %c0_89, %c0_90, %c2_91, %c1_92, %c0_93] : memref<1x1x1x20x18x4xbf16, #tpu.memory_space<vmem>>, vector<1x1x1x18x16x4xbf16>
    %62 = vector.shape_cast %61 : vector<1x1x1x18x16x4xbf16> to vector<18x16x4xbf16>
    %63 = vector.shape_cast %62 : vector<18x16x4xbf16> to vector<288x4xbf16>
    %c7 = arith.constant 7 : index
    %c0_94 = arith.constant 0 : index
    %c0_95 = arith.constant 0 : index
    %64 = vector.load %arg3[%c7, %c0_94, %c0_95] : memref<9x4x128xbf16, #tpu.memory_space<vmem>>, vector<1x4x128xbf16>
    %65 = vector.shape_cast %64 : vector<1x4x128xbf16> to vector<4x128xbf16>
    %cst_96 = arith.constant dense<0.000000e+00> : vector<288x128xf32>
    %66 = tpu.matmul %63, %65, %cst_96 {dimension_numbers = #tpu.dot_dimension_numbers<[1], [0], [0], [1], [0, 0, 1, 1], [], []>} : vector<288x4xbf16>, vector<4x128xbf16>, vector<288x128xf32> -> vector<288x128xf32>
    %c0_97 = arith.constant 0 : index
    %c0_98 = arith.constant 0 : index
    %67 = vector.load %arg8[%c0_97, %c0_98] : memref<288x128xf32, #tpu.memory_space<vmem>>, vector<288x128xf32>
    %68 = arith.addf %67, %66 : vector<288x128xf32>
    %c0_99 = arith.constant 0 : index
    %c0_100 = arith.constant 0 : index
    %69 = vector.load %arg8[%c0_99, %c0_100] : memref<288x128xf32, #tpu.memory_space<vmem>>, vector<288x128xf32>
    tpu.vector_store %arg8[%c0_99, %c0_100], %68 {strides = array<i32>} : memref<288x128xf32, #tpu.memory_space<vmem>>, vector<288x128xf32>,
    %c0_101 = arith.constant 0 : index
    %c0_102 = arith.constant 0 : index
    %c0_103 = arith.constant 0 : index
    %c2_104 = arith.constant 2 : index
    %c2_105 = arith.constant 2 : index
    %c0_106 = arith.constant 0 : index
    %70 = vector.load %arg2[%c0_101, %c0_102, %c0_103, %c2_104, %c2_105, %c0_106] : memref<1x1x1x20x18x4xbf16, #tpu.memory_space<vmem>>, vector<1x1x1x18x16x4xbf16>
    %71 = vector.shape_cast %70 : vector<1x1x1x18x16x4xbf16> to vector<18x16x4xbf16>
    %72 = vector.shape_cast %71 : vector<18x16x4xbf16> to vector<288x4xbf16>
    %c8 = arith.constant 8 : index
    %c0_107 = arith.constant 0 : index
    %c0_108 = arith.constant 0 : index
    %73 = vector.load %arg3[%c8, %c0_107, %c0_108] : memref<9x4x128xbf16, #tpu.memory_space<vmem>>, vector<1x4x128xbf16>
    %74 = vector.shape_cast %73 : vector<1x4x128xbf16> to vector<4x128xbf16>
    %cst_109 = arith.constant dense<0.000000e+00> : vector<288x128xf32>
    %75 = tpu.matmul %72, %74, %cst_109 {dimension_numbers = #tpu.dot_dimension_numbers<[1], [0], [0], [1], [0, 0, 1, 1], [], []>} : vector<288x4xbf16>, vector<4x128xbf16>, vector<288x128xf32> -> vector<288x128xf32>
    %c0_110 = arith.constant 0 : index
    %c0_111 = arith.constant 0 : index
    %76 = vector.load %arg8[%c0_110, %c0_111] : memref<288x128xf32, #tpu.memory_space<vmem>>, vector<288x128xf32>
    %77 = arith.addf %76, %75 : vector<288x128xf32>
    %c0_112 = arith.constant 0 : index
    %c0_113 = arith.constant 0 : index
    %78 = vector.load %arg8[%c0_112, %c0_113] : memref<288x128xf32, #tpu.memory_space<vmem>>, vector<288x128xf32>
    tpu.vector_store %arg8[%c0_112, %c0_113], %77 {strides = array<i32>} : memref<288x128xf32, #tpu.memory_space<vmem>>, vector<288x128xf32>,
    %c0_114 = arith.constant 0 : index
    %c0_115 = arith.constant 0 : index
    %79 = vector.load %arg8[%c0_114, %c0_115] : memref<288x128xf32, #tpu.memory_space<vmem>>, vector<288x128xf32>
    %c0_116 = arith.constant 0 : index
    %c0_117 = arith.constant 0 : index
    %c0_118 = arith.constant 0 : index
    %80 = vector.load %arg6[%c0_116, %c0_117, %c0_118] : memref<2x1x128xf32, #tpu.memory_space<vmem>>, vector<1x1x128xf32>
    %81 = vector.shape_cast %80 : vector<1x1x128xf32> to vector<1x128xf32>
    %82 = vector.broadcast %81 : vector<1x128xf32> to vector<288x128xf32>
    %83 = arith.addf %79, %82 : vector<288x128xf32>
    %cst_119 = arith.constant 0.000000e+00 : f32
    %84 = vector.broadcast %cst_119 : f32 to vector<288x128xf32>
    %85 = arith.maximumf %83, %84 : vector<288x128xf32>
    %cst_120 = arith.constant 0.000000e+00 : bf16
    %86 = vector.broadcast %cst_120 : bf16 to vector<18x18x128xbf16>
    %c0_121 = arith.constant 0 : index
    %c0_122 = arith.constant 0 : index
    %c0_123 = arith.constant 0 : index
    %87 = vector.load %arg10[%c0_121, %c0_122, %c0_123] : memref<18x18x128xbf16, #tpu.memory_space<vmem>>, vector<18x18x128xbf16>
    tpu.vector_store %arg10[%c0_121, %c0_122, %c0_123], %86 {strides = array<i32>} : memref<18x18x128xbf16, #tpu.memory_space<vmem>>, vector<18x18x128xbf16>,
    %88 = vector.shape_cast %85 : vector<288x128xf32> to vector<18x16x128xf32>
    %89 = arith.truncf %88 : vector<18x16x128xf32> to vector<18x16x128xbf16>
    %c0_124 = arith.constant 0 : index
    %c1_125 = arith.constant 1 : index
    %c0_126 = arith.constant 0 : index
    %90 = vector.load %arg10[%c0_124, %c1_125, %c0_126] : memref<18x18x128xbf16, #tpu.memory_space<vmem>>, vector<18x16x128xbf16>
    tpu.vector_store %arg10[%c0_124, %c1_125, %c0_126], %89 {strides = array<i32>} : memref<18x18x128xbf16, #tpu.memory_space<vmem>>, vector<18x16x128xbf16>,
    %c0_i32 = arith.constant 0 : i32
    %91 = arith.cmpi eq, %arg1, %c0_i32 : i32
    %92 = arith.extui %91 : i1 to i32
    %c0_i32_127 = arith.constant 0 : i32
    %93 = arith.cmpi ne, %92, %c0_i32_127 : i32
    scf.if %93 {
      %cst_247 = arith.constant 0.000000e+00 : bf16
      %184 = vector.broadcast %cst_247 : bf16 to vector<18x128xbf16>
      %c0_248 = arith.constant 0 : index
      %c0_249 = arith.constant 0 : index
      %c0_250 = arith.constant 0 : index
      %185 = vector.load %arg10[%c0_248, %c0_249, %c0_250] : memref<18x18x128xbf16, #tpu.memory_space<vmem>>, vector<1x18x128xbf16>
      %186 = vector.shape_cast %185 : vector<1x18x128xbf16> to vector<18x128xbf16>
      %187 = vector.shape_cast %184 : vector<18x128xbf16> to vector<1x18x128xbf16>
      tpu.vector_store %arg10[%c0_248, %c0_249, %c0_250], %187 {strides = array<i32>} : memref<18x18x128xbf16, #tpu.memory_space<vmem>>, vector<1x18x128xbf16>,
    } else {
    }
    %c0_i32_128 = arith.constant 0 : i32
    %94 = arith.cmpi eq, %arg1, %c0_i32_128 : i32
    %95 = arith.extui %94 : i1 to i32
    %c0_i32_129 = arith.constant 0 : i32
    %96 = arith.cmpi ne, %95, %c0_i32_129 : i32
    scf.if %96 {
      %cst_247 = arith.constant 0.000000e+00 : bf16
      %184 = vector.broadcast %cst_247 : bf16 to vector<18x128xbf16>
      %c17 = arith.constant 17 : index
      %c0_248 = arith.constant 0 : index
      %c0_249 = arith.constant 0 : index
      %185 = vector.load %arg10[%c17, %c0_248, %c0_249] : memref<18x18x128xbf16, #tpu.memory_space<vmem>>, vector<1x18x128xbf16>
      %186 = vector.shape_cast %185 : vector<1x18x128xbf16> to vector<18x128xbf16>
      %187 = vector.shape_cast %184 : vector<18x128xbf16> to vector<1x18x128xbf16>
      tpu.vector_store %arg10[%c17, %c0_248, %c0_249], %187 {strides = array<i32>} : memref<18x18x128xbf16, #tpu.memory_space<vmem>>, vector<1x18x128xbf16>,
    } else {
    }
    %c0_130 = arith.constant 0 : index
    %c0_131 = arith.constant 0 : index
    %c0_132 = arith.constant 0 : index
    %97 = vector.load %arg10[%c0_130, %c0_131, %c0_132] : memref<18x18x128xbf16, #tpu.memory_space<vmem>>, vector<16x16x128xbf16>
    %98 = vector.shape_cast %97 : vector<16x16x128xbf16> to vector<256x128xbf16>
    %c0_133 = arith.constant 0 : index
    %c0_134 = arith.constant 0 : index
    %c0_135 = arith.constant 0 : index
    %99 = vector.load %arg4[%c0_133, %c0_134, %c0_135] : memref<9x128x128xbf16, #tpu.memory_space<vmem>>, vector<1x128x128xbf16>
    %100 = vector.shape_cast %99 : vector<1x128x128xbf16> to vector<128x128xbf16>
    %cst_136 = arith.constant dense<0.000000e+00> : vector<256x128xf32>
    %101 = tpu.matmul %98, %100, %cst_136 {dimension_numbers = #tpu.dot_dimension_numbers<[1], [0], [0], [1], [0, 0, 1, 1], [], []>} : vector<256x128xbf16>, vector<128x128xbf16>, vector<256x128xf32> -> vector<256x128xf32>
    %c0_137 = arith.constant 0 : index
    %c0_138 = arith.constant 0 : index
    %102 = vector.load %arg9[%c0_137, %c0_138] : memref<256x128xf32, #tpu.memory_space<vmem>>, vector<256x128xf32>
    tpu.vector_store %arg9[%c0_137, %c0_138], %101 {strides = array<i32>} : memref<256x128xf32, #tpu.memory_space<vmem>>, vector<256x128xf32>,
    %c0_139 = arith.constant 0 : index
    %c1_140 = arith.constant 1 : index
    %c0_141 = arith.constant 0 : index
    %103 = vector.load %arg10[%c0_139, %c1_140, %c0_141] : memref<18x18x128xbf16, #tpu.memory_space<vmem>>, vector<16x16x128xbf16>
    %104 = vector.shape_cast %103 : vector<16x16x128xbf16> to vector<256x128xbf16>
    %c1_142 = arith.constant 1 : index
    %c0_143 = arith.constant 0 : index
    %c0_144 = arith.constant 0 : index
    %105 = vector.load %arg4[%c1_142, %c0_143, %c0_144] : memref<9x128x128xbf16, #tpu.memory_space<vmem>>, vector<1x128x128xbf16>
    %106 = vector.shape_cast %105 : vector<1x128x128xbf16> to vector<128x128xbf16>
    %cst_145 = arith.constant dense<0.000000e+00> : vector<256x128xf32>
    %107 = tpu.matmul %104, %106, %cst_145 {dimension_numbers = #tpu.dot_dimension_numbers<[1], [0], [0], [1], [0, 0, 1, 1], [], []>} : vector<256x128xbf16>, vector<128x128xbf16>, vector<256x128xf32> -> vector<256x128xf32>
    %c0_146 = arith.constant 0 : index
    %c0_147 = arith.constant 0 : index
    %108 = vector.load %arg9[%c0_146, %c0_147] : memref<256x128xf32, #tpu.memory_space<vmem>>, vector<256x128xf32>
    %109 = arith.addf %108, %107 : vector<256x128xf32>
    %c0_148 = arith.constant 0 : index
    %c0_149 = arith.constant 0 : index
    %110 = vector.load %arg9[%c0_148, %c0_149] : memref<256x128xf32, #tpu.memory_space<vmem>>, vector<256x128xf32>
    tpu.vector_store %arg9[%c0_148, %c0_149], %109 {strides = array<i32>} : memref<256x128xf32, #tpu.memory_space<vmem>>, vector<256x128xf32>,
    %c0_150 = arith.constant 0 : index
    %c2_151 = arith.constant 2 : index
    %c0_152 = arith.constant 0 : index
    %111 = vector.load %arg10[%c0_150, %c2_151, %c0_152] : memref<18x18x128xbf16, #tpu.memory_space<vmem>>, vector<16x16x128xbf16>
    %112 = vector.shape_cast %111 : vector<16x16x128xbf16> to vector<256x128xbf16>
    %c2_153 = arith.constant 2 : index
    %c0_154 = arith.constant 0 : index
    %c0_155 = arith.constant 0 : index
    %113 = vector.load %arg4[%c2_153, %c0_154, %c0_155] : memref<9x128x128xbf16, #tpu.memory_space<vmem>>, vector<1x128x128xbf16>
    %114 = vector.shape_cast %113 : vector<1x128x128xbf16> to vector<128x128xbf16>
    %cst_156 = arith.constant dense<0.000000e+00> : vector<256x128xf32>
    %115 = tpu.matmul %112, %114, %cst_156 {dimension_numbers = #tpu.dot_dimension_numbers<[1], [0], [0], [1], [0, 0, 1, 1], [], []>} : vector<256x128xbf16>, vector<128x128xbf16>, vector<256x128xf32> -> vector<256x128xf32>
    %c0_157 = arith.constant 0 : index
    %c0_158 = arith.constant 0 : index
    %116 = vector.load %arg9[%c0_157, %c0_158] : memref<256x128xf32, #tpu.memory_space<vmem>>, vector<256x128xf32>
    %117 = arith.addf %116, %115 : vector<256x128xf32>
    %c0_159 = arith.constant 0 : index
    %c0_160 = arith.constant 0 : index
    %118 = vector.load %arg9[%c0_159, %c0_160] : memref<256x128xf32, #tpu.memory_space<vmem>>, vector<256x128xf32>
    tpu.vector_store %arg9[%c0_159, %c0_160], %117 {strides = array<i32>} : memref<256x128xf32, #tpu.memory_space<vmem>>, vector<256x128xf32>,
    %c1_161 = arith.constant 1 : index
    %c0_162 = arith.constant 0 : index
    %c0_163 = arith.constant 0 : index
    %119 = vector.load %arg10[%c1_161, %c0_162, %c0_163] : memref<18x18x128xbf16, #tpu.memory_space<vmem>>, vector<16x16x128xbf16>
    %120 = vector.shape_cast %119 : vector<16x16x128xbf16> to vector<256x128xbf16>
    %c3_164 = arith.constant 3 : index
    %c0_165 = arith.constant 0 : index
    %c0_166 = arith.constant 0 : index
    %121 = vector.load %arg4[%c3_164, %c0_165, %c0_166] : memref<9x128x128xbf16, #tpu.memory_space<vmem>>, vector<1x128x128xbf16>
    %122 = vector.shape_cast %121 : vector<1x128x128xbf16> to vector<128x128xbf16>
    %cst_167 = arith.constant dense<0.000000e+00> : vector<256x128xf32>
    %123 = tpu.matmul %120, %122, %cst_167 {dimension_numbers = #tpu.dot_dimension_numbers<[1], [0], [0], [1], [0, 0, 1, 1], [], []>} : vector<256x128xbf16>, vector<128x128xbf16>, vector<256x128xf32> -> vector<256x128xf32>
    %c0_168 = arith.constant 0 : index
    %c0_169 = arith.constant 0 : index
    %124 = vector.load %arg9[%c0_168, %c0_169] : memref<256x128xf32, #tpu.memory_space<vmem>>, vector<256x128xf32>
    %125 = arith.addf %124, %123 : vector<256x128xf32>
    %c0_170 = arith.constant 0 : index
    %c0_171 = arith.constant 0 : index
    %126 = vector.load %arg9[%c0_170, %c0_171] : memref<256x128xf32, #tpu.memory_space<vmem>>, vector<256x128xf32>
    tpu.vector_store %arg9[%c0_170, %c0_171], %125 {strides = array<i32>} : memref<256x128xf32, #tpu.memory_space<vmem>>, vector<256x128xf32>,
    %c1_172 = arith.constant 1 : index
    %c1_173 = arith.constant 1 : index
    %c0_174 = arith.constant 0 : index
    %127 = vector.load %arg10[%c1_172, %c1_173, %c0_174] : memref<18x18x128xbf16, #tpu.memory_space<vmem>>, vector<16x16x128xbf16>
    %128 = vector.shape_cast %127 : vector<16x16x128xbf16> to vector<256x128xbf16>
    %c4_175 = arith.constant 4 : index
    %c0_176 = arith.constant 0 : index
    %c0_177 = arith.constant 0 : index
    %129 = vector.load %arg4[%c4_175, %c0_176, %c0_177] : memref<9x128x128xbf16, #tpu.memory_space<vmem>>, vector<1x128x128xbf16>
    %130 = vector.shape_cast %129 : vector<1x128x128xbf16> to vector<128x128xbf16>
    %cst_178 = arith.constant dense<0.000000e+00> : vector<256x128xf32>
    %131 = tpu.matmul %128, %130, %cst_178 {dimension_numbers = #tpu.dot_dimension_numbers<[1], [0], [0], [1], [0, 0, 1, 1], [], []>} : vector<256x128xbf16>, vector<128x128xbf16>, vector<256x128xf32> -> vector<256x128xf32>
    %c0_179 = arith.constant 0 : index
    %c0_180 = arith.constant 0 : index
    %132 = vector.load %arg9[%c0_179, %c0_180] : memref<256x128xf32, #tpu.memory_space<vmem>>, vector<256x128xf32>
    %133 = arith.addf %132, %131 : vector<256x128xf32>
    %c0_181 = arith.constant 0 : index
    %c0_182 = arith.constant 0 : index
    %134 = vector.load %arg9[%c0_181, %c0_182] : memref<256x128xf32, #tpu.memory_space<vmem>>, vector<256x128xf32>
    tpu.vector_store %arg9[%c0_181, %c0_182], %133 {strides = array<i32>} : memref<256x128xf32, #tpu.memory_space<vmem>>, vector<256x128xf32>,
    %c1_183 = arith.constant 1 : index
    %c2_184 = arith.constant 2 : index
    %c0_185 = arith.constant 0 : index
    %135 = vector.load %arg10[%c1_183, %c2_184, %c0_185] : memref<18x18x128xbf16, #tpu.memory_space<vmem>>, vector<16x16x128xbf16>
    %136 = vector.shape_cast %135 : vector<16x16x128xbf16> to vector<256x128xbf16>
    %c5_186 = arith.constant 5 : index
    %c0_187 = arith.constant 0 : index
    %c0_188 = arith.constant 0 : index
    %137 = vector.load %arg4[%c5_186, %c0_187, %c0_188] : memref<9x128x128xbf16, #tpu.memory_space<vmem>>, vector<1x128x128xbf16>
    %138 = vector.shape_cast %137 : vector<1x128x128xbf16> to vector<128x128xbf16>
    %cst_189 = arith.constant dense<0.000000e+00> : vector<256x128xf32>
    %139 = tpu.matmul %136, %138, %cst_189 {dimension_numbers = #tpu.dot_dimension_numbers<[1], [0], [0], [1], [0, 0, 1, 1], [], []>} : vector<256x128xbf16>, vector<128x128xbf16>, vector<256x128xf32> -> vector<256x128xf32>
    %c0_190 = arith.constant 0 : index
    %c0_191 = arith.constant 0 : index
    %140 = vector.load %arg9[%c0_190, %c0_191] : memref<256x128xf32, #tpu.memory_space<vmem>>, vector<256x128xf32>
    %141 = arith.addf %140, %139 : vector<256x128xf32>
    %c0_192 = arith.constant 0 : index
    %c0_193 = arith.constant 0 : index
    %142 = vector.load %arg9[%c0_192, %c0_193] : memref<256x128xf32, #tpu.memory_space<vmem>>, vector<256x128xf32>
    tpu.vector_store %arg9[%c0_192, %c0_193], %141 {strides = array<i32>} : memref<256x128xf32, #tpu.memory_space<vmem>>, vector<256x128xf32>,
    %c2_194 = arith.constant 2 : index
    %c0_195 = arith.constant 0 : index
    %c0_196 = arith.constant 0 : index
    %143 = vector.load %arg10[%c2_194, %c0_195, %c0_196] : memref<18x18x128xbf16, #tpu.memory_space<vmem>>, vector<16x16x128xbf16>
    %144 = vector.shape_cast %143 : vector<16x16x128xbf16> to vector<256x128xbf16>
    %c6_197 = arith.constant 6 : index
    %c0_198 = arith.constant 0 : index
    %c0_199 = arith.constant 0 : index
    %145 = vector.load %arg4[%c6_197, %c0_198, %c0_199] : memref<9x128x128xbf16, #tpu.memory_space<vmem>>, vector<1x128x128xbf16>
    %146 = vector.shape_cast %145 : vector<1x128x128xbf16> to vector<128x128xbf16>
    %cst_200 = arith.constant dense<0.000000e+00> : vector<256x128xf32>
    %147 = tpu.matmul %144, %146, %cst_200 {dimension_numbers = #tpu.dot_dimension_numbers<[1], [0], [0], [1], [0, 0, 1, 1], [], []>} : vector<256x128xbf16>, vector<128x128xbf16>, vector<256x128xf32> -> vector<256x128xf32>
    %c0_201 = arith.constant 0 : index
    %c0_202 = arith.constant 0 : index
    %148 = vector.load %arg9[%c0_201, %c0_202] : memref<256x128xf32, #tpu.memory_space<vmem>>, vector<256x128xf32>
    %149 = arith.addf %148, %147 : vector<256x128xf32>
    %c0_203 = arith.constant 0 : index
    %c0_204 = arith.constant 0 : index
    %150 = vector.load %arg9[%c0_203, %c0_204] : memref<256x128xf32, #tpu.memory_space<vmem>>, vector<256x128xf32>
    tpu.vector_store %arg9[%c0_203, %c0_204], %149 {strides = array<i32>} : memref<256x128xf32, #tpu.memory_space<vmem>>, vector<256x128xf32>,
    %c2_205 = arith.constant 2 : index
    %c1_206 = arith.constant 1 : index
    %c0_207 = arith.constant 0 : index
    %151 = vector.load %arg10[%c2_205, %c1_206, %c0_207] : memref<18x18x128xbf16, #tpu.memory_space<vmem>>, vector<16x16x128xbf16>
    %152 = vector.shape_cast %151 : vector<16x16x128xbf16> to vector<256x128xbf16>
    %c7_208 = arith.constant 7 : index
    %c0_209 = arith.constant 0 : index
    %c0_210 = arith.constant 0 : index
    %153 = vector.load %arg4[%c7_208, %c0_209, %c0_210] : memref<9x128x128xbf16, #tpu.memory_space<vmem>>, vector<1x128x128xbf16>
    %154 = vector.shape_cast %153 : vector<1x128x128xbf16> to vector<128x128xbf16>
    %cst_211 = arith.constant dense<0.000000e+00> : vector<256x128xf32>
    %155 = tpu.matmul %152, %154, %cst_211 {dimension_numbers = #tpu.dot_dimension_numbers<[1], [0], [0], [1], [0, 0, 1, 1], [], []>} : vector<256x128xbf16>, vector<128x128xbf16>, vector<256x128xf32> -> vector<256x128xf32>
    %c0_212 = arith.constant 0 : index
    %c0_213 = arith.constant 0 : index
    %156 = vector.load %arg9[%c0_212, %c0_213] : memref<256x128xf32, #tpu.memory_space<vmem>>, vector<256x128xf32>
    %157 = arith.addf %156, %155 : vector<256x128xf32>
    %c0_214 = arith.constant 0 : index
    %c0_215 = arith.constant 0 : index
    %158 = vector.load %arg9[%c0_214, %c0_215] : memref<256x128xf32, #tpu.memory_space<vmem>>, vector<256x128xf32>
    tpu.vector_store %arg9[%c0_214, %c0_215], %157 {strides = array<i32>} : memref<256x128xf32, #tpu.memory_space<vmem>>, vector<256x128xf32>,
    %c2_216 = arith.constant 2 : index
    %c2_217 = arith.constant 2 : index
    %c0_218 = arith.constant 0 : index
    %159 = vector.load %arg10[%c2_216, %c2_217, %c0_218] : memref<18x18x128xbf16, #tpu.memory_space<vmem>>, vector<16x16x128xbf16>
    %160 = vector.shape_cast %159 : vector<16x16x128xbf16> to vector<256x128xbf16>
    %c8_219 = arith.constant 8 : index
    %c0_220 = arith.constant 0 : index
    %c0_221 = arith.constant 0 : index
    %161 = vector.load %arg4[%c8_219, %c0_220, %c0_221] : memref<9x128x128xbf16, #tpu.memory_space<vmem>>, vector<1x128x128xbf16>
    %162 = vector.shape_cast %161 : vector<1x128x128xbf16> to vector<128x128xbf16>
    %cst_222 = arith.constant dense<0.000000e+00> : vector<256x128xf32>
    %163 = tpu.matmul %160, %162, %cst_222 {dimension_numbers = #tpu.dot_dimension_numbers<[1], [0], [0], [1], [0, 0, 1, 1], [], []>} : vector<256x128xbf16>, vector<128x128xbf16>, vector<256x128xf32> -> vector<256x128xf32>
    %c0_223 = arith.constant 0 : index
    %c0_224 = arith.constant 0 : index
    %164 = vector.load %arg9[%c0_223, %c0_224] : memref<256x128xf32, #tpu.memory_space<vmem>>, vector<256x128xf32>
    %165 = arith.addf %164, %163 : vector<256x128xf32>
    %c0_225 = arith.constant 0 : index
    %c0_226 = arith.constant 0 : index
    %166 = vector.load %arg9[%c0_225, %c0_226] : memref<256x128xf32, #tpu.memory_space<vmem>>, vector<256x128xf32>
    tpu.vector_store %arg9[%c0_225, %c0_226], %165 {strides = array<i32>} : memref<256x128xf32, #tpu.memory_space<vmem>>, vector<256x128xf32>,
    %c0_227 = arith.constant 0 : index
    %c0_228 = arith.constant 0 : index
    %c0_229 = arith.constant 0 : index
    %c2_230 = arith.constant 2 : index
    %c1_231 = arith.constant 1 : index
    %c0_232 = arith.constant 0 : index
    %167 = vector.load %arg2[%c0_227, %c0_228, %c0_229, %c2_230, %c1_231, %c0_232] : memref<1x1x1x20x18x4xbf16, #tpu.memory_space<vmem>>, vector<1x1x1x16x16x4xbf16>
    %168 = vector.shape_cast %167 : vector<1x1x1x16x16x4xbf16> to vector<16x16x4xbf16>
    %169 = vector.shape_cast %168 : vector<16x16x4xbf16> to vector<256x4xbf16>
    %c0_233 = arith.constant 0 : index
    %c0_234 = arith.constant 0 : index
    %170 = vector.load %arg5[%c0_233, %c0_234] : memref<4x128xbf16, #tpu.memory_space<vmem>>, vector<4x128xbf16>
    %cst_235 = arith.constant dense<0.000000e+00> : vector<256x128xf32>
    %171 = tpu.matmul %169, %170, %cst_235 {dimension_numbers = #tpu.dot_dimension_numbers<[1], [0], [0], [1], [0, 0, 1, 1], [], []>} : vector<256x4xbf16>, vector<4x128xbf16>, vector<256x128xf32> -> vector<256x128xf32>
    %c0_236 = arith.constant 0 : index
    %c0_237 = arith.constant 0 : index
    %172 = vector.load %arg9[%c0_236, %c0_237] : memref<256x128xf32, #tpu.memory_space<vmem>>, vector<256x128xf32>
    %c1_238 = arith.constant 1 : index
    %c0_239 = arith.constant 0 : index
    %c0_240 = arith.constant 0 : index
    %173 = vector.load %arg6[%c1_238, %c0_239, %c0_240] : memref<2x1x128xf32, #tpu.memory_space<vmem>>, vector<1x1x128xf32>
    %174 = vector.shape_cast %173 : vector<1x1x128xf32> to vector<1x128xf32>
    %175 = vector.broadcast %174 : vector<1x128xf32> to vector<256x128xf32>
    %176 = arith.addf %172, %175 : vector<256x128xf32>
    %177 = arith.addf %176, %171 : vector<256x128xf32>
    %cst_241 = arith.constant 0.000000e+00 : f32
    %178 = vector.broadcast %cst_241 : f32 to vector<256x128xf32>
    %179 = arith.maximumf %177, %178 : vector<256x128xf32>
    %180 = vector.shape_cast %179 : vector<256x128xf32> to vector<16x16x128xf32>
    %c0_242 = arith.constant 0 : index
    %c0_243 = arith.constant 0 : index
    %c0_244 = arith.constant 0 : index
    %c0_245 = arith.constant 0 : index
    %c0_246 = arith.constant 0 : index
    %181 = vector.load %arg7[%c0_242, %c0_243, %c0_244, %c0_245, %c0_246] : memref<1x1x16x16x128xf32, #tpu.memory_space<vmem>>, vector<1x1x16x16x128xf32>
    %182 = vector.shape_cast %181 : vector<1x1x16x16x128xf32> to vector<16x16x128xf32>
    %183 = vector.shape_cast %180 : vector<16x16x128xf32> to vector<1x1x16x16x128xf32>
    tpu.vector_store %arg7[%c0_242, %c0_243, %c0_244, %c0_245, %c0_246], %183 {strides = array<i32>} : memref<1x1x16x16x128xf32, #tpu.memory_space<vmem>>, vector<1x1x16x16x128xf32>,
    return
  }
  func.func @transform_0(%arg0: i32, %arg1: i32) -> (i32, i32, i32, i32, i32, i32) {
    %c0_i32 = arith.constant 0 : i32
    %c0_i32_0 = arith.constant 0 : i32
    %c0_i32_1 = arith.constant 0 : i32
    %c0_i32_2 = arith.constant 0 : i32
    %c0_i32_3 = arith.constant 0 : i32
    return %arg0, %arg1, %c0_i32, %c0_i32_0, %c0_i32_1, %c0_i32_2 : i32, i32, i32, i32, i32, i32
  }
  func.func @transform_1(%arg0: i32, %arg1: i32) -> (i32, i32, i32) {
    %c0_i32 = arith.constant 0 : i32
    %c0_i32_0 = arith.constant 0 : i32
    %c0_i32_1 = arith.constant 0 : i32
    %c0_i32_2 = arith.constant 0 : i32
    return %c0_i32, %c0_i32_0, %c0_i32_1 : i32, i32, i32
  }
  func.func @transform_2(%arg0: i32, %arg1: i32) -> (i32, i32, i32) {
    %c0_i32 = arith.constant 0 : i32
    %c0_i32_0 = arith.constant 0 : i32
    %c0_i32_1 = arith.constant 0 : i32
    %c0_i32_2 = arith.constant 0 : i32
    return %c0_i32, %c0_i32_0, %c0_i32_1 : i32, i32, i32
  }
  func.func @transform_3(%arg0: i32, %arg1: i32) -> (i32, i32) {
    %c0_i32 = arith.constant 0 : i32
    %c0_i32_0 = arith.constant 0 : i32
    %c0_i32_1 = arith.constant 0 : i32
    return %c0_i32, %c0_i32_0 : i32, i32
  }
  func.func @transform_4(%arg0: i32, %arg1: i32) -> (i32, i32, i32) {
    %c0_i32 = arith.constant 0 : i32
    %c0_i32_0 = arith.constant 0 : i32
    %c0_i32_1 = arith.constant 0 : i32
    %c0_i32_2 = arith.constant 0 : i32
    return %c0_i32, %c0_i32_0, %c0_i32_1 : i32, i32, i32
  }
  func.func @transform_5(%arg0: i32, %arg1: i32) -> (i32, i32, i32, i32, i32) {
    %c0_i32 = arith.constant 0 : i32
    %c0_i32_0 = arith.constant 0 : i32
    %c0_i32_1 = arith.constant 0 : i32
    %c0_i32_2 = arith.constant 0 : i32
    return %arg0, %arg1, %c0_i32, %c0_i32_0, %c0_i32_1 : i32, i32, i32, i32, i32
  }
}

</mosaic_0001>

<bundles_post_ra>
// kernel: tpu_custom_call.1
= control target key start
LH: loop header
LB: loop body
LE: loop exit
PB: predicated region body
PF: predicated region fallthrough
CT: control target
= control target key end

     0   :  { %10 = vsyncpa [#allocation6], 0  ;;  %s19421_s0 = inlined_call_operand.vmem [shape: bf16[2,1,1,20,18,4], index: 0, kind: input, shape index: {}]   ;;  %s19422_s1 = inlined_call_operand.vmem [shape: bf16[9,4,128], index: 1, kind: input, shape index: {}]   ;;  %s19423_s2 = inlined_call_operand.hbm [shape: bf16[9,128,128], index: 2, kind: input, shape index: {}]   ;;  %s19424_s3 = inlined_call_operand.vmem [shape: bf16[4,128], index: 3, kind: input, shape index: {}]   ;;  %s19425_s4 = inlined_call_operand.vmem [shape: f32[2,1,128], index: 4, kind: input, shape index: {}]   ;;  %s19426_s5 = inlined_call_operand.hbm [shape: f32[2,1,16,16,128], index: 5, kind: output, shape index: {}]  }
   0x1   :  { %11 = vsyncpa [#allocation7], 0 }
   0x2   :  { %13 = vsyncpa [#allocation7 + $0x1], 0  ;;  %s16787_s18 = smov 0   ;;  %s16789_s19 = smov 0  }
   0x3   :  { %s16791_s20 = smov 0   ;;  %s16793_s21 = smov 0  }
   0x4   :  { %s16795_s22 = smov 0   ;;  %s16797_s23 = smov 0  }
   0x5 LB: > { %s13438_s24 = sadd.s32 4294967295, %s16748_s23   ;;  %s13439_s25 = sadd.s32 4294967294, %s16748_s23   ;;  %s16748_s23 = sphi %s16797_s23, %s19_s23   ;;  %s16744_s22 = sphi %s16795_s22, %s19454_s22   ;;  %s16740_s21 = sphi %s16793_s21, %s19453_s21   ;;  %s16736_s20 = sphi %s16791_s20, %s19452_s20   ;;  %s16732_s19 = sphi %s16789_s19, %s19451_s19   ;;  %s16728_s18 = sphi %s16787_s18, %s19450_s18  }
   0x6   : > { %s31_s26 = sadd.s32 1, %s16744_s22  ;;  %s152_s27 = sadd.s32 1, %s16736_s20 }
   0x7   : > { %p33_p0 = scmp.ge.s32.totalorder %s31_s26, 2  ;;  %p162_p1 = scmp.ne.s32.totalorder %s16736_s20, %s16732_s19 }
   0x8   : > { %p163_p2 = scmp.eq.s32.totalorder %s13438_s24, 1  ;;  %p168_p3 = scmp.ne.s32.totalorder %s16732_s19, %s16728_s18 }
   0x9   : > { %s19456_s26 = smov (%p33_p0, %s31_s26), 0  ;;  %p169_p5 = scmp.eq.s32.totalorder %s13439_s25, 1 }
   0xa   : > { %p16827_p4 = por %p163_p2, %p162_p1  ;;  %s147_s29 = ssub.s32 %s16744_s22, %s19456_s26 }
   0xb   : > { %p13440_p6 = scmp.ge.s32.totalorder %s16748_s23, 1  ;;  %p150_p7 = scmp.eq.s32.totalorder %s147_s29, 0 }
   0xc   : > { %s19431_s28 = scalar_select %p16827_p4, 1, 0 }
   0xd   : > { %p16834_p8 = por %p169_p5, %p168_p3  ;;  %p176_p9 = scmp.lt.s32.totalorder %s16748_s23, 3 }
   0xe   : > { %s16840_s6 = scalar_select %p150_p7, %s16736_s20, %s152_s27  }
   0xf   : > { %s19432_s30 = scalar_select %p16834_p8, 1, 0 }
  0x10   : > { %p16842_p10 = pnand %p13440_p6, %p176_p9  ;;  %p16846_p11 = scmp.eq.s32.totalorder %s13438_s24, 0 }
  0x11   : > { %s16750_s9 = smov [#allocation5]   ;;  %s16638_s14 = scalar_lea.hbm %s19423_s2, 9216 }
  0x12   : > { %s19433_s7 = scalar_select %p16842_p10, 1, 0 }
  0x13   : > { %s19434_s8 = scalar_select %p16846_p11, 1, 0 }
  0x14   : > { %p16399_p12 = pneg %p16842_p10  ;;  %s191_s10 = sshll.u32 %s16750_s9, 4  ;;  %s192_s10 = int_to_ptr.vmem [resolvable:$true] %s191_s10 }
  0x15   : > { %p16639_p0 = scmp.ne.s32.totalorder %s19423_s2, %s16638_s14  ;;  %p16645_p5 = scmp.lt.u32.totalorder %s16638_s14, %s19423_s2 }
  0x16   : > { %p16854_p13 = pnand %p16846_p11, %p16399_p12 }
  0x18   : > { %p16640_p1 = pneg %p16854_p13 }
  0x1a   : > { %p16641_p2 = pnand %p16640_p1, %p16639_p0 }
  0x1c   : > { %p16642_p3 = pneg %p16641_p2 }
  0x1e   : > { %p16647_p6 = pnand %p16645_p5, %p16642_p3 }
  0x20   : > { %16650 = shalt.err (!%p16647_p6)
}
  0x21   : > { %s16651_s25 = scalar_lea.vmem %s192_s10, 9216  ;;  %p16659_p8 = scmp.lt.s32.totalorder %s192_s10, %s192_s10 }
  0x22   : > { %p16652_p7 = scmp.ne.s32.totalorder %s192_s10, %s16651_s25  ;;  %p16660_p4 = scmp.lt.s32.totalorder %s16651_s25, %s16651_s25 }
  0x24   : > { %p16654_p9 = pnand %p16652_p7, %p16640_p1  ;;  %p16661_p11 = por %p16660_p4, %p16659_p8 }
  0x26   : > { %p16655_p12 = pneg %p16654_p9 }
  0x28   : > { %p16662_p10 = pnand %p16661_p11, %p16655_p12 }
  0x2a   : > { %16665 = shalt.err (!%p16662_p10)
}
  0x2b   : > { %s16751_s27 = smov 64   ;;  %s16752_s29 = smov 4  }
  0x2c   : > { %16402 = dma.hbm_to_vmem [thread:$0]  (!%p16854_p13), %s19423_s2, 9216, %s192_s10, [#allocation6], %s16751_s27, %s16751_s27, %s16752_s29  }
  0x2d   : > { %p19436_p0 = scmp.ne.s32.totalorder %s19433_s7, 0 }
  0x2e   : > { %p19437_p2 = scmp.ne.s32.totalorder (!%p19436_p0), %s19434_s8, 0 }
  0x2f   : > { %225 = sbr.rel (%p19436_p0) target bundleno = 1764 (0x6e4), region = 40 }
  0x36   : > { %16719 = dma.done.wait (%p19437_p2), [#allocation6], 9216  }
  0x37   : > { %16721 = vsyncadd (%p19437_p2), [#allocation6], 4294958080  ;;  %p257_p4 = scmp.lt.s32.totalorder %s16740_s21, 1  ;;  %vm449_vm0 = vcmask 1041408   ;;  %vm394_vm1 = vcmask 31744   ;;  %vm1661_vm5 = vcmask 1042432  }
  0x38   : > { %v303_v0 = vld [vmem:[%s19422_s1] sm:$0x3]  ;;  %v13483_v4 = vld [vmem:[%s19422_s1 + $0x2] sm:$0x3]  ;;  %v16914_v11 = vld [vmem:[%s19422_s1 + $0x4] sm:$0x3] }
  0x39   : > { %s258_s13 = scalar_select %p257_p4, %s16740_s21, 1  ;;  %16382 = vmatprep.subr.msk.bf16.mxu0 %vm449_vm0, %v303_v0  ;;  %v451_v1 = vsel %vm449_vm0, %v303_v0, 0  ;;  %v1266_v5 = vsel %vm449_vm0, %v13483_v4, 0  ;;  %vm720_vm2 = vsmask.f32 3328  ;;  %vm1662_vm6 = vcmask 1046532  }
  0x3a   : > { %14951 = vmatpush3.bf16.msra.mxu0 %v451_v1  ;;  %vm721_vm3 = vsmask.f32 7440  ;;  %vm17220_vm7 = vmor %vm1661_vm5, %vm1662_vm6  ;;  %vm6802_vm8 = vcmask 1043456   ;;  %vm6803_vm9 = vsmask.f32 7938  ;;  %vm6809_vm12 = vcmask 1040384  }
  0x3b   : > { %s16392_s14 = smul.u32 240, %s258_s13  ;;  %16383 = vmatprep.subr.msk.bf16.mxu0 %vm449_vm0, %v13483_v4  ;;  %vm16964_vm4 = vmor %vm720_vm2, %vm721_vm3  ;;  %vm6439_vm10 = vsmask.f32 256  ;;  %vm6440_vm11 = vsmask.f32 4368  ;;  %s14545_s11 = sshll.u32 %s16740_s21, 12 }
  0x3c   : > { %vm18309_vm13 = vmand %vm6802_vm8, %vm6803_vm9  ;;  %s19366_s8 = scalar_lea.hbm %s19426_s5, %s14545_s11  ;;  %p19448_p10 = scmp.ne.s32.totalorder %s19431_s28, 0 }
  0x3d   : > { %s16885_s16 = scalar_lea.vmem %s19421_s0, %s16392_s14  ;;  %vm18316_vm14 = vmor %vm6439_vm10, %vm6440_vm11  ;;  %s16754_s24 = smov [#allocation8]  }
  0x3e   : > { %v16464_v2 = vld [vmem:[%s16885_s16] sm:$0xff]   ;;  %v16465_v3 = vld [vmem:[%s16885_s16 + $0xc] sm:$0xff]   ;;  %v16466_v6 = vld [vmem:[%s16885_s16 + $0x18] sm:$0xff]   ;;  %s16670_s25 = sshll.u32 %s16754_s24, 4  ;;  %s16671_s25 = int_to_ptr.vmem [resolvable:$false] %s16670_s25 }
  0x3f   : > { %14952 = vmatprep.mubr.msk.bf16.mxu0 %vm394_vm1, %v16464_v2  ;;  %v16467_v7 = vld [vmem:[%s16885_s16 + $0x24] sm:$0xff]   ;;  %v16468_v8 = vld [vmem:[%s16885_s16 + $0x30] sm:$0xff]   ;;  %v16469_v9 = vld [vmem:[%s16885_s16 + $0x3c] sm:$0xff]   ;;  %s16672_s27 = scalar_lea.vmem %s16671_s25, 8192 }
  0x40   : > { %14953 = vmatmul.mubr.msk.bf16.vlgmr.msra.gmra.mrb[0].mxu0 %vm394_vm1, %v16465_v3  ;;  %v16470_v10 = vld [vmem:[%s16885_s16 + $0x48] sm:$0xff]   ;;  %v16471_v12 = vld [vmem:[%s16885_s16 + $0x54] sm:$0xff]   ;;  %v16472_v13 = vld [vmem:[%s16885_s16 + $0x60] sm:$0xff]  }
  0x41   : > { %14989 = vmatpush3.bf16.msra.mxu0 %v1266_v5  ;;  %14956 = vmatprep.mubr.msk.bf16.mxu0 %vm394_vm1, %v16466_v6  ;;  %v16473_v14 = vld [vmem:[%s16885_s16 + $0x6c] sm:$0xff]   ;;  %v16474_v15 = vld [vmem:[%s16885_s16 + $0x78] sm:$0xff]   ;;  %v666_v16 = vld [vmem:[%s16885_s16] sm:$0xf] }
  0x42   : > { %16384 = vmatprep.subr.msk.bf16.mxu0 %vm449_vm0, %v16914_v11  ;;  %v16475_v17 = vld [vmem:[%s16885_s16 + $0x84] sm:$0xff]   ;;  %v16476_v19 = vld [vmem:[%s16885_s16 + $0x90] sm:$0xff]   ;;  %v669_v20 = vld [vmem:[%s16885_s16 + $0xc] sm:$0xf]  ;;  %v724_v22 = vshrl.u32 %v666_v16, 16  ;;  %v727_v23 = vshll.u32 %v666_v16, 16 }
  0x43   : > { %v667_v18 = vld [vmem:[%s16885_s16 + $0x4] sm:$0xf]  ;;  %v670_v21 = vld [vmem:[%s16885_s16 + $0x10] sm:$0xf]  ;;  %v672_v24 = vld [vmem:[%s16885_s16 + $0x18] sm:$0xf] }
  0x44   : > { %v673_v25 = vld [vmem:[%s16885_s16 + $0x1c] sm:$0xf]  ;;  %v733_v26 = vshll.u32 %v667_v18, 16  ;;  %v737_v27 = vshrl.u32 %v667_v18, 16  ;;  %v675_v28 = vld [vmem:[%s16885_s16 + $0x24] sm:$0xf]  ;;  %vm18322_vm15 = vmand %vm6809_vm12, %vm6439_vm10 }
  0x45   : > { %v748_v29 = vshrl.u32 %v669_v20, 16  ;;  %v751_v30 = vshll.u32 %v669_v20, 16  ;;  %v757_v31 = vshll.u32 %v670_v21, 16  ;;  %v761_v32 = vshrl.u32 %v670_v21, 16  ;;  %v676_v33 = vld [vmem:[%s16885_s16 + $0x28] sm:$0xf] }
  0x46   : > { %v772_v34 = vshrl.u32 %v672_v24, 16  ;;  %v775_v35 = vshll.u32 %v672_v24, 16  ;;  %v781_v36 = vshll.u32 %v673_v25, 16  ;;  %v785_v37 = vshrl.u32 %v673_v25, 16  ;;  %v16477_v38 = vld [vmem:[%s16885_s16 + $0x9c] sm:$0xff]   ;;  %v16478_v43 = vld [vmem:[%s16885_s16 + $0xa8] sm:$0xff]  }
  0x47   : > { %v726_v39 = vrot.slane %v724_v22, 4  ;;  %v729_v40 = vrot.slane %v727_v23, 5  ;;  %v796_v41 = vshrl.u32 %v675_v28, 16  ;;  %v799_v42 = vshll.u32 %v675_v28, 16  ;;  %v668_v44 = vld [vmem:[%s16885_s16 + $0x8] sm:$0x1] }
  0x48   : > { %14957 = vmatmul.mubr.msk.bf16.gmra.mrb[4].mxu0 %vm394_vm1, %v16467_v7  ;;  %v16941_v45 = vrot.slane %v733_v26, 5  ;;  %v739_v46 = vrot.slane %v737_v27, 4  ;;  %v805_v47 = vshll.u32 %v676_v33, 16  ;;  %v809_v48 = vshrl.u32 %v676_v33, 16  ;;  %v678_v53 = vld [vmem:[%s16885_s16 + $0x30] sm:$0xf] }
  0x49   : > { %14960 = vmatprep.mubr.msk.bf16.mxu0 %vm394_vm1, %v16468_v8  ;;  %v750_v49 = vrot.slane %v748_v29, 4  ;;  %v753_v50 = vrot.slane %v751_v30, 5  ;;  %v16943_v51 = vrot.slane %v757_v31, 5  ;;  %v763_v52 = vrot.slane %v761_v32, 4  ;;  %v671_v54 = vld [vmem:[%s16885_s16 + $0x14] sm:$0x1] }
  0x4a   : > { %v774_v55 = vrot.slane %v772_v34, 4  ;;  %v777_v56 = vrot.slane %v775_v35, 5  ;;  %v16947_v57 = vrot.slane %v781_v36, 5  ;;  %v787_v58 = vrot.slane %v785_v37, 4  ;;  %v674_v60 = vld [vmem:[%s16885_s16 + $0x20] sm:$0x1] }
  0x4b   : > { %v743_v59 = vshll.u32 %v668_v44, 16  ;;  %v798_v61 = vrot.slane %v796_v41, 4  ;;  %v801_v62 = vrot.slane %v799_v42, 5  ;;  %v16950_v63 = vrot.slane %v805_v47, 5  ;;  %v679_v1 = vld [vmem:[%s16885_s16 + $0x34] sm:$0xf] }
  0x4c   : > { %v811_v0 = vrot.slane %v809_v48, 4  ;;  %v820_v2 = vshrl.u32 %v678_v53, 16  ;;  %v823_v3 = vshll.u32 %v678_v53, 16  ;;  %v730_v4 = vor.u32 %v729_v40, %v726_v39  ;;  %v677_v8 = vld [vmem:[%s16885_s16 + $0x2c] sm:$0x1]  ;;  %v16479_v22 = vld [vmem:[%s16885_s16 + $0xb4] sm:$0xff]  }
  0x4d   : > { %v740_v5 = vor.u32 %v739_v46, %v16941_v45  ;;  %v754_v6 = vor.u32 %v753_v50, %v750_v49  ;;  %v767_v7 = vshll.u32 %v671_v54, 16  ;;  %v829_v16 = vshll.u32 %v679_v1, 16  ;;  %v16480_v27 = vld [vmem:[%s16885_s16 + $0xc0] sm:$0xff]   ;;  %v680_v34 = vld [vmem:[%s16885_s16 + $0x38] sm:$0x1]  ;;  %v16481_v53 = vld [vmem:[%s16885_s16 + $0xcc] sm:$0xff]  }
  0x4e   : > { %v812_v18 = vor.u32 %v811_v0, %v16950_v63  ;;  %v822_v20 = vrot.slane %v820_v2, 4  ;;  %v825_v21 = vrot.slane %v823_v3, 5  ;;  %v731_v23 = vrot.slane %v730_v4, 4  ;;  %v681_v40 = vld [vmem:[%s16885_s16 + $0x3c] sm:$0xf] }
  0x4f   : > { %v741_v24 = vrot.slane %v740_v5, 4  ;;  %v755_v25 = vrot.slane %v754_v6, 4  ;;  %v769_v26 = vrot.slane %v767_v7, 5  ;;  %v16969_v35 = vrot.slane %v829_v16, 5  ;;  %v682_v46 = vld [vmem:[%s16885_s16 + $0x40] sm:$0xf] }
  0x50   : > { %14961 = vmatmul.mubr.msk.bf16.gmra.mrb[8].mxu0 %vm394_vm1, %v16469_v9  ;;  %v764_v9 = vor.u32 %v763_v52, %v16943_v51  ;;  %v813_v37 = vrot.slane %v812_v18, 4  ;;  %v826_v39 = vor.u32 %v825_v21, %v822_v20  ;;  %v736_v41 = vsel %vm16964_vm4, %v731_v23, %v16941_v45  ;;  %v688_v2 = vld [vmem:[%s16885_s16 + $0x58] sm:$0xf]  ;;  %v690_v7 = vld [vmem:[%s16885_s16 + $0x60] sm:$0xf] }
  0x51   : > { %14964 = vmatprep.mubr.msk.bf16.mxu0 %vm394_vm1, %v16470_v10  ;;  %v778_v10 = vor.u32 %v777_v56, %v774_v55  ;;  %v16983_v44 = vsel %vm449_vm0, %v16914_v11, 0  ;;  %v839_v49 = vshll.u32 %v680_v34, 16  ;;  %v847_v52 = vshll.u32 %v681_v40, 16 }
  0x52   : > { %v765_v29 = vrot.slane %v764_v9, 4  ;;  %v17001_v55 = vrot.slane %v826_v39, 4  ;;  %v853_v56 = vshll.u32 %v682_v46, 16  ;;  %v901_v20 = vshll.u32 %v688_v2, 16 }
  0x53   : > { %v779_v30 = vrot.slane %v778_v10, 4  ;;  %v841_v0 = vrot.slane %v839_v49, 5  ;;  %v849_v6 = vrot.slane %v847_v52, 5  ;;  %v905_v21 = vshrl.u32 %v688_v2, 16  ;;  %v17039_v52 = vld [vmem:[%s19422_s1 + $0x6] sm:$0x3] }
  0x54   : > { %v770_v45 = vsel %vm16964_vm4, %v765_v29, %v769_v26  ;;  %v17015_v9 = vrot.slane %v853_v56, 5  ;;  %v919_v23 = vshll.u32 %v690_v7, 16 }
  0x55   : > { %v784_v47 = vsel %vm16964_vm4, %v779_v30, %v16947_v57 }
  0x58   : > { %14965 = vmatmul.mubr.msk.bf16.gmra.mrb[12].mxu0 %vm394_vm1, %v16471_v12  ;;  %v788_v12 = vor.u32 %v787_v58, %v16947_v57  ;;  %v857_v57 = vshrl.u32 %v682_v46, 16  ;;  %v683_v58 = vld [vmem:[%s16885_s16 + $0x44] sm:$0x1] }
  0x59   : > { %14968 = vmatprep.mubr.msk.bf16.mxu0 %vm394_vm1, %v16472_v13  ;;  %v791_v13 = vshll.u32 %v674_v60, 16  ;;  %v685_v60 = vld [vmem:[%s16885_s16 + $0x4c] sm:$0xf] }
  0x5a   : > { %v789_v31 = vrot.slane %v788_v12, 4  ;;  %v859_v10 = vrot.slane %v857_v57, 4  ;;  %v863_v12 = vshll.u32 %v683_v58, 16  ;;  %v877_v16 = vshll.u32 %v685_v60, 16 }
  0x5b   : > { %v793_v32 = vrot.slane %v791_v13, 5  ;;  %v691_v13 = vld [vmem:[%s16885_s16 + $0x64] sm:$0xf] }
  0x5c   : > { %v860_v29 = vor.u32 %v859_v10, %v17015_v9  ;;  %v17023_v30 = vrot.slane %v863_v12, 5 }
  0x5d   : > { %v794_v48 = vsel %vm16964_vm4, %v789_v31, %v793_v32  ;;  %v686_v31 = vld [vmem:[%s16885_s16 + $0x50] sm:$0x1]  ;;  %v693_v32 = vld [vmem:[%s16885_s16 + $0x6c] sm:$0xf] }
  0x5e   : > { %v940_v49 = vshrl.u32 %v693_v32, 16  ;;  %v887_v56 = vshll.u32 %v686_v31, 16 }
  0x60   : > { %14969 = vmatmul.mubr.msk.bf16.gmra.mrb[16].mxu0 %vm394_vm1, %v16473_v14  ;;  %v745_v14 = vrot.slane %v743_v59, 5  ;;  %v684_v59 = vld [vmem:[%s16885_s16 + $0x48] sm:$0xf] }
  0x61   : > { %14972 = vmatprep.mubr.msk.bf16.mxu0 %vm394_vm1, %v16474_v15  ;;  %v802_v15 = vor.u32 %v801_v62, %v798_v61 }
  0x62   : > { %v746_v42 = vsel %vm16964_vm4, %v741_v24, %v745_v14  ;;  %v868_v14 = vshrl.u32 %v684_v59, 16  ;;  %v925_v24 = vshll.u32 %v691_v13, 16 }
  0x63   : > { %v803_v33 = vrot.slane %v802_v15, 4  ;;  %v13484_v61 = vcombine.low %v736_v41, %v746_v42  ;;  %v871_v15 = vshll.u32 %v684_v59, 16  ;;  %v17031_v41 = vrot.slane %v901_v20, 5 }
  0x64   : > { %v907_v42 = vrot.slane %v905_v21, 4 }
  0x65   : > { %v808_v11 = vsel %vm16964_vm4, %v803_v33, %v16950_v63  ;;  %v13486_v63 = vcombine.low %v784_v47, %v794_v48  ;;  %v870_v33 = vrot.slane %v868_v14, 4  ;;  %v873_v34 = vrot.slane %v871_v15, 5 }
  0x66   : > { %v17034_v47 = vrot.slane %v925_v24, 5 }
  0x67   : > { %v874_v57 = vor.u32 %v873_v34, %v870_v33 }
  0x68   : > { %14973 = vmatmul.mubr.msk.bf16.gmra.mrb[20].mxu0 %vm394_vm1, %v16475_v17  ;;  %v833_v17 = vshrl.u32 %v679_v1, 16  ;;  %v687_v1 = vld [vmem:[%s16885_s16 + $0x54] sm:$0xf] }
  0x69   : > { %14976 = vmatprep.mubr.msk.bf16.mxu0 %vm394_vm1, %v16476_v19  ;;  %v815_v19 = vshll.u32 %v677_v8, 16  ;;  %v832_v8 = vsel %vm16964_vm4, %v17001_v55, %v16969_v35  ;;  %v892_v18 = vshrl.u32 %v687_v1, 16  ;;  %v861_v55 = vrot.slane %v860_v29, 4 }
  0x6a   : > { %v835_v36 = vrot.slane %v833_v17, 4  ;;  %v881_v17 = vshrl.u32 %v685_v60, 16  ;;  %v875_v14 = vrot.slane %v874_v57, 4 }
  0x6b   : > { %v894_v39 = vrot.slane %v892_v18, 4 }
  0x6c   : > { %v836_v50 = vor.u32 %v835_v36, %v16969_v35  ;;  %v17027_v35 = vrot.slane %v877_v16, 5  ;;  %v883_v36 = vrot.slane %v881_v17, 4  ;;  %v697_v17 = vld [vmem:[%s16885_s16 + $0x7c] sm:$0xf] }
  0x6d   : > { %v977_v29 = vshrl.u32 %v697_v17, 16 }
  0x6e   : > { %v837_v4 = vrot.slane %v836_v50, 4  ;;  %v884_v58 = vor.u32 %v883_v36, %v17027_v35  ;;  %v880_v31 = vsel %vm16964_vm4, %v875_v14, %v17027_v35 }
  0x70   : > { %14977 = vmatmul.mubr.msk.bf16.gmra.mrb[24].mxu0 %vm394_vm1, %v16477_v38  ;;  %v817_v38 = vrot.slane %v815_v19, 5  ;;  %v895_v19 = vshll.u32 %v687_v1, 16  ;;  %v842_v26 = vsel %vm16964_vm4, %v837_v4, %v841_v0  ;;  %v908_v0 = vor.u32 %v907_v42, %v17031_v41 }
  0x71   : > { %14980 = vmatprep.mubr.msk.bf16.mxu0 %vm394_vm1, %v16478_v43  ;;  %v760_v43 = vsel %vm16964_vm4, %v755_v25, %v16943_v51  ;;  %v844_v51 = vshrl.u32 %v681_v40, 16  ;;  %v929_v25 = vshrl.u32 %v691_v13, 16  ;;  %v866_v13 = vsel %vm16964_vm4, %v861_v55, %v17023_v30  ;;  %v703_v55 = vld [vmem:[%s16885_s16 + $0x94] sm:$0xf] }
  0x72   : > { %v818_v54 = vsel %vm16964_vm4, %v813_v37, %v817_v38  ;;  %v13485_v62 = vcombine.low %v760_v43, %v770_v45  ;;  %v694_v37 = vld [vmem:[%s16885_s16 + $0x70] sm:$0xf]  ;;  %v689_v38 = vld [vmem:[%s16885_s16 + $0x5c] sm:$0x1]  ;;  %v897_v40 = vrot.slane %v895_v19, 5  ;;  %v921_v45 = vrot.slane %v919_v23, 5 }
  0x73   : > { %v17008_v3 = vcombine.low %v808_v11, %v818_v54  ;;  %v846_v5 = vrot.slane %v844_v51, 4  ;;  %v692_v43 = vld [vmem:[%s16885_s16 + $0x68] sm:$0x1]  ;;  %v931_v48 = vrot.slane %v929_v25, 4  ;;  %v943_v11 = vshll.u32 %v693_v32, 16 }
  0x74   : > { %v949_v50 = vshll.u32 %v694_v37, 16  ;;  %v953_v51 = vshrl.u32 %v694_v37, 16  ;;  %v898_v59 = vor.u32 %v897_v40, %v894_v39  ;;  %v911_v60 = vshll.u32 %v689_v38, 16  ;;  %v699_v32 = vld [vmem:[%s16885_s16 + $0x84] sm:$0xf] }
  0x75   : > { %v935_v2 = vshll.u32 %v692_v43, 16  ;;  %v945_v4 = vrot.slane %v943_v11, 5  ;;  %v885_v15 = vrot.slane %v884_v58, 4  ;;  %v909_v18 = vrot.slane %v908_v0, 4  ;;  %v698_v40 = vld [vmem:[%s16885_s16 + $0x80] sm:$0x1] }
  0x76   : > { %v899_v16 = vrot.slane %v898_v59, 4  ;;  %v913_v19 = vrot.slane %v911_v60, 5  ;;  %v979_v43 = vrot.slane %v977_v29, 4  ;;  %v702_v11 = vld [vmem:[%s16885_s16 + $0x90] sm:$0xf] }
  0x77   : > { %v937_v21 = vrot.slane %v935_v2, 5  ;;  %v701_v60 = vld [vmem:[%s16885_s16 + $0x8c] sm:$0x1]  ;;  %v706_v0 = vld [vmem:[%s16885_s16 + $0xa0] sm:$0xf]  ;;  %v1012_v2 = vshrl.u32 %v702_v11, 16 }
  0x78   : > { %14981 = vmatmul.mubr.msk.bf16.gmra.mrb[28].mxu0 %vm394_vm1, %v16479_v22  ;;  %v916_v22 = vshrl.u32 %v690_v7, 16  ;;  %v889_v7 = vrot.slane %v887_v56, 5  ;;  %v914_v34 = vsel %vm16964_vm4, %v909_v18, %v913_v19  ;;  %v705_v56 = vld [vmem:[%s16885_s16 + $0x9c] sm:$0xf]  ;;  %v1049_v14 = vshrl.u32 %v706_v0, 16 }
  0x79   : > { %14984 = vmatprep.mubr.msk.bf16.mxu0 %vm394_vm1, %v16480_v27  ;;  %v850_v27 = vor.u32 %v849_v6, %v846_v5  ;;  %v955_v5 = vrot.slane %v953_v51, 4 }
  0x7a   : > { %v918_v46 = vrot.slane %v916_v22, 4  ;;  %v890_v33 = vsel %vm16964_vm4, %v885_v15, %v889_v7  ;;  %v1036_v7 = vshrl.u32 %v705_v56, 16 }
  0x7b   : > { %v851_v54 = vrot.slane %v850_v27, 4  ;;  %v973_v27 = vshll.u32 %v697_v17, 16  ;;  %v709_v17 = vld [vmem:[%s16885_s16 + $0xac] sm:$0xf] }
  0x7c   : > { %v922_v1 = vor.u32 %v921_v45, %v918_v46  ;;  %v700_v46 = vld [vmem:[%s16885_s16 + $0x88] sm:$0xf]  ;;  %v988_v45 = vshrl.u32 %v699_v32, 16 }
  0x7d   : > { %v856_v6 = vsel %vm16964_vm4, %v851_v54, %v17015_v9  ;;  %v17087_v42 = vrot.slane %v973_v27, 5  ;;  %v997_v54 = vshll.u32 %v700_v46, 16  ;;  %v1038_v27 = vrot.slane %v1036_v7, 4 }
  0x7e   : > { %v923_v20 = vrot.slane %v922_v1, 4  ;;  %v13489_v30 = vcombine.low %v856_v6, %v866_v13  ;;  %v1025_v6 = vshrl.u32 %v703_v55, 16  ;;  %v1045_v13 = vshll.u32 %v706_v0, 16 }
  0x7f   : > { %v980_v59 = vor.u32 %v979_v43, %v17087_v42 }
  0x80   : > { %14985 = vmatmul.mubr.msk.bf16.gmra.mrb[32].mxu0 %vm394_vm1, %v16481_v53  ;;  %v13488_v53 = vcombine.low %v832_v8, %v842_v26  ;;  %v695_v8 = vld [vmem:[%s16885_s16 + $0x74] sm:$0x1]  ;;  %v928_v36 = vsel %vm16964_vm4, %v923_v20, %v17034_v47 }
  0x81   : > { %14990 = vmatprep.mubr.msk.bf16.mxu0 %vm394_vm1, %v13484_v61  ;;  %v696_v61 = vld [vmem:[%s16885_s16 + $0x78] sm:$0xf]  ;;  %v959_v24 = vshll.u32 %v695_v8, 16  ;;  %v1039_v8 = vshll.u32 %v705_v56, 16  ;;  %v981_v15 = vrot.slane %v980_v59, 4 }
  0x82   : > { %v964_v10 = vshrl.u32 %v696_v61, 16  ;;  %v967_v12 = vshll.u32 %v696_v61, 16  ;;  %v990_v61 = vrot.slane %v988_v45, 4 }
  0x83   : > { %v17084_v39 = vrot.slane %v959_v24, 5  ;;  %v1041_v29 = vrot.slane %v1039_v8, 5 }
  0x84   : > { %v966_v25 = vrot.slane %v964_v10, 4  ;;  %v969_v26 = vrot.slane %v967_v12, 5  ;;  %v17109_v12 = vrot.slane %v997_v54, 5 }
  0x88   : > { %14991 = vmatmul.mubr.msk.bf16.vlgmr.msra.gmra.mrb[0].mxu0 %vm394_vm1, %v13485_v62  ;;  %v932_v62 = vor.u32 %v931_v48, %v17034_v47  ;;  %v13490_v47 = vcombine.low %v880_v31, %v890_v33  ;;  %v991_v48 = vshll.u32 %v699_v32, 16  ;;  %v1051_v31 = vrot.slane %v1049_v14, 4  ;;  %v710_v32 = vld [vmem:[%s16885_s16 + $0xb0] sm:$0x1] }
  0x89   : > { %15027 = vmatpush3.bf16.msra.mxu0 %v16983_v44  ;;  %14994 = vmatprep.mubr.msk.bf16.mxu0 %vm394_vm1, %v13486_v63  ;;  %v942_v44 = vrot.slane %v940_v49, 4  ;;  %v17050_v63 = vrot.slane %v949_v50, 5  ;;  %v1069_v33 = vshll.u32 %v709_v17, 16  ;;  %v1079_v54 = vshll.u32 %v710_v32, 16 }
  0x8a   : > { %16385 = vmatprep.subr.msk.bf16.mxu0 %vm449_vm0, %v17039_v52  ;;  %v933_v22 = vrot.slane %v932_v62, 4  ;;  %v993_v1 = vrot.slane %v991_v48, 5  ;;  %v1001_v62 = vshrl.u32 %v700_v46, 16  ;;  %v1042_v48 = vor.u32 %v1041_v29, %v1038_v27 }
  0x8b   : > { %v946_v23 = vor.u32 %v945_v4, %v942_v44  ;;  %v956_v9 = vor.u32 %v955_v5, %v17050_v63  ;;  %v1015_v44 = vshll.u32 %v702_v11, 16  ;;  %v708_v4 = vld [vmem:[%s16885_s16 + $0xa8] sm:$0xf]  ;;  %v1021_v5 = vshll.u32 %v703_v55, 16 }
  0x8c   : > { %v938_v37 = vsel %vm16964_vm4, %v933_v22, %v937_v21  ;;  %v1060_v18 = vshrl.u32 %v708_v4, 16  ;;  %v1063_v19 = vshll.u32 %v708_v4, 16  ;;  %v994_v20 = vor.u32 %v993_v1, %v990_v61  ;;  %v704_v22 = vld [vmem:[%s16885_s16 + $0x98] sm:$0x1] }
  0x8d   : > { %v17080_v35 = vrot.slane %v946_v23, 4  ;;  %v17082_v38 = vrot.slane %v956_v9, 4  ;;  %v13492_v50 = vcombine.low %v928_v36, %v938_v37  ;;  %v1003_v21 = vrot.slane %v1001_v62, 4  ;;  %v715_v62 = vld [vmem:[%s16885_s16 + $0xc4] sm:$0xf] }
  0x8e   : > { %v1014_v23 = vrot.slane %v1012_v2, 4  ;;  %v1017_v9 = vrot.slane %v1015_v44, 5  ;;  %v17113_v24 = vrot.slane %v1021_v5, 5  ;;  %v1062_v37 = vrot.slane %v1060_v18, 4 }
  0x8f   : > { %v952_v51 = vsel %vm16964_vm4, %v17080_v35, %v17050_v63  ;;  %v962_v57 = vsel %vm16964_vm4, %v17082_v38, %v17084_v39  ;;  %v1065_v38 = vrot.slane %v1063_v19, 5  ;;  %v711_v39 = vld [vmem:[%s16885_s16 + $0xb4] sm:$0xf]  ;;  %v1004_v43 = vor.u32 %v1003_v21, %v17109_v12 }
  0x90   : > { %14995 = vmatmul.mubr.msk.bf16.gmra.mrb[4].mxu0 %vm394_vm1, %v17008_v3  ;;  %v904_v3 = vsel %vm16964_vm4, %v899_v16, %v17031_v41  ;;  %v970_v41 = vor.u32 %v969_v26, %v966_v25  ;;  %v1007_v16 = vshll.u32 %v701_v60, 16  ;;  %v1027_v25 = vrot.slane %v1025_v6, 4  ;;  %v707_v26 = vld [vmem:[%s16885_s16 + $0xa4] sm:$0x1]  ;;  %v714_v60 = vld [vmem:[%s16885_s16 + $0xc0] sm:$0xf] }
  0x91   : > { %14998 = vmatprep.mubr.msk.bf16.mxu0 %vm394_vm1, %v13488_v53  ;;  %v13491_v49 = vcombine.low %v904_v3, %v914_v34  ;;  %v983_v53 = vshll.u32 %v698_v40, 16  ;;  %v1073_v3 = vshrl.u32 %v709_v17, 16  ;;  %v1031_v46 = vshll.u32 %v704_v22, 16  ;;  %v713_v6 = vld [vmem:[%s16885_s16 + $0xbc] sm:$0x1] }
  0x92   : > { %v17102_v58 = vrot.slane %v970_v41, 4  ;;  %v1009_v36 = vrot.slane %v1007_v16, 5  ;;  %v995_v41 = vrot.slane %v994_v20, 4  ;;  %v1018_v45 = vor.u32 %v1017_v9, %v1014_v23 }
  0x93   : > { %v985_v10 = vrot.slane %v983_v53, 5  ;;  %v17132_v53 = vrot.slane %v1069_v33, 5  ;;  %v13493_v55 = vcombine.low %v952_v51, %v962_v57  ;;  %v1066_v56 = vor.u32 %v1065_v38, %v1062_v37  ;;  %v717_v57 = vld [vmem:[%s16885_s16 + $0xcc] sm:$0xf] }
  0x94   : > { %v976_v34 = vsel %vm16964_vm4, %v17102_v58, %v17087_v42  ;;  %v1055_v42 = vshll.u32 %v707_v26, 16  ;;  %v1084_v58 = vshrl.u32 %v711_v39, 16  ;;  %v1087_v59 = vshll.u32 %v711_v39, 16 }
  0x95   : > { %v986_v40 = vsel %vm16964_vm4, %v981_v15, %v985_v10  ;;  %v1005_v0 = vrot.slane %v1004_v43, 4  ;;  %v1033_v1 = vrot.slane %v1031_v46, 5  ;;  %v1019_v2 = vrot.slane %v1018_v45, 4  ;;  %v718_v15 = vld [vmem:[%s16885_s16 + $0xd0] sm:$0xf] }
  0x96   : > { %v13494_v61 = vcombine.low %v976_v34, %v986_v40  ;;  %v17141_v4 = vrot.slane %v1042_v48, 4  ;;  %v17143_v5 = vrot.slane %v1055_v42, 5  ;;  %v1067_v8 = vrot.slane %v1066_v56, 4  ;;  %v719_v43 = vld [vmem:[%s16885_s16 + $0xd4] sm:$0x1] }
  0x97   : > { %v1081_v10 = vrot.slane %v1079_v54, 5  ;;  %v1089_v14 = vrot.slane %v1087_v59, 5  ;;  %v1000_v16 = vsel %vm16964_vm4, %v995_v41, %v17109_v12  ;;  %v1010_v17 = vsel %vm16964_vm4, %v1005_v0, %v1009_v36  ;;  %v17173_v46 = vld [vmem:[%s16885_s16 + $0x4] sm:$0xf]  ;;  %v17190_v59 = vld [vmem:[%s16885_s16 + $0x10] sm:$0xf] }
  0x98   : > { %14999 = vmatmul.mubr.msk.bf16.gmra.mrb[8].mxu0 %vm394_vm1, %v13489_v30  ;;  %v17116_v30 = vrot.slane %v1045_v13, 5  ;;  %v1086_v13 = vrot.slane %v1084_v58, 4  ;;  %v1108_v18 = vshrl.u32 %v714_v60, 16  ;;  %v1111_v19 = vshll.u32 %v714_v60, 16  ;;  %v1553_v58 = vld [vmem:[%s16885_s16] sm:$0xe] }
  0x99   : > { %15002 = vmatprep.mubr.msk.bf16.mxu0 %vm394_vm1, %v13490_v47  ;;  %v1028_v47 = vor.u32 %v1027_v25, %v17113_v24  ;;  %v1024_v20 = vsel %vm16964_vm4, %v1019_v2, %v17113_v24  ;;  %v1117_v22 = vshll.u32 %v715_v62, 16  ;;  %v1121_v23 = vshrl.u32 %v715_v62, 16  ;;  %v1555_v0 = vld [vmem:[%s16885_s16 + $0x8] sm:$0x1] }
  0x9a   : > { %v1052_v11 = vor.u32 %v1051_v31, %v17116_v30  ;;  %v1103_v12 = vshll.u32 %v713_v6, 16  ;;  %v13495_v27 = vcombine.low %v1000_v16, %v1010_v17  ;;  %v1132_v29 = vshrl.u32 %v717_v57, 16 }
  0x9b   : > { %v1029_v44 = vrot.slane %v1028_v47, 4  ;;  %v1135_v31 = vshll.u32 %v717_v57, 16  ;;  %v1090_v33 = vor.u32 %v1089_v14, %v1086_v13  ;;  %v1141_v34 = vshll.u32 %v718_v15, 16  ;;  %v17202_v13 = vld [vmem:[%s16885_s16 + $0x24] sm:$0xe] }
  0x9c   : > { %v1053_v7 = vrot.slane %v1052_v11, 4  ;;  %v1145_v24 = vshrl.u32 %v718_v15, 16  ;;  %v1110_v36 = vrot.slane %v1108_v18, 4  ;;  %v1113_v37 = vrot.slane %v1111_v19, 5 }
  0x9d   : > { %v1034_v21 = vsel %vm16964_vm4, %v1029_v44, %v1033_v1  ;;  %v17164_v38 = vrot.slane %v1117_v22, 5  ;;  %v1123_v39 = vrot.slane %v1121_v23, 4  ;;  %v1048_v40 = vsel %vm16964_vm4, %v17141_v4, %v17116_v30  ;;  %v1556_v1 = vld [vmem:[%s16885_s16 + $0xc] sm:$0xe]  ;;  %v1558_v4 = vld [vmem:[%s16885_s16 + $0x14] sm:$0x1] }
  0x9e   : > { %v13496_v32 = vcombine.low %v1024_v20, %v1034_v21  ;;  %v1058_v45 = vsel %vm16964_vm4, %v1053_v7, %v17143_v5  ;;  %v1072_v47 = vsel %vm16964_vm4, %v1067_v8, %v17132_v53  ;;  %v1134_v48 = vrot.slane %v1132_v29, 4  ;;  %v1559_v7 = vld [vmem:[%s16885_s16 + $0x18] sm:$0xe] }
  0x9f   : > { %v1137_v30 = vrot.slane %v1135_v31, 5  ;;  %v1091_v42 = vrot.slane %v1090_v33, 4  ;;  %v17183_v11 = vrot.slane %v1141_v34, 5  ;;  %v13497_v62 = vcombine.low %v1048_v40, %v1058_v45  ;;  %v1563_v33 = vld [vmem:[%s16885_s16 + $0x28] sm:$0xf] }
  0xa0   : > { %15003 = vmatmul.mubr.msk.bf16.gmra.mrb[12].mxu0 %vm394_vm1, %v13491_v49  ;;  %v712_v49 = vld [vmem:[%s16885_s16 + $0xb8] sm:$0xf]  ;;  %v1666_v44 = vrot.slane %v17173_v46, 5  ;;  %v1673_v8 = vrot.slane %v17190_v59, 5  ;;  %v13520_v17 = vrot.slane %v1553_v58, 9  ;;  %v1669_v20 = vrot.slane %v1555_v0, 5 }
  0xa1   : > { %15006 = vmatprep.mubr.msk.bf16.mxu0 %vm394_vm1, %v13492_v50  ;;  %v1075_v50 = vrot.slane %v1073_v3, 4  ;;  %v1093_v35 = vshll.u32 %v712_v49, 16  ;;  %v1097_v51 = vshrl.u32 %v712_v49, 16  ;;  %v716_v3 = vld [vmem:[%s16885_s16 + $0xc8] sm:$0x1]  ;;  %v1105_v49 = vrot.slane %v1103_v12, 5 }
  0xa2   : > { %v1127_v56 = vshll.u32 %v716_v3, 16  ;;  %v1138_v2 = vor.u32 %v1137_v30, %v1134_v48  ;;  %v1668_v19 = vrot.slane %v1666_v44, 4  ;;  %v13521_v21 = vrot.slane %v1556_v1, 9  ;;  %v1567_v30 = vld [vmem:[%s16885_s16 + $0x38] sm:$0x1] }
  0xa3   : > { %v1076_v63 = vor.u32 %v1075_v50, %v17132_v53  ;;  %v17161_v25 = vrot.slane %v1093_v35, 5  ;;  %v1099_v26 = vrot.slane %v1097_v51, 4  ;;  %v1147_v50 = vrot.slane %v1145_v24, 4  ;;  %v1566_v24 = vld [vmem:[%s16885_s16 + $0x34] sm:$0xf] }
  0xa4   : > { %v1124_v53 = vor.u32 %v1123_v39, %v17164_v38  ;;  %v1129_v57 = vrot.slane %v1127_v56, 5  ;;  %v1139_v18 = vrot.slane %v1138_v2, 4  ;;  %v1676_v23 = vrot.slane %v1558_v4, 5  ;;  %v17256_v1 = vld [vmem:[%s19422_s1 + $0x8] sm:$0x3] }
  0xa5   : > { %v1077_v9 = vrot.slane %v1076_v63, 4  ;;  %v1100_v41 = vor.u32 %v1099_v26, %v17161_v25  ;;  %v1148_v6 = vor.u32 %v1147_v50, %v17183_v11  ;;  %v1560_v63 = vld [vmem:[%s16885_s16 + $0x1c] sm:$0xf]  ;;  %v1096_v14 = vsel %vm16964_vm4, %v1091_v42, %v17161_v25  ;;  %v1570_v2 = vld [vmem:[%s16885_s16 + $0x44] sm:$0x1] }
  0xa6   : > { %v1125_v51 = vrot.slane %v1124_v53, 4  ;;  %v13522_v25 = vrot.slane %v1559_v7, 9  ;;  %v1680_v29 = vrot.slane %v1560_v63, 5  ;;  %v13523_v3 = vrot.slane %v17202_v13, 9 }
  0xa7   : > { %v1082_v54 = vsel %vm16964_vm4, %v1077_v9, %v1081_v10  ;;  %v1101_v60 = vrot.slane %v1100_v41, 4  ;;  %v1561_v10 = vld [vmem:[%s16885_s16 + $0x20] sm:$0x1]  ;;  %v1149_v22 = vrot.slane %v1148_v6, 4  ;;  %v2372_v9 = vsel %vm449_vm0, %v17039_v52, 0 }
  0xa8   : > { %15007 = vmatmul.mubr.msk.bf16.gmra.mrb[16].mxu0 %vm394_vm1, %v13493_v55  ;;  %v1114_v55 = vor.u32 %v1113_v37, %v1110_v36  ;;  %v13498_v5 = vcombine.low %v1072_v47, %v1082_v54  ;;  %v1130_v12 = vsel %vm16964_vm4, %v1125_v51, %v1129_v57  ;;  %v1564_v52 = vld [vmem:[%s16885_s16 + $0x2c] sm:$0x1]  ;;  %v1687_v37 = vrot.slane %v1563_v33, 5  ;;  %v1565_v47 = vld [vmem:[%s16885_s16 + $0x30] sm:$0xe] }
  0xa9   : > { %15010 = vmatprep.mubr.msk.bf16.mxu0 %vm394_vm1, %v13494_v61  ;;  %v1151_v61 = vshll.u32 %v719_v43, 16  ;;  %v1106_v15 = vsel %vm16964_vm4, %v1101_v60, %v1105_v49  ;;  %v1144_v39 = vsel %vm16964_vm4, %v1139_v18, %v17183_v11  ;;  %v1682_v41 = vrot.slane %v1680_v29, 4  ;;  %v1569_v60 = vld [vmem:[%s16885_s16 + $0x40] sm:$0xf]  ;;  %v1573_v51 = vld [vmem:[%s16885_s16 + $0x50] sm:$0x1] }
  0xaa   : > { %v1115_v35 = vrot.slane %v1114_v55, 4  ;;  %v13499_v34 = vcombine.low %v1096_v14, %v1106_v15  ;;  %v1694_v43 = vrot.slane %v1566_v24, 5  ;;  %v1667_v46 = vsel %vm17220_vm7, %v13520_v17, %v1666_v44 }
  0xab   : > { %v1153_v16 = vrot.slane %v1151_v61, 5  ;;  %v1670_v45 = vsel %vm17220_vm7, %v1668_v19, %v1669_v20  ;;  %v1689_v49 = vrot.slane %v1687_v37, 4  ;;  %v13524_v11 = vrot.slane %v1565_v47, 9  ;;  %v1572_v61 = vld [vmem:[%s16885_s16 + $0x4c] sm:$0xf] }
  0xac   : > { %v1120_v26 = vsel %vm16964_vm4, %v1115_v35, %v17164_v38  ;;  %v1690_v38 = vrot.slane %v1564_v52, 5  ;;  %v13539_v42 = vcombine.low %v1667_v46, %v1670_v45  ;;  %v1674_v50 = vsel %vm17220_vm7, %v13521_v21, %v1673_v8  ;;  %v1571_v35 = vld [vmem:[%s16885_s16 + $0x48] sm:$0xe]  ;;  %v1578_v19 = vld [vmem:[%s16885_s16 + $0x64] sm:$0xf] }
  0xad   : > { %v13500_v36 = vcombine.low %v1120_v26, %v1130_v12  ;;  %v1154_v40 = vsel %vm16964_vm4, %v1149_v22, %v1153_v16  ;;  %v1696_v55 = vrot.slane %v1694_v43, 4  ;;  %v1697_v53 = vrot.slane %v1567_v30, 5  ;;  %v1574_v22 = vld [vmem:[%s16885_s16 + $0x54] sm:$0xe]  ;;  %v1576_v26 = vld [vmem:[%s16885_s16 + $0x5c] sm:$0x1] }
  0xae   : > { %v13501_v48 = vcombine.low %v1144_v39, %v1154_v40  ;;  %v1681_v56 = vsel %vm17220_vm7, %v13522_v25, %v1680_v29  ;;  %v1688_v44 = vsel %vm17220_vm7, %v13523_v3, %v1687_v37  ;;  %v1691_v4 = vsel %vm17220_vm7, %v1689_v49, %v1690_v38  ;;  %v1579_v29 = vld [vmem:[%s16885_s16 + $0x68] sm:$0x1]  ;;  %v1581_v52 = vld [vmem:[%s16885_s16 + $0x70] sm:$0xf]  ;;  %v1584_v39 = vld [vmem:[%s16885_s16 + $0x7c] sm:$0xf] }
  0xaf   : > { %v1708_v6 = vrot.slane %v1572_v61, 5  ;;  %v1695_v7 = vsel %vm17220_vm7, %v13524_v11, %v1694_v43  ;;  %v1698_v63 = vsel %vm17220_vm7, %v1696_v55, %v1697_v53  ;;  %v13542_v57 = vcombine.low %v1688_v44, %v1691_v4  ;;  %v1580_v40 = vld [vmem:[%s16885_s16 + $0x6c] sm:$0xe]  ;;  %v1582_v46 = vld [vmem:[%s16885_s16 + $0x74] sm:$0x1] }
  0xb0   : > { %15011 = vmatmul.mubr.msk.bf16.gmra.mrb[20].mxu0 %vm394_vm1, %v13495_v27  ;;  %v1675_v27 = vrot.slane %v1673_v8, 4  ;;  %v1575_v8 = vld [vmem:[%s16885_s16 + $0x58] sm:$0xf]  ;;  %v1704_v15 = vrot.slane %v1570_v2, 5  ;;  %v13526_v16 = vrot.slane %v1571_v35, 9  ;;  %v1711_v18 = vrot.slane %v1573_v51, 5 }
  0xb1   : > { %15014 = vmatprep.mubr.msk.bf16.mxu0 %vm394_vm1, %v13496_v32  ;;  %v1683_v32 = vrot.slane %v1561_v10, 5  ;;  %v13543_v10 = vcombine.low %v1695_v7, %v1698_v63  ;;  %v1710_v17 = vrot.slane %v1708_v6, 4  ;;  %v1722_v12 = vrot.slane %v1578_v19, 5  ;;  %v1583_v30 = vld [vmem:[%s16885_s16 + $0x78] sm:$0xe] }
  0xb2   : > { %v1677_v54 = vsel %vm17220_vm7, %v1675_v27, %v1676_v23  ;;  %v1715_v23 = vrot.slane %v1575_v8, 5  ;;  %v1577_v27 = vld [vmem:[%s16885_s16 + $0x60] sm:$0xe]  ;;  %v13527_v33 = vrot.slane %v1574_v22, 9  ;;  %v1718_v24 = vrot.slane %v1576_v26, 5 }
  0xb3   : > { %v1684_v58 = vsel %vm17220_vm7, %v1682_v41, %v1683_v32  ;;  %v13540_v59 = vcombine.low %v1674_v50, %v1677_v54  ;;  %v1712_v25 = vsel %vm17220_vm7, %v1710_v17, %v1711_v18  ;;  %v1724_v37 = vrot.slane %v1722_v12, 4  ;;  %v1585_v49 = vld [vmem:[%s16885_s16 + $0x80] sm:$0x1]  ;;  %v1590_v61 = vld [vmem:[%s16885_s16 + $0x94] sm:$0xf] }
  0xb4   : > { %v13541_v0 = vcombine.low %v1681_v56, %v1684_v58  ;;  %v1725_v38 = vrot.slane %v1579_v29, 5  ;;  %v1716_v41 = vsel %vm17220_vm7, %v13527_v33, %v1715_v23  ;;  %v1729_v45 = vrot.slane %v1581_v52, 5  ;;  %v1587_v58 = vld [vmem:[%s16885_s16 + $0x88] sm:$0xf]  ;;  %v1591_v35 = vld [vmem:[%s16885_s16 + $0x98] sm:$0x1] }
  0xb5   : > { %v13529_v50 = vrot.slane %v1580_v40, 9  ;;  %v1732_v53 = vrot.slane %v1582_v46, 5  ;;  %v13530_v56 = vrot.slane %v1583_v30, 9  ;;  %v1743_v4 = vrot.slane %v1587_v58, 5  ;;  %v1596_v18 = vld [vmem:[%s16885_s16 + $0xac] sm:$0xf] }
  0xb6   : > { %v1731_v55 = vrot.slane %v1729_v45, 4  ;;  %v1750_v63 = vrot.slane %v1590_v61, 5  ;;  %v1753_v17 = vrot.slane %v1591_v35, 5  ;;  %v1592_v19 = vld [vmem:[%s16885_s16 + $0x9c] sm:$0xe]  ;;  %v1764_v26 = vrot.slane %v1596_v18, 5 }
  0xb7   : > { %v1730_v2 = vsel %vm17220_vm7, %v13529_v50, %v1729_v45  ;;  %v13533_v33 = vrot.slane %v1592_v19, 9  ;;  %v1601_v30 = vld [vmem:[%s16885_s16 + $0xc0] sm:$0xe]  ;;  %v16488_v19 = vld [vmem:[%s16885_s16 + $0x54] sm:$0xff]  }
  0xb8   : > { %15015 = vmatmul.mubr.msk.bf16.gmra.mrb[24].mxu0 %vm394_vm1, %v13497_v62  ;;  %v1568_v62 = vld [vmem:[%s16885_s16 + $0x3c] sm:$0xe]  ;;  %v1733_v44 = vsel %vm17220_vm7, %v1731_v55, %v1732_v53  ;;  %v1605_v53 = vld [vmem:[%s16885_s16 + $0xd0] sm:$0xf] }
  0xb9   : > { %15018 = vmatprep.mubr.msk.bf16.mxu0 %vm394_vm1, %v13498_v5  ;;  %v1701_v5 = vrot.slane %v1569_v60, 5  ;;  %v13525_v13 = vrot.slane %v1568_v62, 9  ;;  %v1739_v60 = vrot.slane %v1585_v49, 5  ;;  %v1588_v62 = vld [vmem:[%s16885_s16 + $0x8c] sm:$0x1]  ;;  %v13548_v51 = vcombine.low %v1730_v2, %v1733_v44  ;;  %v16486_v18 = vld [vmem:[%s16885_s16 + $0x3c] sm:$0xff]  }
  0xba   : > { %v1604_v44 = vld [vmem:[%s16885_s16 + $0xcc] sm:$0xe] }
  0xbb   : > { %v1703_v14 = vrot.slane %v1701_v5, 4  ;;  %v1702_v20 = vsel %vm17220_vm7, %v13525_v13, %v1701_v5  ;;  %v1589_v5 = vld [vmem:[%s16885_s16 + $0x90] sm:$0xe]  ;;  %v1746_v13 = vrot.slane %v1588_v62, 5 }
  0xbd   : > { %v1705_v21 = vsel %vm17220_vm7, %v1703_v14, %v1704_v15  ;;  %v13532_v14 = vrot.slane %v1589_v5, 9  ;;  %v1593_v15 = vld [vmem:[%s16885_s16 + $0xa0] sm:$0xf] }
  0xbe   : > { %v13544_v32 = vcombine.low %v1702_v20, %v1705_v21  ;;  %v1757_v22 = vrot.slane %v1593_v15, 5  ;;  %v3256_v15 = vsel %vm449_vm0, %v17256_v1, 0 }
  0xc0   : > { %15019 = vmatmul.mubr.msk.bf16.gmra.mrb[28].mxu0 %vm394_vm1, %v13499_v34  ;;  %v1717_v34 = vrot.slane %v1715_v23, 4  ;;  %v1751_v23 = vsel %vm17220_vm7, %v13532_v14, %v1750_v63  ;;  %v1759_v52 = vrot.slane %v1757_v22, 4  ;;  %v1758_v40 = vsel %vm17220_vm7, %v13533_v33, %v1757_v22  ;;  %v16484_v14 = vld [vmem:[%s16885_s16 + $0x24] sm:$0xff]   ;;  %v13648_v22 = vld [vmem:[%s16885_s16 + $0xc] sm:$0xf] }
  0xc1   : > { %15022 = vmatprep.mubr.msk.bf16.mxu0 %vm394_vm1, %v13500_v36  ;;  %v13528_v36 = vrot.slane %v1577_v27, 9  ;;  %v1597_v27 = vld [vmem:[%s16885_s16 + $0xb0] sm:$0x1]  ;;  %v13652_v33 = vld [vmem:[%s16885_s16 + $0x1c] sm:$0xf] }
  0xc2   : > { %v1719_v43 = vsel %vm17220_vm7, %v1717_v34, %v1718_v24  ;;  %v1599_v34 = vld [vmem:[%s16885_s16 + $0xb8] sm:$0xf] }
  0xc3   : > { %v1723_v47 = vsel %vm17220_vm7, %v13528_v36, %v1722_v12  ;;  %v13546_v11 = vcombine.low %v1716_v41, %v1719_v43  ;;  %v1595_v12 = vld [vmem:[%s16885_s16 + $0xa8] sm:$0xe]  ;;  %v1766_v36 = vrot.slane %v1764_v26, 4  ;;  %v1771_v43 = vrot.slane %v1599_v34, 5 }
  0xc4   : > { %v13534_v24 = vrot.slane %v1595_v12, 9  ;;  %v2717_v12 = vshll.u32 %v13648_v22, 16 }
  0xc6   : > { %v1765_v46 = vsel %vm17220_vm7, %v13534_v24, %v1764_v26  ;;  %v2714_v26 = vshrl.u32 %v13648_v22, 16  ;;  %v2719_v34 = vrot.slane %v2717_v12, 5 }
  0xc8   : > { %15023 = vmatmul.mubr.msk.bf16.gmra.mrb[32].mxu0 %vm394_vm1, %v13501_v48  ;;  %v1726_v48 = vsel %vm17220_vm7, %v1724_v37, %v1725_v38  ;;  %v1767_v37 = vrot.slane %v1597_v27, 5  ;;  %v1602_v38 = vld [vmem:[%s16885_s16 + $0xc4] sm:$0xf] }
  0xc9   : > { %15028 = vmatprep.mubr.msk.bf16.mxu0 %vm394_vm1, %v13539_v42  ;;  %v1736_v42 = vrot.slane %v1584_v39, 5  ;;  %v13547_v54 = vcombine.low %v1723_v47, %v1726_v48  ;;  %v1598_v39 = vld [vmem:[%s16885_s16 + $0xb4] sm:$0xe]  ;;  %v1600_v47 = vld [vmem:[%s16885_s16 + $0xbc] sm:$0x1]  ;;  %v1778_v48 = vrot.slane %v1602_v38, 5 }
  0xca   : > { %v1768_v45 = vsel %vm17220_vm7, %v1766_v36, %v1767_v37  ;;  %v13535_v50 = vrot.slane %v1598_v39, 9  ;;  %v1774_v55 = vrot.slane %v1600_v47, 5  ;;  %v16494_v37 = vld [vmem:[%s16885_s16 + $0x9c] sm:$0xff]  }
  0xcb   : > { %v1780_v58 = vrot.slane %v1778_v48, 4  ;;  %v13653_v47 = vld [vmem:[%s16885_s16 + $0x20] sm:$0x1] }
  0xd0   : > { %15029 = vmatmul.mubr.msk.bf16.vlgmr.msra.gmra.mrb[0].mxu0 %vm394_vm1, %v13540_v59  ;;  %v1738_v59 = vrot.slane %v1736_v42, 4 }
  0xd1   : > { %15065 = vmatpush3.bf16.msra.mxu0 %v2372_v9  ;;  %15032 = vmatprep.mubr.msk.bf16.mxu0 %vm394_vm1, %v13541_v0  ;;  %v1709_v9 = vsel %vm17220_vm7, %v13526_v16, %v1708_v6  ;;  %v1586_v0 = vld [vmem:[%s16885_s16 + $0x84] sm:$0xe]  ;;  %v1737_v6 = vsel %vm17220_vm7, %v13530_v56, %v1736_v42  ;;  %v1752_v16 = vrot.slane %v1750_v63, 4  ;;  %v1603_v42 = vld [vmem:[%s16885_s16 + $0xc8] sm:$0x1]  ;;  %v13536_v56 = vrot.slane %v1601_v30, 9 }
  0xd2   : > { %16386 = vmatprep.subr.msk.bf16.mxu0 %vm449_vm0, %v17256_v1  ;;  %v13545_v3 = vcombine.low %v1709_v9, %v1712_v25  ;;  %v1740_v7 = vsel %vm17220_vm7, %v1738_v59, %v1739_v60  ;;  %v1594_v25 = vld [vmem:[%s16885_s16 + $0xa4] sm:$0x1]  ;;  %v1781_v59 = vrot.slane %v1603_v42, 5  ;;  %v1772_v60 = vsel %vm17220_vm7, %v13535_v50, %v1771_v43  ;;  %v16487_v1 = vld [vmem:[%s16885_s16 + $0x48] sm:$0xff]  }
  0xd3   : > { %v13549_v8 = vcombine.low %v1737_v6, %v1740_v7  ;;  %v1754_v9 = vsel %vm17220_vm7, %v1752_v16, %v1753_v17  ;;  %v1779_v62 = vsel %vm17220_vm7, %v13536_v56, %v1778_v48  ;;  %v13537_v7 = vrot.slane %v1604_v44, 9  ;;  %v17383_v16 = vld [vmem:[%s19422_s1 + $0xa] sm:$0x3]  ;;  %v16485_v17 = vld [vmem:[%s16885_s16 + $0x30] sm:$0xff]   ;;  %v13654_v42 = vld [vmem:[%s16885_s16 + $0x24] sm:$0xf] }
  0xd4   : > { %v1782_v2 = vsel %vm17220_vm7, %v1780_v58, %v1781_v59  ;;  %v13655_v50 = vld [vmem:[%s16885_s16 + $0x28] sm:$0xf]  ;;  %v2757_v58 = vshll.u32 %v13653_v47, 16  ;;  %v16496_v59 = vld [vmem:[%s16885_s16 + $0xb4] sm:$0xff]   ;;  %v13657_v44 = vld [vmem:[%s16885_s16 + $0x30] sm:$0xf] }
  0xd5   : > { %v13555_v6 = vcombine.low %v1779_v62, %v1782_v2  ;;  %v2771_v62 = vshll.u32 %v13655_v50, 16  ;;  %v2775_v2 = vshrl.u32 %v13655_v50, 16 }
  0xd8   : > { %15033 = vmatmul.mubr.msk.bf16.gmra.mrb[4].mxu0 %vm394_vm1, %v13542_v57  ;;  %v13531_v57 = vrot.slane %v1586_v0, 9  ;;  %v1785_v0 = vrot.slane %v1605_v53, 5 }
  0xd9   : > { %15036 = vmatprep.mubr.msk.bf16.mxu0 %vm394_vm1, %v13543_v10  ;;  %v1745_v10 = vrot.slane %v1743_v4, 4 }
  0xda   : > { %v1744_v20 = vsel %vm17220_vm7, %v13531_v57, %v1743_v4  ;;  %v1606_v4 = vld [vmem:[%s16885_s16 + $0xd4] sm:$0x1]  ;;  %v1787_v63 = vrot.slane %v1785_v0, 4 }
  0xdb   : > { %v1747_v21 = vsel %vm17220_vm7, %v1745_v10, %v1746_v13  ;;  %v1788_v35 = vrot.slane %v1606_v4, 5  ;;  %v16482_v10 = vld [vmem:[%s16885_s16 + $0xc] sm:$0xff]   ;;  %v16483_v13 = vld [vmem:[%s16885_s16 + $0x18] sm:$0xff]  }
  0xdc   : > { %v13550_v29 = vcombine.low %v1744_v20, %v1747_v21  ;;  %v16489_v20 = vld [vmem:[%s16885_s16 + $0x60] sm:$0xff]   ;;  %v16490_v21 = vld [vmem:[%s16885_s16 + $0x6c] sm:$0xff]  }
  0xdd   : > { %v1789_v57 = vsel %vm17220_vm7, %v1787_v63, %v1788_v35 }
  0xe0   : > { %15037 = vmatmul.mubr.msk.bf16.gmra.mrb[8].mxu0 %vm394_vm1, %v13544_v32  ;;  %v13551_v32 = vcombine.low %v1751_v23, %v1754_v9  ;;  %v13649_v23 = vld [vmem:[%s16885_s16 + $0x10] sm:$0xf]  ;;  %v16491_v9 = vld [vmem:[%s16885_s16 + $0x78] sm:$0xff]  }
  0xe1   : > { %15040 = vmatprep.mubr.msk.bf16.mxu0 %vm394_vm1, %v13545_v3  ;;  %v1760_v3 = vrot.slane %v1594_v25, 5  ;;  %v16492_v25 = vld [vmem:[%s16885_s16 + $0x84] sm:$0xff]   ;;  %v2723_v27 = vshll.u32 %v13649_v23, 16 }
  0xe3   : > { %v1761_v41 = vsel %vm17220_vm7, %v1759_v52, %v1760_v3  ;;  %v16493_v52 = vld [vmem:[%s16885_s16 + $0x90] sm:$0xff]   ;;  %v2716_v3 = vrot.slane %v2714_v26, 4  ;;  %v17410_v24 = vrot.slane %v2723_v27, 5 }
  0xe4   : > { %v13552_v49 = vcombine.low %v1758_v40, %v1761_v41  ;;  %v13650_v40 = vld [vmem:[%s16885_s16 + $0x14] sm:$0x1]  ;;  %v2747_v41 = vshll.u32 %v13652_v33, 16 }
  0xe8   : > { %15041 = vmatmul.mubr.msk.bf16.gmra.mrb[12].mxu0 %vm394_vm1, %v13546_v11  ;;  %v13553_v11 = vcombine.low %v1765_v46, %v1768_v45  ;;  %v2720_v46 = vor.u32 %v2719_v34, %v2716_v3 }
  0xe9   : > { %15044 = vmatprep.mubr.msk.bf16.mxu0 %vm394_vm1, %v13547_v54  ;;  %v1773_v54 = vrot.slane %v1771_v43, 4  ;;  %v2751_v43 = vshrl.u32 %v13652_v33, 16 }
  0xeb   : > { %v1775_v61 = vsel %vm17220_vm7, %v1773_v54, %v1774_v55  ;;  %v16495_v54 = vld [vmem:[%s16885_s16 + $0xa8] sm:$0xff]   ;;  %v2721_v55 = vrot.slane %v2720_v46, 4  ;;  %v2753_v56 = vrot.slane %v2751_v43, 4 }
  0xec   : > { %v13554_v5 = vcombine.low %v1772_v60, %v1775_v61  ;;  %v2762_v60 = vshrl.u32 %v13654_v42, 16  ;;  %v2765_v61 = vshll.u32 %v13654_v42, 16  ;;  %v13663_v43 = vld [vmem:[%s16885_s16 + $0x48] sm:$0xf]  ;;  %v13664_v46 = vld [vmem:[%s16885_s16 + $0x4c] sm:$0xf] }
  0xed   : > { %v13666_v42 = vld [vmem:[%s16885_s16 + $0x54] sm:$0xf] }
  0xee   : > { %v2764_v63 = vrot.slane %v2762_v60, 4  ;;  %v2767_v35 = vrot.slane %v2765_v61, 5  ;;  %v16499_v60 = vld [vmem:[%s16885_s16 + $0xd8] sm:$0xff]  }
  0xf0   : > { %15045 = vmatmul.mubr.msk.bf16.gmra.mrb[16].mxu0 %vm394_vm1, %v13548_v51  ;;  %v1786_v51 = vsel %vm17220_vm7, %v13537_v7, %v1785_v0 }
  0xf1   : > { %15048 = vmatprep.mubr.msk.bf16.mxu0 %vm394_vm1, %v13549_v8  ;;  %v13556_v8 = vcombine.low %v1786_v51, %v1789_v57  ;;  %v13656_v51 = vld [vmem:[%s16885_s16 + $0x2c] sm:$0x1]  ;;  %v17430_v57 = vrot.slane %v2771_v62, 5  ;;  %v2858_v62 = vshrl.u32 %v13666_v42, 16 }
  0xf8   : > { %15049 = vmatmul.mubr.msk.bf16.gmra.mrb[20].mxu0 %vm394_vm1, %v13550_v29  ;;  %v2727_v29 = vshrl.u32 %v13649_v23, 16  ;;  %v2768_v23 = vor.u32 %v2767_v35, %v2764_v63 }
  0xf9   : > { %15052 = vmatprep.mubr.msk.bf16.mxu0 %vm394_vm1, %v13551_v32  ;;  %v13651_v32 = vld [vmem:[%s16885_s16 + $0x18] sm:$0xf] }
  0xfa   : > { %v2729_v36 = vrot.slane %v2727_v29, 4  ;;  %v2738_v38 = vshrl.u32 %v13651_v32, 16  ;;  %v2741_v39 = vshll.u32 %v13651_v32, 16  ;;  %v13659_v32 = vld [vmem:[%s16885_s16 + $0x38] sm:$0x1] }
  0xfc   : > { %v2730_v45 = vor.u32 %v2729_v36, %v17410_v24  ;;  %v2740_v48 = vrot.slane %v2738_v38, 4  ;;  %v2743_v30 = vrot.slane %v2741_v39, 5 }
  0xfe   : > { %v2731_v53 = vrot.slane %v2730_v45, 4  ;;  %v2744_v0 = vor.u32 %v2743_v30, %v2740_v48  ;;  %v2805_v48 = vshll.u32 %v13659_v32, 16  ;;  %v13672_v32 = vld [vmem:[%s16885_s16 + $0x6c] sm:$0xf] }
 0x100   : > { %15053 = vmatmul.mubr.msk.bf16.gmra.mrb[24].mxu0 %vm394_vm1, %v13552_v49  ;;  %v2733_v49 = vshll.u32 %v13650_v40, 16  ;;  %v2745_v7 = vrot.slane %v2744_v0, 4  ;;  %v2769_v40 = vrot.slane %v2768_v23, 4  ;;  %v2847_v0 = vshrl.u32 %v13664_v46, 16 }
 0x101   : > { %15056 = vmatprep.mubr.msk.bf16.mxu0 %vm394_vm1, %v13553_v11  ;;  %v17419_v11 = vrot.slane %v2747_v41, 5 }
 0x102   : > { %v2774_v61 = vsel %vm16964_vm4, %v2769_v40, %v17430_v57 }
 0x103   : > { %v2754_v4 = vor.u32 %v2753_v56, %v17419_v11  ;;  %v2834_v56 = vshrl.u32 %v13663_v43, 16 }
 0x108   : > { %15057 = vmatmul.mubr.msk.bf16.gmra.mrb[28].mxu0 %vm394_vm1, %v13554_v5  ;;  %v13658_v5 = vld [vmem:[%s16885_s16 + $0x34] sm:$0xf] }
 0x109   : > { %15060 = vmatprep.mubr.msk.bf16.mxu0 %vm394_vm1, %v13555_v6  ;;  %v2735_v6 = vrot.slane %v2733_v49, 5 }
 0x10b   : > { %v2736_v22 = vsel %vm16964_vm4, %v2731_v53, %v2735_v6 }
 0x110   : > { %15061 = vmatmul.mubr.msk.bf16.gmra.mrb[32].mxu0 %vm394_vm1, %v13556_v8  ;;  %v2777_v8 = vrot.slane %v2775_v2, 4  ;;  %v2861_v2 = vshll.u32 %v13666_v42, 16 }
 0x111   : > { %15066 = vmatprep.mubr.msk.bf16.mxu0 %vm394_vm1, %v16482_v10  ;;  %v2786_v10 = vshrl.u32 %v13657_v44, 16 }
 0x112   : > { %v2778_v26 = vor.u32 %v2777_v8, %v17430_v57  ;;  %v13670_v57 = vld [vmem:[%s16885_s16 + $0x64] sm:$0xf] }
 0x113   : > { %v2788_v12 = vrot.slane %v2786_v10, 4 }
 0x114   : > { %v2779_v45 = vrot.slane %v2778_v26, 4 }
 0x118   : > { %15067 = vmatmul.mubr.msk.bf16.vlgmr.msra.gmra.mrb[0].mxu0 %vm394_vm1, %v16483_v13  ;;  %v2789_v13 = vshll.u32 %v13657_v44, 16 }
 0x119   : > { %15103 = vmatpush3.bf16.msra.mxu0 %v3256_v15  ;;  %15070 = vmatprep.mubr.msk.bf16.mxu0 %vm394_vm1, %v16484_v14  ;;  %v2755_v14 = vrot.slane %v2754_v4, 4  ;;  %v2759_v15 = vrot.slane %v2757_v58, 5  ;;  %v2837_v58 = vshll.u32 %v13663_v43, 16  ;;  %v17472_v4 = vrot.slane %v2805_v48, 5  ;;  %v13671_v43 = vld [vmem:[%s16885_s16 + $0x68] sm:$0x1] }
 0x11a   : > { %16387 = vmatprep.subr.msk.bf16.mxu0 %vm449_vm0, %v17383_v16  ;;  %v2791_v27 = vrot.slane %v2789_v13, 5  ;;  %v2836_v13 = vrot.slane %v2834_v56, 4  ;;  %v17514_v56 = vld [vmem:[%s19422_s1 + $0xc] sm:$0x3] }
 0x11b   : > { %v2760_v36 = vsel %vm16964_vm4, %v2755_v14, %v2759_v15  ;;  %v2839_v14 = vrot.slane %v2837_v58, 5 }
 0x11c   : > { %v2792_v47 = vor.u32 %v2791_v27, %v2788_v12 }
 0x11e   : > { %v17470_v44 = vrot.slane %v2792_v47, 4 }
 0x120   : > { %15071 = vmatmul.mubr.msk.bf16.gmra.mrb[4].mxu0 %vm394_vm1, %v16485_v17  ;;  %v2795_v17 = vshll.u32 %v13658_v5, 16 }
 0x121   : > { %15074 = vmatprep.mubr.msk.bf16.mxu0 %vm394_vm1, %v16486_v18  ;;  %v2799_v18 = vshrl.u32 %v13658_v5, 16 }
 0x122   : > { %v17443_v33 = vrot.slane %v2795_v17, 5  ;;  %v13665_v17 = vld [vmem:[%s16885_s16 + $0x50] sm:$0x1] }
 0x124   : > { %v2798_v12 = vsel %vm16964_vm4, %v17470_v44, %v17443_v33 }
 0x128   : > { %15075 = vmatmul.mubr.msk.bf16.gmra.mrb[8].mxu0 %vm394_vm1, %v16487_v1  ;;  %v13660_v1 = vld [vmem:[%s16885_s16 + $0x3c] sm:$0xf] }
 0x129   : > { %15078 = vmatprep.mubr.msk.bf16.mxu0 %vm394_vm1, %v16488_v19  ;;  %v13661_v19 = vld [vmem:[%s16885_s16 + $0x40] sm:$0xf]  ;;  %v2810_v29 = vshrl.u32 %v13660_v1, 16  ;;  %v2813_v3 = vshll.u32 %v13660_v1, 16  ;;  %v2860_v1 = vrot.slane %v2858_v62, 4 }
 0x12a   : > { %v2819_v34 = vshll.u32 %v13661_v19, 16  ;;  %v2823_v38 = vshrl.u32 %v13661_v19, 16  ;;  %v2863_v19 = vrot.slane %v2861_v2, 5 }
 0x12b   : > { %v2812_v30 = vrot.slane %v2810_v29, 4  ;;  %v2815_v50 = vrot.slane %v2813_v3, 5  ;;  %v2895_v29 = vshrl.u32 %v13670_v57, 16 }
 0x12c   : > { %v2825_v53 = vrot.slane %v2823_v38, 4 }
 0x130   : > { %15079 = vmatmul.mubr.msk.bf16.gmra.mrb[12].mxu0 %vm394_vm1, %v16489_v20  ;;  %v16497_v20 = vld [vmem:[%s16885_s16 + $0xc0] sm:$0xff]  }
 0x131   : > { %15082 = vmatprep.mubr.msk.bf16.mxu0 %vm394_vm1, %v16490_v21  ;;  %v2726_v21 = vsel %vm16964_vm4, %v2721_v55, %v17410_v24  ;;  %v2750_v24 = vsel %vm16964_vm4, %v2745_v7, %v17419_v11  ;;  %v13662_v11 = vld [vmem:[%s16885_s16 + $0x44] sm:$0x1]  ;;  %v13667_v55 = vld [vmem:[%s16885_s16 + $0x58] sm:$0xf]  ;;  %v13669_v7 = vld [vmem:[%s16885_s16 + $0x60] sm:$0xf] }
 0x132   : > { %v13703_v39 = vcombine.low %v2726_v21, %v2736_v22  ;;  %v2829_v5 = vshll.u32 %v13662_v11, 16  ;;  %v2867_v6 = vshll.u32 %v13667_v55, 16  ;;  %v2871_v8 = vshrl.u32 %v13667_v55, 16  ;;  %v13668_v22 = vld [vmem:[%s16885_s16 + $0x5c] sm:$0x1] }
 0x133   : > { %v2877_v40 = vshll.u32 %v13668_v22, 16 }
 0x134   : > { %v2831_v21 = vrot.slane %v2829_v5, 5  ;;  %v17487_v23 = vrot.slane %v2867_v6, 5  ;;  %v2873_v27 = vrot.slane %v2871_v8, 4 }
 0x138   : > { %15083 = vmatmul.mubr.msk.bf16.gmra.mrb[16].mxu0 %vm394_vm1, %v16491_v9  ;;  %v2781_v9 = vshll.u32 %v13656_v51, 16  ;;  %v2816_v51 = vor.u32 %v2815_v50, %v2812_v30 }
 0x139   : > { %15086 = vmatprep.mubr.msk.bf16.mxu0 %vm394_vm1, %v16492_v25  ;;  %v16498_v25 = vld [vmem:[%s16885_s16 + $0xcc] sm:$0xff]  }
 0x13a   : > { %v2783_v41 = vrot.slane %v2781_v9, 5  ;;  %v2885_v9 = vshll.u32 %v13669_v7, 16  ;;  %v2817_v3 = vrot.slane %v2816_v51, 4 }
 0x13c   : > { %v2784_v63 = vsel %vm16964_vm4, %v2779_v45, %v2783_v41  ;;  %v2909_v45 = vshll.u32 %v13672_v32, 16  ;;  %v2887_v30 = vrot.slane %v2885_v9, 5 }
 0x13d   : > { %v13705_v26 = vcombine.low %v2774_v61, %v2784_v63  ;;  %v2901_v61 = vshll.u32 %v13671_v43, 16  ;;  %v13674_v63 = vld [vmem:[%s16885_s16 + $0x74] sm:$0x1] }
 0x13e   : > { %v2911_v62 = vrot.slane %v2909_v45, 5 }
 0x140   : > { %15087 = vmatmul.mubr.msk.bf16.gmra.mrb[20].mxu0 %vm394_vm1, %v16493_v52  ;;  %v2801_v52 = vrot.slane %v2799_v18, 4  ;;  %v2849_v18 = vrot.slane %v2847_v0, 4 }
 0x141   : > { %15090 = vmatprep.mubr.msk.bf16.mxu0 %vm394_vm1, %v16494_v37  ;;  %v17452_v37 = vsel %vm449_vm0, %v17383_v16, 0  ;;  %v17459_v16 = vcombine.low %v2750_v24, %v2760_v36  ;;  %v2840_v24 = vor.u32 %v2839_v14, %v2836_v13  ;;  %v2853_v36 = vshll.u32 %v13665_v17, 16  ;;  %v13678_v17 = vld [vmem:[%s16885_s16 + $0x84] sm:$0xf] }
 0x142   : > { %v2802_v49 = vor.u32 %v2801_v52, %v17443_v33  ;;  %v13673_v52 = vld [vmem:[%s16885_s16 + $0x70] sm:$0xf]  ;;  %v2874_v33 = vor.u32 %v2873_v27, %v17487_v23  ;;  %v2954_v27 = vshrl.u32 %v13678_v17, 16 }
 0x143   : > { %v2915_v47 = vshll.u32 %v13673_v52, 16  ;;  %v2919_v48 = vshrl.u32 %v13673_v52, 16  ;;  %v2841_v58 = vrot.slane %v2840_v24, 4 }
 0x144   : > { %v17477_v35 = vrot.slane %v2802_v49, 4  ;;  %v2897_v49 = vrot.slane %v2895_v29, 4  ;;  %v2957_v29 = vshll.u32 %v13678_v17, 16 }
 0x145   : > { %v17521_v2 = vrot.slane %v2915_v47, 5  ;;  %v2921_v44 = vrot.slane %v2919_v48, 4  ;;  %v2956_v48 = vrot.slane %v2954_v27, 4  ;;  %v13688_v27 = vld [vmem:[%s16885_s16 + $0xac] sm:$0xf] }
 0x146   : > { %v2808_v11 = vsel %vm16964_vm4, %v17477_v35, %v17472_v4  ;;  %v13676_v4 = vld [vmem:[%s16885_s16 + $0x7c] sm:$0xf] }
 0x147   : > { %v2939_v13 = vshll.u32 %v13676_v4, 16  ;;  %v2943_v14 = vshrl.u32 %v13676_v4, 16 }
 0x148   : > { %15091 = vmatmul.mubr.msk.bf16.gmra.mrb[24].mxu0 %vm394_vm1, %v16495_v54  ;;  %v17463_v54 = vrot.slane %v2819_v34, 5 }
 0x149   : > { %15094 = vmatprep.mubr.msk.bf16.mxu0 %vm394_vm1, %v16496_v59  ;;  %v2843_v59 = vshll.u32 %v13664_v46, 16  ;;  %v2906_v46 = vshrl.u32 %v13672_v32, 16 }
 0x14a   : > { %v2826_v10 = vor.u32 %v2825_v53, %v17463_v54  ;;  %v2822_v50 = vsel %vm16964_vm4, %v2817_v3, %v17463_v54  ;;  %v17509_v53 = vrot.slane %v2853_v36, 5  ;;  %v13675_v54 = vld [vmem:[%s16885_s16 + $0x78] sm:$0xf]  ;;  %v13682_v3 = vld [vmem:[%s16885_s16 + $0x94] sm:$0xf]  ;;  %v17546_v36 = vrot.slane %v2939_v13, 5 }
 0x14b   : > { %v17481_v15 = vrot.slane %v2843_v59, 5  ;;  %v2908_v0 = vrot.slane %v2906_v46, 4  ;;  %v2930_v51 = vshrl.u32 %v13675_v54, 16  ;;  %v2933_v8 = vshll.u32 %v13675_v54, 16 }
 0x14c   : > { %v2827_v34 = vrot.slane %v2826_v10, 4  ;;  %v2987_v45 = vshll.u32 %v13682_v3, 16  ;;  %v2991_v47 = vshrl.u32 %v13682_v3, 16 }
 0x14d   : > { %v2850_v38 = vor.u32 %v2849_v18, %v17481_v15  ;;  %v13679_v18 = vld [vmem:[%s16885_s16 + $0x88] sm:$0xf]  ;;  %v2935_v24 = vrot.slane %v2933_v8, 5 }
 0x14e   : > { %v2832_v55 = vsel %vm16964_vm4, %v2827_v34, %v2831_v21  ;;  %v2925_v21 = vshll.u32 %v13674_v63, 16  ;;  %v2963_v32 = vshll.u32 %v13679_v18, 16  ;;  %v2967_v52 = vshrl.u32 %v13679_v18, 16 }
 0x14f   : > { %v2851_v59 = vrot.slane %v2850_v38, 4  ;;  %v13707_v35 = vcombine.low %v2822_v50, %v2832_v55  ;;  %v2932_v34 = vrot.slane %v2930_v51, 4  ;;  %v2945_v38 = vrot.slane %v2943_v14, 4 }
 0x150   : > { %15095 = vmatmul.mubr.msk.bf16.gmra.mrb[28].mxu0 %vm394_vm1, %v16497_v20  ;;  %v2882_v20 = vshrl.u32 %v13669_v7, 16  ;;  %v17564_v4 = vrot.slane %v2987_v45, 5 }
 0x151   : > { %15098 = vmatprep.mubr.msk.bf16.mxu0 %vm394_vm1, %v16498_v25  ;;  %v2891_v25 = vshll.u32 %v13670_v57, 16  ;;  %v2846_v57 = vsel %vm16964_vm4, %v2841_v58, %v17481_v15  ;;  %v2856_v10 = vsel %vm16964_vm4, %v2851_v59, %v17509_v53  ;;  %v2936_v55 = vor.u32 %v2935_v24, %v2932_v34  ;;  %v13680_v58 = vld [vmem:[%s16885_s16 + $0x8c] sm:$0x1]  ;;  %v13691_v24 = vld [vmem:[%s16885_s16 + $0xb8] sm:$0xf] }
 0x152   : > { %v2884_v41 = vrot.slane %v2882_v20, 4  ;;  %v2922_v20 = vor.u32 %v2921_v44, %v17521_v2  ;;  %v2946_v53 = vor.u32 %v2945_v38, %v17546_v36  ;;  %v2973_v63 = vshll.u32 %v13680_v58, 16 }
 0x153   : > { %v17498_v42 = vrot.slane %v2891_v25, 5 }
 0x154   : > { %v2888_v6 = vor.u32 %v2887_v30, %v2884_v41  ;;  %v17549_v30 = vrot.slane %v2963_v32, 5 }
 0x155   : > { %v2898_v7 = vor.u32 %v2897_v49, %v17498_v42  ;;  %v2969_v49 = vrot.slane %v2967_v52, 4 }
 0x156   : > { %v2889_v9 = vrot.slane %v2888_v6, 4 }
 0x157   : > { %v2899_v25 = vrot.slane %v2898_v7, 4  ;;  %v2970_v7 = vor.u32 %v2969_v49, %v17549_v30 }
 0x158   : > { %15099 = vmatmul.mubr.msk.bf16.gmra.mrb[32].mxu0 %vm394_vm1, %v16499_v60  ;;  %v2879_v60 = vrot.slane %v2877_v40, 5  ;;  %v2927_v40 = vrot.slane %v2925_v21, 5  ;;  %v2894_v59 = vsel %vm16964_vm4, %v2889_v9, %v17498_v42 }
 0x159   : > { %15104 = vmatprep.mubr.msk.bf16.mxu0 %vm394_vm1, %v13703_v39  ;;  %v2864_v39 = vor.u32 %v2863_v19, %v2860_v1  ;;  %v2903_v1 = vrot.slane %v2901_v61, 5  ;;  %v2912_v19 = vor.u32 %v2911_v62, %v2908_v0  ;;  %v13684_v0 = vld [vmem:[%s16885_s16 + $0x9c] sm:$0xf]  ;;  %v2971_v21 = vrot.slane %v2970_v7, 4 }
 0x15a   : > { %v3002_v51 = vshrl.u32 %v13684_v0, 16  ;;  %v3005_v8 = vshll.u32 %v13684_v0, 16 }
 0x15b   : > { %v2865_v5 = vrot.slane %v2864_v39, 4  ;;  %v2923_v39 = vrot.slane %v2922_v20, 4 }
 0x15d   : > { %v2870_v22 = vsel %vm16964_vm4, %v2865_v5, %v17487_v23  ;;  %v2913_v23 = vrot.slane %v2912_v19, 4  ;;  %v2993_v5 = vrot.slane %v2991_v47, 4  ;;  %v2928_v6 = vsel %vm16964_vm4, %v2923_v39, %v2927_v40 }
 0x15f   : > { %v2918_v61 = vsel %vm16964_vm4, %v2913_v23, %v17521_v2  ;;  %v2937_v2 = vrot.slane %v2936_v55, 4  ;;  %v2994_v17 = vor.u32 %v2993_v5, %v17564_v4  ;;  %v13692_v5 = vld [vmem:[%s16885_s16 + $0xbc] sm:$0x1] }
 0x160   : > { %15105 = vmatmul.mubr.msk.bf16.vlgmr.msra.gmra.mrb[0].mxu0 %vm394_vm1, %v17459_v16  ;;  %v2875_v16 = vrot.slane %v2874_v33, 4  ;;  %v2959_v33 = vrot.slane %v2957_v29, 5  ;;  %v13711_v19 = vcombine.low %v2918_v61, %v2928_v6  ;;  %v13690_v29 = vld [vmem:[%s16885_s16 + $0xb4] sm:$0xf] }
 0x161   : > { %15141 = vmatpush3.bf16.msra.mxu0 %v17452_v37  ;;  %15108 = vmatprep.mubr.msk.bf16.mxu0 %vm394_vm1, %v13705_v26  ;;  %v13706_v37 = vcombine.low %v2798_v12, %v2808_v11  ;;  %v13677_v26 = vld [vmem:[%s16885_s16 + $0x80] sm:$0x1]  ;;  %v13681_v12 = vld [vmem:[%s16885_s16 + $0x90] sm:$0xf]  ;;  %v13708_v11 = vcombine.low %v2846_v57, %v2856_v10  ;;  %v2942_v9 = vsel %vm16964_vm4, %v2937_v2, %v17546_v36  ;;  %v2995_v23 = vrot.slane %v2994_v17, 4 }
 0x162   : > { %16388 = vmatprep.subr.msk.bf16.mxu0 %vm449_vm0, %v17514_v56  ;;  %v2880_v15 = vsel %vm16964_vm4, %v2875_v16, %v2879_v60  ;;  %v2949_v41 = vshll.u32 %v13677_v26, 16  ;;  %v2978_v43 = vshrl.u32 %v13681_v12, 16  ;;  %v2981_v46 = vshll.u32 %v13681_v12, 16  ;;  %v13685_v16 = vld [vmem:[%s16885_s16 + $0xa0] sm:$0xf] }
 0x163   : > { %v13709_v50 = vcombine.low %v2870_v22, %v2880_v15  ;;  %v2904_v60 = vsel %vm16964_vm4, %v2899_v25, %v2903_v1  ;;  %v2960_v42 = vor.u32 %v2959_v33, %v2956_v48  ;;  %v3011_v57 = vshll.u32 %v13685_v16, 16  ;;  %v13687_v1 = vld [vmem:[%s16885_s16 + $0xa8] sm:$0xf]  ;;  %v13686_v15 = vld [vmem:[%s16885_s16 + $0xa4] sm:$0x1] }
 0x164   : > { %v17561_v54 = vrot.slane %v2949_v41, 5  ;;  %v2980_v62 = vrot.slane %v2978_v43, 4  ;;  %v2983_v44 = vrot.slane %v2981_v46, 5  ;;  %v3015_v10 = vshrl.u32 %v13685_v16, 16  ;;  %v13694_v2 = vld [vmem:[%s16885_s16 + $0xc4] sm:$0xf] }
 0x165   : > { %v13710_v13 = vcombine.low %v2894_v59, %v2904_v60  ;;  %v2961_v20 = vrot.slane %v2960_v42, 4  ;;  %v2975_v22 = vrot.slane %v2973_v63, 5  ;;  %v3004_v26 = vrot.slane %v3002_v51, 4  ;;  %v13689_v59 = vld [vmem:[%s16885_s16 + $0xb0] sm:$0x1] }
 0x166   : > { %v2984_v14 = vor.u32 %v2983_v44, %v2980_v62  ;;  %v3007_v12 = vrot.slane %v3005_v8, 5  ;;  %v17584_v32 = vrot.slane %v3011_v57, 5  ;;  %v3017_v52 = vrot.slane %v3015_v10, 4 }
 0x167   : > { %v3026_v3 = vshrl.u32 %v13687_v1, 16  ;;  %v3029_v34 = vshll.u32 %v13687_v1, 16  ;;  %v3021_v40 = vshll.u32 %v13686_v15, 16  ;;  %v3035_v41 = vshll.u32 %v13688_v27, 16 }
 0x168   : > { %15109 = vmatmul.mubr.msk.bf16.gmra.mrb[4].mxu0 %vm394_vm1, %v13706_v37  ;;  %v13683_v37 = vld [vmem:[%s16885_s16 + $0x98] sm:$0x1]  ;;  %v2985_v38 = vrot.slane %v2984_v14, 4  ;;  %v3039_v36 = vshrl.u32 %v13688_v27, 16  ;;  %v3050_v43 = vshrl.u32 %v13690_v29, 16  ;;  %v3053_v46 = vshll.u32 %v13690_v29, 16 }
 0x169   : > { %15112 = vmatprep.mubr.msk.bf16.mxu0 %vm394_vm1, %v13707_v35  ;;  %v2947_v35 = vrot.slane %v2946_v53, 4  ;;  %v2997_v18 = vshll.u32 %v13683_v37, 16  ;;  %v2966_v45 = vsel %vm16964_vm4, %v2961_v20, %v17549_v30  ;;  %v2976_v47 = vsel %vm16964_vm4, %v2971_v21, %v2975_v22  ;;  %v13697_v14 = vld [vmem:[%s16885_s16 + $0xd0] sm:$0xf] }
 0x16a   : > { %v3059_v48 = vshll.u32 %v13691_v24, 16  ;;  %v3063_v33 = vshrl.u32 %v13691_v24, 16  ;;  %v3008_v49 = vor.u32 %v3007_v12, %v3004_v26  ;;  %v3031_v55 = vrot.slane %v3029_v34, 5  ;;  %v13695_v24 = vld [vmem:[%s16885_s16 + $0xc8] sm:$0x1] }
 0x16b   : > { %v2952_v25 = vsel %vm16964_vm4, %v2947_v35, %v17561_v54  ;;  %v2999_v39 = vrot.slane %v2997_v18, 5  ;;  %v2990_v53 = vsel %vm16964_vm4, %v2985_v38, %v17564_v4  ;;  %v3023_v58 = vrot.slane %v3021_v40, 5  ;;  %v13693_v4 = vld [vmem:[%s16885_s16 + $0xc0] sm:$0xf]  ;;  %v13699_v40 = vld [vmem:[%s16885_s16 + $0xd8] sm:$0xf] }
 0x16c   : > { %v17601_v60 = vrot.slane %v3035_v41, 5  ;;  %v3041_v61 = vrot.slane %v3039_v36, 4  ;;  %v3052_v54 = vrot.slane %v3050_v43, 4  ;;  %v3055_v0 = vrot.slane %v3053_v46, 5 }
 0x16d   : > { %v3000_v30 = vsel %vm16964_vm4, %v2995_v23, %v2999_v39  ;;  %v13712_v62 = vcombine.low %v2942_v9, %v2952_v25  ;;  %v13713_v44 = vcombine.low %v2966_v45, %v2976_v47  ;;  %v17604_v16 = vrot.slane %v3059_v48, 5  ;;  %v13700_v45 = vld [vmem:[%s16885_s16 + $0xdc] sm:$0xf] }
 0x16e   : > { %v3065_v6 = vrot.slane %v3063_v33, 4  ;;  %v3009_v42 = vrot.slane %v3008_v49, 4  ;;  %v3045_v37 = vshll.u32 %v13689_v59, 16  ;;  %v13714_v35 = vcombine.low %v2990_v53, %v3000_v30  ;;  %v13698_v49 = vld [vmem:[%s16885_s16 + $0xd4] sm:$0x1] }
 0x16f   : > { %v3042_v51 = vor.u32 %v3041_v61, %v17601_v60  ;;  %v3056_v8 = vor.u32 %v3055_v0, %v3052_v54  ;;  %v3069_v57 = vshll.u32 %v13692_v5, 16  ;;  %v3074_v10 = vshrl.u32 %v13693_v4, 16 }
 0x170   : > { %15113 = vmatmul.mubr.msk.bf16.gmra.mrb[8].mxu0 %vm394_vm1, %v13708_v11  ;;  %v3018_v11 = vor.u32 %v3017_v52, %v17584_v32  ;;  %v3066_v17 = vor.u32 %v3065_v6, %v17604_v16  ;;  %v3077_v18 = vshll.u32 %v13693_v4, 16  ;;  %v3083_v1 = vshll.u32 %v13694_v2, 16 }
 0x171   : > { %15116 = vmatprep.mubr.msk.bf16.mxu0 %vm394_vm1, %v13709_v50  ;;  %v3028_v50 = vrot.slane %v3026_v3, 4  ;;  %v3014_v20 = vsel %vm16964_vm4, %v3009_v42, %v17584_v32  ;;  %v3047_v15 = vrot.slane %v3045_v37, 5  ;;  %v3107_v26 = vshll.u32 %v13697_v14, 16 }
 0x172   : > { %v3019_v7 = vrot.slane %v3018_v11, 4  ;;  %v3111_v12 = vshrl.u32 %v13697_v14, 16  ;;  %v3043_v27 = vrot.slane %v3042_v51, 4  ;;  %v3057_v29 = vrot.slane %v3056_v8, 4  ;;  %v13701_v51 = vld [vmem:[%s16885_s16 + $0xe0] sm:$0x1] }
 0x173   : > { %v3032_v63 = vor.u32 %v3031_v55, %v3028_v50  ;;  %v3071_v52 = vrot.slane %v3069_v57, 5  ;;  %v3076_v3 = vrot.slane %v3074_v10, 4  ;;  %v3067_v34 = vrot.slane %v3066_v17, 4  ;;  %v13740_v8 = vld [vmem:[%s16885_s16 + $0x10] sm:$0xf] }
 0x174   : > { %v3024_v21 = vsel %vm16964_vm4, %v3019_v7, %v3023_v58  ;;  %v3079_v38 = vrot.slane %v3077_v18, 5  ;;  %v3085_v32 = vrot.slane %v3083_v1, 5  ;;  %v3109_v43 = vrot.slane %v3107_v26, 5 }
 0x175   : > { %v3033_v22 = vrot.slane %v3032_v63, 4  ;;  %v13715_v39 = vcombine.low %v3014_v20, %v3024_v21  ;;  %v3113_v46 = vrot.slane %v3111_v12, 4  ;;  %v3048_v48 = vsel %vm16964_vm4, %v3043_v27, %v3047_v15  ;;  %v13739_v20 = vld [vmem:[%s16885_s16 + $0xc] sm:$0xe]  ;;  %v13741_v21 = vld [vmem:[%s16885_s16 + $0x14] sm:$0x1] }
 0x176   : > { %v3093_v33 = vshll.u32 %v13695_v24, 16  ;;  %v3062_v11 = vsel %vm16964_vm4, %v3057_v29, %v17604_v16  ;;  %v3072_v50 = vsel %vm16964_vm4, %v3067_v34, %v3071_v52  ;;  %v3080_v55 = vor.u32 %v3079_v38, %v3076_v3  ;;  %v13743_v52 = vld [vmem:[%s16885_s16 + $0x1c] sm:$0xf]  ;;  %v13746_v3 = vld [vmem:[%s16885_s16 + $0x28] sm:$0xf] }
 0x177   : > { %v3038_v47 = vsel %vm16964_vm4, %v3033_v22, %v17601_v60  ;;  %v3122_v30 = vshrl.u32 %v13699_v40, 16  ;;  %v3125_v58 = vshll.u32 %v13699_v40, 16  ;;  %v3131_v59 = vshll.u32 %v13700_v45, 16  ;;  %v13744_v40 = vld [vmem:[%s16885_s16 + $0x20] sm:$0x1] }
 0x178   : > { %15117 = vmatmul.mubr.msk.bf16.gmra.mrb[12].mxu0 %vm394_vm1, %v13710_v13  ;;  %v13696_v13 = vld [vmem:[%s16885_s16 + $0xcc] sm:$0xf]  ;;  %v3135_v60 = vshrl.u32 %v13700_v45, 16  ;;  %v3114_v54 = vor.u32 %v3113_v46, %v3109_v43  ;;  %v3117_v0 = vshll.u32 %v13698_v49, 16  ;;  %v3081_v5 = vrot.slane %v3080_v55, 4 }
 0x179   : > { %15120 = vmatprep.mubr.msk.bf16.mxu0 %vm394_vm1, %v13711_v19  ;;  %v3087_v19 = vshrl.u32 %v13694_v2, 16  ;;  %v3098_v9 = vshrl.u32 %v13696_v13, 16  ;;  %v3101_v25 = vshll.u32 %v13696_v13, 16  ;;  %v3095_v6 = vrot.slane %v3093_v33, 5  ;;  %v13749_v55 = vld [vmem:[%s16885_s16 + $0x34] sm:$0xf] }
 0x17a   : > { %v3124_v4 = vrot.slane %v3122_v30, 4  ;;  %v3127_v42 = vrot.slane %v3125_v58, 5  ;;  %v3133_v7 = vrot.slane %v3131_v59, 5  ;;  %v3137_v63 = vrot.slane %v3135_v60, 4 }
 0x17b   : > { %v3089_v23 = vrot.slane %v3087_v19, 4  ;;  %v3100_v41 = vrot.slane %v3098_v9, 4  ;;  %v3103_v36 = vrot.slane %v3101_v25, 5  ;;  %v3115_v2 = vrot.slane %v3114_v54, 4  ;;  %v13748_v54 = vld [vmem:[%s16885_s16 + $0x30] sm:$0xe] }
 0x17c   : > { %v3086_v57 = vsel %vm16964_vm4, %v3081_v5, %v3085_v32  ;;  %v3128_v13 = vor.u32 %v3127_v42, %v3124_v4  ;;  %v3138_v14 = vor.u32 %v3137_v63, %v3133_v7  ;;  %v3141_v17 = vshll.u32 %v13701_v51, 16  ;;  %v13753_v5 = vld [vmem:[%s16885_s16 + $0x44] sm:$0x1]  ;;  %v13755_v51 = vld [vmem:[%s16885_s16 + $0x4c] sm:$0xf] }
 0x17d   : > { %v3090_v53 = vor.u32 %v3089_v23, %v3085_v32  ;;  %v3104_v61 = vor.u32 %v3103_v36, %v3100_v41  ;;  %v3653_v19 = vrot.slane %v13740_v8, 5  ;;  %v13793_v12 = vrot.slane %v13739_v20, 9  ;;  %v13745_v36 = vld [vmem:[%s16885_s16 + $0x24] sm:$0xe]  ;;  %v13758_v8 = vld [vmem:[%s16885_s16 + $0x58] sm:$0xf] }
 0x17e   : > { %v3129_v9 = vrot.slane %v3128_v13, 4  ;;  %v3139_v25 = vrot.slane %v3138_v14, 4  ;;  %v3143_v26 = vrot.slane %v3141_v17, 5  ;;  %v3656_v29 = vrot.slane %v13741_v21, 5  ;;  %v13757_v20 = vld [vmem:[%s16885_s16 + $0x54] sm:$0xe] }
 0x17f   : > { %v3091_v16 = vrot.slane %v3090_v53, 4  ;;  %v3105_v37 = vrot.slane %v3104_v61, 4  ;;  %v3655_v27 = vrot.slane %v3653_v19, 4  ;;  %v3660_v38 = vrot.slane %v13743_v52, 5  ;;  %v13752_v53 = vld [vmem:[%s16885_s16 + $0x40] sm:$0xf] }
 0x180   : > { %15121 = vmatmul.mubr.msk.bf16.gmra.mrb[16].mxu0 %vm394_vm1, %v13712_v62  ;;  %v13716_v62 = vcombine.low %v3038_v47, %v3048_v48  ;;  %v3134_v34 = vsel %vm16964_vm4, %v3129_v9, %v3133_v7  ;;  %v3144_v24 = vsel %vm16964_vm4, %v3139_v25, %v3143_v26  ;;  %v3654_v32 = vsel %vm17220_vm7, %v13793_v12, %v3653_v19  ;;  %v13759_v21 = vld [vmem:[%s16885_s16 + $0x5c] sm:$0x1]  ;;  %v13761_v52 = vld [vmem:[%s16885_s16 + $0x64] sm:$0xf] }
 0x181   : > { %15124 = vmatprep.mubr.msk.bf16.mxu0 %vm394_vm1, %v13713_v44  ;;  %v13717_v44 = vcombine.low %v3062_v11, %v3072_v50  ;;  %v3096_v10 = vsel %vm16964_vm4, %v3091_v16, %v3095_v6  ;;  %v3110_v18 = vsel %vm16964_vm4, %v3105_v37, %v3109_v43  ;;  %v3657_v23 = vsel %vm17220_vm7, %v3655_v27, %v3656_v29  ;;  %v13747_v43 = vld [vmem:[%s16885_s16 + $0x2c] sm:$0x1] }
 0x182   : > { %v13718_v22 = vcombine.low %v3086_v57, %v3096_v10  ;;  %v3667_v41 = vrot.slane %v13746_v3, 5  ;;  %v13720_v46 = vcombine.low %v3134_v34, %v3144_v24  ;;  %v13812_v45 = vcombine.low %v3654_v32, %v3657_v23  ;;  %v17688_v57 = vld [vmem:[%s19422_s1 + $0xe] sm:$0x3]  ;;  %v13764_v3 = vld [vmem:[%s16885_s16 + $0x70] sm:$0xf] }
 0x183   : > { %v3662_v48 = vrot.slane %v3660_v38, 4  ;;  %v3663_v33 = vrot.slane %v13744_v40, 5  ;;  %v13795_v49 = vrot.slane %v13745_v36, 9  ;;  %v3670_v50 = vrot.slane %v13747_v43, 5  ;;  %v13762_v40 = vld [vmem:[%s16885_s16 + $0x68] sm:$0x1] }
 0x184   : > { %v3669_v11 = vrot.slane %v3667_v41, 4  ;;  %v3674_v59 = vrot.slane %v13749_v55, 5  ;;  %v13796_v4 = vrot.slane %v13748_v54, 9  ;;  %v4359_v63 = vsel %vm449_vm0, %v17514_v56, 0  ;;  %v13763_v36 = vld [vmem:[%s16885_s16 + $0x6c] sm:$0xe] }
 0x185   : > { %v3664_v58 = vsel %vm17220_vm7, %v3662_v48, %v3663_v33  ;;  %v3668_v60 = vsel %vm17220_vm7, %v13795_v49, %v3667_v41  ;;  %v3688_v13 = vrot.slane %v13755_v51, 5  ;;  %v3695_v19 = vrot.slane %v13758_v8, 5  ;;  %v13765_v43 = vld [vmem:[%s16885_s16 + $0x74] sm:$0x1]  ;;  %v13767_v55 = vld [vmem:[%s16885_s16 + $0x7c] sm:$0xf] }
 0x186   : > { %v3671_v61 = vsel %vm17220_vm7, %v3669_v11, %v3670_v50  ;;  %v3676_v42 = vrot.slane %v3674_v59, 4  ;;  %v3675_v56 = vsel %vm17220_vm7, %v13796_v4, %v3674_v59  ;;  %v13799_v12 = vrot.slane %v13757_v20, 9  ;;  %v13766_v54 = vld [vmem:[%s16885_s16 + $0x78] sm:$0xe]  ;;  %v13776_v51 = vld [vmem:[%s16885_s16 + $0xa0] sm:$0xf] }
 0x187   : > { %v13814_v6 = vcombine.low %v3668_v60, %v3671_v61  ;;  %v3690_v25 = vrot.slane %v3688_v13, 4  ;;  %v3697_v27 = vrot.slane %v3695_v19, 4  ;;  %v3698_v29 = vrot.slane %v13759_v21, 5  ;;  %v13777_v20 = vld [vmem:[%s16885_s16 + $0xa4] sm:$0x1] }
 0x188   : > { %15125 = vmatmul.mubr.msk.bf16.gmra.mrb[20].mxu0 %vm394_vm1, %v13714_v35  ;;  %v3119_v35 = vrot.slane %v3117_v0, 5  ;;  %v13750_v0 = vld [vmem:[%s16885_s16 + $0x38] sm:$0x1]  ;;  %v3696_v32 = vsel %vm17220_vm7, %v13799_v12, %v3695_v19  ;;  %v3709_v41 = vrot.slane %v13764_v3, 5  ;;  %v3705_v33 = vrot.slane %v13762_v40, 5 }
 0x189   : > { %15128 = vmatprep.mubr.msk.bf16.mxu0 %vm394_vm1, %v13715_v39  ;;  %v13742_v39 = vld [vmem:[%s16885_s16 + $0x18] sm:$0xe]  ;;  %v3677_v7 = vrot.slane %v13750_v0, 5  ;;  %v3699_v23 = vsel %vm17220_vm7, %v3697_v27, %v3698_v29  ;;  %v13801_v49 = vrot.slane %v13763_v36, 9  ;;  %v3712_v50 = vrot.slane %v13765_v43, 5 }
 0x18a   : > { %v3120_v1 = vsel %vm16964_vm4, %v3115_v2, %v3119_v35  ;;  %v13794_v47 = vrot.slane %v13742_v39, 9  ;;  %v3684_v35 = vrot.slane %v13753_v5, 5  ;;  %v13760_v39 = vld [vmem:[%s16885_s16 + $0x60] sm:$0xe]  ;;  %v3711_v11 = vrot.slane %v3709_v41, 4 }
 0x18b   : > { %v13719_v15 = vcombine.low %v3110_v18, %v3120_v1  ;;  %v3678_v10 = vsel %vm17220_vm7, %v3676_v42, %v3677_v7  ;;  %v13754_v18 = vld [vmem:[%s16885_s16 + $0x48] sm:$0xe]  ;;  %v13756_v1 = vld [vmem:[%s16885_s16 + $0x50] sm:$0x1]  ;;  %v3716_v59 = vrot.slane %v13767_v55, 5  ;;  %v3710_v60 = vsel %vm17220_vm7, %v13801_v49, %v3709_v41 }
 0x18c   : > { %v3661_v30 = vsel %vm17220_vm7, %v13794_v47, %v3660_v38  ;;  %v13798_v9 = vrot.slane %v13754_v18, 9  ;;  %v3691_v26 = vrot.slane %v13756_v1, 5  ;;  %v3702_v38 = vrot.slane %v13761_v52, 5  ;;  %v13768_v0 = vld [vmem:[%s16885_s16 + $0x80] sm:$0x1] }
 0x18d   : > { %v13813_v16 = vcombine.low %v3661_v30, %v3664_v58  ;;  %v13800_v47 = vrot.slane %v13760_v39, 9  ;;  %v3713_v61 = vsel %vm17220_vm7, %v3711_v11, %v3712_v50  ;;  %v13771_v5 = vld [vmem:[%s16885_s16 + $0x8c] sm:$0x1]  ;;  %v13802_v4 = vrot.slane %v13766_v54, 9  ;;  %v13774_v18 = vld [vmem:[%s16885_s16 + $0x98] sm:$0x1] }
 0x18e   : > { %v3689_v34 = vsel %vm17220_vm7, %v13798_v9, %v3688_v13  ;;  %v3692_v24 = vsel %vm17220_vm7, %v3690_v25, %v3691_v26  ;;  %v3704_v48 = vrot.slane %v3702_v38, 4  ;;  %v3718_v42 = vrot.slane %v3716_v59, 4  ;;  %v13775_v19 = vld [vmem:[%s16885_s16 + $0x9c] sm:$0xe]  ;;  %v13779_v29 = vld [vmem:[%s16885_s16 + $0xac] sm:$0xf] }
 0x18f   : > { %v3703_v30 = vsel %vm17220_vm7, %v13800_v47, %v3702_v38  ;;  %v3719_v7 = vrot.slane %v13768_v0, 5  ;;  %v3717_v8 = vsel %vm17220_vm7, %v13802_v4, %v3716_v59  ;;  %v3737_v1 = vrot.slane %v13776_v51, 5  ;;  %v13782_v52 = vld [vmem:[%s16885_s16 + $0xb8] sm:$0xf]  ;;  %v13780_v39 = vld [vmem:[%s16885_s16 + $0xb0] sm:$0x1] }
 0x190   : > { %15129 = vmatmul.mubr.msk.bf16.gmra.mrb[24].mxu0 %vm394_vm1, %v13716_v62  ;;  %v3681_v62 = vrot.slane %v13752_v53, 5  ;;  %v13770_v53 = vld [vmem:[%s16885_s16 + $0x88] sm:$0xf]  ;;  %v3706_v58 = vsel %vm17220_vm7, %v3704_v48, %v3705_v33  ;;  %v3733_v25 = vrot.slane %v13774_v18, 5  ;;  %v13805_v26 = vrot.slane %v13775_v19, 9 }
 0x191   : > { %15132 = vmatprep.mubr.msk.bf16.mxu0 %vm394_vm1, %v13717_v44  ;;  %v13751_v44 = vld [vmem:[%s16885_s16 + $0x3c] sm:$0xe]  ;;  %v3739_v12 = vrot.slane %v3737_v1, 4  ;;  %v3740_v27 = vrot.slane %v13777_v20, 5  ;;  %v3751_v40 = vrot.slane %v13782_v52, 5  ;;  %v3747_v48 = vrot.slane %v13780_v39, 5 }
 0x192   : > { %v13797_v37 = vrot.slane %v13751_v44, 9  ;;  %v3683_v2 = vrot.slane %v3681_v62, 4  ;;  %v13769_v44 = vld [vmem:[%s16885_s16 + $0x84] sm:$0xe]  ;;  %v3738_v38 = vsel %vm17220_vm7, %v13805_v26, %v3737_v1  ;;  %v13781_v41 = vld [vmem:[%s16885_s16 + $0xb4] sm:$0xe] }
 0x193   : > { %v13783_v36 = vld [vmem:[%s16885_s16 + $0xbc] sm:$0x1]  ;;  %v13807_v33 = vrot.slane %v13781_v41, 9  ;;  %v3753_v49 = vrot.slane %v3751_v40, 4  ;;  %v13785_v50 = vld [vmem:[%s16885_s16 + $0xc4] sm:$0xf] }
 0x194   : > { %v3682_v14 = vsel %vm17220_vm7, %v13797_v37, %v3681_v62  ;;  %v3685_v17 = vsel %vm17220_vm7, %v3683_v2, %v3684_v35  ;;  %v3723_v62 = vrot.slane %v13770_v53, 5  ;;  %v3726_v2 = vrot.slane %v13771_v5, 5  ;;  %v13773_v35 = vld [vmem:[%s16885_s16 + $0x94] sm:$0xf]  ;;  %v13788_v55 = vld [vmem:[%s16885_s16 + $0xd0] sm:$0xf] }
 0x195   : > { %v3754_v11 = vrot.slane %v13783_v36, 5  ;;  %v3752_v59 = vsel %vm17220_vm7, %v13807_v33, %v3751_v40  ;;  %v13786_v54 = vld [vmem:[%s16885_s16 + $0xc8] sm:$0x1]  ;;  %v3765_v0 = vrot.slane %v13788_v55, 5  ;;  %v16502_v26 = vld [vmem:[%s16885_s16 + $0x30] sm:$0xff]  }
 0x196   : > { %v3725_v37 = vrot.slane %v3723_v62, 4  ;;  %v16504_v52 = vld [vmem:[%s16885_s16 + $0x48] sm:$0xff]   ;;  %v13922_v39 = vld [vmem:[%s16885_s16 + $0x1c] sm:$0xf]  ;;  %v13924_v36 = vld [vmem:[%s16885_s16 + $0x24] sm:$0xf] }
 0x197   : > { %v4725_v33 = vshrl.u32 %v13924_v36, 16 }
 0x198   : > { %15133 = vmatmul.mubr.msk.bf16.gmra.mrb[28].mxu0 %vm394_vm1, %v13718_v22  ;;  %v13815_v22 = vcombine.low %v3675_v56, %v3678_v10  ;;  %v3720_v56 = vsel %vm17220_vm7, %v3718_v42, %v3719_v7  ;;  %v3730_v10 = vrot.slane %v13773_v35, 5  ;;  %v3761_v42 = vrot.slane %v13786_v54, 5  ;;  %v13928_v54 = vld [vmem:[%s16885_s16 + $0x34] sm:$0xf] }
 0x199   : > { %15136 = vmatprep.mubr.msk.bf16.mxu0 %vm394_vm1, %v13719_v15  ;;  %v13816_v15 = vcombine.low %v3682_v14, %v3685_v17  ;;  %v3727_v14 = vsel %vm17220_vm7, %v3725_v37, %v3726_v2  ;;  %v13772_v17 = vld [vmem:[%s16885_s16 + $0x90] sm:$0xe]  ;;  %v13821_v21 = vcombine.low %v3717_v8, %v3720_v56  ;;  %v13791_v2 = vld [vmem:[%s16885_s16 + $0xdc] sm:$0xf] }
 0x19a   : > { %v3732_v9 = vrot.slane %v3730_v10, 4  ;;  %v3772_v8 = vrot.slane %v13791_v2, 5  ;;  %v4758_v2 = vshll.u32 %v13928_v54, 16 }
 0x19c   : > { %v3774_v19 = vrot.slane %v3772_v8, 4 }
 0x1a0   : > { %15137 = vmatmul.mubr.msk.bf16.gmra.mrb[32].mxu0 %vm394_vm1, %v13720_v46  ;;  %v13817_v46 = vcombine.low %v3689_v34, %v3692_v24  ;;  %v3734_v34 = vsel %vm17220_vm7, %v3732_v9, %v3733_v25  ;;  %v3744_v24 = vrot.slane %v13779_v29, 5  ;;  %v16500_v9 = vld [vmem:[%s16885_s16 + $0x18] sm:$0xff]   ;;  %v16501_v25 = vld [vmem:[%s16885_s16 + $0x24] sm:$0xff]  }
 0x1a1   : > { %15142 = vmatprep.mubr.msk.bf16.mxu0 %vm394_vm1, %v13812_v45  ;;  %v13818_v45 = vcombine.low %v3696_v32, %v3699_v23  ;;  %v3741_v32 = vsel %vm17220_vm7, %v3739_v12, %v3740_v27  ;;  %v13778_v23 = vld [vmem:[%s16885_s16 + $0xa8] sm:$0xe]  ;;  %v5243_v12 = vsel %vm449_vm0, %v17688_v57, 0  ;;  %v17815_v27 = vld [vmem:[%s19422_s1 + $0x10] sm:$0x3]  ;;  %v16503_v29 = vld [vmem:[%s16885_s16 + $0x3c] sm:$0xff]  }
 0x1a2   : > { %v3746_v47 = vrot.slane %v3744_v24, 4 }
 0x1a8   : > { %15143 = vmatmul.mubr.msk.bf16.vlgmr.msra.gmra.mrb[0].mxu0 %vm394_vm1, %v13813_v16  ;;  %v13819_v16 = vcombine.low %v3703_v30, %v3706_v58  ;;  %v3748_v30 = vsel %vm17220_vm7, %v3746_v47, %v3747_v48  ;;  %v3758_v58 = vrot.slane %v13785_v50, 5  ;;  %v13925_v47 = vld [vmem:[%s16885_s16 + $0x28] sm:$0xf] }
 0x1a9   : > { %15179 = vmatpush3.bf16.msra.mxu0 %v4359_v63  ;;  %15146 = vmatprep.mubr.msk.bf16.mxu0 %vm394_vm1, %v13814_v6  ;;  %v13820_v6 = vcombine.low %v3710_v60, %v3713_v61  ;;  %v13803_v63 = vrot.slane %v13769_v44, 9  ;;  %v3755_v60 = vsel %vm17220_vm7, %v3753_v49, %v3754_v11  ;;  %v13784_v61 = vld [vmem:[%s16885_s16 + $0xc0] sm:$0xe]  ;;  %v13789_v44 = vld [vmem:[%s16885_s16 + $0xd4] sm:$0x1]  ;;  %v16512_v48 = vld [vmem:[%s16885_s16 + $0xa8] sm:$0xff]  }
 0x1aa   : > { %16389 = vmatprep.subr.msk.bf16.mxu0 %vm449_vm0, %v17688_v57  ;;  %v3760_v4 = vrot.slane %v3758_v58, 4  ;;  %v3768_v37 = vrot.slane %v13789_v44, 5  ;;  %v16505_v57 = vld [vmem:[%s16885_s16 + $0x54] sm:$0xff]   ;;  %v4728_v49 = vshll.u32 %v13924_v36, 16  ;;  %v4734_v55 = vshll.u32 %v13925_v47, 16 }
 0x1ab   : > { %v3724_v13 = vsel %vm17220_vm7, %v13803_v63, %v3723_v62  ;;  %v13787_v62 = vld [vmem:[%s16885_s16 + $0xcc] sm:$0xe]  ;;  %v3767_v63 = vrot.slane %v3765_v0, 4 }
 0x1ac   : > { %v13809_v7 = vrot.slane %v13787_v62, 9  ;;  %v3762_v51 = vsel %vm17220_vm7, %v3760_v4, %v3761_v42  ;;  %v4730_v62 = vrot.slane %v4728_v49, 5  ;;  %v17850_v44 = vrot.slane %v4734_v55, 5  ;;  %v13926_v42 = vld [vmem:[%s16885_s16 + $0x2c] sm:$0x1] }
 0x1ae   : > { %v3766_v56 = vsel %vm17220_vm7, %v13809_v7, %v3765_v0 }
 0x1b0   : > { %15147 = vmatmul.mubr.msk.bf16.gmra.mrb[4].mxu0 %vm394_vm1, %v13815_v22  ;;  %v13822_v22 = vcombine.low %v3724_v13, %v3727_v14  ;;  %v13790_v13 = vld [vmem:[%s16885_s16 + $0xd8] sm:$0xe]  ;;  %v13792_v14 = vld [vmem:[%s16885_s16 + $0xe0] sm:$0x1] }
 0x1b1   : > { %15150 = vmatprep.mubr.msk.bf16.mxu0 %vm394_vm1, %v13816_v15  ;;  %v13804_v15 = vrot.slane %v13772_v17, 9  ;;  %v13810_v1 = vrot.slane %v13790_v13, 9  ;;  %v3775_v20 = vrot.slane %v13792_v14, 5  ;;  %v4744_v13 = vshll.u32 %v13926_v42, 16  ;;  %v13931_v14 = vld [vmem:[%s16885_s16 + $0x40] sm:$0xf] }
 0x1b2   : > { %v13940_v42 = vld [vmem:[%s16885_s16 + $0x64] sm:$0xf] }
 0x1b3   : > { %v3731_v3 = vsel %vm17220_vm7, %v13804_v15, %v3730_v10  ;;  %v3769_v10 = vsel %vm17220_vm7, %v3767_v63, %v3768_v37  ;;  %v16514_v37 = vld [vmem:[%s16885_s16 + $0xc0] sm:$0xff]  }
 0x1b4   : > { %v13823_v43 = vcombine.low %v3731_v3, %v3734_v34  ;;  %v13828_v18 = vcombine.low %v3766_v56, %v3769_v10  ;;  %v16506_v3 = vld [vmem:[%s16885_s16 + $0x60] sm:$0xff]   ;;  %v16507_v34 = vld [vmem:[%s16885_s16 + $0x6c] sm:$0xff]  }
 0x1b8   : > { %15151 = vmatmul.mubr.msk.bf16.gmra.mrb[8].mxu0 %vm394_vm1, %v13817_v46  ;;  %v13824_v46 = vcombine.low %v3738_v38, %v3741_v32  ;;  %v16509_v38 = vld [vmem:[%s16885_s16 + $0x84] sm:$0xff]   ;;  %v16510_v32 = vld [vmem:[%s16885_s16 + $0x90] sm:$0xff]  }
 0x1b9   : > { %15154 = vmatprep.mubr.msk.bf16.mxu0 %vm394_vm1, %v13818_v45  ;;  %v13806_v45 = vrot.slane %v13778_v23, 9  ;;  %v13921_v23 = vld [vmem:[%s16885_s16 + $0x18] sm:$0xf] }
 0x1ba   : > { %v4701_v40 = vshrl.u32 %v13921_v23, 16  ;;  %v4704_v41 = vshll.u32 %v13921_v23, 16 }
 0x1bb   : > { %v3745_v53 = vsel %vm17220_vm7, %v13806_v45, %v3744_v24  ;;  %v16508_v24 = vld [vmem:[%s16885_s16 + $0x78] sm:$0xff]   ;;  %v4714_v45 = vshrl.u32 %v13922_v39, 16 }
 0x1bc   : > { %v13825_v5 = vcombine.low %v3745_v53, %v3748_v30  ;;  %v4703_v11 = vrot.slane %v4701_v40, 4  ;;  %v4706_v50 = vrot.slane %v4704_v41, 5  ;;  %v4738_v53 = vshrl.u32 %v13925_v47, 16 }
 0x1be   : > { %v4707_v0 = vor.u32 %v4706_v50, %v4703_v11  ;;  %v17884_v50 = vsel %vm449_vm0, %v17815_v27, 0 }
 0x1c0   : > { %15155 = vmatmul.mubr.msk.bf16.gmra.mrb[12].mxu0 %vm394_vm1, %v13819_v16  ;;  %v13826_v16 = vcombine.low %v3752_v59, %v3755_v60  ;;  %v13923_v59 = vld [vmem:[%s16885_s16 + $0x20] sm:$0x1]  ;;  %v13927_v60 = vld [vmem:[%s16885_s16 + $0x30] sm:$0xf] }
 0x1c1   : > { %15158 = vmatprep.mubr.msk.bf16.mxu0 %vm394_vm1, %v13820_v6  ;;  %v13808_v6 = vrot.slane %v13784_v61, 9  ;;  %v4727_v61 = vrot.slane %v4725_v33, 4  ;;  %v4720_v4 = vshll.u32 %v13923_v59, 16  ;;  %v4749_v7 = vshrl.u32 %v13927_v60, 16  ;;  %v13936_v59 = vld [vmem:[%s16885_s16 + $0x54] sm:$0xf] }
 0x1c2   : > { %v4752_v63 = vshll.u32 %v13927_v60, 16  ;;  %v13937_v60 = vld [vmem:[%s16885_s16 + $0x58] sm:$0xf] }
 0x1c3   : > { %v3759_v35 = vsel %vm17220_vm7, %v13808_v6, %v3758_v58  ;;  %v4716_v58 = vrot.slane %v4714_v45, 4  ;;  %v4731_v56 = vor.u32 %v4730_v62, %v4727_v61 }
 0x1c4   : > { %v13827_v17 = vcombine.low %v3759_v35, %v3762_v51  ;;  %v4762_v35 = vshrl.u32 %v13928_v54, 16  ;;  %v13930_v51 = vld [vmem:[%s16885_s16 + $0x3c] sm:$0xf] }
 0x1c8   : > { %15159 = vmatmul.mubr.msk.bf16.gmra.mrb[16].mxu0 %vm394_vm1, %v13821_v21  ;;  %v3773_v21 = vsel %vm17220_vm7, %v13810_v1, %v3772_v8  ;;  %v4708_v8 = vrot.slane %v4707_v0, 4  ;;  %v4751_v1 = vrot.slane %v4749_v7, 4 }
 0x1c9   : > { %15162 = vmatprep.mubr.msk.bf16.mxu0 %vm394_vm1, %v13822_v22  ;;  %v3776_v22 = vsel %vm17220_vm7, %v3774_v19, %v3775_v20  ;;  %v4754_v19 = vrot.slane %v4752_v63, 5  ;;  %v13929_v20 = vld [vmem:[%s16885_s16 + $0x38] sm:$0x1]  ;;  %v4821_v63 = vshrl.u32 %v13936_v59, 16 }
 0x1ca   : > { %v13829_v15 = vcombine.low %v3773_v21, %v3776_v22  ;;  %v17862_v21 = vrot.slane %v4758_v2, 5  ;;  %v4764_v22 = vrot.slane %v4762_v35, 4  ;;  %v4768_v23 = vshll.u32 %v13929_v20, 16  ;;  %v16517_v35 = vld [vmem:[%s16885_s16 + $0xe4] sm:$0xff]  }
 0x1cb   : > { %v4830_v2 = vshll.u32 %v13937_v60, 16 }
 0x1cc   : > { %v4765_v40 = vor.u32 %v4764_v22, %v17862_v21 }
 0x1ce   : > { %v4766_v61 = vrot.slane %v4765_v40, 4 }
 0x1d0   : > { %15163 = vmatmul.mubr.msk.bf16.gmra.mrb[20].mxu0 %vm394_vm1, %v13823_v43  ;;  %v16511_v43 = vld [vmem:[%s16885_s16 + $0x9c] sm:$0xff]  }
 0x1d1   : > { %15166 = vmatprep.mubr.msk.bf16.mxu0 %vm394_vm1, %v13824_v46  ;;  %v4710_v46 = vshll.u32 %v13922_v39, 16  ;;  %v16516_v39 = vld [vmem:[%s16885_s16 + $0xd8] sm:$0xff]  }
 0x1d3   : > { %v17844_v30 = vrot.slane %v4710_v46, 5  ;;  %v13932_v46 = vld [vmem:[%s16885_s16 + $0x44] sm:$0x1] }
 0x1d4   : > { %v4792_v0 = vshll.u32 %v13932_v46, 16  ;;  %v13945_v46 = vld [vmem:[%s16885_s16 + $0x78] sm:$0xf] }
 0x1d5   : > { %v4717_v6 = vor.u32 %v4716_v58, %v17844_v30  ;;  %v4770_v58 = vrot.slane %v4768_v23, 5 }
 0x1d8   : > { %15167 = vmatmul.mubr.msk.bf16.gmra.mrb[24].mxu0 %vm394_vm1, %v13825_v5  ;;  %v4740_v5 = vrot.slane %v4738_v53, 4 }
 0x1d9   : > { %15170 = vmatprep.mubr.msk.bf16.mxu0 %vm394_vm1, %v13826_v16  ;;  %v16513_v16 = vld [vmem:[%s16885_s16 + $0xb4] sm:$0xff]  }
 0x1da   : > { %v4741_v10 = vor.u32 %v4740_v5, %v17850_v44 }
 0x1e0   : > { %15171 = vmatmul.mubr.msk.bf16.gmra.mrb[28].mxu0 %vm394_vm1, %v13827_v17  ;;  %v4718_v17 = vrot.slane %v4717_v6, 4 }
 0x1e1   : > { %15174 = vmatprep.mubr.msk.bf16.mxu0 %vm394_vm1, %v13828_v18  ;;  %v4722_v18 = vrot.slane %v4720_v4, 5 }
 0x1e8   : > { %15175 = vmatmul.mubr.msk.bf16.gmra.mrb[32].mxu0 %vm394_vm1, %v13829_v15  ;;  %v4773_v15 = vshrl.u32 %v13930_v51, 16 }
 0x1e9   : > { %15180 = vmatprep.mubr.msk.bf16.mxu0 %vm394_vm1, %v16500_v9  ;;  %v4776_v9 = vshll.u32 %v13930_v51, 16 }
 0x1ea   : > { %v4775_v41 = vrot.slane %v4773_v15, 4  ;;  %v4858_v15 = vshrl.u32 %v13940_v42, 16 }
 0x1eb   : > { %v4778_v36 = vrot.slane %v4776_v9, 5 }
 0x1ed   : > { %v4779_v54 = vor.u32 %v4778_v36, %v4775_v41  ;;  %v4860_v36 = vrot.slane %v4858_v15, 4 }
 0x1f0   : > { %15181 = vmatmul.mubr.msk.bf16.vlgmr.msra.gmra.mrb[0].mxu0 %vm394_vm1, %v16501_v25  ;;  %v4782_v25 = vshll.u32 %v13931_v14, 16 }
 0x1f1   : > { %15217 = vmatpush3.bf16.msra.mxu0 %v5243_v12  ;;  %15184 = vmatprep.mubr.msk.bf16.mxu0 %vm394_vm1, %v16502_v26  ;;  %v4786_v26 = vshrl.u32 %v13931_v14, 16  ;;  %v13933_v12 = vld [vmem:[%s16885_s16 + $0x48] sm:$0xf]  ;;  %v17904_v14 = vrot.slane %v4792_v0, 5 }
 0x1f2   : > { %16390 = vmatprep.subr.msk.bf16.mxu0 %vm449_vm0, %v17815_v27  ;;  %v17875_v45 = vrot.slane %v4782_v25, 5  ;;  %v4823_v25 = vrot.slane %v4821_v63, 4 }
 0x1f3   : > { %v4788_v47 = vrot.slane %v4786_v26, 4 }
 0x1f5   : > { %v4789_v5 = vor.u32 %v4788_v47, %v17875_v45  ;;  %v13946_v47 = vld [vmem:[%s16885_s16 + $0x7c] sm:$0xf] }
 0x1f6   : > { %v4906_v0 = vshrl.u32 %v13946_v47, 16 }
 0x1f7   : > { %v17909_v20 = vrot.slane %v4789_v5, 4 }
 0x1f8   : > { %15185 = vmatmul.mubr.msk.bf16.gmra.mrb[4].mxu0 %vm394_vm1, %v16503_v29  ;;  %v4732_v29 = vrot.slane %v4731_v56, 4 }
 0x1f9   : > { %15188 = vmatprep.mubr.msk.bf16.mxu0 %vm394_vm1, %v16504_v52  ;;  %v4742_v52 = vrot.slane %v4741_v10, 4 }
 0x1fa   : > { %v4737_v49 = vsel %vm16964_vm4, %v4732_v29, %v17850_v44  ;;  %v13939_v44 = vld [vmem:[%s16885_s16 + $0x60] sm:$0xf]  ;;  %v13938_v29 = vld [vmem:[%s16885_s16 + $0x5c] sm:$0x1] }
 0x1fb   : > { %v4845_v56 = vshrl.u32 %v13939_v44, 16  ;;  %v4848_v10 = vshll.u32 %v13939_v44, 16 }
 0x200   : > { %15189 = vmatmul.mubr.msk.bf16.gmra.mrb[8].mxu0 %vm394_vm1, %v16505_v57  ;;  %v4746_v57 = vrot.slane %v4744_v13, 5  ;;  %v17902_v13 = vrot.slane %v4779_v54, 4  ;;  %v4902_v54 = vshll.u32 %v13946_v47, 16  ;;  %v13955_v47 = vld [vmem:[%s16885_s16 + $0xa0] sm:$0xf] }
 0x201   : > { %15192 = vmatprep.mubr.msk.bf16.mxu0 %vm394_vm1, %v16506_v3  ;;  %v13934_v3 = vld [vmem:[%s16885_s16 + $0x4c] sm:$0xf] }
 0x202   : > { %v4806_v33 = vshll.u32 %v13934_v3, 16  ;;  %v4747_v11 = vsel %vm16964_vm4, %v4742_v52, %v4746_v57  ;;  %v4810_v55 = vshrl.u32 %v13934_v3, 16  ;;  %v4847_v57 = vrot.slane %v4845_v56, 4 }
 0x203   : > { %v17891_v27 = vcombine.low %v4737_v49, %v4747_v11  ;;  %v4850_v3 = vrot.slane %v4848_v10, 5  ;;  %v4785_v41 = vsel %vm16964_vm4, %v17902_v13, %v17875_v45  ;;  %v4840_v11 = vshll.u32 %v13938_v29, 16  ;;  %v13952_v29 = vld [vmem:[%s16885_s16 + $0x94] sm:$0xf] }
 0x204   : > { %v17895_v4 = vrot.slane %v4806_v33, 5  ;;  %v4812_v7 = vrot.slane %v4810_v55, 4  ;;  %v17954_v56 = vrot.slane %v4902_v54, 5  ;;  %v4908_v10 = vrot.slane %v4906_v0, 4 }
 0x205   : > { %v4978_v54 = vshrl.u32 %v13955_v47, 16 }
 0x206   : > { %v4813_v9 = vor.u32 %v4812_v7, %v17895_v4  ;;  %v17941_v7 = vrot.slane %v4840_v11, 5  ;;  %v17984_v11 = vld [vmem:[#allocation5] sm:$0xff]  }
 0x207   : > { %15758 = vmatprep.subr.bf16.mxu1 %v17984_v11 }
 0x208   : > { %15193 = vmatmul.mubr.msk.bf16.gmra.mrb[12].mxu0 %vm394_vm1, %v16507_v34  ;;  %v16515_v34 = vld [vmem:[%s16885_s16 + $0xcc] sm:$0xff]   ;;  %v4814_v33 = vrot.slane %v4813_v9, 4  ;;  %15766 = vmatpush3.bf16.msra.mxu1 %v17984_v11 }
 0x209   : > { %15196 = vmatprep.mubr.msk.bf16.mxu0 %vm394_vm1, %v16508_v24  ;;  %v4713_v24 = vsel %vm16964_vm4, %v4708_v8, %v17844_v30  ;;  %v4834_v8 = vshrl.u32 %v13937_v60, 16  ;;  %v4893_v60 = vshrl.u32 %v13945_v46, 16 }
 0x20b   : > { %v4836_v52 = vrot.slane %v4834_v8, 4 }
 0x210   : > { %15197 = vmatmul.mubr.msk.bf16.gmra.mrb[16].mxu0 %vm394_vm1, %v16509_v38  ;;  %v4723_v38 = vsel %vm16964_vm4, %v4718_v17, %v4722_v18  ;;  %v4854_v18 = vshll.u32 %v13940_v42, 16 }
 0x211   : > { %15200 = vmatprep.mubr.msk.bf16.mxu0 %vm394_vm1, %v16510_v32  ;;  %v4755_v32 = vor.u32 %v4754_v19, %v4751_v1  ;;  %v13976_v53 = vcombine.low %v4713_v24, %v4723_v38  ;;  %v13942_v1 = vld [vmem:[%s16885_s16 + $0x6c] sm:$0xf]  ;;  %v4771_v19 = vsel %vm16964_vm4, %v4766_v61, %v4770_v58  ;;  %v13941_v38 = vld [vmem:[%s16885_s16 + $0x68] sm:$0x1]  ;;  %v4896_v61 = vshll.u32 %v13945_v46, 16 }
 0x212   : > { %v4872_v23 = vshll.u32 %v13942_v1, 16  ;;  %v4954_v46 = vshrl.u32 %v13952_v29, 16 }
 0x213   : > { %v4756_v30 = vrot.slane %v4755_v32, 4  ;;  %v17919_v32 = vrot.slane %v4854_v18, 5  ;;  %v4898_v8 = vrot.slane %v4896_v61, 5  ;;  %v4974_v61 = vshll.u32 %v13955_v47, 16 }
 0x215   : > { %v4761_v51 = vsel %vm16964_vm4, %v4756_v30, %v17862_v21  ;;  %v13943_v21 = vld [vmem:[%s16885_s16 + $0x70] sm:$0xf]  ;;  %v4864_v30 = vshll.u32 %v13941_v38, 16  ;;  %v4861_v45 = vor.u32 %v4860_v36, %v17919_v32 }
 0x216   : > { %v13978_v40 = vcombine.low %v4761_v51, %v4771_v19  ;;  %v13948_v51 = vld [vmem:[%s16885_s16 + $0x84] sm:$0xf] }
 0x218   : > { %15201 = vmatmul.mubr.msk.bf16.gmra.mrb[20].mxu0 %vm394_vm1, %v16511_v43  ;;  %v4797_v43 = vshrl.u32 %v13933_v12, 16 }
 0x219   : > { %15204 = vmatprep.mubr.msk.bf16.mxu0 %vm394_vm1, %v16512_v48  ;;  %v4800_v48 = vshll.u32 %v13933_v12, 16  ;;  %v17913_v12 = vrot.slane %v4830_v2, 5  ;;  %v17949_v2 = vrot.slane %v4864_v30, 5 }
 0x21a   : > { %v4799_v62 = vrot.slane %v4797_v43, 4  ;;  %v4882_v43 = vshrl.u32 %v13943_v21, 16 }
 0x21b   : > { %v4802_v6 = vrot.slane %v4800_v48, 5  ;;  %v4837_v55 = vor.u32 %v4836_v52, %v17913_v12 }
 0x21c   : > { %v4884_v5 = vrot.slane %v4882_v43, 4  ;;  %v4950_v43 = vshll.u32 %v13952_v29, 16 }
 0x21d   : > { %v4803_v22 = vor.u32 %v4802_v6, %v4799_v62  ;;  %v4874_v62 = vrot.slane %v4872_v23, 5 }
 0x21f   : > { %v4804_v48 = vrot.slane %v4803_v22, 4  ;;  %v4917_v22 = vshrl.u32 %v13948_v51, 16 }
 0x220   : > { %15205 = vmatmul.mubr.msk.bf16.gmra.mrb[24].mxu0 %vm394_vm1, %v16513_v16  ;;  %v13935_v16 = vld [vmem:[%s16885_s16 + $0x50] sm:$0x1] }
 0x221   : > { %15208 = vmatprep.mubr.msk.bf16.mxu0 %vm394_vm1, %v16514_v37  ;;  %v4824_v37 = vshll.u32 %v13936_v59, 16  ;;  %v4816_v17 = vshll.u32 %v13935_v16, 16  ;;  %v13944_v59 = vld [vmem:[%s16885_s16 + $0x74] sm:$0x1]  ;;  %v4795_v16 = vsel %vm16964_vm4, %v17909_v20, %v17904_v14  ;;  %v4809_v6 = vsel %vm16964_vm4, %v4804_v48, %v17895_v4 }
 0x222   : > { %v4895_v4 = vrot.slane %v4893_v60, 4  ;;  %v4862_v14 = vrot.slane %v4861_v45, 4  ;;  %v13979_v19 = vcombine.low %v4785_v41, %v4795_v16  ;;  %v4919_v48 = vrot.slane %v4917_v22, 4 }
 0x223   : > { %v4826_v26 = vrot.slane %v4824_v37, 5  ;;  %v4818_v24 = vrot.slane %v4816_v17, 5  ;;  %v17947_v37 = vrot.slane %v4837_v55, 4 }
 0x225   : > { %v4827_v49 = vor.u32 %v4826_v26, %v4823_v25  ;;  %v4819_v42 = vsel %vm16964_vm4, %v4814_v33, %v4818_v24  ;;  %v13951_v26 = vld [vmem:[%s16885_s16 + $0x90] sm:$0xf]  ;;  %v4867_v24 = vsel %vm16964_vm4, %v4862_v14, %v17949_v2  ;;  %v13958_v14 = vld [vmem:[%s16885_s16 + $0xac] sm:$0xf] }
 0x226   : > { %v13980_v20 = vcombine.low %v4809_v6, %v4819_v42  ;;  %v4941_v41 = vshrl.u32 %v13951_v26, 16  ;;  %v4944_v36 = vshll.u32 %v13951_v26, 16 }
 0x227   : > { %v17945_v63 = vrot.slane %v4827_v49, 4 }
 0x228   : > { %15209 = vmatmul.mubr.msk.bf16.gmra.mrb[28].mxu0 %vm394_vm1, %v16515_v34  ;;  %v4869_v34 = vshrl.u32 %v13942_v1, 16  ;;  %v13947_v1 = vld [vmem:[%s16885_s16 + $0x80] sm:$0x1]  ;;  %v4943_v0 = vrot.slane %v4941_v41, 4  ;;  %v4946_v45 = vrot.slane %v4944_v36, 5 }
 0x229   : > { %15212 = vmatprep.mubr.msk.bf16.mxu0 %vm394_vm1, %v16516_v39  ;;  %v4878_v39 = vshll.u32 %v13943_v21, 16  ;;  %v4833_v15 = vsel %vm16964_vm4, %v17945_v63, %v17913_v12  ;;  %v4843_v21 = vsel %vm16964_vm4, %v17947_v37, %v17941_v7  ;;  %v13953_v63 = vld [vmem:[%s16885_s16 + $0x98] sm:$0x1]  ;;  %v13963_v36 = vld [vmem:[%s16885_s16 + $0xc0] sm:$0xf] }
 0x22a   : > { %v4871_v58 = vrot.slane %v4869_v34, 4  ;;  %v4912_v34 = vshll.u32 %v13947_v1, 16  ;;  %v13981_v16 = vcombine.low %v4833_v15, %v4843_v21  ;;  %v4960_v1 = vshll.u32 %v13953_v63, 16  ;;  %v13961_v41 = vld [vmem:[%s16885_s16 + $0xb8] sm:$0xf] }
 0x22b   : > { %v17930_v44 = vrot.slane %v4878_v39, 5  ;;  %v13950_v39 = vld [vmem:[%s16885_s16 + $0x8c] sm:$0x1]  ;;  %v4998_v15 = vshll.u32 %v13958_v14, 16  ;;  %v5002_v21 = vshrl.u32 %v13958_v14, 16 }
 0x22c   : > { %v4875_v17 = vor.u32 %v4874_v62, %v4871_v58  ;;  %v4914_v30 = vrot.slane %v4912_v34, 5  ;;  %v4936_v58 = vshll.u32 %v13950_v39, 16  ;;  %v17989_v62 = vrot.slane %v4950_v43, 5 }
 0x22d   : > { %v4885_v18 = vor.u32 %v4884_v5, %v17930_v44  ;;  %v4956_v5 = vrot.slane %v4954_v46, 4  ;;  %v18026_v43 = vrot.slane %v4998_v15, 5  ;;  %v5004_v46 = vrot.slane %v5002_v21, 4 }
 0x22e   : > { %v4876_v38 = vrot.slane %v4875_v17, 4  ;;  %v4947_v17 = vor.u32 %v4946_v45, %v4943_v0 }
 0x22f   : > { %v4886_v23 = vrot.slane %v4885_v18, 4  ;;  %v4957_v18 = vor.u32 %v4956_v5, %v17989_v62 }
 0x230   : > { %15213 = vmatmul.mubr.msk.bf16.gmra.mrb[32].mxu0 %vm394_vm1, %v16517_v35  ;;  %v4888_v35 = vshll.u32 %v13944_v59, 16  ;;  %v4881_v37 = vsel %vm16964_vm4, %v4876_v38, %v17930_v44 }
 0x231   : > { %15218 = vmatprep.mubr.msk.bf16.mxu0 %vm394_vm1, %v13976_v53  ;;  %v4851_v53 = vor.u32 %v4850_v3, %v4847_v57  ;;  %v4899_v57 = vor.u32 %v4898_v8, %v4895_v4  ;;  %v4909_v3 = vor.u32 %v4908_v10, %v17954_v56  ;;  %v13957_v4 = vld [vmem:[%s16885_s16 + $0xa8] sm:$0xf]  ;;  %v4958_v34 = vrot.slane %v4957_v18, 4 }
 0x232   : > { %v17969_v52 = vrot.slane %v4888_v35, 5  ;;  %v4989_v22 = vshrl.u32 %v13957_v4, 16 }
 0x233   : > { %v4852_v13 = vrot.slane %v4851_v53, 4  ;;  %v4900_v55 = vrot.slane %v4899_v57, 4  ;;  %v4910_v53 = vrot.slane %v4909_v3, 4  ;;  %v4948_v3 = vrot.slane %v4947_v17, 4 }
 0x234   : > { %v4891_v2 = vsel %vm16964_vm4, %v4886_v23, %v17969_v52  ;;  %v13960_v52 = vld [vmem:[%s16885_s16 + $0xb4] sm:$0xf]  ;;  %v4991_v39 = vrot.slane %v4989_v22, 4 }
 0x235   : > { %v4857_v12 = vsel %vm16964_vm4, %v4852_v13, %v17919_v32  ;;  %v4905_v35 = vsel %vm16964_vm4, %v4900_v55, %v17954_v56  ;;  %v4980_v13 = vrot.slane %v4978_v54, 4  ;;  %v4915_v44 = vsel %vm16964_vm4, %v4910_v53, %v4914_v30 }
 0x236   : > { %v13982_v6 = vcombine.low %v4857_v12, %v4867_v24  ;;  %v13984_v57 = vcombine.low %v4905_v35, %v4915_v44  ;;  %v4962_v12 = vrot.slane %v4960_v1, 5  ;;  %v13959_v24 = vld [vmem:[%s16885_s16 + $0xb0] sm:$0x1]  ;;  %v5013_v47 = vshrl.u32 %v13960_v52, 16 }
 0x237   : > { %v5008_v30 = vshll.u32 %v13959_v24, 16 }
 0x238   : > { %15219 = vmatmul.mubr.msk.bf16.vlgmr.msra.gmra.mrb[0].mxu0 %vm394_vm1, %v17891_v27  ;;  %v13949_v27 = vld [vmem:[%s16885_s16 + $0x88] sm:$0xf]  ;;  %v4963_v54 = vsel %vm16964_vm4, %v4958_v34, %v4962_v12 }
 0x239   : > { %15255 = vmatpush3.bf16.msra.mxu0 %v17884_v50  ;;  %15222 = vmatprep.mubr.msk.bf16.mxu0 %vm394_vm1, %v13978_v40  ;;  %v4920_v50 = vshll.u32 %v13948_v51, 16  ;;  %v4926_v9 = vshll.u32 %v13949_v27, 16  ;;  %v4930_v25 = vshrl.u32 %v13949_v27, 16  ;;  %v13954_v40 = vld [vmem:[%s16885_s16 + $0x9c] sm:$0xf]  ;;  %v18003_v51 = vrot.slane %v4936_v58, 5 }
 0x23a   : > { %v4965_v59 = vshrl.u32 %v13954_v40, 16  ;;  %v4968_v60 = vshll.u32 %v13954_v40, 16  ;;  %15292 = vmatprep.subr.bf16.mxu0 %v17984_v11  ;;  %v18006_v27 = vrot.slane %v4974_v61, 5  ;;  %v5022_v58 = vshll.u32 %v13961_v41, 16 }
 0x23b   : > { %v4922_v33 = vrot.slane %v4920_v50, 5  ;;  %v17982_v49 = vrot.slane %v4926_v9, 5  ;;  %v4932_v32 = vrot.slane %v4930_v25, 4  ;;  %v4992_v50 = vshll.u32 %v13957_v4, 16 }
 0x23c   : > { %v4967_v8 = vrot.slane %v4965_v59, 4  ;;  %v4970_v10 = vrot.slane %v4968_v60, 5  ;;  %v13983_v9 = vcombine.low %v4881_v37, %v4891_v2  ;;  %v4981_v26 = vor.u32 %v4980_v13, %v18006_v27  ;;  %v13962_v37 = vld [vmem:[%s16885_s16 + $0xbc] sm:$0x1]  ;;  %v13965_v13 = vld [vmem:[%s16885_s16 + $0xc8] sm:$0x1] }
 0x23d   : > { %v4923_v42 = vor.u32 %v4922_v33, %v4919_v48  ;;  %v4933_v7 = vor.u32 %v4932_v32, %v17982_v49  ;;  %v4994_v40 = vrot.slane %v4992_v50, 5  ;;  %v5016_v48 = vshll.u32 %v13960_v52, 16  ;;  %v13964_v33 = vld [vmem:[%s16885_s16 + $0xc4] sm:$0xf] }
 0x23e   : > { %v4971_v25 = vor.u32 %v4970_v10, %v4967_v8  ;;  %v4982_v55 = vrot.slane %v4981_v26, 4  ;;  %v5037_v59 = vshrl.u32 %v13963_v36, 16  ;;  %v5040_v60 = vshll.u32 %v13963_v36, 16 }
 0x23f   : > { %v4924_v56 = vrot.slane %v4923_v42, 4  ;;  %v4953_v61 = vsel %vm16964_vm4, %v4948_v3, %v17989_v62  ;;  %v5046_v0 = vshll.u32 %v13964_v33, 16  ;;  %v5050_v45 = vshrl.u32 %v13964_v33, 16  ;;  %v13968_v33 = vld [vmem:[%s16885_s16 + $0xd4] sm:$0x1] }
 0x240   : > { %15223 = vmatmul.mubr.msk.bf16.gmra.mrb[4].mxu0 %vm394_vm1, %v13979_v19  ;;  %v13956_v19 = vld [vmem:[%s16885_s16 + $0xa4] sm:$0x1]  ;;  %v4972_v32 = vrot.slane %v4971_v25, 4  ;;  %v4995_v5 = vor.u32 %v4994_v40, %v4991_v39  ;;  %v5018_v42 = vrot.slane %v5016_v48, 5  ;;  %v5010_v63 = vrot.slane %v5008_v30, 5 }
 0x241   : > { %15226 = vmatprep.mubr.msk.bf16.mxu0 %vm394_vm1, %v13980_v20  ;;  %v4934_v20 = vrot.slane %v4933_v7, 4  ;;  %v4984_v29 = vshll.u32 %v13956_v19, 16  ;;  %v4929_v38 = vsel %vm16964_vm4, %v4924_v56, %v17982_v49  ;;  %v5026_v49 = vshrl.u32 %v13961_v41, 16  ;;  %v13967_v56 = vld [vmem:[%s16885_s16 + $0xd0] sm:$0xf] }
 0x242   : > { %v4977_v7 = vsel %vm16964_vm4, %v4972_v32, %v18006_v27  ;;  %v18043_v2 = vrot.slane %v5022_v58, 5  ;;  %v5042_v4 = vrot.slane %v5040_v60, 5  ;;  %v13986_v10 = vcombine.low %v4953_v61, %v4963_v54  ;;  %v13966_v27 = vld [vmem:[%s16885_s16 + $0xcc] sm:$0xf]  ;;  %v13970_v25 = vld [vmem:[%s16885_s16 + $0xdc] sm:$0xf] }
 0x243   : > { %v4939_v23 = vsel %vm16964_vm4, %v4934_v20, %v18003_v51  ;;  %v4986_v53 = vrot.slane %v4984_v29, 5  ;;  %v5028_v35 = vrot.slane %v5026_v49, 4  ;;  %v5039_v51 = vrot.slane %v5037_v59, 4  ;;  %v13972_v30 = vld [vmem:[%s16885_s16 + $0xe4] sm:$0xf] }
 0x244   : > { %v13985_v8 = vcombine.low %v4929_v38, %v4939_v23  ;;  %v18046_v14 = vrot.slane %v5046_v0, 5  ;;  %v5052_v44 = vrot.slane %v5050_v45, 4  ;;  %v4996_v17 = vrot.slane %v4995_v5, 4  ;;  %v13973_v61 = vld [vmem:[%s16885_s16 + $0xe8] sm:$0xf] }
 0x245   : > { %v4987_v62 = vsel %vm16964_vm4, %v4982_v55, %v4986_v53  ;;  %v5032_v19 = vshll.u32 %v13962_v37, 16  ;;  %v5029_v22 = vor.u32 %v5028_v35, %v18043_v2  ;;  %v5043_v50 = vor.u32 %v5042_v4, %v5039_v51  ;;  %v13971_v5 = vld [vmem:[%s16885_s16 + $0xe0] sm:$0x1] }
 0x246   : > { %v13987_v20 = vcombine.low %v4977_v7, %v4987_v62  ;;  %v5056_v15 = vshll.u32 %v13965_v13, 16  ;;  %v5061_v21 = vshrl.u32 %v13966_v27, 16  ;;  %v5053_v26 = vor.u32 %v5052_v44, %v18046_v14 }
 0x247   : > { %v5064_v29 = vshll.u32 %v13966_v27, 16  ;;  %v5070_v52 = vshll.u32 %v13967_v56, 16  ;;  %v5001_v3 = vsel %vm16964_vm4, %v4996_v17, %v18026_v43  ;;  %v5034_v24 = vrot.slane %v5032_v19, 5 }
 0x248   : > { %15227 = vmatmul.mubr.msk.bf16.gmra.mrb[8].mxu0 %vm394_vm1, %v13981_v16  ;;  %v5005_v16 = vor.u32 %v5004_v46, %v18026_v43  ;;  %v5094_v39 = vshll.u32 %v13970_v25, 16  ;;  %v5098_v40 = vshrl.u32 %v13970_v25, 16  ;;  %v5030_v41 = vrot.slane %v5029_v22, 4  ;;  %v13974_v22 = vld [vmem:[%s16885_s16 + $0xec] sm:$0x1] }
 0x249   : > { %15230 = vmatprep.mubr.msk.bf16.mxu0 %vm394_vm1, %v13982_v6  ;;  %v5015_v6 = vrot.slane %v5013_v47, 4  ;;  %v5044_v36 = vrot.slane %v5043_v50, 4  ;;  %v5058_v46 = vrot.slane %v5056_v15, 5  ;;  %v5063_v47 = vrot.slane %v5061_v21, 4  ;;  %v14013_v50 = vld [vmem:[%s16885_s16 + $0x1c] sm:$0xf] }
 0x24a   : > { %v5006_v18 = vrot.slane %v5005_v16, 4  ;;  %v5054_v48 = vrot.slane %v5053_v26, 4  ;;  %v5066_v32 = vrot.slane %v5064_v29, 5  ;;  %v5072_v43 = vrot.slane %v5070_v52, 5 }
 0x24b   : > { %v5019_v1 = vor.u32 %v5018_v42, %v5015_v6  ;;  %v5096_v59 = vrot.slane %v5094_v39, 5  ;;  %v5100_v60 = vrot.slane %v5098_v40, 4  ;;  %v5035_v0 = vsel %vm16964_vm4, %v5030_v41, %v5034_v24 }
 0x24c   : > { %v5011_v34 = vsel %vm16964_vm4, %v5006_v18, %v5010_v63  ;;  %v5080_v45 = vshll.u32 %v13968_v33, 16  ;;  %v5049_v16 = vsel %vm16964_vm4, %v5044_v36, %v18046_v14  ;;  %v5059_v6 = vsel %vm16964_vm4, %v5054_v48, %v5058_v46  ;;  %v14016_v46 = vld [vmem:[%s16885_s16 + $0x28] sm:$0xf] }
 0x24d   : > { %v5020_v12 = vrot.slane %v5019_v1, 4  ;;  %v13988_v53 = vcombine.low %v5001_v3, %v5011_v34  ;;  %v5067_v42 = vor.u32 %v5066_v32, %v5063_v47  ;;  %v5109_v62 = vshrl.u32 %v13972_v30, 16  ;;  %v14012_v3 = vld [vmem:[%s16885_s16 + $0x18] sm:$0xe]  ;;  %v14014_v34 = vld [vmem:[%s16885_s16 + $0x20] sm:$0x1] }
 0x24e   : > { %v5112_v63 = vshll.u32 %v13972_v30, 16  ;;  %v5118_v37 = vshll.u32 %v13973_v61, 16  ;;  %v5101_v51 = vor.u32 %v5100_v60, %v5096_v59  ;;  %v5104_v4 = vshll.u32 %v13971_v5, 16  ;;  %v14019_v47 = vld [vmem:[%s16885_s16 + $0x34] sm:$0xf] }
 0x24f   : > { %v5025_v54 = vsel %vm16964_vm4, %v5020_v12, %v18043_v2  ;;  %v5122_v2 = vshrl.u32 %v13973_v61, 16  ;;  %v5068_v13 = vrot.slane %v5067_v42, 4  ;;  %v5082_v44 = vrot.slane %v5080_v45, 5  ;;  %v14017_v30 = vld [vmem:[%s16885_s16 + $0x2c] sm:$0x1] }
 0x250   : > { %15231 = vmatmul.mubr.msk.bf16.gmra.mrb[12].mxu0 %vm394_vm1, %v13983_v9  ;;  %v13969_v9 = vld [vmem:[%s16885_s16 + $0xd8] sm:$0xf]  ;;  %v5111_v27 = vrot.slane %v5109_v62, 4  ;;  %v5114_v17 = vrot.slane %v5112_v63, 5  ;;  %v5120_v18 = vrot.slane %v5118_v37, 5  ;;  %v5128_v26 = vshll.u32 %v13974_v22, 16 }
 0x251   : > { %15234 = vmatprep.mubr.msk.bf16.mxu0 %vm394_vm1, %v13984_v57  ;;  %v5074_v57 = vshrl.u32 %v13967_v56, 16  ;;  %v5085_v38 = vshrl.u32 %v13969_v9, 16  ;;  %v5088_v23 = vshll.u32 %v13969_v9, 16  ;;  %v5124_v1 = vrot.slane %v5122_v2, 4  ;;  %v14022_v42 = vld [vmem:[%s16885_s16 + $0x40] sm:$0xf] }
 0x252   : > { %v5102_v56 = vrot.slane %v5101_v51, 4  ;;  %v5073_v15 = vsel %vm16964_vm4, %v5068_v13, %v5072_v43  ;;  %v5115_v9 = vor.u32 %v5114_v17, %v5111_v27  ;;  %v5130_v39 = vrot.slane %v5128_v26, 5  ;;  %v14021_v51 = vld [vmem:[%s16885_s16 + $0x3c] sm:$0xe]  ;;  %v14026_v13 = vld [vmem:[%s16885_s16 + $0x50] sm:$0x1] }
 0x253   : > { %v5076_v55 = vrot.slane %v5074_v57, 4  ;;  %v5087_v58 = vrot.slane %v5085_v38, 4  ;;  %v5090_v49 = vrot.slane %v5088_v23, 5  ;;  %v5125_v25 = vor.u32 %v5124_v1, %v5120_v18  ;;  %v14031_v22 = vld [vmem:[%s16885_s16 + $0x64] sm:$0xf] }
 0x254   : > { %v5640_v57 = vrot.slane %v14013_v50, 5  ;;  %v5116_v38 = vrot.slane %v5115_v9, 4  ;;  %v14066_v40 = vrot.slane %v14012_v3, 9  ;;  %v5643_v36 = vrot.slane %v14014_v34, 5  ;;  %v14027_v26 = vld [vmem:[%s16885_s16 + $0x54] sm:$0xe] }
 0x255   : > { %v5077_v7 = vor.u32 %v5076_v55, %v5072_v43  ;;  %v5091_v35 = vor.u32 %v5090_v49, %v5087_v58  ;;  %v5126_v23 = vrot.slane %v5125_v25, 4  ;;  %v5647_v32 = vrot.slane %v14016_v46, 5  ;;  %v14018_v49 = vld [vmem:[%s16885_s16 + $0x30] sm:$0xe]  ;;  %v14032_v3 = vld [vmem:[%s16885_s16 + $0x68] sm:$0x1] }
 0x256   : > { %v5642_v41 = vrot.slane %v5640_v57, 4  ;;  %v5121_v48 = vsel %vm16964_vm4, %v5116_v38, %v5120_v18  ;;  %v5641_v43 = vsel %vm17220_vm7, %v14066_v40, %v5640_v57  ;;  %v5654_v58 = vrot.slane %v14019_v47, 5  ;;  %v14030_v57 = vld [vmem:[%s16885_s16 + $0x60] sm:$0xe] }
 0x257   : > { %v5078_v14 = vrot.slane %v5077_v7, 4  ;;  %v5092_v19 = vrot.slane %v5091_v35, 4  ;;  %v5131_v33 = vsel %vm16964_vm4, %v5126_v23, %v5130_v39  ;;  %v5650_v45 = vrot.slane %v14017_v30, 5  ;;  %v14025_v7 = vld [vmem:[%s16885_s16 + $0x4c] sm:$0xf] }
 0x258   : > { %15235 = vmatmul.mubr.msk.bf16.gmra.mrb[16].mxu0 %vm394_vm1, %v13985_v8  ;;  %v13989_v8 = vcombine.low %v5025_v54, %v5035_v0  ;;  %v5644_v55 = vsel %vm17220_vm7, %v5642_v41, %v5643_v36  ;;  %v13993_v60 = vcombine.low %v5121_v48, %v5131_v33  ;;  %v5649_v0 = vrot.slane %v5647_v32, 4  ;;  %v14034_v41 = vld [vmem:[%s16885_s16 + $0x70] sm:$0xf]  ;;  %v14037_v36 = vld [vmem:[%s16885_s16 + $0x7c] sm:$0xf] }
 0x259   : > { %15238 = vmatprep.mubr.msk.bf16.mxu0 %vm394_vm1, %v13986_v10  ;;  %v13990_v10 = vcombine.low %v5049_v16, %v5059_v6  ;;  %v5083_v21 = vsel %vm16964_vm4, %v5078_v14, %v5082_v44  ;;  %v5097_v29 = vsel %vm16964_vm4, %v5092_v19, %v5096_v59  ;;  %v14020_v59 = vld [vmem:[%s16885_s16 + $0x38] sm:$0x1]  ;;  %v14085_v61 = vcombine.low %v5641_v43, %v5644_v55  ;;  %v14033_v43 = vld [vmem:[%s16885_s16 + $0x6c] sm:$0xe]  ;;  %v14035_v55 = vld [vmem:[%s16885_s16 + $0x74] sm:$0x1] }
 0x25a   : > { %v13991_v12 = vcombine.low %v5073_v15, %v5083_v21  ;;  %v14068_v5 = vrot.slane %v14018_v49, 9  ;;  %v5656_v16 = vrot.slane %v5654_v58, 4  ;;  %v5657_v6 = vrot.slane %v14020_v59, 5  ;;  %v14036_v30 = vld [vmem:[%s16885_s16 + $0x78] sm:$0xe] }
 0x25b   : > { %v5651_v63 = vsel %vm17220_vm7, %v5649_v0, %v5650_v45  ;;  %v5661_v37 = vrot.slane %v14022_v42, 5  ;;  %v14069_v27 = vrot.slane %v14021_v51, 9  ;;  %v14072_v23 = vrot.slane %v14030_v57, 9 }
 0x25c   : > { %v5655_v2 = vsel %vm17220_vm7, %v14068_v5, %v5654_v58  ;;  %v5658_v35 = vsel %vm17220_vm7, %v5656_v16, %v5657_v6  ;;  %v5685_v40 = vrot.slane %v14032_v3, 5  ;;  %v5689_v48 = vrot.slane %v14034_v41, 5  ;;  %v14038_v58 = vld [vmem:[%s16885_s16 + $0x80] sm:$0x1]  ;;  %v14040_v16 = vld [vmem:[%s16885_s16 + $0x88] sm:$0xf] }
 0x25d   : > { %v14087_v44 = vcombine.low %v5655_v2, %v5658_v35  ;;  %v5663_v17 = vrot.slane %v5661_v37, 4  ;;  %v5662_v50 = vsel %vm17220_vm7, %v14069_v27, %v5661_v37  ;;  %v14074_v0 = vrot.slane %v14036_v30, 9  ;;  %v14043_v6 = vld [vmem:[%s16885_s16 + $0x94] sm:$0xf]  ;;  %v14039_v2 = vld [vmem:[%s16885_s16 + $0x84] sm:$0xe] }
 0x25e   : > { %v5699_v5 = vrot.slane %v14038_v58, 5  ;;  %v14041_v35 = vld [vmem:[%s16885_s16 + $0x8c] sm:$0x1]  ;;  %v5710_v51 = vrot.slane %v14043_v6, 5 }
 0x25f   : > { %v5706_v27 = vrot.slane %v14041_v35, 5  ;;  %v14060_v35 = vld [vmem:[%s16885_s16 + $0xd8] sm:$0xe] }
 0x260   : > { %15239 = vmatmul.mubr.msk.bf16.gmra.mrb[20].mxu0 %vm394_vm1, %v13987_v20  ;;  %v5106_v20 = vrot.slane %v5104_v4, 5  ;;  %v14023_v4 = vld [vmem:[%s16885_s16 + $0x44] sm:$0x1] }
 0x261   : > { %15242 = vmatprep.mubr.msk.bf16.mxu0 %vm394_vm1, %v13988_v53  ;;  %v14015_v53 = vld [vmem:[%s16885_s16 + $0x24] sm:$0xe]  ;;  %v5664_v18 = vrot.slane %v14023_v4, 5  ;;  %v14042_v4 = vld [vmem:[%s16885_s16 + $0x90] sm:$0xe] }
 0x262   : > { %v5107_v52 = vsel %vm16964_vm4, %v5102_v56, %v5106_v20  ;;  %v14067_v54 = vrot.slane %v14015_v53, 9  ;;  %v5671_v56 = vrot.slane %v14026_v13, 5  ;;  %v14028_v20 = vld [vmem:[%s16885_s16 + $0x58] sm:$0xf]  ;;  %v5696_v53 = vrot.slane %v14037_v36, 5 }
 0x263   : > { %v13992_v24 = vcombine.low %v5097_v29, %v5107_v52  ;;  %v5665_v15 = vsel %vm17220_vm7, %v5663_v17, %v5664_v18  ;;  %v5675_v21 = vrot.slane %v14028_v20, 5  ;;  %v14029_v29 = vld [vmem:[%s16885_s16 + $0x5c] sm:$0x1]  ;;  %v5682_v52 = vrot.slane %v14031_v22, 5 }
 0x264   : > { %v5648_v62 = vsel %vm17220_vm7, %v14067_v54, %v5647_v32  ;;  %v14088_v34 = vcombine.low %v5662_v50, %v5665_v15  ;;  %v5692_v54 = vrot.slane %v14035_v55, 5  ;;  %v5698_v45 = vrot.slane %v5696_v53, 4  ;;  %v14054_v55 = vld [vmem:[%s16885_s16 + $0xc0] sm:$0xe] }
 0x265   : > { %v14086_v14 = vcombine.low %v5648_v62, %v5651_v63  ;;  %v5677_v38 = vrot.slane %v5675_v21, 4  ;;  %v5684_v39 = vrot.slane %v5682_v52, 4  ;;  %v5683_v33 = vsel %vm17220_vm7, %v14072_v23, %v5682_v52  ;;  %v14050_v52 = vld [vmem:[%s16885_s16 + $0xb0] sm:$0x1] }
 0x266   : > { %v5703_v62 = vrot.slane %v14040_v16, 5  ;;  %v5697_v63 = vsel %vm17220_vm7, %v14074_v0, %v5696_v53  ;;  %v5700_v37 = vsel %vm17220_vm7, %v5698_v45, %v5699_v5  ;;  %v14076_v17 = vrot.slane %v14042_v4, 9  ;;  %v14056_v53 = vld [vmem:[%s16885_s16 + $0xc8] sm:$0x1]  ;;  %v14058_v45 = vld [vmem:[%s16885_s16 + $0xd0] sm:$0xf] }
 0x267   : > { %v5686_v32 = vsel %vm17220_vm7, %v5684_v39, %v5685_v40  ;;  %v14093_v13 = vcombine.low %v5697_v63, %v5700_v37  ;;  %v5712_v18 = vrot.slane %v5710_v51, 4  ;;  %v5727_v23 = vrot.slane %v14050_v52, 5  ;;  %v14052_v39 = vld [vmem:[%s16885_s16 + $0xb8] sm:$0xf]  ;;  %v14055_v40 = vld [vmem:[%s16885_s16 + $0xc4] sm:$0xf] }
 0x268   : > { %15243 = vmatmul.mubr.msk.bf16.gmra.mrb[24].mxu0 %vm394_vm1, %v13989_v8  ;;  %v5668_v8 = vrot.slane %v14025_v7, 5  ;;  %v14091_v59 = vcombine.low %v5683_v33, %v5686_v32  ;;  %v5711_v15 = vsel %vm17220_vm7, %v14076_v17, %v5710_v51  ;;  %v14051_v33 = vld [vmem:[%s16885_s16 + $0xb4] sm:$0xe]  ;;  %v14053_v32 = vld [vmem:[%s16885_s16 + $0xbc] sm:$0x1]  ;;  %v5741_v0 = vrot.slane %v14056_v53, 5 }
 0x269   : > { %15246 = vmatprep.mubr.msk.bf16.mxu0 %vm394_vm1, %v13990_v10  ;;  %v14024_v10 = vld [vmem:[%s16885_s16 + $0x48] sm:$0xe]  ;;  %v14061_v5 = vld [vmem:[%s16885_s16 + $0xdc] sm:$0xf]  ;;  %v14057_v63 = vld [vmem:[%s16885_s16 + $0xcc] sm:$0xe] }
 0x26a   : > { %v14070_v1 = vrot.slane %v14024_v10, 9  ;;  %v5670_v19 = vrot.slane %v5668_v8, 4  ;;  %v14059_v37 = vld [vmem:[%s16885_s16 + $0xd4] sm:$0x1]  ;;  %v14062_v51 = vld [vmem:[%s16885_s16 + $0xe0] sm:$0x1] }
 0x26b   : > { %v5755_v17 = vrot.slane %v14062_v51, 5 }
 0x26c   : > { %v5669_v9 = vsel %vm17220_vm7, %v14070_v1, %v5668_v8  ;;  %v5672_v25 = vsel %vm17220_vm7, %v5670_v19, %v5671_v56  ;;  %v14044_v8 = vld [vmem:[%s16885_s16 + $0x98] sm:$0x1]  ;;  %v14046_v19 = vld [vmem:[%s16885_s16 + $0xa0] sm:$0xf]  ;;  %v14049_v56 = vld [vmem:[%s16885_s16 + $0xac] sm:$0xf] }
 0x26d   : > { %v5713_v1 = vrot.slane %v14044_v8, 5  ;;  %v5717_v50 = vrot.slane %v14046_v19, 5 }
 0x270   : > { %15247 = vmatmul.mubr.msk.bf16.gmra.mrb[28].mxu0 %vm394_vm1, %v13991_v12  ;;  %v14089_v12 = vcombine.low %v5669_v9, %v5672_v25  ;;  %v14045_v9 = vld [vmem:[%s16885_s16 + $0x9c] sm:$0xe]  ;;  %v14047_v25 = vld [vmem:[%s16885_s16 + $0xa4] sm:$0x1] }
 0x271   : > { %15250 = vmatprep.mubr.msk.bf16.mxu0 %vm394_vm1, %v13992_v24  ;;  %v14071_v24 = vrot.slane %v14027_v26, 9  ;;  %v5724_v26 = vrot.slane %v14049_v56, 5 }
 0x273   : > { %v5676_v46 = vsel %vm17220_vm7, %v14071_v24, %v5675_v21  ;;  %v5714_v21 = vsel %vm17220_vm7, %v5712_v18, %v5713_v1  ;;  %v5720_v24 = vrot.slane %v14047_v25, 5  ;;  %v14064_v18 = vld [vmem:[%s16885_s16 + $0xe8] sm:$0xf] }
 0x274   : > { %v14095_v3 = vcombine.low %v5711_v15, %v5714_v21  ;;  %v5759_v56 = vrot.slane %v14064_v18, 5  ;;  %v14065_v15 = vld [vmem:[%s16885_s16 + $0xec] sm:$0x1] }
 0x278   : > { %15251 = vmatmul.mubr.msk.bf16.gmra.mrb[32].mxu0 %vm394_vm1, %v13993_v60  ;;  %v14073_v60 = vrot.slane %v14033_v43, 9  ;;  %v5738_v43 = vrot.slane %v14055_v40, 5  ;;  %v16525_v40 = vld [vmem:[#allocation5 + $0x38] sm:$0xff]  }
 0x279   : > { %15256 = vmatprep.mubr.msk.bf16.mxu0 %vm394_vm1, %v14085_v61  ;;  %v5691_v61 = vrot.slane %v5689_v48, 4 }
 0x27a   : > { %v5690_v42 = vsel %vm17220_vm7, %v14073_v60, %v5689_v48  ;;  %v5734_v60 = vrot.slane %v14053_v32, 5 }
 0x27b   : > { %v5693_v7 = vsel %vm17220_vm7, %v5691_v61, %v5692_v54  ;;  %v14080_v61 = vrot.slane %v14054_v55, 9  ;;  %v5740_v54 = vrot.slane %v5738_v43, 4 }
 0x27c   : > { %v14092_v10 = vcombine.low %v5690_v42, %v5693_v7  ;;  %v5745_v42 = vrot.slane %v14058_v45, 5 }
 0x27d   : > { %v5739_v7 = vsel %vm17220_vm7, %v14080_v61, %v5738_v43 }
 0x280   : > { %15257 = vmatmul.mubr.msk.bf16.vlgmr.msra.gmra.mrb[0].mxu0 %vm394_vm1, %v14086_v14  ;;  %v14075_v14 = vrot.slane %v14039_v2, 9  ;;  %v5752_v2 = vrot.slane %v14061_v5, 5 }
 0x281   : > { %15260 = vmatprep.mubr.msk.bf16.mxu0 %vm394_vm1, %v14087_v44  ;;  %15293 = vmatpush3.bf16.msra.mxu0 %v17984_v11  ;;  %v5678_v11 = vrot.slane %v14029_v29, 5  ;;  %v5705_v44 = vrot.slane %v5703_v62, 4  ;;  %v14048_v29 = vld [vmem:[%s16885_s16 + $0xa8] sm:$0xe] }
 0x282   : > { %v5704_v20 = vsel %vm17220_vm7, %v14075_v14, %v5703_v62  ;;  %v5742_v62 = vsel %vm17220_vm7, %v5740_v54, %v5741_v0  ;;  %v5748_v14 = vrot.slane %v14059_v37, 5 }
 0x283   : > { %v5679_v47 = vsel %vm17220_vm7, %v5677_v38, %v5678_v11  ;;  %v5707_v22 = vsel %vm17220_vm7, %v5705_v44, %v5706_v27  ;;  %v14078_v38 = vrot.slane %v14048_v29, 9  ;;  %v5726_v11 = vrot.slane %v5724_v26, 4 }
 0x284   : > { %v14090_v49 = vcombine.low %v5676_v46, %v5679_v47  ;;  %v14094_v57 = vcombine.low %v5704_v20, %v5707_v22  ;;  %v5731_v46 = vrot.slane %v14052_v39, 5  ;;  %v14099_v8 = vcombine.low %v5739_v7, %v5742_v62  ;;  %v16524_v39 = vld [vmem:[#allocation5 + $0x30] sm:$0xff]  }
 0x285   : > { %v5725_v47 = vsel %vm17220_vm7, %v14078_v38, %v5724_v26  ;;  %v5728_v48 = vsel %vm17220_vm7, %v5726_v11, %v5727_v23  ;;  %v14082_v44 = vrot.slane %v14060_v35, 9  ;;  %v5754_v27 = vrot.slane %v5752_v2, 4  ;;  %v16521_v38 = vld [vmem:[#allocation5 + $0x18] sm:$0xff]   ;;  %v16522_v11 = vld [vmem:[#allocation5 + $0x20] sm:$0xff]   ;;  %v16523_v23 = vld [vmem:[#allocation5 + $0x28] sm:$0xff]  }
 0x286   : > { %v14097_v58 = vcombine.low %v5725_v47, %v5728_v48  ;;  %v5761_v26 = vrot.slane %v5759_v56, 4  ;;  %v5762_v29 = vrot.slane %v14065_v15, 5 }
 0x287   : > { %v5753_v20 = vsel %vm17220_vm7, %v14082_v44, %v5752_v2  ;;  %v5756_v22 = vsel %vm17220_vm7, %v5754_v27, %v5755_v17 }
 0x288   : > { %15261 = vmatmul.mubr.msk.bf16.gmra.mrb[4].mxu0 %vm394_vm1, %v14088_v34  ;;  %v14077_v34 = vrot.slane %v14045_v9, 9  ;;  %v14101_v9 = vcombine.low %v5753_v20, %v5756_v22 }
 0x289   : > { %15264 = vmatprep.mubr.msk.bf16.mxu0 %vm394_vm1, %v14089_v12  ;;  %v5719_v12 = vrot.slane %v5717_v50, 4 }
 0x28a   : > { %v5718_v41 = vsel %vm17220_vm7, %v14077_v34, %v5717_v50  ;;  %v14063_v50 = vld [vmem:[%s16885_s16 + $0xe4] sm:$0xe] }
 0x28b   : > { %v5721_v36 = vsel %vm17220_vm7, %v5719_v12, %v5720_v24  ;;  %v14083_v25 = vrot.slane %v14063_v50, 9  ;;  %v16519_v34 = vld [vmem:[#allocation5 + $0x8] sm:$0xff]   ;;  %v16520_v12 = vld [vmem:[#allocation5 + $0x10] sm:$0xff]   ;;  %v16753_v24 = vmov 0  }
 0x28c   : > { %v14096_v30 = vcombine.low %v5718_v41, %v5721_v36  ;;  %15294 = vmatprep.subr.bf16.mxu0 %v16519_v34  ;;  %15759 = vmatprep.subr.bf16.mxu1 %v16519_v34  ;;  %6280 = vst [vmem:[#allocation4 + $0xc] sm:$0xf] %v16753_v24  ;;  %6277 = vst [vmem:[#allocation4] sm:$0xf] %v16753_v24  ;;  %v18294_v41 = vld [vmem:[#allocation5 + $0x40] sm:$0xff]  }
 0x28d   : > { %v5760_v52 = vsel %vm17220_vm7, %v14083_v25, %v5759_v56  ;;  %15295 = vmatpush3.bf16.msra.mxu0 %v16519_v34  ;;  %15767 = vmatpush3.bf16.msra.mxu1 %v16519_v34  ;;  %6278 = vst [vmem:[#allocation4 + $0x4] sm:$0xf] %v16753_v24  ;;  %6279 = vst [vmem:[#allocation4 + $0x8] sm:$0x1] %v16753_v24  ;;  %v18300_v36 = vld [vmem:[%s19425_s4] ss:$0 sm:$0xff] }
 0x28e   : > { %6281 = vst [vmem:[#allocation4 + $0x10] sm:$0xf] %v16753_v24  ;;  %6282 = vst [vmem:[#allocation4 + $0x14] sm:$0x1] %v16753_v24  ;;  %15296 = vmatprep.subr.bf16.mxu0 %v16520_v12  ;;  %15760 = vmatprep.subr.bf16.mxu1 %v16520_v12 }
 0x28f   : > { %6283 = vst [vmem:[#allocation4 + $0x18] sm:$0xf] %v16753_v24  ;;  %6284 = vst [vmem:[#allocation4 + $0x1c] sm:$0xf] %v16753_v24 }
 0x290   : > { %15265 = vmatmul.mubr.msk.bf16.gmra.mrb[8].mxu0 %vm394_vm1, %v14090_v49  ;;  %v14079_v49 = vrot.slane %v14051_v33, 9  ;;  %6285 = vst [vmem:[#allocation4 + $0x20] sm:$0x1] %v16753_v24  ;;  %6286 = vst [vmem:[#allocation4 + $0x24] sm:$0xf] %v16753_v24 }
 0x291   : > { %15268 = vmatprep.mubr.msk.bf16.mxu0 %vm394_vm1, %v14091_v59  ;;  %v5733_v59 = vrot.slane %v5731_v46, 4  ;;  %6287 = vst [vmem:[#allocation4 + $0x28] sm:$0xf] %v16753_v24  ;;  %6288 = vst [vmem:[#allocation4 + $0x2c] sm:$0x1] %v16753_v24  ;;  %15297 = vmatpush3.bf16.msra.mxu0 %v16520_v12 }
 0x292   : > { %v5732_v16 = vsel %vm17220_vm7, %v14079_v49, %v5731_v46  ;;  %6289 = vst [vmem:[#allocation4 + $0x30] sm:$0xf] %v16753_v24  ;;  %6290 = vst [vmem:[#allocation4 + $0x34] sm:$0xf] %v16753_v24  ;;  %15768 = vmatpush3.bf16.msra.mxu1 %v16520_v12  ;;  %15298 = vmatprep.subr.bf16.mxu0 %v16521_v38 }
 0x293   : > { %v5735_v6 = vsel %vm17220_vm7, %v5733_v59, %v5734_v60  ;;  %6291 = vst [vmem:[#allocation4 + $0x38] sm:$0x1] %v16753_v24  ;;  %6292 = vst [vmem:[#allocation4 + $0x3c] sm:$0xf] %v16753_v24  ;;  %15761 = vmatprep.subr.bf16.mxu1 %v16521_v38  ;;  %v6814_v51 = vld [vmem:[#allocation4 + $0xc] sm:$0xf] }
 0x294   : > { %v14098_v4 = vcombine.low %v5732_v16, %v5735_v6  ;;  %6293 = vst [vmem:[#allocation4 + $0x40] sm:$0xf] %v16753_v24  ;;  %6294 = vst [vmem:[#allocation4 + $0x44] sm:$0x1] %v16753_v24  ;;  %v6805_v17 = vld [vmem:[#allocation4] sm:$0xf] }
 0x295   : > { %6295 = vst [vmem:[#allocation4 + $0x48] sm:$0xf] %v16753_v24  ;;  %6296 = vst [vmem:[#allocation4 + $0x4c] sm:$0xf] %v16753_v24  ;;  %15299 = vmatpush3.bf16.msra.mxu0 %v16521_v38  ;;  %v6818_v15 = vld [vmem:[#allocation4 + $0x14] sm:$0x1] }
 0x296   : > { %6297 = vst [vmem:[#allocation4 + $0x50] sm:$0x1] %v16753_v24  ;;  %6298 = vst [vmem:[#allocation4 + $0x54] sm:$0xf] %v16753_v24  ;;  %15769 = vmatpush3.bf16.msra.mxu1 %v16521_v38  ;;  %15300 = vmatprep.subr.bf16.mxu0 %v16522_v11 }
 0x297   : > { %6299 = vst [vmem:[#allocation4 + $0x58] sm:$0xf] %v16753_v24  ;;  %6300 = vst [vmem:[#allocation4 + $0x5c] sm:$0x1] %v16753_v24  ;;  %15762 = vmatprep.subr.bf16.mxu1 %v16522_v11 }
 0x298   : > { %15269 = vmatmul.mubr.msk.bf16.gmra.mrb[12].mxu0 %vm394_vm1, %v14092_v10  ;;  %v14081_v10 = vrot.slane %v14057_v63, 9  ;;  %6301 = vst [vmem:[#allocation4 + $0x60] sm:$0xf] %v16753_v24  ;;  %6302 = vst [vmem:[#allocation4 + $0x64] sm:$0xf] %v16753_v24 }
 0x299   : > { %15272 = vmatprep.mubr.msk.bf16.mxu0 %vm394_vm1, %v14093_v13  ;;  %v5747_v13 = vrot.slane %v5745_v42, 4  ;;  %6303 = vst [vmem:[#allocation4 + $0x68] sm:$0x1] %v16753_v24  ;;  %6304 = vst [vmem:[#allocation4 + $0x6c] sm:$0xf] %v16753_v24  ;;  %15301 = vmatpush3.bf16.msra.mxu0 %v16522_v11 }
 0x29a   : > { %v5746_v1 = vsel %vm17220_vm7, %v14081_v10, %v5745_v42  ;;  %6305 = vst [vmem:[#allocation4 + $0x70] sm:$0xf] %v16753_v24  ;;  %6306 = vst [vmem:[#allocation4 + $0x74] sm:$0x1] %v16753_v24  ;;  %15770 = vmatpush3.bf16.msra.mxu1 %v16522_v11  ;;  %15302 = vmatprep.subr.bf16.mxu0 %v16523_v23 }
 0x29b   : > { %v5749_v19 = vsel %vm17220_vm7, %v5747_v13, %v5748_v14  ;;  %6307 = vst [vmem:[#allocation4 + $0x78] sm:$0xf] %v16753_v24  ;;  %6308 = vst [vmem:[#allocation4 + $0x7c] sm:$0xf] %v16753_v24  ;;  %15763 = vmatprep.subr.bf16.mxu1 %v16523_v23 }
 0x29c   : > { %v14100_v21 = vcombine.low %v5746_v1, %v5749_v19  ;;  %6309 = vst [vmem:[#allocation4 + $0x80] sm:$0x1] %v16753_v24  ;;  %6310 = vst [vmem:[#allocation4 + $0x84] sm:$0xf] %v16753_v24 }
 0x29d   : > { %6311 = vst [vmem:[#allocation4 + $0x88] sm:$0xf] %v16753_v24  ;;  %6312 = vst [vmem:[#allocation4 + $0x8c] sm:$0x1] %v16753_v24  ;;  %15303 = vmatpush3.bf16.msra.mxu0 %v16523_v23 }
 0x29e   : > { %6313 = vst [vmem:[#allocation4 + $0x90] sm:$0xf] %v16753_v24  ;;  %6314 = vst [vmem:[#allocation4 + $0x94] sm:$0xf] %v16753_v24  ;;  %15771 = vmatpush3.bf16.msra.mxu1 %v16523_v23  ;;  %15304 = vmatprep.subr.bf16.mxu0 %v16524_v39 }
 0x29f   : > { %6315 = vst [vmem:[#allocation4 + $0x98] sm:$0x1] %v16753_v24  ;;  %6316 = vst [vmem:[#allocation4 + $0x9c] sm:$0xf] %v16753_v24  ;;  %15764 = vmatprep.subr.bf16.mxu1 %v16524_v39 }
 0x2a0   : > { %15273 = vmatmul.mubr.msk.bf16.gmra.mrb[16].mxu0 %vm394_vm1, %v14094_v57  ;;  %v5763_v57 = vsel %vm17220_vm7, %v5761_v26, %v5762_v29  ;;  %6317 = vst [vmem:[#allocation4 + $0xa0] sm:$0xf] %v16753_v24  ;;  %6318 = vst [vmem:[#allocation4 + $0xa4] sm:$0x1] %v16753_v24 }
 0x2a1   : > { %15276 = vmatprep.mubr.msk.bf16.mxu0 %vm394_vm1, %v14095_v3  ;;  %v14102_v3 = vcombine.low %v5760_v52, %v5763_v57  ;;  %6319 = vst [vmem:[#allocation4 + $0xa8] sm:$0xf] %v16753_v24  ;;  %6320 = vst [vmem:[#allocation4 + $0xac] sm:$0xf] %v16753_v24  ;;  %15305 = vmatpush3.bf16.msra.mxu0 %v16524_v39  ;;  %v6811_v52 = vld [vmem:[#allocation4 + $0x8] sm:$0x1] }
 0x2a2   : > { %6321 = vst [vmem:[#allocation4 + $0xb0] sm:$0x1] %v16753_v24  ;;  %6322 = vst [vmem:[#allocation4 + $0xb4] sm:$0xf] %v16753_v24  ;;  %15772 = vmatpush3.bf16.msra.mxu1 %v16524_v39  ;;  %15306 = vmatprep.subr.bf16.mxu0 %v16525_v40 }
 0x2a3   : > { %6323 = vst [vmem:[#allocation4 + $0xb8] sm:$0xf] %v16753_v24  ;;  %6324 = vst [vmem:[#allocation4 + $0xbc] sm:$0x1] %v16753_v24  ;;  %15765 = vmatprep.subr.bf16.mxu1 %v16525_v40 }
 0x2a4   : > { %6325 = vst [vmem:[#allocation4 + $0xc0] sm:$0xf] %v16753_v24  ;;  %6326 = vst [vmem:[#allocation4 + $0xc4] sm:$0xf] %v16753_v24 }
 0x2a5   : > { %6327 = vst [vmem:[#allocation4 + $0xc8] sm:$0x1] %v16753_v24  ;;  %6328 = vst [vmem:[#allocation4 + $0xcc] sm:$0xf] %v16753_v24  ;;  %15307 = vmatpush3.bf16.msra.mxu0 %v16525_v40 }
 0x2a6   : > { %6329 = vst [vmem:[#allocation4 + $0xd0] sm:$0xf] %v16753_v24  ;;  %6330 = vst [vmem:[#allocation4 + $0xd4] sm:$0x1] %v16753_v24  ;;  %15773 = vmatpush3.bf16.msra.mxu1 %v16525_v40 }
 0x2a7   : > { %15340 = vmatprep.subr.bf16.mxu1 %v18294_v41 }
 0x2a8   : > { %15277 = vmatmul.mubr.msk.bf16.gmra.mrb[20].mxu0 %vm394_vm1, %v14096_v30 }
 0x2a9   : > { %15280 = vmatprep.mubr.msk.bf16.mxu0 %vm394_vm1, %v14097_v58 }
 0x2b0   : > { %15281 = vmatmul.mubr.msk.bf16.gmra.mrb[24].mxu0 %vm394_vm1, %v14098_v4 }
 0x2b1   : > { %15284 = vmatprep.mubr.msk.bf16.mxu0 %vm394_vm1, %v14099_v8 }
 0x2b8   : > { %15285 = vmatmul.mubr.msk.bf16.gmra.mrb[28].mxu0 %vm394_vm1, %v14100_v21 }
 0x2b9   : > { %15288 = vmatprep.mubr.msk.bf16.mxu0 %vm394_vm1, %v14101_v9 }
 0x2c0   : > { %15289 = vmatmul.mubr.msk.bf16.gmra.mrb[32].mxu0 %vm394_vm1, %v14102_v3 }
 0x353   : > { %v15258_v46 = vpop.f32.mrb[0].mxu0 }
 0x354   : > { %v6207_v47 = vadd.f32 %v15258_v46, %v18300_v36  ;;  %v5911_v48 = vpop.f32.mrb[1].mxu0 }
 0x355   : > { %v6205_v33 = vadd.f32 %v18300_v36, %v5911_v48  ;;  %v15259_v32 = vpop.f32.mrb[2].mxu0 }
 0x356   : > { %v6243_v43 = vmax.f32 %v6207_v47, 0.0  ;;  %v6208_v55 = vadd.f32 %v15259_v32, %v18300_v36  ;;  %v5914_v53 = vpop.f32.mrb[3].mxu0 }
 0x357   : > { %v6241_v30 = vmax.f32 %v6205_v33, 0.0  ;;  %v6206_v58 = vadd.f32 %v18300_v36, %v5914_v53 }
 0x358   : > { %v14511_v49 = vpack.c.bf16 %v6243_v43, %v6243_v43  ;;  %v6244_v59 = vmax.f32 %v6208_v55, 0.0 }
 0x359   : > { %v14509_v60 = vpack.c.bf16 %v6241_v30, %v6241_v30  ;;  %v6242_v61 = vmax.f32 %v6206_v58, 0.0  ;;  %v6828_v58 = vld [vmem:[#allocation4 + $0x24] sm:$0xf] }
 0x35a   : > { %v6460_v54 = vshrl.u32 %v14511_v49, 16  ;;  %v14512_v0 = vpack.c.bf16 %v6244_v59, %v6244_v59  ;;  %v6463_v45 = vshll.u32 %v14511_v49, 16 }
 0x35b   : > { %v6443_v5 = vshrl.u32 %v14509_v60, 16  ;;  %v6446_v16 = vshll.u32 %v14509_v60, 16  ;;  %v14510_v6 = vpack.c.bf16 %v6242_v61, %v6242_v61  ;;  %v15262_v42 = vpop.f32.mrb[4].mxu0 }
 0x35c   : > { %v6462_v7 = vrot.slane %v6460_v54, 7  ;;  %v6468_v62 = vshrl.u32 %v14512_v0, 16  ;;  %v6471_v63 = vshll.u32 %v14512_v0, 16  ;;  %v6211_v37 = vadd.f32 %v15262_v42, %v18300_v36  ;;  %v5927_v2 = vpop.f32.mrb[5].mxu0 }
 0x35d   : > { %v6445_v4 = vrot.slane %v6443_v5, 7  ;;  %v6451_v8 = vshrl.u32 %v14510_v6, 16  ;;  %v6454_v10 = vshll.u32 %v14510_v6, 16  ;;  %v6209_v13 = vadd.f32 %v18300_v36, %v5927_v2  ;;  %v15263_v14 = vpop.f32.mrb[6].mxu0 }
 0x35e   : > { %v6465_v44 = vor.u32 %v6463_v45, %v6462_v7  ;;  %v6466_v27 = vrot.slane %v6462_v7, 4  ;;  %v6470_v1 = vrot.slane %v6468_v62, 7  ;;  %v6247_v19 = vmax.f32 %v6211_v37, 0.0  ;;  %v5930_v56 = vpop.f32.mrb[7].mxu0  ;;  %v6821_v45 = vld [vmem:[#allocation4 + $0x18] sm:$0xf] }
 0x35f   : > { %v6448_v20 = vor.u32 %v6446_v16, %v6445_v4  ;;  %v6449_v22 = vrot.slane %v6445_v4, 4  ;;  %v6453_v21 = vrot.slane %v6451_v8, 7  ;;  %v6245_v9 = vmax.f32 %v6209_v13, 0.0 }
 0x360   : > { %v6815_v25 = vsel %vm18309_vm13, %v6465_v44, %v6814_v51  ;;  %v6473_v26 = vor.u32 %v6471_v63, %v6470_v1  ;;  %v6475_v29 = vrot.slane %v6470_v1, 4  ;;  %v14515_v57 = vpack.c.bf16 %v6247_v19, %v6247_v19  ;;  %v6832_v19 = vld [vmem:[#allocation4 + $0x2c] sm:$0x1] }
 0x361   : > { %6816 = vst [vmem:[#allocation4 + $0xc] sm:$0xf] %v6815_v25  ;;  %v6806_v3 = vsel %vm18309_vm13, %v6448_v20, %v6805_v17  ;;  %v6456_v34 = vor.u32 %v6454_v10, %v6453_v21  ;;  %v6458_v12 = vrot.slane %v6453_v21, 4  ;;  %v14513_v38 = vpack.c.bf16 %v6245_v9, %v6245_v9 }
 0x362   : > { %6807 = vst [vmem:[#allocation4] sm:$0xf] %v6806_v3  ;;  %v6474_v11 = vsel %vm18316_vm14, %v6466_v27, %v6473_v26  ;;  %v6819_v23 = vsel %vm18322_vm15, %v6475_v29, %v6818_v15  ;;  %v6494_v39 = vshrl.u32 %v14515_v57, 16  ;;  %v6497_v47 = vshll.u32 %v14515_v57, 16  ;;  %v6842_v29 = vld [vmem:[#allocation4 + $0x3c] sm:$0xf] }
 0x363   : > { %6937 = vst [vmem:[#allocation4] sm:$0xf] %v16753_v24  ;;  %6817 = vst [vmem:[#allocation4 + $0x10] sm:$0xf] %v6474_v11  ;;  %v6457_v40 = vsel %vm18316_vm14, %v6449_v22, %v6456_v34  ;;  %v6812_v46 = vsel %vm18322_vm15, %v6458_v12, %v6811_v52  ;;  %v6477_v48 = vshrl.u32 %v14513_v38, 16  ;;  %v15266_v33 = vpop.f32.mrb[8].mxu0  ;;  %v6212_v43 = vadd.f32 %v15263_v14, %v18300_v36 }
 0x364   : > { %6820 = vst [vmem:[#allocation4 + $0x14] sm:$0x1] %v6819_v23  ;;  %6808 = vst [vmem:[#allocation4 + $0x4] sm:$0xf] %v6457_v40  ;;  %v18339_v32 = vrot.slane %v6494_v39, 7  ;;  %v6210_v55 = vadd.f32 %v18300_v36, %v5930_v56  ;;  %v6215_v53 = vadd.f32 %v15266_v33, %v18300_v36  ;;  %v5943_v30 = vpop.f32.mrb[9].mxu0 }
 0x365   : > { %6813 = vst [vmem:[#allocation4 + $0x8] sm:$0x1] %v6812_v46  ;;  %6938 = vst [vmem:[#allocation4 + $0x4] sm:$0xf] %v16753_v24  ;;  %v18346_v49 = vrot.slane %v6477_v48, 7  ;;  %v6480_v59 = vshll.u32 %v14513_v38, 16  ;;  %v6213_v60 = vadd.f32 %v18300_v36, %v5943_v30 }
 0x366   : > { %6939 = vst [vmem:[#allocation4 + $0x8] sm:$0x1] %v16753_v24  ;;  %v15267_v61 = vpop.f32.mrb[10].mxu0  ;;  %v6499_v54 = vor.u32 %v6497_v47, %v18339_v32  ;;  %v6500_v0 = vrot.slane %v18339_v32, 4  ;;  %v6248_v5 = vmax.f32 %v6212_v43, 0.0  ;;  %v6246_v16 = vmax.f32 %v6210_v55, 0.0 }
 0x367   : > { %v5946_v6 = vpop.f32.mrb[11].mxu0  ;;  %v6482_v42 = vor.u32 %v6480_v59, %v18346_v49  ;;  %v6483_v7 = vrot.slane %v18346_v49, 4  ;;  %v6251_v62 = vmax.f32 %v6215_v53, 0.0  ;;  %v6249_v63 = vmax.f32 %v6213_v60, 0.0  ;;  %v6825_v56 = vld [vmem:[#allocation4 + $0x20] sm:$0x1] }
 0x368   : > { %v6829_v37 = vsel %vm18309_vm13, %v6499_v54, %v6828_v58  ;;  %v14516_v2 = vpack.c.bf16 %v6248_v5, %v6248_v5  ;;  %v14514_v51 = vpack.c.bf16 %v6246_v16, %v6246_v16  ;;  %v6216_v4 = vadd.f32 %v15267_v61, %v18300_v36  ;;  %v6835_v52 = vld [vmem:[#allocation4 + $0x30] sm:$0xf] }
 0x369   : > { %6830 = vst [vmem:[#allocation4 + $0x24] sm:$0xf] %v6829_v37  ;;  %v6822_v8 = vsel %vm18309_vm13, %v6482_v42, %v6821_v45  ;;  %v14519_v10 = vpack.c.bf16 %v6251_v62, %v6251_v62  ;;  %v14517_v13 = vpack.c.bf16 %v6249_v63, %v6249_v63  ;;  %v6214_v14 = vadd.f32 %v18300_v36, %v5946_v6 }
 0x36a   : > { %6823 = vst [vmem:[#allocation4 + $0x18] sm:$0xf] %v6822_v8  ;;  %v6502_v44 = vshrl.u32 %v14516_v2, 16  ;;  %v6505_v27 = vshll.u32 %v14516_v2, 16  ;;  %v6485_v17 = vshrl.u32 %v14514_v51, 16  ;;  %v6488_v1 = vshll.u32 %v14514_v51, 16 }
 0x36b   : > { %v6528_v20 = vshrl.u32 %v14519_v10, 16  ;;  %v6531_v22 = vshll.u32 %v14519_v10, 16  ;;  %v6511_v15 = vshrl.u32 %v14517_v13, 16  ;;  %v6514_v21 = vshll.u32 %v14517_v13, 16  ;;  %v15270_v9 = vpop.f32.mrb[12].mxu0  ;;  %v16527_v46 = vld [vmem:[#allocation4 + $0xc] sm:$0xff]  }
 0x36c   : > { %v6504_v25 = vrot.slane %v6502_v44, 7  ;;  %v6487_v26 = vrot.slane %v6485_v17, 7  ;;  %v6252_v57 = vmax.f32 %v6216_v4, 0.0  ;;  %v6250_v3 = vmax.f32 %v6214_v14, 0.0  ;;  %v5959_v34 = vpop.f32.mrb[13].mxu0  ;;  %v16526_v12 = vld [vmem:[#allocation4] sm:$0xff]  }
 0x36d   : > { %v18359_v38 = vrot.slane %v6528_v20, 7  ;;  %v18361_v11 = vrot.slane %v6511_v15, 7  ;;  %v6219_v23 = vadd.f32 %v15270_v9, %v18300_v36  ;;  %v6217_v39 = vadd.f32 %v18300_v36, %v5959_v34  ;;  %v15271_v40 = vpop.f32.mrb[14].mxu0  ;;  %15308 = vmatprep.mubr.bf16.mxu0 %v16526_v12  ;;  %v6846_v4 = vld [vmem:[#allocation4 + $0x44] sm:$0x1] }
 0x36e   : > { %v6507_v47 = vor.u32 %v6505_v27, %v6504_v25  ;;  %v6509_v48 = vrot.slane %v6504_v25, 4  ;;  %v6490_v33 = vor.u32 %v6488_v1, %v6487_v26  ;;  %v6492_v32 = vrot.slane %v6487_v26, 4  ;;  %v5962_v43 = vpop.f32.mrb[15].mxu0  ;;  %15309 = vmatmul.mubr.bf16.vlgmr.msra.gmra.mrb[36].mxu0 %v16527_v46  ;;  %v6839_v1 = vld [vmem:[#allocation4 + $0x38] sm:$0x1]  ;;  %v16532_v12 = vld [vmem:[#allocation5 + $0x48] sm:$0xff]  }
 0x36f   : > { %v6533_v55 = vor.u32 %v6531_v22, %v18359_v38  ;;  %v6534_v53 = vrot.slane %v18359_v38, 4  ;;  %v6516_v30 = vor.u32 %v6514_v21, %v18361_v11  ;;  %v6517_v58 = vrot.slane %v18361_v11, 4  ;;  %v6849_v34 = vld [vmem:[#allocation4 + $0x48] sm:$0xf] }
 0x370   : > { %v6508_v49 = vsel %vm18316_vm14, %v6500_v0, %v6507_v47  ;;  %v6833_v59 = vsel %vm18322_vm15, %v6509_v48, %v6832_v19  ;;  %v6491_v60 = vsel %vm18316_vm14, %v6483_v7, %v6490_v33  ;;  %v6826_v61 = vsel %vm18322_vm15, %v6492_v32, %v6825_v56 }
 0x371   : > { %6831 = vst [vmem:[#allocation4 + $0x28] sm:$0xf] %v6508_v49  ;;  %6834 = vst [vmem:[#allocation4 + $0x2c] sm:$0x1] %v6833_v59  ;;  %v6843_v54 = vsel %vm18309_vm13, %v6533_v55, %v6842_v29  ;;  %v6836_v45 = vsel %vm18309_vm13, %v6516_v30, %v6835_v52  ;;  %v14520_v0 = vpack.c.bf16 %v6252_v57, %v6252_v57  ;;  %v6255_v16 = vmax.f32 %v6219_v23, 0.0 }
 0x372   : > { %6824 = vst [vmem:[#allocation4 + $0x1c] sm:$0xf] %v6491_v60  ;;  %6827 = vst [vmem:[#allocation4 + $0x20] sm:$0x1] %v6826_v61  ;;  %v14518_v5 = vpack.c.bf16 %v6250_v3, %v6250_v3  ;;  %v6253_v6 = vmax.f32 %v6217_v39, 0.0  ;;  %v6220_v42 = vadd.f32 %v15271_v40, %v18300_v36  ;;  %v6218_v7 = vadd.f32 %v18300_v36, %v5962_v43 }
 0x373   : > { %6844 = vst [vmem:[#allocation4 + $0x3c] sm:$0xf] %v6843_v54  ;;  %6837 = vst [vmem:[#allocation4 + $0x30] sm:$0xf] %v6836_v45  ;;  %v6536_v62 = vshrl.u32 %v14520_v0, 16  ;;  %v6539_v63 = vshll.u32 %v14520_v0, 16  ;;  %v14523_v8 = vpack.c.bf16 %v6255_v16, %v6255_v16 }
 0x374   : > { %v6519_v37 = vshrl.u32 %v14518_v5, 16  ;;  %v6522_v2 = vshll.u32 %v14518_v5, 16  ;;  %v15274_v51 = vpop.f32.mrb[16].mxu0  ;;  %v14521_v10 = vpack.c.bf16 %v6253_v6, %v6253_v6  ;;  %v6256_v13 = vmax.f32 %v6220_v42, 0.0  ;;  %v6856_v3 = vld [vmem:[#allocation4 + $0x54] sm:$0xf] }
 0x375   : > { %v6254_v14 = vmax.f32 %v6218_v7, 0.0  ;;  %v5975_v44 = vpop.f32.mrb[17].mxu0  ;;  %v6538_v27 = vrot.slane %v6536_v62, 7  ;;  %v6223_v19 = vadd.f32 %v15274_v51, %v18300_v36  ;;  %v6562_v22 = vshrl.u32 %v14523_v8, 16  ;;  %v6853_v51 = vld [vmem:[#allocation4 + $0x50] sm:$0x1] }
 0x376   : > { %v6521_v17 = vrot.slane %v6519_v37, 7  ;;  %v6221_v56 = vadd.f32 %v18300_v36, %v5975_v44  ;;  %v15275_v20 = vpop.f32.mrb[18].mxu0  ;;  %v6565_v15 = vshll.u32 %v14523_v8, 16  ;;  %v6545_v21 = vshrl.u32 %v14521_v10, 16  ;;  %v16534_v37 = vld [vmem:[#allocation5 + $0x50] sm:$0xff]  }
 0x377   : > { %v6548_v9 = vshll.u32 %v14521_v10, 16  ;;  %v5978_v25 = vpop.f32.mrb[19].mxu0  ;;  %v6541_v26 = vor.u32 %v6539_v63, %v6538_v27  ;;  %v6543_v29 = vrot.slane %v6538_v27, 4  ;;  %v6564_v38 = vrot.slane %v6562_v22, 7  ;;  %v7335_v35 = vld [vmem:[#allocation4 + $0x18] sm:$0xf] }
 0x378   : > { %v6524_v52 = vor.u32 %v6522_v2, %v6521_v17  ;;  %v6526_v57 = vrot.slane %v6521_v17, 4  ;;  %v6547_v11 = vrot.slane %v6545_v21, 7  ;;  %v14524_v23 = vpack.c.bf16 %v6256_v13, %v6256_v13  ;;  %v16529_v46 = vld [vmem:[#allocation4 + $0x24] sm:$0xff]   ;;  %v6860_v2 = vld [vmem:[#allocation4 + $0x5c] sm:$0x1] }
 0x379   : > { %v14522_v39 = vpack.c.bf16 %v6254_v14, %v6254_v14  ;;  %v16528_v40 = vld [vmem:[#allocation4 + $0x18] sm:$0xff]   ;;  %v6542_v47 = vsel %vm18316_vm14, %v6534_v53, %v6541_v26  ;;  %v6847_v48 = vsel %vm18322_vm15, %v6543_v29, %v6846_v4  ;;  %v6567_v43 = vor.u32 %v6565_v15, %v6564_v38 }
 0x37a   : > { %v6525_v33 = vsel %vm18316_vm14, %v6517_v58, %v6524_v52  ;;  %v6840_v32 = vsel %vm18322_vm15, %v6526_v57, %v6839_v1  ;;  %6845 = vst [vmem:[#allocation4 + $0x40] sm:$0xf] %v6542_v47  ;;  %6848 = vst [vmem:[#allocation4 + $0x44] sm:$0x1] %v6847_v48  ;;  %v6568_v55 = vrot.slane %v6564_v38, 4  ;;  %v6550_v30 = vor.u32 %v6548_v9, %v6547_v11 }
 0x37b   : > { %6838 = vst [vmem:[#allocation4 + $0x34] sm:$0xf] %v6525_v33  ;;  %6841 = vst [vmem:[#allocation4 + $0x38] sm:$0x1] %v6840_v32  ;;  %v6551_v49 = vrot.slane %v6547_v11, 4  ;;  %15312 = vmatprep.mubr.bf16.mxu1 %v16528_v40  ;;  %v6570_v59 = vshrl.u32 %v14524_v23, 16  ;;  %v6857_v58 = vsel %vm18309_vm13, %v6567_v43, %v6856_v3  ;;  %v6224_v7 = vadd.f32 %v15275_v20, %v18300_v36 }
 0x37c   : > { %v6573_v53 = vshll.u32 %v14524_v23, 16  ;;  %v6553_v60 = vshrl.u32 %v14522_v39, 16  ;;  %v6556_v61 = vshll.u32 %v14522_v39, 16  ;;  %15313 = vmatmul.mubr.bf16.vlgmr.msra.gmra.mrb[0].mxu1 %v16529_v46  ;;  %v15278_v54 = vpop.f32.mrb[20].mxu0  ;;  %v6850_v45 = vsel %vm18309_vm13, %v6550_v30, %v6849_v34  ;;  %6858 = vst [vmem:[#allocation4 + $0x54] sm:$0xf] %v6857_v58 }
 0x37d   : > { %v6259_v0 = vmax.f32 %v6223_v19, 0.0  ;;  %v6257_v5 = vmax.f32 %v6221_v56, 0.0  ;;  %15341 = vmatpush3.bf16.msra.mxu1 %v18294_v41  ;;  %v5991_v16 = vpop.f32.mrb[21].mxu0  ;;  %6851 = vst [vmem:[#allocation4 + $0x48] sm:$0xf] %v6850_v45  ;;  %v6572_v6 = vrot.slane %v6570_v59, 7  ;;  %v6222_v62 = vadd.f32 %v18300_v36, %v5978_v25 }
 0x37e   : > { %v6555_v42 = vrot.slane %v6553_v60, 7  ;;  %v15279_v63 = vpop.f32.mrb[22].mxu0  ;;  %15342 = vmatprep.subr.bf16.mxu1 %v16532_v12  ;;  %v6227_v10 = vadd.f32 %v15278_v54, %v18300_v36  ;;  %v6225_v41 = vadd.f32 %v18300_v36, %v5991_v16  ;;  %v6870_v25 = vld [vmem:[#allocation4 + $0x6c] sm:$0xf]  ;;  %v6260_v57 = vmax.f32 %v6224_v7, 0.0 }
 0x37f   : > { %v14527_v4 = vpack.c.bf16 %v6259_v0, %v6259_v0  ;;  %v14525_v8 = vpack.c.bf16 %v6257_v5, %v6257_v5  ;;  %v5994_v13 = vpop.f32.mrb[23].mxu0  ;;  %v6575_v14 = vor.u32 %v6573_v53, %v6572_v6  ;;  %v6577_v44 = vrot.slane %v6572_v6, 4  ;;  %v6863_v38 = vld [vmem:[#allocation4 + $0x60] sm:$0xf]  ;;  %v16540_v0 = vld [vmem:[#allocation5 + $0x60] sm:$0xff]  }
 0x380   : > { %v6558_v27 = vor.u32 %v6556_v61, %v6555_v42  ;;  %v6560_v17 = vrot.slane %v6555_v42, 4  ;;  %v6258_v3 = vmax.f32 %v6222_v62, 0.0  ;;  %v6263_v11 = vmax.f32 %v6227_v10, 0.0  ;;  %v6874_v7 = vld [vmem:[#allocation4 + $0x74] sm:$0x1] }
 0x381   : > { %v6596_v1 = vshrl.u32 %v14527_v4, 16  ;;  %v6599_v19 = vshll.u32 %v14527_v4, 16  ;;  %v6579_v56 = vshrl.u32 %v14525_v8, 16  ;;  %v6582_v20 = vshll.u32 %v14525_v8, 16  ;;  %15343 = vmatpush3.bf16.msra.mxu1 %v16532_v12  ;;  %v16533_v34 = vld [vmem:[#allocation4 + $0x3c] sm:$0xff]   ;;  %v16537_v12 = vld [vmem:[#allocation5 + $0x58] sm:$0xff]  }
 0x382   : > { %v6576_v22 = vsel %vm18316_vm14, %v6568_v55, %v6575_v14  ;;  %v6861_v15 = vsel %vm18322_vm15, %v6577_v44, %v6860_v2  ;;  %v6559_v21 = vsel %vm18316_vm14, %v6551_v49, %v6558_v27  ;;  %v6854_v9 = vsel %vm18322_vm15, %v6560_v17, %v6853_v51  ;;  %v16531_v26 = vld [vmem:[#allocation4 + $0x30] sm:$0xff]   ;;  %15344 = vmatprep.subr.bf16.mxu1 %v16534_v37  ;;  %v6867_v62 = vld [vmem:[#allocation4 + $0x68] sm:$0x1]  ;;  %v6884_v10 = vld [vmem:[#allocation4 + $0x84] sm:$0xf] }
 0x383   : > { %6859 = vst [vmem:[#allocation4 + $0x58] sm:$0xf] %v6576_v22  ;;  %6862 = vst [vmem:[#allocation4 + $0x5c] sm:$0x1] %v6861_v15  ;;  %v18410_v29 = vrot.slane %v6596_v1, 7  ;;  %v18412_v52 = vrot.slane %v6579_v56, 7  ;;  %v6228_v39 = vadd.f32 %v15279_v63, %v18300_v36  ;;  %v6226_v40 = vadd.f32 %v18300_v36, %v5994_v13  ;;  %15316 = vmatprep.mubr.bf16.mxu1 %v16531_v26 }
 0x384   : > { %6852 = vst [vmem:[#allocation4 + $0x4c] sm:$0xf] %v6559_v21  ;;  %6855 = vst [vmem:[#allocation4 + $0x50] sm:$0x1] %v6854_v9  ;;  %v6261_v23 = vmax.f32 %v6225_v41, 0.0  ;;  %v15282_v46 = vpop.f32.mrb[24].mxu0  ;;  %15317 = vmatmul.mubr.bf16.gmra.mrb[4].mxu1 %v16533_v34  ;;  %v14528_v55 = vpack.c.bf16 %v6260_v57, %v6260_v57  ;;  %v14526_v30 = vpack.c.bf16 %v6258_v3, %v6258_v3 }
 0x385   : > { %v6601_v47 = vor.u32 %v6599_v19, %v18410_v29  ;;  %v6602_v48 = vrot.slane %v18410_v29, 4  ;;  %v6584_v33 = vor.u32 %v6582_v20, %v18412_v52  ;;  %v6585_v32 = vrot.slane %v18412_v52, 4  ;;  %v6007_v43 = vpop.f32.mrb[25].mxu0  ;;  %15345 = vmatpush3.bf16.msra.mxu1 %v16534_v37  ;;  %v16543_v56 = vld [vmem:[#allocation5 + $0x68] sm:$0xff]   ;;  %v6877_v9 = vld [vmem:[#allocation4 + $0x78] sm:$0xf] }
 0x386   : > { %v14531_v49 = vpack.c.bf16 %v6263_v11, %v6263_v11  ;;  %v14529_v59 = vpack.c.bf16 %v6261_v23, %v6261_v23  ;;  %v18420_v53 = vpop.f32.mrb[26].mxu0  ;;  %v6264_v54 = vmax.f32 %v6228_v39, 0.0  ;;  %v6262_v58 = vmax.f32 %v6226_v40, 0.0  ;;  %15346 = vmatprep.subr.bf16.mxu1 %v16537_v12 }
 0x387   : > { %v6871_v60 = vsel %vm18309_vm13, %v6601_v47, %v6870_v25  ;;  %v6864_v61 = vsel %vm18309_vm13, %v6584_v33, %v6863_v38  ;;  %v18426_v45 = vpop.f32.mrb[27].mxu0  ;;  %v6604_v5 = vshrl.u32 %v14528_v55, 16  ;;  %v6607_v16 = vshll.u32 %v14528_v55, 16  ;;  %v16546_v33 = vld [vmem:[#allocation5 + $0x70] sm:$0xff]  }
 0x388   : > { %6872 = vst [vmem:[#allocation4 + $0x6c] sm:$0xf] %v6871_v60  ;;  %6865 = vst [vmem:[#allocation4 + $0x60] sm:$0xf] %v6864_v61  ;;  %v6587_v6 = vshrl.u32 %v14526_v30, 16  ;;  %v6590_v42 = vshll.u32 %v14526_v30, 16  ;;  %v14532_v41 = vpack.c.bf16 %v6264_v54, %v6264_v54  ;;  %v18428_v13 = vpack.c.bf16 %v6262_v58, %v6262_v58 }
 0x389   : > { %v6630_v63 = vshrl.u32 %v14531_v49, 16  ;;  %v6633_v37 = vshll.u32 %v14531_v49, 16  ;;  %v6613_v2 = vshrl.u32 %v14529_v59, 16  ;;  %v6616_v51 = vshll.u32 %v14529_v59, 16  ;;  %15347 = vmatpush3.bf16.msra.mxu1 %v16537_v12  ;;  %v6888_v54 = vld [vmem:[#allocation4 + $0x8c] sm:$0x1] }
 0x38a   : > { %v6606_v4 = vrot.slane %v6604_v5, 7  ;;  %v6589_v8 = vrot.slane %v6587_v6, 7  ;;  %v6231_v17 = vadd.f32 %v15282_v46, %v18300_v36  ;;  %v6229_v1 = vadd.f32 %v18300_v36, %v6007_v43  ;;  %v16536_v19 = vld [vmem:[#allocation4 + $0x54] sm:$0xff]   ;;  %15348 = vmatprep.subr.bf16.mxu1 %v16540_v0 }
 0x38b   : > { %v16535_v14 = vld [vmem:[#allocation4 + $0x48] sm:$0xff]   ;;  %v18430_v44 = vrot.slane %v6630_v63, 7  ;;  %v18432_v27 = vrot.slane %v6613_v2, 7  ;;  %v15286_v25 = vpop.f32.mrb[28].mxu0  ;;  %v6638_v46 = vshrl.u32 %v14532_v41, 16  ;;  %v6641_v47 = vshll.u32 %v14532_v41, 16 }
 0x38c   : > { %v6609_v20 = vor.u32 %v6607_v16, %v6606_v4  ;;  %v6611_v22 = vrot.slane %v6606_v4, 4  ;;  %v6592_v15 = vor.u32 %v6590_v42, %v6589_v8  ;;  %v6594_v21 = vrot.slane %v6589_v8, 4  ;;  %15320 = vmatprep.mubr.bf16.mxu1 %v16535_v14  ;;  %v6023_v3 = vpop.f32.mrb[29].mxu0  ;;  %v6898_v41 = vld [vmem:[#allocation4 + $0x9c] sm:$0xf] }
 0x38d   : > { %v6635_v26 = vor.u32 %v6633_v37, %v18430_v44  ;;  %v6636_v29 = vrot.slane %v18430_v44, 4  ;;  %v6618_v52 = vor.u32 %v6616_v51, %v18432_v27  ;;  %v6619_v57 = vrot.slane %v18432_v27, 4  ;;  %15321 = vmatmul.mubr.bf16.gmra.mrb[8].mxu1 %v16536_v19  ;;  %v18448_v23 = vpop.f32.mrb[30].mxu0  ;;  %v16549_v37 = vld [vmem:[#allocation5 + $0x78] sm:$0xff]  }
 0x38e   : > { %v6610_v34 = vsel %vm18316_vm14, %v6602_v48, %v6609_v20  ;;  %v6875_v12 = vsel %vm18322_vm15, %v6611_v22, %v6874_v7  ;;  %v6593_v38 = vsel %vm18316_vm14, %v6585_v32, %v6592_v15  ;;  %v6868_v11 = vsel %vm18322_vm15, %v6594_v21, %v6867_v62  ;;  %15349 = vmatpush3.bf16.msra.mxu1 %v16540_v0  ;;  %v18454_v48 = vpop.f32.mrb[31].mxu0  ;;  %v6881_v7 = vld [vmem:[#allocation4 + $0x80] sm:$0x1]  ;;  %v6891_v19 = vld [vmem:[#allocation4 + $0x90] sm:$0xf] }
 0x38f   : > { %6873 = vst [vmem:[#allocation4 + $0x70] sm:$0xf] %v6610_v34  ;;  %6876 = vst [vmem:[#allocation4 + $0x74] sm:$0x1] %v6875_v12  ;;  %v6885_v39 = vsel %vm18309_vm13, %v6635_v26, %v6884_v10  ;;  %v6878_v40 = vsel %vm18309_vm13, %v6618_v52, %v6877_v9  ;;  %15350 = vmatprep.subr.bf16.mxu1 %v16543_v56  ;;  %v6621_v32 = vshrl.u32 %v18428_v13, 16  ;;  %v6624_v43 = vshll.u32 %v18428_v13, 16 }
 0x390   : > { %6866 = vst [vmem:[#allocation4 + $0x64] sm:$0xf] %v6593_v38  ;;  %6869 = vst [vmem:[#allocation4 + $0x68] sm:$0x1] %v6868_v11  ;;  %v6267_v55 = vmax.f32 %v6231_v17, 0.0  ;;  %v6265_v30 = vmax.f32 %v6229_v1, 0.0  ;;  %v6232_v59 = vadd.f32 %v18420_v53, %v18300_v36  ;;  %v6230_v60 = vadd.f32 %v18300_v36, %v18426_v45 }
 0x391   : > { %6886 = vst [vmem:[#allocation4 + $0x84] sm:$0xf] %v6885_v39  ;;  %6879 = vst [vmem:[#allocation4 + $0x78] sm:$0xf] %v6878_v40  ;;  %v6640_v49 = vrot.slane %v6638_v46, 7  ;;  %v6235_v61 = vadd.f32 %v15286_v25, %v18300_v36  ;;  %v6623_v58 = vrot.slane %v6621_v32, 7  ;;  %v6233_v16 = vadd.f32 %v18300_v36, %v6023_v3 }
 0x392   : > { %v14535_v0 = vpack.c.bf16 %v6267_v55, %v6267_v55  ;;  %v14533_v5 = vpack.c.bf16 %v6265_v30, %v6265_v30  ;;  %15351 = vmatpush3.bf16.msra.mxu1 %v16543_v56  ;;  %v6268_v62 = vmax.f32 %v6232_v59, 0.0  ;;  %v6266_v63 = vmax.f32 %v6230_v60, 0.0  ;;  %v6902_v55 = vld [vmem:[#allocation4 + $0xa4] sm:$0x1] }
 0x393   : > { %v6643_v6 = vor.u32 %v6641_v47, %v6640_v49  ;;  %v6645_v42 = vrot.slane %v6640_v49, 4  ;;  %15352 = vmatprep.subr.bf16.mxu1 %v16546_v33  ;;  %v6626_v53 = vor.u32 %v6624_v43, %v6623_v58  ;;  %v6628_v2 = vrot.slane %v6623_v58, 4  ;;  %v18464_v4 = vpop.f32.mrb[32].mxu0 }
 0x394   : > { %v6664_v51 = vshrl.u32 %v14535_v0, 16  ;;  %v6667_v45 = vshll.u32 %v14535_v0, 16  ;;  %v6647_v13 = vshrl.u32 %v14533_v5, 16  ;;  %v6650_v14 = vshll.u32 %v14533_v5, 16  ;;  %v18470_v44 = vpop.f32.mrb[33].mxu0 }
 0x395   : > { %v6644_v8 = vsel %vm18316_vm14, %v6636_v29, %v6643_v6  ;;  %v6889_v10 = vsel %vm18322_vm15, %v6645_v42, %v6888_v54  ;;  %v6627_v27 = vsel %vm18316_vm14, %v6619_v57, %v6626_v53  ;;  %v6882_v17 = vsel %vm18322_vm15, %v6628_v2, %v6881_v7  ;;  %v18476_v26 = vpop.f32.mrb[34].mxu0  ;;  %v18478_v29 = vld [vmem:[#allocation5 + $0x80] sm:$0xff]   ;;  %v6912_v2 = vld [vmem:[#allocation4 + $0xb4] sm:$0xf] }
 0x396   : > { %6887 = vst [vmem:[#allocation4 + $0x88] sm:$0xf] %v6644_v8  ;;  %6890 = vst [vmem:[#allocation4 + $0x8c] sm:$0x1] %v6889_v10  ;;  %v6666_v1 = vrot.slane %v6664_v51, 7  ;;  %v14536_v56 = vpack.c.bf16 %v6268_v62, %v6268_v62  ;;  %15353 = vmatpush3.bf16.msra.mxu1 %v16546_v33  ;;  %v6649_v22 = vrot.slane %v6647_v13, 7  ;;  %v14534_v15 = vpack.c.bf16 %v6266_v63, %v6266_v63 }
 0x397   : > { %v16538_v20 = vld [vmem:[#allocation4 + $0x60] sm:$0xff]   ;;  %6880 = vst [vmem:[#allocation4 + $0x7c] sm:$0xf] %v6627_v27  ;;  %6883 = vst [vmem:[#allocation4 + $0x80] sm:$0x1] %v6882_v17  ;;  %v6271_v21 = vmax.f32 %v6235_v61, 0.0  ;;  %15354 = vmatprep.subr.bf16.mxu1 %v16549_v37  ;;  %v6236_v49 = vadd.f32 %v18448_v23, %v18300_v36  ;;  %v6234_v59 = vadd.f32 %v18300_v36, %v18454_v48 }
 0x398   : > { %v6269_v9 = vmax.f32 %v6233_v16, 0.0  ;;  %v16539_v25 = vld [vmem:[#allocation4 + $0x6c] sm:$0xff]   ;;  %v6669_v52 = vor.u32 %v6667_v45, %v6666_v1  ;;  %v6670_v57 = vrot.slane %v6666_v1, 4  ;;  %v6672_v3 = vshrl.u32 %v14536_v56, 16  ;;  %15324 = vmatprep.mubr.bf16.mxu1 %v16538_v20  ;;  %v18480_v12 = vpop.f32.mrb[35].mxu0 }
 0x399   : > { %v6675_v34 = vshll.u32 %v14536_v56, 16  ;;  %v6652_v38 = vor.u32 %v6650_v14, %v6649_v22  ;;  %v6653_v11 = vrot.slane %v6649_v22, 4  ;;  %v6655_v39 = vshrl.u32 %v14534_v15, 16  ;;  %15325 = vmatmul.mubr.bf16.gmra.mrb[12].mxu1 %v16539_v25  ;;  %v6895_v54 = vld [vmem:[#allocation4 + $0x98] sm:$0x1] }
 0x39a   : > { %v6658_v40 = vshll.u32 %v14534_v15, 16  ;;  %v6899_v46 = vsel %vm18309_vm13, %v6669_v52, %v6898_v41  ;;  %v6674_v47 = vrot.slane %v6672_v3, 7  ;;  %v14539_v33 = vpack.c.bf16 %v6271_v21, %v6271_v21  ;;  %15355 = vmatpush3.bf16.msra.mxu1 %v16549_v37  ;;  %v6905_v13 = vld [vmem:[#allocation4 + $0xa8] sm:$0xf]  ;;  %v7329_v20 = vld [vmem:[#allocation4] sm:$0xf] }
 0x39b   : > { %v14537_v32 = vpack.c.bf16 %v6269_v9, %v6269_v9  ;;  %6900 = vst [vmem:[#allocation4 + $0x9c] sm:$0xf] %v6899_v46  ;;  %v6892_v43 = vsel %vm18309_vm13, %v6652_v38, %v6891_v19  ;;  %v6657_v30 = vrot.slane %v6655_v39, 7  ;;  %15388 = vmatprep.subr.bf16.mxu1 %v18478_v29  ;;  %v6272_v48 = vmax.f32 %v6236_v49, 0.0 }
 0x39c   : > { %6893 = vst [vmem:[#allocation4 + $0x90] sm:$0xf] %v6892_v43  ;;  %v6677_v60 = vor.u32 %v6675_v34, %v6674_v47  ;;  %v6679_v61 = vrot.slane %v6674_v47, 4  ;;  %v6698_v58 = vshrl.u32 %v14539_v33, 16  ;;  %v6701_v0 = vshll.u32 %v14539_v33, 16 }
 0x39d   : > { %v6660_v5 = vor.u32 %v6658_v40, %v6657_v30  ;;  %v6662_v16 = vrot.slane %v6657_v30, 4  ;;  %v6681_v6 = vshrl.u32 %v14537_v32, 16  ;;  %v6684_v42 = vshll.u32 %v14537_v32, 16  ;;  %v16542_v8 = vld [vmem:[#allocation4 + $0x84] sm:$0xff]   ;;  %v6916_v34 = vld [vmem:[#allocation4 + $0xbc] sm:$0x1] }
 0x39e   : > { %v6678_v7 = vsel %vm18316_vm14, %v6670_v57, %v6677_v60  ;;  %v6903_v23 = vsel %vm18322_vm15, %v6679_v61, %v6902_v55  ;;  %v6700_v62 = vrot.slane %v6698_v58, 7  ;;  %v16541_v63 = vld [vmem:[#allocation4 + $0x78] sm:$0xff]   ;;  %v6270_v45 = vmax.f32 %v6234_v59, 0.0  ;;  %v6909_v40 = vld [vmem:[#allocation4 + $0xb0] sm:$0x1] }
 0x39f   : > { %6901 = vst [vmem:[#allocation4 + $0xa0] sm:$0xf] %v6678_v7  ;;  %6904 = vst [vmem:[#allocation4 + $0xa4] sm:$0x1] %v6903_v23  ;;  %v6661_v37 = vsel %vm18316_vm14, %v6653_v11, %v6660_v5  ;;  %v6896_v53 = vsel %vm18322_vm15, %v6662_v16, %v6895_v54  ;;  %v6683_v51 = vrot.slane %v6681_v6, 7  ;;  %v14540_v14 = vpack.c.bf16 %v6272_v48, %v6272_v48 }
 0x3a0   : > { %6894 = vst [vmem:[#allocation4 + $0x94] sm:$0xf] %v6661_v37  ;;  %6897 = vst [vmem:[#allocation4 + $0x98] sm:$0x1] %v6896_v53  ;;  %v6703_v10 = vor.u32 %v6701_v0, %v6700_v62  ;;  %v6704_v41 = vrot.slane %v6700_v62, 4  ;;  %v6239_v27 = vadd.f32 %v18464_v4, %v18300_v36  ;;  %15328 = vmatprep.mubr.bf16.mxu1 %v16541_v63  ;;  %v7378_v47 = vshrl.u32 %v7329_v20, 16 }
 0x3a1   : > { %v6686_v17 = vor.u32 %v6684_v42, %v6683_v51  ;;  %v6687_v1 = vrot.slane %v6683_v51, 4  ;;  %v14538_v19 = vpack.c.bf16 %v6270_v45, %v6270_v45  ;;  %v6237_v56 = vadd.f32 %v18300_v36, %v18470_v44  ;;  %15329 = vmatmul.mubr.bf16.gmra.mrb[16].mxu1 %v16542_v8  ;;  %v6926_v6 = vld [vmem:[#allocation4 + $0xcc] sm:$0xf]  ;;  %v7330_v23 = vld [vmem:[#allocation4 + $0x4] sm:$0xf] }
 0x3a2   : > { %v6913_v22 = vsel %vm18309_vm13, %v6703_v10, %v6912_v2  ;;  %v6706_v15 = vshrl.u32 %v14540_v14, 16  ;;  %v6709_v21 = vshll.u32 %v14540_v14, 16  ;;  %v6275_v9 = vmax.f32 %v6239_v27, 0.0  ;;  %v6919_v63 = vld [vmem:[#allocation4 + $0xc0] sm:$0xf] }
 0x3a3   : > { %6914 = vst [vmem:[#allocation4 + $0xb4] sm:$0xf] %v6913_v22  ;;  %v6906_v25 = vsel %vm18309_vm13, %v6686_v17, %v6905_v13  ;;  %v6689_v4 = vshrl.u32 %v14538_v19, 16  ;;  %v6692_v52 = vshll.u32 %v14538_v19, 16  ;;  %v6273_v57 = vmax.f32 %v6237_v56, 0.0 }
 0x3a4   : > { %6907 = vst [vmem:[#allocation4 + $0xa8] sm:$0xf] %v6906_v25  ;;  %v6708_v3 = vrot.slane %v6706_v15, 7  ;;  %v14543_v38 = vpack.c.bf16 %v6275_v9, %v6275_v9  ;;  %v6240_v44 = vadd.f32 %v18476_v26, %v18300_v36  ;;  %v6238_v11 = vadd.f32 %v18300_v36, %v18480_v12  ;;  %v7331_v8 = vld [vmem:[#allocation4 + $0x8] sm:$0x1] }
 0x3a5   : > { %v6691_v39 = vrot.slane %v6689_v4, 7  ;;  %v14541_v46 = vpack.c.bf16 %v6273_v57, %v6273_v57  ;;  %v7381_v33 = vshll.u32 %v7329_v20, 16  ;;  %v7380_v53 = vrot.slane %v7378_v47, 4  ;;  %v7332_v17 = vld [vmem:[#allocation4 + $0xc] sm:$0xf] }
 0x3a6   : > { %v6711_v32 = vor.u32 %v6709_v21, %v6708_v3  ;;  %v6713_v43 = vrot.slane %v6708_v3, 4  ;;  %v6732_v55 = vshrl.u32 %v14543_v38, 16  ;;  %v6735_v30 = vshll.u32 %v14543_v38, 16  ;;  %v16545_v0 = vld [vmem:[#allocation4 + $0x9c] sm:$0xff]   ;;  %v6930_v19 = vld [vmem:[#allocation4 + $0xd4] sm:$0x1] }
 0x3a7   : > { %v6694_v49 = vor.u32 %v6692_v52, %v6691_v39  ;;  %v6696_v59 = vrot.slane %v6691_v39, 4  ;;  %v6715_v60 = vshrl.u32 %v14541_v46, 16  ;;  %v6718_v61 = vshll.u32 %v14541_v46, 16  ;;  %v16544_v54 = vld [vmem:[#allocation4 + $0x90] sm:$0xff]   ;;  %v6923_v21 = vld [vmem:[#allocation4 + $0xc8] sm:$0x1] }
 0x3a8   : > { %v6712_v26 = vsel %vm18316_vm14, %v6704_v41, %v6711_v32  ;;  %v6917_v36 = vsel %vm18322_vm15, %v6713_v43, %v6916_v34  ;;  %v6734_v12 = vrot.slane %v6732_v55, 7  ;;  %v6276_v58 = vmax.f32 %v6240_v44, 0.0  ;;  %15332 = vmatprep.mubr.bf16.mxu1 %v16544_v54  ;;  %v7333_v52 = vld [vmem:[#allocation4 + $0x10] sm:$0xf]  ;;  %v7334_v34 = vld [vmem:[#allocation4 + $0x14] sm:$0x1] }
 0x3a9   : > { %6915 = vst [vmem:[#allocation4 + $0xb8] sm:$0xf] %v6712_v26  ;;  %6918 = vst [vmem:[#allocation4 + $0xbc] sm:$0x1] %v6917_v36  ;;  %v6695_v5 = vsel %vm18316_vm14, %v6687_v1, %v6694_v49  ;;  %v6910_v16 = vsel %vm18322_vm15, %v6696_v59, %v6909_v40  ;;  %v6717_v42 = vrot.slane %v6715_v60, 7  ;;  %v6274_v7 = vmax.f32 %v6238_v11, 0.0  ;;  %15333 = vmatmul.mubr.bf16.gmra.mrb[20].mxu1 %v16545_v0 }
 0x3aa   : > { %6908 = vst [vmem:[#allocation4 + $0xac] sm:$0xf] %v6695_v5  ;;  %6911 = vst [vmem:[#allocation4 + $0xb0] sm:$0x1] %v6910_v16  ;;  %v6737_v62 = vor.u32 %v6735_v30, %v6734_v12  ;;  %v6738_v48 = vrot.slane %v6734_v12, 4  ;;  %v14544_v37 = vpack.c.bf16 %v6276_v58, %v6276_v58  ;;  %v7383_v10 = vrot.slane %v7381_v33, 5 }
 0x3ab   : > { %v6720_v2 = vor.u32 %v6718_v61, %v6717_v42  ;;  %v6721_v51 = vrot.slane %v6717_v42, 4  ;;  %v14542_v45 = vpack.c.bf16 %v6274_v7, %v6274_v7  ;;  %v7387_v27 = vshll.u32 %v7330_v23, 16  ;;  %v7336_v54 = vld [vmem:[#allocation4 + $0x1c] sm:$0xf]  ;;  %v7338_v42 = vld [vmem:[#allocation4 + $0x24] sm:$0xf] }
 0x3ac   : > { %v6927_v41 = vsel %vm18309_vm13, %v6737_v62, %v6926_v6  ;;  %v6740_v13 = vshrl.u32 %v14544_v37, 16  ;;  %v6743_v14 = vshll.u32 %v14544_v37, 16  ;;  %v7384_v22 = vor.u32 %v7383_v10, %v7380_v53 }
 0x3ad   : > { %6928 = vst [vmem:[#allocation4 + $0xcc] sm:$0xf] %v6927_v41  ;;  %v6920_v1 = vsel %vm18309_vm13, %v6720_v2, %v6919_v63  ;;  %v6723_v56 = vshrl.u32 %v14542_v45, 16  ;;  %v6726_v20 = vshll.u32 %v14542_v45, 16  ;;  %v7389_v9 = vrot.slane %v7387_v27, 5 }
 0x3ae   : > { %6941 = vst [vmem:[#allocation4 + $0xcc] sm:$0xf] %v16753_v24  ;;  %6921 = vst [vmem:[#allocation4 + $0xc0] sm:$0xf] %v6920_v1  ;;  %v6742_v15 = vrot.slane %v6740_v13, 7  ;;  %v7391_v25 = vshrl.u32 %v7330_v23, 16 }
 0x3af   : > { %v7397_v4 = vshll.u32 %v7331_v8, 16  ;;  %v6725_v57 = vrot.slane %v6723_v56, 7  ;;  %v7385_v3 = vrot.slane %v7384_v22, 4  ;;  %v7402_v38 = vshrl.u32 %v7332_v17, 16  ;;  %v7337_v23 = vld [vmem:[#allocation4 + $0x20] sm:$0x1] }
 0x3b0   : > { %v7405_v44 = vshll.u32 %v7332_v17, 16  ;;  %v6745_v11 = vor.u32 %v6743_v14, %v6742_v15  ;;  %v6747_v39 = vrot.slane %v6742_v15, 4  ;;  %v7393_v40 = vrot.slane %v7391_v25, 4  ;;  %v16548_v59 = vld [vmem:[#allocation4 + $0xb4] sm:$0xff]   ;;  %v7340_v1 = vld [vmem:[#allocation4 + $0x2c] sm:$0x1] }
 0x3b1   : > { %v7399_v46 = vrot.slane %v7397_v4, 5  ;;  %v6728_v47 = vor.u32 %v6726_v20, %v6725_v57  ;;  %v6730_v33 = vrot.slane %v6725_v57, 4  ;;  %v16547_v32 = vld [vmem:[#allocation4 + $0xa8] sm:$0xff]   ;;  %v7390_v43 = vsel %vm16964_vm4, %v7385_v3, %v7389_v9  ;;  %v7342_v3 = vld [vmem:[#allocation4 + $0x34] sm:$0xf] }
 0x3b2   : > { %v7404_v55 = vrot.slane %v7402_v38, 4  ;;  %v6746_v30 = vsel %vm18316_vm14, %v6738_v48, %v6745_v11  ;;  %v6931_v49 = vsel %vm18322_vm15, %v6747_v39, %v6930_v19  ;;  %v7394_v60 = vor.u32 %v7393_v40, %v7389_v9  ;;  %15336 = vmatprep.mubr.bf16.mxu1 %v16547_v32  ;;  %v7341_v9 = vld [vmem:[#allocation4 + $0x30] sm:$0xf]  ;;  %v16551_v11 = vld [vmem:[#allocation5 + $0x88] sm:$0xff]  }
 0x3b3   : > { %v7407_v61 = vrot.slane %v7405_v44, 5  ;;  %6929 = vst [vmem:[#allocation4 + $0xd0] sm:$0xf] %v6746_v30  ;;  %6932 = vst [vmem:[#allocation4 + $0xd4] sm:$0x1] %v6931_v49  ;;  %v6729_v26 = vsel %vm18316_vm14, %v6721_v51, %v6728_v47  ;;  %v6924_v36 = vsel %vm18322_vm15, %v6730_v33, %v6923_v21  ;;  %v7411_v12 = vshll.u32 %v7333_v52, 16  ;;  %15337 = vmatmul.mubr.bf16.gmra.mrb[24].mxu1 %v16548_v59 }
 0x3b4   : > { %v7415_v58 = vshrl.u32 %v7333_v52, 16  ;;  %6942 = vst [vmem:[#allocation4 + $0xd0] sm:$0xf] %v16753_v24  ;;  %6943 = vst [vmem:[#allocation4 + $0xd4] sm:$0x1] %v16753_v24  ;;  %v7395_v0 = vrot.slane %v7394_v60, 4 }
 0x3b5   : > { %6922 = vst [vmem:[#allocation4 + $0xc4] sm:$0xf] %v6729_v26  ;;  %6925 = vst [vmem:[#allocation4 + $0xc8] sm:$0x1] %v6924_v36  ;;  %v7408_v5 = vor.u32 %v7407_v61, %v7404_v55  ;;  %v7421_v16 = vshll.u32 %v7334_v34, 16  ;;  %v7426_v6 = vshrl.u32 %v7335_v35, 16 }
 0x3b6   : > { %v7413_v18 = vrot.slane %v7411_v12, 5  ;;  %v7417_v7 = vrot.slane %v7415_v58, 4  ;;  %v7429_v50 = vshll.u32 %v7335_v35, 16  ;;  %v7435_v62 = vshll.u32 %v7336_v54, 16  ;;  %v7339_v24 = vld [vmem:[#allocation4 + $0x28] sm:$0xf] }
 0x3b7   : > { %v7400_v48 = vsel %vm16964_vm4, %v7395_v0, %v7399_v46  ;;  %v7409_v63 = vrot.slane %v7408_v5, 4  ;;  %v7423_v37 = vrot.slane %v7421_v16, 5  ;;  %v7428_v53 = vrot.slane %v7426_v6, 4  ;;  %v7343_v46 = vld [vmem:[#allocation4 + $0x38] sm:$0x1]  ;;  %v16552_v5 = vld [vmem:[#allocation5 + $0x90] sm:$0xff]  }
 0x3b8   : > { %v14182_v2 = vcombine.low %v7390_v43, %v7400_v48  ;;  %v7418_v51 = vor.u32 %v7417_v7, %v7413_v18  ;;  %v7431_v45 = vrot.slane %v7429_v50, 5  ;;  %v7437_v8 = vrot.slane %v7435_v62, 5  ;;  %v7345_v0 = vld [vmem:[#allocation4 + $0x40] sm:$0xf]  ;;  %v7347_v48 = vld [vmem:[#allocation4 + $0x48] sm:$0xf] }
 0x3b9   : > { %v7414_v10 = vsel %vm16964_vm4, %v7409_v63, %v7413_v18  ;;  %v7439_v41 = vshrl.u32 %v7336_v54, 16  ;;  %v7445_v13 = vshll.u32 %v7337_v23, 16  ;;  %v7450_v14 = vshrl.u32 %v7338_v42, 16  ;;  %v7344_v54 = vld [vmem:[#allocation4 + $0x3c] sm:$0xf] }
 0x3ba   : > { %15356 = vmatprep.mubr.bf16.mxu1 %v14182_v2  ;;  %v7419_v27 = vrot.slane %v7418_v51, 4  ;;  %v7432_v17 = vor.u32 %v7431_v45, %v7428_v53  ;;  %v7453_v19 = vshll.u32 %v7338_v42, 16  ;;  %v7459_v56 = vshll.u32 %v7339_v24, 16  ;;  %v7346_v18 = vld [vmem:[#allocation4 + $0x44] sm:$0x1]  ;;  %v16553_v2 = vld [vmem:[#allocation5 + $0x98] sm:$0xff]  }
 0x3bb   : > { %v7441_v20 = vrot.slane %v7439_v41, 4  ;;  %v7447_v22 = vrot.slane %v7445_v13, 5  ;;  %v7452_v15 = vrot.slane %v7450_v14, 4  ;;  %v7463_v21 = vshrl.u32 %v7339_v24, 16  ;;  %v7348_v41 = vld [vmem:[#allocation4 + $0x4c] sm:$0xf] }
 0x3bc   : > { %v7424_v25 = vsel %vm16964_vm4, %v7419_v27, %v7423_v37  ;;  %v7433_v4 = vrot.slane %v7432_v17, 4  ;;  %v7455_v52 = vrot.slane %v7453_v19, 5  ;;  %v7461_v57 = vrot.slane %v7459_v56, 5  ;;  %v7349_v17 = vld [vmem:[#allocation4 + $0x50] sm:$0x1] }
 0x3bd   : > { %v14183_v34 = vcombine.low %v7414_v10, %v7424_v25  ;;  %v7442_v38 = vor.u32 %v7441_v20, %v7437_v8  ;;  %v7465_v44 = vrot.slane %v7463_v21, 4  ;;  %v7469_v35 = vshll.u32 %v7340_v1, 16 }
 0x3be   : > { %v7438_v39 = vsel %vm16964_vm4, %v7433_v4, %v7437_v8  ;;  %v7456_v40 = vor.u32 %v7455_v52, %v7452_v15  ;;  %v7474_v47 = vshrl.u32 %v7341_v9, 16  ;;  %v7477_v33 = vshll.u32 %v7341_v9, 16  ;;  %v7350_v15 = vld [vmem:[#allocation4 + $0x54] sm:$0xf] }
 0x3bf   : > { %15357 = vmatmul.mubr.bf16.vlgmr.msra.gmra.mrb[28].mxu1 %v14183_v34  ;;  %v7443_v32 = vrot.slane %v7442_v38, 4  ;;  %v7466_v43 = vor.u32 %v7465_v44, %v7461_v57  ;;  %v7471_v55 = vrot.slane %v7469_v35, 5  ;;  %v7483_v30 = vshll.u32 %v7342_v3, 16  ;;  %v7351_v38 = vld [vmem:[#allocation4 + $0x58] sm:$0xf] }
 0x3c0   : > { %15389 = vmatpush3.bf16.msra.mxu1 %v18478_v29  ;;  %v7457_v49 = vrot.slane %v7456_v40, 4  ;;  %v7476_v59 = vrot.slane %v7474_v47, 4  ;;  %v7479_v60 = vrot.slane %v7477_v33, 5  ;;  %v7487_v61 = vshrl.u32 %v7342_v3, 16  ;;  %v16554_v44 = vld [vmem:[#allocation5 + $0xa0] sm:$0xff]  }
 0x3c1   : > { %v7448_v26 = vsel %vm16964_vm4, %v7443_v32, %v7447_v22  ;;  %v7467_v36 = vrot.slane %v7466_v43, 4  ;;  %15390 = vmatprep.subr.bf16.mxu1 %v16551_v11  ;;  %v7485_v12 = vrot.slane %v7483_v30, 5  ;;  %v7493_v58 = vshll.u32 %v7343_v46, 16  ;;  %v7352_v40 = vld [vmem:[#allocation4 + $0x5c] sm:$0x1] }
 0x3c2   : > { %v14184_v16 = vcombine.low %v7438_v39, %v7448_v26  ;;  %v7462_v6 = vsel %vm16964_vm4, %v7457_v49, %v7461_v57  ;;  %v7480_v42 = vor.u32 %v7479_v60, %v7476_v59  ;;  %v7489_v29 = vrot.slane %v7487_v61, 4  ;;  %v7354_v30 = vld [vmem:[#allocation4 + $0x64] sm:$0xf] }
 0x3c3   : > { %v7472_v7 = vsel %vm16964_vm4, %v7467_v36, %v7471_v55  ;;  %v7495_v23 = vrot.slane %v7493_v58, 5  ;;  %v7498_v50 = vshrl.u32 %v7344_v54, 16  ;;  %v7501_v62 = vshll.u32 %v7344_v54, 16  ;;  %v7353_v55 = vld [vmem:[#allocation4 + $0x60] sm:$0xf] }
 0x3c4   : > { %15360 = vmatprep.mubr.bf16.mxu1 %v14184_v16  ;;  %v14185_v63 = vcombine.low %v7462_v6, %v7472_v7  ;;  %v7481_v37 = vrot.slane %v7480_v42, 4  ;;  %v7490_v53 = vor.u32 %v7489_v29, %v7485_v12  ;;  %15391 = vmatpush3.bf16.msra.mxu1 %v16551_v11  ;;  %v7507_v24 = vshll.u32 %v7345_v0, 16  ;;  %v7355_v58 = vld [vmem:[#allocation4 + $0x68] sm:$0x1]  ;;  %v7356_v42 = vld [vmem:[#allocation4 + $0x6c] sm:$0xf] }
 0x3c5   : > { %v7500_v51 = vrot.slane %v7498_v50, 4  ;;  %v7503_v45 = vrot.slane %v7501_v62, 5  ;;  %v7511_v8 = vshrl.u32 %v7345_v0, 16  ;;  %v7517_v10 = vshll.u32 %v7346_v18, 16  ;;  %15392 = vmatprep.subr.bf16.mxu1 %v16552_v5  ;;  %v16555_v29 = vld [vmem:[#allocation5 + $0xa8] sm:$0xff]  }
 0x3c6   : > { %v7486_v13 = vsel %vm16964_vm4, %v7481_v37, %v7485_v12  ;;  %v7491_v14 = vrot.slane %v7490_v53, 4  ;;  %v7509_v27 = vrot.slane %v7507_v24, 5  ;;  %v7522_v1 = vshrl.u32 %v7347_v48, 16  ;;  %v7357_v62 = vld [vmem:[#allocation4 + $0x70] sm:$0xf]  ;;  %v16556_v24 = vld [vmem:[#allocation5 + $0xb0] sm:$0xff]  }
 0x3c7   : > { %15361 = vmatmul.mubr.bf16.gmra.mrb[0].mxu1 %v14185_v63  ;;  %v7504_v19 = vor.u32 %v7503_v45, %v7500_v51  ;;  %v7513_v56 = vrot.slane %v7511_v8, 4  ;;  %v7519_v20 = vrot.slane %v7517_v10, 5  ;;  %v7525_v22 = vshll.u32 %v7347_v48, 16 }
 0x3c8   : > { %v7496_v21 = vsel %vm16964_vm4, %v7491_v14, %v7495_v23  ;;  %v7524_v9 = vrot.slane %v7522_v1, 4  ;;  %v7531_v25 = vshll.u32 %v7348_v41, 16  ;;  %v7535_v4 = vshrl.u32 %v7348_v41, 16  ;;  %15393 = vmatpush3.bf16.msra.mxu1 %v16552_v5 }
 0x3c9   : > { %v14186_v52 = vcombine.low %v7486_v13, %v7496_v21  ;;  %v7505_v57 = vrot.slane %v7504_v19, 4  ;;  %v7514_v3 = vor.u32 %v7513_v56, %v7509_v27  ;;  %v7527_v34 = vrot.slane %v7525_v22, 5  ;;  %15394 = vmatprep.subr.bf16.mxu1 %v16553_v2  ;;  %v7360_v22 = vld [vmem:[#allocation4 + $0x7c] sm:$0xf] }
 0x3ca   : > { %v7533_v35 = vrot.slane %v7531_v25, 5  ;;  %v7537_v11 = vrot.slane %v7535_v4, 4  ;;  %v7541_v39 = vshll.u32 %v7349_v17, 16  ;;  %v7546_v46 = vshrl.u32 %v7350_v15, 16  ;;  %v7359_v17 = vld [vmem:[#allocation4 + $0x78] sm:$0xf] }
 0x3cb   : > { %15364 = vmatprep.mubr.bf16.mxu1 %v14186_v52  ;;  %v7510_v47 = vsel %vm16964_vm4, %v7505_v57, %v7509_v27  ;;  %v7515_v33 = vrot.slane %v7514_v3, 4  ;;  %v7528_v32 = vor.u32 %v7527_v34, %v7524_v9  ;;  %v7549_v43 = vshll.u32 %v7350_v15, 16  ;;  %v7358_v27 = vld [vmem:[#allocation4 + $0x74] sm:$0x1] }
 0x3cc   : > { %v7538_v49 = vor.u32 %v7537_v11, %v7533_v35  ;;  %v7543_v59 = vrot.slane %v7541_v39, 5  ;;  %v7548_v60 = vrot.slane %v7546_v46, 4  ;;  %v7555_v61 = vshll.u32 %v7351_v38, 16  ;;  %15395 = vmatpush3.bf16.msra.mxu1 %v16553_v2  ;;  %v16557_v34 = vld [vmem:[#allocation5 + $0xb8] sm:$0xff]   ;;  %v7361_v39 = vld [vmem:[#allocation4 + $0x80] sm:$0x1] }
 0x3cd   : > { %v7520_v54 = vsel %vm16964_vm4, %v7515_v33, %v7519_v20  ;;  %v7529_v26 = vrot.slane %v7528_v32, 4  ;;  %v7551_v36 = vrot.slane %v7549_v43, 5  ;;  %v7559_v12 = vshrl.u32 %v7351_v38, 16  ;;  %15396 = vmatprep.subr.bf16.mxu1 %v16554_v44  ;;  %v7362_v32 = vld [vmem:[#allocation4 + $0x84] sm:$0xf] }
 0x3ce   : > { %v14187_v0 = vcombine.low %v7510_v47, %v7520_v54  ;;  %v7539_v5 = vrot.slane %v7538_v49, 4  ;;  %v7557_v16 = vrot.slane %v7555_v61, 5  ;;  %v7565_v6 = vshll.u32 %v7352_v40, 16 }
 0x3cf   : > { %v7534_v18 = vsel %vm16964_vm4, %v7529_v26, %v7533_v35  ;;  %v7552_v7 = vor.u32 %v7551_v36, %v7548_v60  ;;  %v7561_v23 = vrot.slane %v7559_v12, 4  ;;  %v7570_v50 = vshrl.u32 %v7353_v55, 16 }
 0x3d0   : > { %15365 = vmatmul.mubr.bf16.gmra.mrb[4].mxu1 %v14187_v0  ;;  %v7544_v48 = vsel %vm16964_vm4, %v7539_v5, %v7543_v59  ;;  %v7567_v63 = vrot.slane %v7565_v6, 5  ;;  %v7573_v37 = vshll.u32 %v7353_v55, 16  ;;  %v7579_v53 = vshll.u32 %v7354_v30, 16  ;;  %v7363_v59 = vld [vmem:[#allocation4 + $0x88] sm:$0xf] }
 0x3d1   : > { %v14188_v2 = vcombine.low %v7534_v18, %v7544_v48  ;;  %v7553_v51 = vrot.slane %v7552_v7, 4  ;;  %v7562_v45 = vor.u32 %v7561_v23, %v7557_v16  ;;  %v7572_v8 = vrot.slane %v7570_v50, 4  ;;  %15397 = vmatpush3.bf16.msra.mxu1 %v16554_v44  ;;  %v7364_v5 = vld [vmem:[#allocation4 + $0x8c] sm:$0x1]  ;;  %v7365_v7 = vld [vmem:[#allocation4 + $0x90] sm:$0xf] }
 0x3d2   : > { %v7575_v10 = vrot.slane %v7573_v37, 5  ;;  %v7581_v41 = vrot.slane %v7579_v53, 5  ;;  %v7583_v13 = vshrl.u32 %v7354_v30, 16  ;;  %v7589_v14 = vshll.u32 %v7355_v58, 16  ;;  %15398 = vmatprep.subr.bf16.mxu1 %v16555_v29 }
 0x3d3   : > { %15368 = vmatprep.mubr.bf16.mxu1 %v14188_v2  ;;  %v7558_v1 = vsel %vm16964_vm4, %v7553_v51, %v7557_v16  ;;  %v7563_v19 = vrot.slane %v7562_v45, 4  ;;  %v7594_v56 = vshrl.u32 %v7356_v42, 16  ;;  %v7597_v20 = vshll.u32 %v7356_v42, 16  ;;  %v18571_v16 = vld [vmem:[#allocation5 + $0xc0] sm:$0xff]  }
 0x3d4   : > { %v7576_v15 = vor.u32 %v7575_v10, %v7572_v8  ;;  %v7585_v21 = vrot.slane %v7583_v13, 4  ;;  %v7591_v9 = vrot.slane %v7589_v14, 5  ;;  %v7603_v25 = vshll.u32 %v7357_v62, 16 }
 0x3d5   : > { %v7568_v4 = vsel %vm16964_vm4, %v7563_v19, %v7567_v63  ;;  %v7596_v52 = vrot.slane %v7594_v56, 4  ;;  %v7599_v57 = vrot.slane %v7597_v20, 5  ;;  %v7607_v3 = vshrl.u32 %v7357_v62, 16  ;;  %15399 = vmatpush3.bf16.msra.mxu1 %v16555_v29  ;;  %v7366_v63 = vld [vmem:[#allocation4 + $0x94] sm:$0xf] }
 0x3d6   : > { %v14189_v38 = vcombine.low %v7558_v1, %v7568_v4  ;;  %v7577_v44 = vrot.slane %v7576_v15, 4  ;;  %v7586_v35 = vor.u32 %v7585_v21, %v7581_v41  ;;  %v7605_v11 = vrot.slane %v7603_v25, 5  ;;  %15400 = vmatprep.subr.bf16.mxu1 %v16556_v24  ;;  %v7368_v1 = vld [vmem:[#allocation4 + $0x9c] sm:$0xf]  ;;  %v7369_v15 = vld [vmem:[#allocation4 + $0xa0] sm:$0xf] }
 0x3d7   : > { %v7600_v40 = vor.u32 %v7599_v57, %v7596_v52  ;;  %v7609_v46 = vrot.slane %v7607_v3, 4  ;;  %v7613_v47 = vshll.u32 %v7358_v27, 16  ;;  %v7618_v33 = vshrl.u32 %v7359_v17, 16 }
 0x3d8   : > { %15369 = vmatmul.mubr.bf16.gmra.mrb[8].mxu1 %v14189_v38  ;;  %v7582_v43 = vsel %vm16964_vm4, %v7577_v44, %v7581_v41  ;;  %v7587_v55 = vrot.slane %v7586_v35, 4  ;;  %v7621_v30 = vshll.u32 %v7359_v17, 16  ;;  %v7627_v49 = vshll.u32 %v7360_v22, 16  ;;  %v7367_v17 = vld [vmem:[#allocation4 + $0x98] sm:$0x1] }
 0x3d9   : > { %v7601_v60 = vrot.slane %v7600_v40, 4  ;;  %v7610_v61 = vor.u32 %v7609_v46, %v7605_v11  ;;  %v7615_v54 = vrot.slane %v7613_v47, 5  ;;  %v7620_v26 = vrot.slane %v7618_v33, 4  ;;  %15401 = vmatpush3.bf16.msra.mxu1 %v16556_v24 }
 0x3da   : > { %v7592_v36 = vsel %vm16964_vm4, %v7587_v55, %v7591_v9  ;;  %v7623_v12 = vrot.slane %v7621_v30, 5  ;;  %v7629_v58 = vrot.slane %v7627_v49, 5  ;;  %v7631_v0 = vshrl.u32 %v7360_v22, 16  ;;  %15402 = vmatprep.subr.bf16.mxu1 %v16557_v34  ;;  %v7371_v49 = vld [vmem:[#allocation4 + $0xa8] sm:$0xf] }
 0x3db   : > { %v14190_v6 = vcombine.low %v7582_v43, %v7592_v36  ;;  %v7606_v42 = vsel %vm16964_vm4, %v7601_v60, %v7605_v11  ;;  %v7611_v29 = vrot.slane %v7610_v61, 4  ;;  %v7637_v18 = vshll.u32 %v7361_v39, 16  ;;  %v7370_v43 = vld [vmem:[#allocation4 + $0xa4] sm:$0x1] }
 0x3dc   : > { %v7624_v23 = vor.u32 %v7623_v12, %v7620_v26  ;;  %v7633_v50 = vrot.slane %v7631_v0, 4  ;;  %v7642_v62 = vshrl.u32 %v7362_v32, 16  ;;  %v7645_v48 = vshll.u32 %v7362_v32, 16 }
 0x3dd   : > { %15372 = vmatprep.mubr.bf16.mxu1 %v14190_v6  ;;  %v7616_v37 = vsel %vm16964_vm4, %v7611_v29, %v7615_v54  ;;  %v7639_v53 = vrot.slane %v7637_v18, 5  ;;  %v7651_v24 = vshll.u32 %v7363_v59, 16  ;;  %v7655_v2 = vshrl.u32 %v7363_v59, 16  ;;  %15403 = vmatpush3.bf16.msra.mxu1 %v16557_v34  ;;  %v7372_v54 = vld [vmem:[#allocation4 + $0xac] sm:$0xf] }
 0x3de   : > { %v14191_v51 = vcombine.low %v7606_v42, %v7616_v37  ;;  %v7625_v45 = vrot.slane %v7624_v23, 4  ;;  %v7634_v8 = vor.u32 %v7633_v50, %v7629_v58  ;;  %v7644_v10 = vrot.slane %v7642_v62, 4  ;;  %15436 = vmatprep.subr.bf16.mxu1 %v18571_v16  ;;  %v7374_v29 = vld [vmem:[#allocation4 + $0xb4] sm:$0xf]  ;;  %v7373_v23 = vld [vmem:[#allocation4 + $0xb0] sm:$0x1] }
 0x3df   : > { %v7647_v41 = vrot.slane %v7645_v48, 5  ;;  %v7653_v13 = vrot.slane %v7651_v24, 5  ;;  %v7657_v14 = vrot.slane %v7655_v2, 4  ;;  %v7661_v27 = vshll.u32 %v7364_v5, 16 }
 0x3e0   : > { %15373 = vmatmul.mubr.bf16.gmra.mrb[12].mxu1 %v14191_v51  ;;  %v7630_v19 = vsel %vm16964_vm4, %v7625_v45, %v7629_v58  ;;  %v7635_v56 = vrot.slane %v7634_v8, 4  ;;  %v7666_v20 = vshrl.u32 %v7365_v7, 16  ;;  %v7669_v22 = vshll.u32 %v7365_v7, 16  ;;  %v7375_v8 = vld [vmem:[#allocation4 + $0xb8] sm:$0xf] }
 0x3e1   : > { %v7648_v21 = vor.u32 %v7647_v41, %v7644_v10  ;;  %v7658_v9 = vor.u32 %v7657_v14, %v7653_v13  ;;  %v7663_v25 = vrot.slane %v7661_v27, 5  ;;  %v7675_v4 = vshll.u32 %v7366_v63, 16 }
 0x3e2   : > { %v7640_v52 = vsel %vm16964_vm4, %v7635_v56, %v7639_v53  ;;  %v7668_v57 = vrot.slane %v7666_v20, 4  ;;  %v7671_v3 = vrot.slane %v7669_v22, 5  ;;  %v7679_v34 = vshrl.u32 %v7366_v63, 16  ;;  %v8147_v56 = vld [vmem:[#allocation4] sm:$0xe] }
 0x3e3   : > { %v14192_v38 = vcombine.low %v7630_v19, %v7640_v52  ;;  %v7649_v44 = vrot.slane %v7648_v21, 4  ;;  %v7659_v35 = vrot.slane %v7658_v9, 4  ;;  %v7677_v11 = vrot.slane %v7675_v4, 5 }
 0x3e4   : > { %v7672_v39 = vor.u32 %v7671_v3, %v7668_v57  ;;  %v7681_v40 = vrot.slane %v7679_v34, 4  ;;  %v7685_v46 = vshll.u32 %v7367_v17, 16  ;;  %v7690_v47 = vshrl.u32 %v7368_v1, 16  ;;  %v8149_v34 = vld [vmem:[#allocation4 + $0x8] sm:$0x1] }
 0x3e5   : > { %15376 = vmatprep.mubr.bf16.mxu1 %v14192_v38  ;;  %v7654_v33 = vsel %vm16964_vm4, %v7649_v44, %v7653_v13  ;;  %v7664_v32 = vsel %vm16964_vm4, %v7659_v35, %v7663_v25  ;;  %v7693_v55 = vshll.u32 %v7368_v1, 16  ;;  %v7699_v30 = vshll.u32 %v7369_v15, 16  ;;  %v8148_v25 = vld [vmem:[#allocation4 + $0x4] sm:$0xf] }
 0x3e6   : > { %v14193_v59 = vcombine.low %v7654_v33, %v7664_v32  ;;  %v7673_v60 = vrot.slane %v7672_v39, 4  ;;  %v7682_v61 = vor.u32 %v7681_v40, %v7677_v11  ;;  %v7692_v26 = vrot.slane %v7690_v47, 4 }
 0x3e7   : > { %v7695_v36 = vrot.slane %v7693_v55, 5  ;;  %v7701_v12 = vrot.slane %v7699_v30, 5  ;;  %v7703_v58 = vshrl.u32 %v7369_v15, 16  ;;  %v7687_v5 = vrot.slane %v7685_v46, 5  ;;  %v7376_v15 = vld [vmem:[#allocation4 + $0xbc] sm:$0x1] }
 0x3e8   : > { %15377 = vmatmul.mubr.bf16.gmra.mrb[16].mxu1 %v14193_v59  ;;  %v7683_v0 = vrot.slane %v7682_v61, 4  ;;  %v7709_v6 = vshll.u32 %v7370_v43, 16  ;;  %v7714_v42 = vshrl.u32 %v7371_v49, 16  ;;  %v7717_v50 = vshll.u32 %v7371_v49, 16  ;;  %v8151_v30 = vld [vmem:[#allocation4 + $0x10] sm:$0xf] }
 0x3e9   : > { %v7696_v18 = vor.u32 %v7695_v36, %v7692_v26  ;;  %v7705_v7 = vrot.slane %v7703_v58, 4  ;;  %v7723_v62 = vshll.u32 %v7372_v54, 16  ;;  %v7678_v48 = vsel %vm16964_vm4, %v7673_v60, %v7677_v11  ;;  %v8154_v61 = vld [vmem:[#allocation4 + $0x1c] sm:$0xf] }
 0x3ea   : > { %v7688_v63 = vsel %vm16964_vm4, %v7683_v0, %v7687_v5  ;;  %v7716_v37 = vrot.slane %v7714_v42, 4  ;;  %v7727_v53 = vshrl.u32 %v7372_v54, 16  ;;  %v7719_v45 = vrot.slane %v7717_v50, 5  ;;  %v8155_v50 = vld [vmem:[#allocation4 + $0x20] sm:$0x1] }
 0x3eb   : > { %v14194_v24 = vcombine.low %v7678_v48, %v7688_v63  ;;  %v7697_v2 = vrot.slane %v7696_v18, 4  ;;  %v7706_v51 = vor.u32 %v7705_v7, %v7701_v12  ;;  %v7725_v10 = vrot.slane %v7723_v62, 5  ;;  %v8152_v7 = vld [vmem:[#allocation4 + $0x14] sm:$0x1]  ;;  %v8150_v62 = vld [vmem:[#allocation4 + $0xc] sm:$0xe] }
 0x3ec   : > { %v7729_v41 = vrot.slane %v7727_v53, 4  ;;  %v7733_v13 = vshll.u32 %v7373_v23, 16  ;;  %v7738_v14 = vshrl.u32 %v7374_v29, 16  ;;  %v7711_v17 = vrot.slane %v7709_v6, 5  ;;  %v8157_v63 = vld [vmem:[#allocation4 + $0x28] sm:$0xf] }
 0x3ed   : > { %15380 = vmatprep.mubr.bf16.mxu1 %v14194_v24  ;;  %v7707_v27 = vrot.slane %v7706_v51, 4  ;;  %v7720_v1 = vor.u32 %v7719_v45, %v7716_v37  ;;  %v7741_v19 = vshll.u32 %v7374_v29, 16  ;;  %v7702_v20 = vsel %vm16964_vm4, %v7697_v2, %v7701_v12  ;;  %v8153_v53 = vld [vmem:[#allocation4 + $0x18] sm:$0xe]  ;;  %v8160_v24 = vld [vmem:[#allocation4 + $0x34] sm:$0xf] }
 0x3ee   : > { %v7730_v22 = vor.u32 %v7729_v41, %v7725_v10  ;;  %v7740_v21 = vrot.slane %v7738_v14, 4  ;;  %v7747_v9 = vshll.u32 %v7375_v8, 16  ;;  %v7751_v3 = vshrl.u32 %v7375_v8, 16 }
 0x3ef   : > { %v7712_v4 = vsel %vm16964_vm4, %v7707_v27, %v7711_v17  ;;  %v7721_v52 = vrot.slane %v7720_v1, 4  ;;  %v7743_v57 = vrot.slane %v7741_v19, 5  ;;  %v7735_v35 = vrot.slane %v7733_v13, 5  ;;  %v8158_v1 = vld [vmem:[#allocation4 + $0x2c] sm:$0x1]  ;;  %v16559_v19 = vld [vmem:[#allocation5 + $0xc8] sm:$0xff]  }
 0x3f0   : > { %v14195_v38 = vcombine.low %v7702_v20, %v7712_v4  ;;  %v7731_v44 = vrot.slane %v7730_v22, 4  ;;  %v7749_v11 = vrot.slane %v7747_v9, 5  ;;  %v7753_v40 = vrot.slane %v7751_v3, 4  ;;  %v8161_v22 = vld [vmem:[#allocation4 + $0x38] sm:$0x1]  ;;  %v16560_v3 = vld [vmem:[#allocation5 + $0xd0] sm:$0xff]  }
 0x3f1   : > { %v7744_v39 = vor.u32 %v7743_v57, %v7740_v21  ;;  %v7757_v46 = vshll.u32 %v7376_v15, 16  ;;  %v14206_v47 = vrot.slane %v8147_v56, 9  ;;  %v7726_v33 = vsel %vm16964_vm4, %v7721_v52, %v7725_v10  ;;  %v8156_v15 = vld [vmem:[#allocation4 + $0x24] sm:$0xe]  ;;  %v8163_v9 = vld [vmem:[#allocation4 + $0x40] sm:$0xf] }
 0x3f2   : > { %15381 = vmatmul.mubr.bf16.gmra.mrb[20].mxu1 %v14195_v38  ;;  %v7736_v32 = vsel %vm16964_vm4, %v7731_v44, %v7735_v35  ;;  %v8245_v43 = vrot.slane %v8148_v25, 5  ;;  %v8248_v55 = vrot.slane %v8149_v34, 5  ;;  %v7754_v60 = vor.u32 %v7753_v40, %v7749_v11  ;;  %v8159_v4 = vld [vmem:[#allocation4 + $0x30] sm:$0xe]  ;;  %v8166_v52 = vld [vmem:[#allocation4 + $0x4c] sm:$0xf] }
 0x3f3   : > { %v14196_v49 = vcombine.low %v7726_v33, %v7736_v32  ;;  %v7745_v59 = vrot.slane %v7744_v39, 4  ;;  %v7759_v12 = vrot.slane %v7757_v46, 5  ;;  %v8252_v58 = vrot.slane %v8151_v30, 5  ;;  %v16561_v33 = vld [vmem:[#allocation5 + $0xd8] sm:$0xff]   ;;  %v8162_v30 = vld [vmem:[#allocation4 + $0x3c] sm:$0xe] }
 0x3f4   : > { %v8246_v54 = vsel %vm17220_vm7, %v14206_v47, %v8245_v43  ;;  %v8247_v26 = vrot.slane %v8245_v43, 4  ;;  %v7755_v36 = vrot.slane %v7754_v60, 4  ;;  %v8259_v5 = vrot.slane %v8154_v61, 5  ;;  %v8164_v47 = vld [vmem:[#allocation4 + $0x44] sm:$0x1] }
 0x3f5   : > { %15384 = vmatprep.mubr.bf16.mxu1 %v14196_v49  ;;  %v7750_v6 = vsel %vm16964_vm4, %v7745_v59, %v7749_v11  ;;  %v8254_v23 = vrot.slane %v8252_v58, 4  ;;  %v8255_v37 = vrot.slane %v8152_v7, 5  ;;  %v8262_v2 = vrot.slane %v8155_v50, 5  ;;  %v8169_v59 = vld [vmem:[#allocation4 + $0x58] sm:$0xf]  ;;  %v16563_v50 = vld [vmem:[#allocation5 + $0xe8] sm:$0xff]  }
 0x3f6   : > { %v8249_v0 = vsel %vm17220_vm7, %v8247_v26, %v8248_v55  ;;  %v7760_v42 = vsel %vm16964_vm4, %v7755_v36, %v7759_v12  ;;  %v8261_v48 = vrot.slane %v8259_v5, 4  ;;  %v14207_v51 = vrot.slane %v8150_v62, 9  ;;  %v8167_v55 = vld [vmem:[#allocation4 + $0x50] sm:$0x1]  ;;  %v8165_v61 = vld [vmem:[#allocation4 + $0x48] sm:$0xe] }
 0x3f7   : > { %v14222_v29 = vcombine.low %v8246_v54, %v8249_v0  ;;  %v14197_v18 = vcombine.low %v7750_v6, %v7760_v42  ;;  %v8256_v45 = vsel %vm17220_vm7, %v8254_v23, %v8255_v37  ;;  %v8266_v8 = vrot.slane %v8157_v63, 5  ;;  %v8172_v54 = vld [vmem:[#allocation4 + $0x64] sm:$0xf]  ;;  %v16562_v36 = vld [vmem:[#allocation5 + $0xe0] sm:$0xff]   ;;  %v8173_v63 = vld [vmem:[#allocation4 + $0x68] sm:$0x1] }
 0x3f8   : > { %v14208_v10 = vrot.slane %v8153_v53, 9  ;;  %v8263_v41 = vsel %vm17220_vm7, %v8261_v48, %v8262_v2  ;;  %v8273_v13 = vrot.slane %v8160_v24, 5  ;;  %v8253_v14 = vsel %vm17220_vm7, %v14207_v51, %v8252_v58  ;;  %v8170_v23 = vld [vmem:[#allocation4 + $0x5c] sm:$0x1]  ;;  %v8168_v37 = vld [vmem:[#allocation4 + $0x54] sm:$0xe] }
 0x3f9   : > { %v14223_v27 = vcombine.low %v8253_v14, %v8256_v45  ;;  %v8268_v20 = vrot.slane %v8266_v8, 4  ;;  %v8269_v25 = vrot.slane %v8158_v1, 5  ;;  %v8276_v57 = vrot.slane %v8161_v22, 5  ;;  %v8175_v24 = vld [vmem:[#allocation4 + $0x70] sm:$0xf] }
 0x3fa   : > { %15385 = vmatmul.mubr.bf16.gmra.mrb[24].mxu1 %v14197_v18  ;;  %v8260_v17 = vsel %vm17220_vm7, %v14208_v10, %v8259_v5  ;;  %v8275_v21 = vrot.slane %v8273_v13, 4  ;;  %v14209_v34 = vrot.slane %v8156_v15, 9  ;;  %v8280_v44 = vrot.slane %v8163_v9, 5  ;;  %v8171_v51 = vld [vmem:[#allocation4 + $0x60] sm:$0xe]  ;;  %v16564_v10 = vld [vmem:[#allocation5 + $0xf0] sm:$0xff]  }
 0x3fb   : > { %15404 = vmatprep.mubr.bf16.mxu1 %v14222_v29  ;;  %v14224_v56 = vcombine.low %v8260_v17, %v8263_v41  ;;  %v8270_v38 = vsel %vm17220_vm7, %v8268_v20, %v8269_v25  ;;  %v14210_v35 = vrot.slane %v8159_v4, 9  ;;  %v8287_v39 = vrot.slane %v8166_v52, 5  ;;  %v8178_v45 = vld [vmem:[#allocation4 + $0x7c] sm:$0xf]  ;;  %v8176_v22 = vld [vmem:[#allocation4 + $0x74] sm:$0x1] }
 0x3fc   : > { %v8277_v11 = vsel %vm17220_vm7, %v8275_v21, %v8276_v57  ;;  %v8267_v40 = vsel %vm17220_vm7, %v14209_v34, %v8266_v8  ;;  %v8282_v43 = vrot.slane %v8280_v44, 4  ;;  %v8283_v60 = vrot.slane %v8164_v47, 5  ;;  %v16565_v15 = vld [vmem:[#allocation5 + $0xf8] sm:$0xff]   ;;  %v8179_v25 = vld [vmem:[#allocation4 + $0x80] sm:$0x1] }
 0x3fd   : > { %v8274_v46 = vsel %vm17220_vm7, %v14210_v35, %v8273_v13  ;;  %v8289_v49 = vrot.slane %v8287_v39, 4  ;;  %v8290_v26 = vrot.slane %v8167_v55, 5  ;;  %v14211_v12 = vrot.slane %v8162_v30, 9  ;;  %v8174_v4 = vld [vmem:[#allocation4 + $0x6c] sm:$0xe]  ;;  %v18639_v35 = vld [vmem:[#allocation5 + $0x100] sm:$0xff]  }
 0x3fe   : > { %v14226_v32 = vcombine.low %v8274_v46, %v8277_v11  ;;  %v8284_v58 = vsel %vm17220_vm7, %v8282_v43, %v8283_v60  ;;  %v8294_v0 = vrot.slane %v8169_v59, 5  ;;  %v14212_v5 = vrot.slane %v8165_v61, 9  ;;  %v8181_v57 = vld [vmem:[#allocation4 + $0x88] sm:$0xf]  ;;  %v8177_v34 = vld [vmem:[#allocation4 + $0x78] sm:$0xe] }
 0x3ff   : > { %v8291_v6 = vsel %vm17220_vm7, %v8289_v49, %v8290_v26  ;;  %v8301_v42 = vrot.slane %v8172_v54, 5  ;;  %v8281_v29 = vsel %vm17220_vm7, %v14211_v12, %v8280_v44  ;;  %v8297_v2 = vrot.slane %v8170_v23, 5  ;;  %v8182_v55 = vld [vmem:[#allocation4 + $0x8c] sm:$0x1]  ;;  %v8185_v59 = vld [vmem:[#allocation4 + $0x98] sm:$0x1] }
 0x400   : > { %v14227_v18 = vcombine.low %v8281_v29, %v8284_v58  ;;  %v8288_v7 = vsel %vm17220_vm7, %v14212_v5, %v8287_v39  ;;  %v8296_v48 = vrot.slane %v8294_v0, 4  ;;  %v8304_v8 = vrot.slane %v8173_v63, 5  ;;  %v8180_v60 = vld [vmem:[#allocation4 + $0x84] sm:$0xe]  ;;  %v8187_v54 = vld [vmem:[#allocation4 + $0xa0] sm:$0xf] }
 0x401   : > { %v14228_v62 = vcombine.low %v8288_v7, %v8291_v6  ;;  %v8303_v53 = vrot.slane %v8301_v42, 4  ;;  %v14213_v41 = vrot.slane %v8168_v37, 9  ;;  %v8308_v14 = vrot.slane %v8175_v24, 5  ;;  %v8190_v12 = vld [vmem:[#allocation4 + $0xac] sm:$0xf] }
 0x402   : > { %15405 = vmatmul.mubr.bf16.vlgmr.msra.gmra.mrb[28].mxu1 %v14223_v27  ;;  %v8298_v13 = vsel %vm17220_vm7, %v8296_v48, %v8297_v2  ;;  %v14214_v27 = vrot.slane %v8171_v51, 9  ;;  %v8315_v1 = vrot.slane %v8178_v45, 5  ;;  %v8318_v44 = vrot.slane %v8179_v25, 5  ;;  %v8188_v48 = vld [vmem:[#allocation4 + $0xa4] sm:$0x1] }
 0x403   : > { %15408 = vmatprep.mubr.bf16.mxu1 %v14224_v56  ;;  %15437 = vmatpush3.bf16.msra.mxu1 %v18571_v16  ;;  %v14225_v16 = vcombine.low %v8267_v40, %v8270_v38  ;;  %v8305_v17 = vsel %vm17220_vm7, %v8303_v53, %v8304_v8  ;;  %v8310_v9 = vrot.slane %v8308_v14, 4  ;;  %v8184_v38 = vld [vmem:[#allocation4 + $0x94] sm:$0xf]  ;;  %v14215_v11 = vrot.slane %v8174_v4, 9  ;;  %v8191_v63 = vld [vmem:[#allocation4 + $0xb0] sm:$0x1] }
 0x404   : > { %15438 = vmatprep.subr.bf16.mxu1 %v16559_v19  ;;  %v8302_v20 = vsel %vm17220_vm7, %v14214_v27, %v8301_v42  ;;  %v8317_v52 = vrot.slane %v8315_v1, 4  ;;  %v8322_v40 = vrot.slane %v8181_v57, 5  ;;  %v8329_v47 = vrot.slane %v8184_v38, 5  ;;  %v8193_v2 = vld [vmem:[#allocation4 + $0xb8] sm:$0xf]  ;;  %v16566_v57 = vld [vmem:[#allocation4 + $0xc] sm:$0xff]  }
 0x405   : > { %v14230_v21 = vcombine.low %v8302_v20, %v8305_v17  ;;  %v8325_v26 = vrot.slane %v8182_v55, 5  ;;  %v8332_v58 = vrot.slane %v8185_v59, 5  ;;  %v8336_v6 = vrot.slane %v8187_v54, 5  ;;  %v8189_v45 = vld [vmem:[#allocation4 + $0xa8] sm:$0xe]  ;;  %v16575_v55 = vld [vmem:[#allocation4 + $0x54] sm:$0xff]  }
 0x406   : > { %v8319_v46 = vsel %vm17220_vm7, %v8317_v52, %v8318_v44  ;;  %v8324_v49 = vrot.slane %v8322_v40, 4  ;;  %v8331_v61 = vrot.slane %v8329_v47, 4  ;;  %v8339_v51 = vrot.slane %v8188_v48, 5  ;;  %v16569_v38 = vld [vmem:[#allocation4 + $0x24] sm:$0xff]   ;;  %v16589_v59 = vld [vmem:[#allocation5 + $0x138] sm:$0xff]   ;;  %v16579_v54 = vld [vmem:[#allocation4 + $0x78] sm:$0xff]  }
 0x407   : > { %15439 = vmatpush3.bf16.msra.mxu1 %v16559_v19  ;;  %v8295_v19 = vsel %vm17220_vm7, %v14213_v41, %v8294_v0  ;;  %v14217_v0 = vrot.slane %v8180_v60, 9  ;;  %v8338_v53 = vrot.slane %v8336_v6, 4  ;;  %v8346_v8 = vrot.slane %v8191_v63, 5  ;;  %v16574_v44 = vld [vmem:[#allocation5 + $0x110] sm:$0xff]  }
 0x408   : > { %15440 = vmatprep.subr.bf16.mxu1 %v16560_v3  ;;  %v14229_v56 = vcombine.low %v8295_v19, %v8298_v13  ;;  %v8326_v5 = vsel %vm17220_vm7, %v8324_v49, %v8325_v26  ;;  %v8333_v29 = vsel %vm17220_vm7, %v8331_v61, %v8332_v58  ;;  %v8350_v13 = vrot.slane %v8193_v2, 5  ;;  %v16576_v49 = vld [vmem:[#allocation4 + $0x60] sm:$0xff]   ;;  %v16578_v60 = vld [vmem:[#allocation4 + $0x6c] sm:$0xff]   ;;  %v18679_v61 = vld [vmem:[#allocation5 + $0x140] sm:$0xff]  }
 0x409   : > { %v8323_v7 = vsel %vm17220_vm7, %v14217_v0, %v8322_v40  ;;  %v8340_v41 = vsel %vm17220_vm7, %v8338_v53, %v8339_v51  ;;  %v9192_v26 = vld [vmem:[#allocation4 + $0xc] sm:$0xf] }
 0x40a   : > { %15409 = vmatmul.mubr.bf16.gmra.mrb[0].mxu1 %v14225_v16  ;;  %v14216_v16 = vrot.slane %v8177_v34, 9  ;;  %v14233_v23 = vcombine.low %v8323_v7, %v8326_v5  ;;  %v16571_v34 = vld [vmem:[#allocation5 + $0x108] sm:$0xff]   ;;  %v9241_v58 = vshrl.u32 %v9192_v26, 16  ;;  %v9244_v0 = vshll.u32 %v9192_v26, 16 }
 0x40b   : > { %15412 = vmatprep.mubr.bf16.mxu1 %v14226_v32  ;;  %15441 = vmatpush3.bf16.msra.mxu1 %v16560_v3  ;;  %v8311_v3 = vrot.slane %v8176_v22, 5  ;;  %v8352_v22 = vrot.slane %v8350_v13, 4 }
 0x40c   : > { %15442 = vmatprep.subr.bf16.mxu1 %v16561_v33  ;;  %v8316_v43 = vsel %vm17220_vm7, %v14216_v16, %v8315_v1  ;;  %v9243_v7 = vrot.slane %v9241_v58, 4 }
 0x40d   : > { %v8312_v39 = vsel %vm17220_vm7, %v8310_v9, %v8311_v3  ;;  %v14232_v30 = vcombine.low %v8316_v43, %v8319_v46  ;;  %v16567_v3 = vld [vmem:[#allocation4 + $0x18] sm:$0xff]   ;;  %v16570_v46 = vld [vmem:[#allocation4 + $0x30] sm:$0xff]   ;;  %v16583_v43 = vld [vmem:[#allocation5 + $0x128] sm:$0xff]  }
 0x40f   : > { %15443 = vmatpush3.bf16.msra.mxu1 %v16561_v33  ;;  %v8309_v33 = vsel %vm17220_vm7, %v14215_v11, %v8308_v14  ;;  %v14220_v14 = vrot.slane %v8189_v45, 9  ;;  %v9198_v45 = vld [vmem:[#allocation4 + $0x24] sm:$0xf] }
 0x410   : > { %15444 = vmatprep.subr.bf16.mxu1 %v16562_v36  ;;  %v14231_v32 = vcombine.low %v8309_v33, %v8312_v39  ;;  %v16572_v33 = vld [vmem:[#allocation4 + $0x3c] sm:$0xff]  }
 0x412   : > { %15413 = vmatmul.mubr.bf16.gmra.mrb[4].mxu1 %v14227_v18  ;;  %v8343_v18 = vrot.slane %v8190_v12, 5  ;;  %v9193_v12 = vld [vmem:[#allocation4 + $0x10] sm:$0xf] }
 0x413   : > { %15416 = vmatprep.mubr.bf16.mxu1 %v14228_v62  ;;  %15445 = vmatpush3.bf16.msra.mxu1 %v16562_v36  ;;  %v8183_v36 = vld [vmem:[#allocation4 + $0x90] sm:$0xe]  ;;  %v8186_v62 = vld [vmem:[#allocation4 + $0x9c] sm:$0xe]  ;;  %v9250_v5 = vshll.u32 %v9193_v12, 16 }
 0x414   : > { %15446 = vmatprep.subr.bf16.mxu1 %v16563_v50  ;;  %v14218_v42 = vrot.slane %v8183_v36, 9  ;;  %v8345_v24 = vrot.slane %v8343_v18, 4  ;;  %v8344_v19 = vsel %vm17220_vm7, %v14220_v14, %v8343_v18  ;;  %v16581_v36 = vld [vmem:[#allocation4 + $0x84] sm:$0xff]   ;;  %v16582_v18 = vld [vmem:[#allocation4 + $0x90] sm:$0xff]  }
 0x415   : > { %v18682_v48 = vrot.slane %v9250_v5, 5 }
 0x416   : > { %v8347_v27 = vsel %vm17220_vm7, %v8345_v24, %v8346_v8  ;;  %v16584_v24 = vld [vmem:[#allocation4 + $0x9c] sm:$0xff]  }
 0x417   : > { %15447 = vmatpush3.bf16.msra.mxu1 %v16563_v50  ;;  %v8330_v50 = vsel %vm17220_vm7, %v14218_v42, %v8329_v47  ;;  %v14236_v20 = vcombine.low %v8344_v19, %v8347_v27  ;;  %v16577_v47 = vld [vmem:[#allocation5 + $0x118] sm:$0xff]   ;;  %v9195_v42 = vld [vmem:[#allocation4 + $0x18] sm:$0xf] }
 0x418   : > { %15448 = vmatprep.subr.bf16.mxu1 %v16564_v10  ;;  %v14234_v37 = vcombine.low %v8330_v50, %v8333_v29  ;;  %v9196_v29 = vld [vmem:[#allocation4 + $0x1c] sm:$0xf]  ;;  %v9199_v50 = vld [vmem:[#allocation4 + $0x28] sm:$0xf]  ;;  %v9268_v53 = vshll.u32 %v9195_v42, 16 }
 0x419   : > { %v9274_v2 = vshll.u32 %v9196_v29, 16  ;;  %v9278_v51 = vshrl.u32 %v9196_v29, 16  ;;  %v9298_v8 = vshll.u32 %v9199_v50, 16  ;;  %v9202_v19 = vld [vmem:[#allocation4 + $0x34] sm:$0xf] }
 0x41a   : > { %15417 = vmatmul.mubr.bf16.gmra.mrb[8].mxu1 %v14229_v56  ;;  %v8194_v56 = vld [vmem:[#allocation4 + $0xbc] sm:$0x1] }
 0x41b   : > { %15420 = vmatprep.mubr.bf16.mxu1 %v14230_v21  ;;  %15449 = vmatpush3.bf16.msra.mxu1 %v16564_v10  ;;  %v14219_v10 = vrot.slane %v8186_v62, 9  ;;  %v8353_v21 = vrot.slane %v8194_v56, 5  ;;  %v9194_v62 = vld [vmem:[#allocation4 + $0x14] sm:$0x1]  ;;  %v9197_v56 = vld [vmem:[#allocation4 + $0x20] sm:$0x1] }
 0x41c   : > { %15450 = vmatprep.subr.bf16.mxu1 %v16565_v15 }
 0x41d   : > { %v8337_v17 = vsel %vm17220_vm7, %v14219_v10, %v8336_v6  ;;  %v8354_v25 = vsel %vm17220_vm7, %v8352_v22, %v8353_v21  ;;  %v9254_v6 = vshrl.u32 %v9193_v12, 16  ;;  %v9302_v10 = vshrl.u32 %v9199_v50, 16  ;;  %v9203_v12 = vld [vmem:[#allocation4 + $0x38] sm:$0x1] }
 0x41e   : > { %v14235_v1 = vcombine.low %v8337_v17, %v8340_v41  ;;  %v9260_v41 = vshll.u32 %v9194_v62, 16  ;;  %v9280_v22 = vrot.slane %v9278_v51, 4  ;;  %v9292_v21 = vshll.u32 %v9198_v45, 16  ;;  %v16588_v51 = vld [vmem:[#allocation4 + $0xc0] sm:$0xff]  }
 0x41f   : > { %15451 = vmatpush3.bf16.msra.mxu1 %v16565_v15  ;;  %v8192_v15 = vld [vmem:[#allocation4 + $0xb4] sm:$0xe]  ;;  %v9256_v63 = vrot.slane %v9254_v6, 4 }
 0x420   : > { %15484 = vmatprep.subr.bf16.mxu1 %v18639_v35  ;;  %v14221_v9 = vrot.slane %v8192_v15, 9  ;;  %v9289_v15 = vshrl.u32 %v9198_v45, 16 }
 0x421   : > { %v9257_v27 = vor.u32 %v9256_v63, %v18682_v48  ;;  %v9207_v63 = vld [vmem:[#allocation4 + $0x48] sm:$0xf] }
 0x422   : > { %15421 = vmatmul.mubr.bf16.gmra.mrb[12].mxu1 %v14231_v32  ;;  %v8351_v4 = vsel %vm17220_vm7, %v14221_v9, %v8350_v13  ;;  %v16573_v32 = vld [vmem:[#allocation4 + $0x48] sm:$0xff]   ;;  %v9201_v13 = vld [vmem:[#allocation4 + $0x30] sm:$0xf]  ;;  %v18687_v9 = vrot.slane %v9298_v8, 5 }
 0x423   : > { %15424 = vmatprep.mubr.bf16.mxu1 %v14232_v30  ;;  %v14237_v52 = vcombine.low %v8351_v4, %v8354_v25  ;;  %v16586_v30 = vld [vmem:[#allocation5 + $0x130] sm:$0xff]   ;;  %v9304_v25 = vrot.slane %v9302_v10, 4  ;;  %v9313_v4 = vshrl.u32 %v9201_v13, 16 }
 0x425   : > { %v9315_v26 = vrot.slane %v9313_v4, 4 }
 0x42a   : > { %15425 = vmatmul.mubr.bf16.gmra.mrb[16].mxu1 %v14233_v23  ;;  %v9246_v23 = vrot.slane %v9244_v0, 5 }
 0x42b   : > { %15428 = vmatprep.mubr.bf16.mxu1 %v14234_v37  ;;  %v9265_v37 = vshrl.u32 %v9195_v42, 16 }
 0x42c   : > { %v9247_v14 = vor.u32 %v9246_v23, %v9243_v7 }
 0x42d   : > { %v9267_v17 = vrot.slane %v9265_v37, 4 }
 0x432   : > { %15429 = vmatmul.mubr.bf16.gmra.mrb[20].mxu1 %v14235_v1  ;;  %v9270_v1 = vrot.slane %v9268_v53, 5 }
 0x433   : > { %15432 = vmatprep.mubr.bf16.mxu1 %v14236_v20  ;;  %v18685_v20 = vrot.slane %v9274_v2, 5  ;;  %v9332_v2 = vshll.u32 %v9203_v12, 16 }
 0x43a   : > { %15433 = vmatmul.mubr.bf16.gmra.mrb[24].mxu1 %v14237_v52  ;;  %v9316_v52 = vshll.u32 %v9201_v13, 16  ;;  %v9208_v13 = vld [vmem:[#allocation4 + $0x4c] sm:$0xf] }
 0x43b   : > { %15452 = vmatprep.mubr.bf16.mxu1 %v16566_v57  ;;  %v16585_v57 = vld [vmem:[#allocation4 + $0xa8] sm:$0xff]   ;;  %v9370_v4 = vshll.u32 %v9208_v13, 16 }
 0x441   : > { %v18671_v11 = vpop.f32.mrb[36].mxu0 }
 0x442   : > { %15453 = vmatmul.mubr.bf16.vlgmr.msra.gmra.mrb[28].mxu1 %v16567_v3  ;;  %v18673_v39 = vpop.f32.mrb[37].mxu0  ;;  %v9200_v3 = vld [vmem:[#allocation4 + $0x2c] sm:$0x1] }
 0x443   : > { %15456 = vmatprep.mubr.bf16.mxu1 %v16569_v38  ;;  %15485 = vmatpush3.bf16.msra.mxu1 %v18639_v35  ;;  %v18675_v40 = vpop.f32.mrb[38].mxu0  ;;  %v16580_v35 = vld [vmem:[#allocation5 + $0x120] sm:$0xff]   ;;  %v9326_v38 = vshrl.u32 %v9202_v19, 16 }
 0x444   : > { %15486 = vmatprep.subr.bf16.mxu1 %v16571_v34  ;;  %v18677_v16 = vpop.f32.mrb[39].mxu0 }
 0x445   : > { %v9328_v0 = vrot.slane %v9326_v38, 4  ;;  %v9334_v38 = vrot.slane %v9332_v2, 5 }
 0x447   : > { %15487 = vmatpush3.bf16.msra.mxu1 %v16571_v34  ;;  %v9322_v34 = vshll.u32 %v9202_v19, 16 }
 0x448   : > { %15488 = vmatprep.subr.bf16.mxu1 %v16574_v44 }
 0x449   : > { %v18691_v58 = vrot.slane %v9322_v34, 5 }
 0x44a   : > { %15457 = vmatmul.mubr.bf16.gmra.mrb[0].mxu1 %v16570_v46  ;;  %v9258_v46 = vrot.slane %v9257_v27, 4 }
 0x44b   : > { %15460 = vmatprep.mubr.bf16.mxu1 %v16572_v33  ;;  %15489 = vmatpush3.bf16.msra.mxu1 %v16574_v44  ;;  %v9248_v44 = vrot.slane %v9247_v14, 4  ;;  %v9284_v33 = vshll.u32 %v9197_v56, 16  ;;  %v9329_v8 = vor.u32 %v9328_v0, %v18691_v58  ;;  %v9206_v14 = vld [vmem:[#allocation4 + $0x44] sm:$0x1] }
 0x44c   : > { %15490 = vmatprep.subr.bf16.mxu1 %v16577_v47 }
 0x44d   : > { %v9286_v42 = vrot.slane %v9284_v33, 5  ;;  %v9253_v7 = vsel %vm16964_vm4, %v9248_v44, %v18682_v48  ;;  %v9330_v34 = vrot.slane %v9329_v8, 4  ;;  %v9356_v44 = vshll.u32 %v9206_v14, 16 }
 0x44f   : > { %15491 = vmatpush3.bf16.msra.mxu1 %v16577_v47  ;;  %v9262_v47 = vrot.slane %v9260_v41, 5  ;;  %v9335_v12 = vsel %vm16964_vm4, %v9330_v34, %v9334_v38  ;;  %v9358_v0 = vrot.slane %v9356_v44, 5  ;;  %v9219_v44 = vld [vmem:[#allocation4 + $0x78] sm:$0xf] }
 0x450   : > { %15492 = vmatprep.subr.bf16.mxu1 %v16580_v35 }
 0x451   : > { %v9263_v23 = vsel %vm16964_vm4, %v9258_v46, %v9262_v47 }
 0x452   : > { %15461 = vmatmul.mubr.bf16.gmra.mrb[4].mxu1 %v16573_v32  ;;  %v16587_v32 = vld [vmem:[#allocation4 + $0xb4] sm:$0xff]   ;;  %v14270_v19 = vcombine.low %v9253_v7, %v9263_v23 }
 0x453   : > { %15464 = vmatprep.mubr.bf16.mxu1 %v16575_v55  ;;  %15493 = vmatpush3.bf16.msra.mxu1 %v16580_v35  ;;  %v9204_v35 = vld [vmem:[#allocation4 + $0x3c] sm:$0xf]  ;;  %v9281_v55 = vor.u32 %v9280_v22, %v18685_v20 }
 0x454   : > { %15494 = vmatprep.subr.bf16.mxu1 %v16583_v43  ;;  %v9337_v5 = vshrl.u32 %v9204_v35, 16  ;;  %v9340_v6 = vshll.u32 %v9204_v35, 16  ;;  %v9209_v35 = vld [vmem:[#allocation4 + $0x50] sm:$0x1] }
 0x455   : > { %v9282_v62 = vrot.slane %v9281_v55, 4  ;;  %v9380_v23 = vshll.u32 %v9209_v35, 16 }
 0x456   : > { %v9339_v10 = vrot.slane %v9337_v5, 4  ;;  %v9342_v41 = vrot.slane %v9340_v6, 5  ;;  %v9213_v5 = vld [vmem:[#allocation4 + $0x60] sm:$0xf]  ;;  %v9214_v6 = vld [vmem:[#allocation4 + $0x64] sm:$0xf] }
 0x457   : > { %15495 = vmatpush3.bf16.msra.mxu1 %v16583_v43  ;;  %v9271_v43 = vor.u32 %v9270_v1, %v9267_v17  ;;  %v9361_v17 = vshrl.u32 %v9207_v63, 16  ;;  %v9364_v1 = vshll.u32 %v9207_v63, 16  ;;  %v9287_v22 = vsel %vm16964_vm4, %v9282_v62, %v9286_v42  ;;  %v16591_v42 = vld [vmem:[#allocation5 + $0x148] sm:$0xff]  }
 0x458   : > { %15496 = vmatprep.subr.bf16.mxu1 %v16586_v30  ;;  %v9343_v46 = vor.u32 %v9342_v41, %v9339_v10  ;;  %v9409_v2 = vshrl.u32 %v9213_v5, 16  ;;  %v9418_v8 = vshll.u32 %v9214_v6, 16  ;;  %v9422_v10 = vshrl.u32 %v9214_v6, 16  ;;  %v9223_v6 = vld [vmem:[#allocation4 + $0x88] sm:$0xf] }
 0x459   : > { %v9272_v50 = vrot.slane %v9271_v43, 4  ;;  %v9363_v47 = vrot.slane %v9361_v17, 4  ;;  %v9366_v33 = vrot.slane %v9364_v1, 5  ;;  %v16592_v17 = vld [vmem:[#allocation5 + $0x150] sm:$0xff]  }
 0x45a   : > { %15465 = vmatmul.mubr.bf16.gmra.mrb[8].mxu1 %v16576_v49  ;;  %v9294_v49 = vrot.slane %v9292_v21, 5 }
 0x45b   : > { %15468 = vmatprep.mubr.bf16.mxu1 %v16578_v60  ;;  %15497 = vmatpush3.bf16.msra.mxu1 %v16586_v30  ;;  %v9291_v30 = vrot.slane %v9289_v15, 4  ;;  %v9305_v60 = vor.u32 %v9304_v25, %v18687_v9  ;;  %v9277_v56 = vsel %vm16964_vm4, %v9272_v50, %v18685_v20  ;;  %v9210_v15 = vld [vmem:[#allocation4 + $0x54] sm:$0xf]  ;;  %v9367_v7 = vor.u32 %v9366_v33, %v9363_v47 }
 0x45c   : > { %15498 = vmatprep.subr.bf16.mxu1 %v16589_v59  ;;  %v9388_v43 = vshll.u32 %v9210_v15, 16 }
 0x45d   : > { %v9295_v37 = vor.u32 %v9294_v49, %v9291_v30  ;;  %v9306_v53 = vrot.slane %v9305_v60, 4  ;;  %v14271_v49 = vcombine.low %v9277_v56, %v9287_v22  ;;  %v18712_v60 = vrot.slane %v9370_v4, 5 }
 0x45e   : > { %v9390_v62 = vrot.slane %v9388_v43, 5  ;;  %v9382_v22 = vrot.slane %v9380_v23, 5  ;;  %v9222_v23 = vld [vmem:[#allocation4 + $0x84] sm:$0xf] }
 0x45f   : > { %15499 = vmatpush3.bf16.msra.mxu1 %v16589_v59  ;;  %v9205_v59 = vld [vmem:[#allocation4 + $0x40] sm:$0xf]  ;;  %v9296_v21 = vrot.slane %v9295_v37, 4 }
 0x460   : > { %15532 = vmatprep.subr.bf16.mxu1 %v18679_v61  ;;  %v9346_v29 = vshll.u32 %v9205_v59, 16 }
 0x462   : > { %15469 = vmatmul.mubr.bf16.gmra.mrb[12].mxu1 %v16579_v54  ;;  %v9308_v54 = vshll.u32 %v9200_v3, 16  ;;  %v18699_v27 = vrot.slane %v9346_v29, 5  ;;  %v9344_v29 = vrot.slane %v9343_v46, 4  ;;  %v16593_v46 = vld [vmem:[#allocation5 + $0x158] sm:$0xff]  }
 0x463   : > { %15472 = vmatprep.mubr.bf16.mxu1 %v16581_v36  ;;  %v9318_v36 = vrot.slane %v9316_v52, 5  ;;  %v9374_v52 = vshrl.u32 %v9208_v13, 16 }
 0x464   : > { %v9349_v14 = vsel %vm16964_vm4, %v9344_v29, %v18699_v27 }
 0x465   : > { %v9319_v45 = vor.u32 %v9318_v36, %v9315_v26 }
 0x467   : > { %v9320_v3 = vrot.slane %v9319_v45, 4  ;;  %v9212_v45 = vld [vmem:[#allocation4 + $0x5c] sm:$0x1] }
 0x468   : > { %v9404_v4 = vshll.u32 %v9212_v45, 16 }
 0x469   : > { %v9325_v36 = vsel %vm16964_vm4, %v9320_v3, %v18691_v58  ;;  %v18729_v3 = vrot.slane %v9418_v8, 5 }
 0x46a   : > { %15473 = vmatmul.mubr.bf16.gmra.mrb[16].mxu1 %v16582_v18  ;;  %v9350_v18 = vshrl.u32 %v9205_v59, 16  ;;  %v9301_v59 = vsel %vm16964_vm4, %v9296_v21, %v18687_v9  ;;  %v9216_v9 = vld [vmem:[#allocation4 + $0x6c] sm:$0xf]  ;;  %v14273_v58 = vcombine.low %v9325_v36, %v9335_v12  ;;  %v9220_v21 = vld [vmem:[#allocation4 + $0x7c] sm:$0xf]  ;;  %v9406_v36 = vrot.slane %v9404_v4, 5 }
 0x46b   : > { %15476 = vmatprep.mubr.bf16.mxu1 %v16584_v24  ;;  %v9310_v24 = vrot.slane %v9308_v54, 5  ;;  %v9376_v54 = vrot.slane %v9374_v52, 4  ;;  %v9433_v41 = vshrl.u32 %v9216_v9, 16  ;;  %v9436_v13 = vshll.u32 %v9216_v9, 16 }
 0x46c   : > { %v9352_v48 = vrot.slane %v9350_v18, 4  ;;  %v9411_v52 = vrot.slane %v9409_v2, 4  ;;  %v9466_v33 = vshll.u32 %v9220_v21, 16  ;;  %v9470_v35 = vshrl.u32 %v9220_v21, 16 }
 0x46d   : > { %v9311_v25 = vsel %vm16964_vm4, %v9306_v53, %v9310_v24  ;;  %v9217_v53 = vld [vmem:[#allocation4 + $0x70] sm:$0xf]  ;;  %v9377_v24 = vor.u32 %v9376_v54, %v18712_v60  ;;  %v9435_v34 = vrot.slane %v9433_v41, 4  ;;  %v9438_v38 = vrot.slane %v9436_v13, 5 }
 0x46e   : > { %v9353_v20 = vor.u32 %v9352_v48, %v18699_v27  ;;  %v14272_v26 = vcombine.low %v9301_v59, %v9311_v25  ;;  %v9368_v48 = vrot.slane %v9367_v7, 4  ;;  %v9442_v1 = vshll.u32 %v9217_v53, 16  ;;  %v9215_v59 = vld [vmem:[#allocation4 + $0x68] sm:$0x1]  ;;  %v16594_v7 = vld [vmem:[#allocation5 + $0x160] sm:$0xff]  }
 0x46f   : > { %v9378_v25 = vrot.slane %v9377_v24, 4  ;;  %v9424_v27 = vrot.slane %v9422_v10, 4  ;;  %v9490_v24 = vshll.u32 %v9223_v6, 16  ;;  %v9494_v2 = vshrl.u32 %v9223_v6, 16 }
 0x470   : > { %v9354_v18 = vrot.slane %v9353_v20, 4  ;;  %v18731_v20 = vrot.slane %v9442_v1, 5  ;;  %v9481_v10 = vshrl.u32 %v9222_v23, 16  ;;  %v9484_v41 = vshll.u32 %v9222_v23, 16 }
 0x471   : > { %v9425_v12 = vor.u32 %v9424_v27, %v18729_v3  ;;  %v9496_v21 = vrot.slane %v9494_v2, 4 }
 0x472   : > { %15477 = vmatmul.mubr.bf16.gmra.mrb[20].mxu1 %v16585_v57  ;;  %v9211_v57 = vld [vmem:[#allocation4 + $0x58] sm:$0xf]  ;;  %v9359_v56 = vsel %vm16964_vm4, %v9354_v18, %v9358_v0  ;;  %v9457_v0 = vshrl.u32 %v9219_v44, 16  ;;  %v18740_v18 = vrot.slane %v9466_v33, 5  ;;  %v9486_v27 = vrot.slane %v9484_v41, 5 }
 0x473   : > { %15480 = vmatprep.mubr.bf16.mxu1 %v16587_v32  ;;  %v9385_v32 = vshrl.u32 %v9210_v15, 16  ;;  %v9394_v55 = vshll.u32 %v9211_v57, 16  ;;  %v9398_v30 = vshrl.u32 %v9211_v57, 16  ;;  %v9426_v13 = vrot.slane %v9425_v12, 4  ;;  %v9224_v33 = vld [vmem:[#allocation4 + $0x8c] sm:$0x1] }
 0x474   : > { %v9459_v45 = vrot.slane %v9457_v0, 4  ;;  %v9500_v6 = vshll.u32 %v9224_v33, 16 }
 0x475   : > { %v9387_v50 = vrot.slane %v9385_v32, 4  ;;  %v18719_v63 = vrot.slane %v9394_v55, 5  ;;  %v9400_v37 = vrot.slane %v9398_v30, 4  ;;  %v14274_v32 = vcombine.low %v9349_v14, %v9359_v56  ;;  %v9225_v56 = vld [vmem:[#allocation4 + $0x90] sm:$0xf] }
 0x476   : > { %v9373_v30 = vsel %vm16964_vm4, %v9368_v48, %v18712_v60  ;;  %v9472_v60 = vrot.slane %v9470_v35, 4  ;;  %v16596_v35 = vld [vmem:[#allocation5 + $0x170] sm:$0xff]  }
 0x477   : > { %v9391_v15 = vor.u32 %v9390_v62, %v9387_v50 }
 0x479   : > { %v9392_v43 = vrot.slane %v9391_v15, 4 }
 0x47a   : > { %15481 = vmatmul.mubr.bf16.gmra.mrb[24].mxu1 %v16588_v51  ;;  %v9412_v51 = vshll.u32 %v9213_v5, 16  ;;  %v9460_v5 = vshll.u32 %v9219_v44, 16 }
 0x47b   : > { %15500 = vmatprep.mubr.bf16.mxu1 %v14270_v19  ;;  %v9446_v19 = vshrl.u32 %v9217_v53, 16  ;;  %v9397_v50 = vsel %vm16964_vm4, %v9392_v43, %v18719_v63 }
 0x47c   : > { %v9414_v57 = vrot.slane %v9412_v51, 5  ;;  %v9221_v51 = vld [vmem:[#allocation4 + $0x80] sm:$0x1]  ;;  %v9462_v8 = vrot.slane %v9460_v5, 5 }
 0x47d   : > { %v9448_v47 = vrot.slane %v9446_v19, 4  ;;  %v9476_v15 = vshll.u32 %v9221_v51, 16  ;;  %v9227_v51 = vld [vmem:[#allocation4 + $0x98] sm:$0x1] }
 0x47e   : > { %v9415_v54 = vor.u32 %v9414_v57, %v9411_v52  ;;  %v9463_v52 = vor.u32 %v9462_v8, %v9459_v45  ;;  %v9483_v57 = vrot.slane %v9481_v10, 4  ;;  %v9235_v45 = vld [vmem:[#allocation4 + $0xb8] sm:$0xf]  ;;  %v9502_v10 = vrot.slane %v9500_v6, 5 }
 0x47f   : > { %v9449_v29 = vor.u32 %v9448_v47, %v18731_v20 }
 0x480   : > { %v9416_v53 = vrot.slane %v9415_v54, 4  ;;  %v9487_v0 = vor.u32 %v9486_v27, %v9483_v57 }
 0x481   : > { %v9450_v48 = vrot.slane %v9449_v29, 4 }
 0x482   : > { %15501 = vmatmul.mubr.bf16.vlgmr.msra.gmra.mrb[28].mxu1 %v14271_v49  ;;  %v9383_v49 = vsel %vm16964_vm4, %v9378_v25, %v9382_v22  ;;  %v9226_v25 = vld [vmem:[#allocation4 + $0x94] sm:$0xf]  ;;  %v9421_v4 = vsel %vm16964_vm4, %v9416_v53, %v18729_v3  ;;  %v9505_v3 = vshrl.u32 %v9225_v56, 16  ;;  %v9488_v2 = vrot.slane %v9487_v0, 4 }
 0x483   : > { %15504 = vmatprep.mubr.bf16.mxu1 %v14272_v26  ;;  %15533 = vmatpush3.bf16.msra.mxu1 %v18679_v61  ;;  %v9401_v61 = vor.u32 %v9400_v37, %v18719_v63  ;;  %v9218_v26 = vld [vmem:[#allocation4 + $0x74] sm:$0x1]  ;;  %v14275_v9 = vcombine.low %v9373_v30, %v9383_v49  ;;  %v9428_v37 = vshll.u32 %v9215_v59, 16  ;;  %v16595_v63 = vld [vmem:[#allocation5 + $0x168] sm:$0xff]   ;;  %v9514_v43 = vshll.u32 %v9226_v25, 16 }
 0x484   : > { %15534 = vmatprep.subr.bf16.mxu1 %v16591_v42  ;;  %v9228_v30 = vld [vmem:[#allocation4 + $0x9c] sm:$0xf]  ;;  %v9478_v49 = vrot.slane %v9476_v15, 5 }
 0x485   : > { %v9402_v55 = vrot.slane %v9401_v61, 4  ;;  %v9430_v19 = vrot.slane %v9428_v37, 5  ;;  %v18748_v61 = vrot.slane %v9490_v24, 5  ;;  %v9532_v29 = vshll.u32 %v9228_v30, 16 }
 0x487   : > { %15535 = vmatpush3.bf16.msra.mxu1 %v16591_v42  ;;  %v9439_v42 = vor.u32 %v9438_v38, %v9435_v34  ;;  %v9407_v62 = vsel %vm16964_vm4, %v9402_v55, %v9406_v36  ;;  %v9229_v34 = vld [vmem:[#allocation4 + $0xa0] sm:$0xf]  ;;  %v9431_v38 = vsel %vm16964_vm4, %v9426_v13, %v9430_v19  ;;  %v9518_v55 = vshrl.u32 %v9226_v25, 16 }
 0x488   : > { %15536 = vmatprep.subr.bf16.mxu1 %v16592_v17  ;;  %v14276_v1 = vcombine.low %v9397_v50, %v9407_v62  ;;  %v9497_v59 = vor.u32 %v9496_v21, %v18748_v61  ;;  %v9538_v54 = vshll.u32 %v9229_v34, 16  ;;  %v14277_v36 = vcombine.low %v9421_v4, %v9431_v38 }
 0x489   : > { %v9440_v14 = vrot.slane %v9439_v42, 4  ;;  %v9529_v42 = vshrl.u32 %v9228_v30, 16  ;;  %v9520_v50 = vrot.slane %v9518_v55, 4  ;;  %v9534_v13 = vrot.slane %v9532_v29, 5  ;;  %v9236_v29 = vld [vmem:[#allocation4 + $0xbc] sm:$0x1] }
 0x48a   : > { %15505 = vmatmul.mubr.bf16.gmra.mrb[0].mxu1 %v14273_v58  ;;  %v9452_v58 = vshll.u32 %v9218_v26, 16  ;;  %v9542_v26 = vshrl.u32 %v9229_v34, 16  ;;  %v9498_v62 = vrot.slane %v9497_v59, 4  ;;  %v18765_v37 = vrot.slane %v9538_v54, 5  ;;  %v9233_v59 = vld [vmem:[#allocation4 + $0xb0] sm:$0x1] }
 0x48b   : > { %15508 = vmatprep.mubr.bf16.mxu1 %v14274_v32  ;;  %15537 = vmatpush3.bf16.msra.mxu1 %v16592_v17  ;;  %v9473_v17 = vor.u32 %v9472_v60, %v18740_v18  ;;  %v9445_v44 = vsel %vm16964_vm4, %v9440_v14, %v18731_v20  ;;  %v9508_v32 = vshll.u32 %v9225_v56, 16  ;;  %v9464_v20 = vrot.slane %v9463_v52, 4  ;;  %v16597_v60 = vld [vmem:[#allocation5 + $0x178] sm:$0xff]   ;;  %v9231_v14 = vld [vmem:[#allocation4 + $0xa8] sm:$0xf] }
 0x48c   : > { %15538 = vmatprep.subr.bf16.mxu1 %v16593_v46  ;;  %v9454_v22 = vrot.slane %v9452_v58, 5  ;;  %v9544_v53 = vrot.slane %v9542_v26, 4  ;;  %v9232_v58 = vld [vmem:[#allocation4 + $0xac] sm:$0xf]  ;;  %v9531_v41 = vrot.slane %v9529_v42, 4  ;;  %v9586_v21 = vshll.u32 %v9235_v45, 16 }
 0x48d   : > { %v9474_v47 = vrot.slane %v9473_v17, 4  ;;  %v9510_v23 = vrot.slane %v9508_v32, 5  ;;  %v9469_v24 = vsel %vm16964_vm4, %v9464_v20, %v18740_v18  ;;  %v9562_v19 = vshll.u32 %v9232_v58, 16 }
 0x48e   : > { %v9566_v56 = vshrl.u32 %v9232_v58, 16  ;;  %v9503_v18 = vsel %vm16964_vm4, %v9498_v62, %v9502_v10  ;;  %v9545_v15 = vor.u32 %v9544_v53, %v18765_v37  ;;  %v9590_v25 = vshrl.u32 %v9235_v45, 16 }
 0x48f   : > { %15539 = vmatpush3.bf16.msra.mxu1 %v16593_v46  ;;  %v9455_v46 = vsel %vm16964_vm4, %v9450_v48, %v9454_v22  ;;  %v9479_v5 = vsel %vm16964_vm4, %v9474_v47, %v9478_v49  ;;  %v18770_v48 = vld [vmem:[#allocation5 + $0x180] sm:$0xff]   ;;  %v9234_v22 = vld [vmem:[#allocation4 + $0xb4] sm:$0xf]  ;;  %v9493_v4 = vsel %vm16964_vm4, %v9488_v2, %v18748_v61  ;;  %v9524_v52 = vshll.u32 %v9227_v51, 16  ;;  %v9238_v61 = vld [vmem:[#allocation4 + $0xc4] sm:$0xf] }
 0x490   : > { %15540 = vmatprep.subr.bf16.mxu1 %v16594_v7  ;;  %v14278_v12 = vcombine.low %v9445_v44, %v9455_v46  ;;  %v14279_v8 = vcombine.low %v9469_v24, %v9479_v5  ;;  %v9553_v57 = vshrl.u32 %v9231_v14, 16  ;;  %v9556_v27 = vshll.u32 %v9231_v14, 16  ;;  %v9237_v5 = vld [vmem:[#allocation4 + $0xc0] sm:$0xf] }
 0x491   : > { %v9535_v34 = vor.u32 %v9534_v13, %v9531_v41  ;;  %v9577_v44 = vshrl.u32 %v9234_v22, 16  ;;  %v9580_v46 = vshll.u32 %v9234_v22, 16  ;;  %v14280_v47 = vcombine.low %v9493_v4, %v9503_v18  ;;  %v10011_v22 = vld [vmem:[#allocation4 + $0x10] sm:$0xf] }
 0x492   : > { %15509 = vmatmul.mubr.bf16.gmra.mrb[4].mxu1 %v14275_v9  ;;  %v18763_v9 = vrot.slane %v9514_v43, 5  ;;  %v9546_v43 = vrot.slane %v9545_v15, 4  ;;  %v9588_v55 = vrot.slane %v9586_v21, 5  ;;  %v9592_v30 = vrot.slane %v9590_v25, 4  ;;  %v9239_v21 = vld [vmem:[#allocation4 + $0xc8] sm:$0x1] }
 0x493   : > { %15512 = vmatprep.mubr.bf16.mxu1 %v14276_v1  ;;  %15541 = vmatpush3.bf16.msra.mxu1 %v16594_v7  ;;  %v9507_v7 = vrot.slane %v9505_v3, 4  ;;  %v9230_v1 = vld [vmem:[#allocation4 + $0xa4] sm:$0x1]  ;;  %v9568_v3 = vrot.slane %v9566_v56, 4  ;;  %v9526_v49 = vrot.slane %v9524_v52, 5  ;;  %v9555_v54 = vrot.slane %v9553_v57, 4 }
 0x494   : > { %15542 = vmatprep.subr.bf16.mxu1 %v16595_v63  ;;  %v9548_v38 = vshll.u32 %v9230_v1, 16  ;;  %v9558_v26 = vrot.slane %v9556_v27, 5  ;;  %v9579_v20 = vrot.slane %v9577_v44, 4  ;;  %v9582_v0 = vrot.slane %v9580_v46, 5 }
 0x495   : > { %v9511_v17 = vor.u32 %v9510_v23, %v9507_v7  ;;  %v9614_v7 = vshrl.u32 %v9238_v61, 16  ;;  %v9593_v62 = vor.u32 %v9592_v30, %v9588_v55  ;;  %v9572_v58 = vshll.u32 %v9233_v59, 16 }
 0x496   : > { %v9559_v53 = vor.u32 %v9558_v26, %v9555_v54  ;;  %v9601_v24 = vshrl.u32 %v9237_v5, 16  ;;  %v9604_v2 = vshll.u32 %v9237_v5, 16  ;;  %v9596_v10 = vshll.u32 %v9236_v29, 16  ;;  %v10015_v5 = vld [vmem:[#allocation4 + $0x20] sm:$0x1] }
 0x497   : > { %15543 = vmatpush3.bf16.msra.mxu1 %v16595_v63  ;;  %v9521_v63 = vor.u32 %v9520_v50, %v18763_v9  ;;  %v9512_v32 = vrot.slane %v9511_v17, 4  ;;  %v9616_v17 = vrot.slane %v9614_v7, 4  ;;  %v9574_v1 = vrot.slane %v9572_v58, 5  ;;  %v10018_v29 = vld [vmem:[#allocation4 + $0x2c] sm:$0x1] }
 0x498   : > { %15544 = vmatprep.subr.bf16.mxu1 %v16596_v35  ;;  %v9606_v56 = vrot.slane %v9604_v2, 5  ;;  %v9598_v15 = vrot.slane %v9596_v10, 5  ;;  %v10108_v52 = vrot.slane %v10011_v22, 5  ;;  %v10125_v58 = vrot.slane %v10018_v29, 5 }
 0x499   : > { %v9522_v33 = vrot.slane %v9521_v63, 4  ;;  %v9517_v23 = vsel %vm16964_vm4, %v9512_v32, %v18763_v9  ;;  %v9594_v9 = vrot.slane %v9593_v62, 4  ;;  %v9560_v63 = vrot.slane %v9559_v53, 4  ;;  %v10014_v32 = vld [vmem:[#allocation4 + $0x1c] sm:$0xf] }
 0x49a   : > { %15513 = vmatmul.mubr.bf16.gmra.mrb[8].mxu1 %v14277_v36  ;;  %v9536_v36 = vrot.slane %v9535_v34, 4  ;;  %v9620_v34 = vshll.u32 %v9239_v21, 16  ;;  %v10115_v54 = vrot.slane %v10014_v32, 5  ;;  %v10016_v62 = vld [vmem:[#allocation4 + $0x24] sm:$0xe] }
 0x49b   : > { %15516 = vmatprep.mubr.bf16.mxu1 %v14278_v12  ;;  %15545 = vmatpush3.bf16.msra.mxu1 %v16596_v35  ;;  %v9564_v35 = vrot.slane %v9562_v19, 5  ;;  %v9550_v12 = vrot.slane %v9548_v38, 5  ;;  %v9527_v6 = vsel %vm16964_vm4, %v9522_v33, %v9526_v49  ;;  %v9603_v19 = vrot.slane %v9601_v24, 4  ;;  %v10012_v33 = vld [vmem:[#allocation4 + $0x14] sm:$0x1] }
 0x49c   : > { %15546 = vmatprep.subr.bf16.mxu1 %v16597_v60  ;;  %v14281_v51 = vcombine.low %v9517_v23, %v9527_v6  ;;  %v9541_v45 = vsel %vm16964_vm4, %v9536_v36, %v18765_v37  ;;  %v9599_v4 = vsel %vm16964_vm4, %v9594_v9, %v9598_v15  ;;  %v9622_v30 = vrot.slane %v9620_v34, 5  ;;  %v10017_v49 = vld [vmem:[#allocation4 + $0x28] sm:$0xf]  ;;  %v10020_v23 = vld [vmem:[#allocation4 + $0x34] sm:$0xf]  ;;  %v16599_v9 = vld [vmem:[#allocation5 + $0x188] sm:$0xff]  }
 0x49d   : > { %v9569_v42 = vor.u32 %v9568_v3, %v9564_v35  ;;  %v9551_v50 = vsel %vm16964_vm4, %v9546_v43, %v9550_v12  ;;  %v9565_v57 = vsel %vm16964_vm4, %v9560_v63, %v9564_v35  ;;  %v9607_v27 = vor.u32 %v9606_v56, %v9603_v19  ;;  %v10023_v53 = vld [vmem:[#allocation4 + $0x40] sm:$0xf]  ;;  %v10024_v19 = vld [vmem:[#allocation4 + $0x44] sm:$0x1]  ;;  %v10019_v56 = vld [vmem:[#allocation4 + $0x30] sm:$0xe] }
 0x49e   : > { %v14282_v41 = vcombine.low %v9541_v45, %v9551_v50  ;;  %v10110_v3 = vrot.slane %v10108_v52, 4  ;;  %v10111_v59 = vrot.slane %v10012_v33, 5  ;;  %v10122_v36 = vrot.slane %v10017_v49, 5  ;;  %v10022_v21 = vld [vmem:[#allocation4 + $0x3c] sm:$0xe] }
 0x49f   : > { %15547 = vmatpush3.bf16.msra.mxu1 %v16597_v60  ;;  %v9610_v60 = vshll.u32 %v9238_v61, 16  ;;  %v9570_v13 = vrot.slane %v9569_v42, 4  ;;  %v9608_v43 = vrot.slane %v9607_v27, 4  ;;  %v10010_v61 = vld [vmem:[#allocation4 + $0xc] sm:$0xe]  ;;  %v10117_v42 = vrot.slane %v10115_v54, 4 }
 0x4a0   : > { %15580 = vmatprep.subr.bf16.mxu1 %v18770_v48  ;;  %v14294_v26 = vrot.slane %v10010_v61, 9  ;;  %v10124_v7 = vrot.slane %v10122_v36, 4  ;;  %v10118_v50 = vrot.slane %v10015_v5, 5  ;;  %v14296_v45 = vrot.slane %v10016_v62, 9  ;;  %v10027_v33 = vld [vmem:[#allocation4 + $0x50] sm:$0x1] }
 0x4a1   : > { %v9612_v14 = vrot.slane %v9610_v60, 5  ;;  %v9575_v37 = vsel %vm16964_vm4, %v9570_v13, %v9574_v1  ;;  %v10013_v60 = vld [vmem:[#allocation4 + $0x18] sm:$0xe]  ;;  %v10136_v10 = vrot.slane %v10023_v53, 5  ;;  %v14298_v34 = vrot.slane %v10022_v21, 9  ;;  %v16605_v21 = vld [vmem:[#allocation5 + $0x1b8] sm:$0xff]  }
 0x4a2   : > { %15517 = vmatmul.mubr.bf16.gmra.mrb[12].mxu1 %v14279_v8  ;;  %v9583_v8 = vor.u32 %v9582_v0, %v9579_v20  ;;  %v14283_v38 = vcombine.low %v9565_v57, %v9575_v37  ;;  %v10109_v0 = vsel %vm17220_vm7, %v14294_v26, %v10108_v52  ;;  %v14295_v24 = vrot.slane %v10013_v60, 9  ;;  %v10029_v37 = vld [vmem:[#allocation4 + $0x58] sm:$0xf]  ;;  %v10025_v61 = vld [vmem:[#allocation4 + $0x48] sm:$0xe] }
 0x4a3   : > { %15520 = vmatprep.mubr.bf16.mxu1 %v14280_v47  ;;  %v9617_v25 = vor.u32 %v9616_v17, %v9612_v14  ;;  %v9613_v12 = vsel %vm16964_vm4, %v9608_v43, %v9612_v14  ;;  %v10119_v2 = vsel %vm17220_vm7, %v10117_v42, %v10118_v50  ;;  %v10123_v14 = vsel %vm17220_vm7, %v14296_v45, %v10122_v36  ;;  %v10021_v17 = vld [vmem:[#allocation4 + $0x38] sm:$0x1]  ;;  %v10035_v26 = vld [vmem:[#allocation4 + $0x70] sm:$0xf]  ;;  %v16603_v50 = vld [vmem:[#allocation5 + $0x1a8] sm:$0xff]  }
 0x4a4   : > { %v9584_v18 = vrot.slane %v9583_v8, 4  ;;  %v10126_v8 = vsel %vm17220_vm7, %v10124_v7, %v10125_v58  ;;  %v10138_v22 = vrot.slane %v10136_v10, 4  ;;  %v10132_v15 = vrot.slane %v10021_v17, 5  ;;  %v16602_v36 = vld [vmem:[#allocation5 + $0x1a0] sm:$0xff]   ;;  %v10036_v58 = vld [vmem:[#allocation4 + $0x74] sm:$0x1] }
 0x4a5   : > { %v9618_v47 = vrot.slane %v9617_v25, 4  ;;  %v14312_v63 = vcombine.low %v10123_v14, %v10126_v8  ;;  %v10139_v25 = vrot.slane %v10024_v19, 5  ;;  %v14297_v52 = vrot.slane %v10019_v56, 9  ;;  %v10034_v8 = vld [vmem:[#allocation4 + $0x6c] sm:$0xe] }
 0x4a6   : > { %v9589_v44 = vsel %vm16964_vm4, %v9584_v18, %v9588_v55  ;;  %v10112_v55 = vsel %vm17220_vm7, %v10110_v3, %v10111_v59  ;;  %v10026_v18 = vld [vmem:[#allocation4 + $0x4c] sm:$0xf]  ;;  %v16601_v3 = vld [vmem:[#allocation5 + $0x198] sm:$0xff]   ;;  %v10032_v59 = vld [vmem:[#allocation4 + $0x64] sm:$0xf]  ;;  %v10164_v42 = vrot.slane %v10035_v26, 5 }
 0x4a7   : > { %v14284_v46 = vcombine.low %v9589_v44, %v9599_v4  ;;  %v9623_v35 = vsel %vm16964_vm4, %v9618_v47, %v9622_v30  ;;  %v14310_v6 = vcombine.low %v10109_v0, %v10112_v55  ;;  %v16600_v4 = vld [vmem:[#allocation5 + $0x190] sm:$0xff]   ;;  %v10143_v27 = vrot.slane %v10026_v18, 5  ;;  %v10030_v30 = vld [vmem:[#allocation4 + $0x5c] sm:$0x1] }
 0x4a8   : > { %v14285_v20 = vcombine.low %v9613_v12, %v9623_v35  ;;  %v10150_v44 = vrot.slane %v10029_v37, 5  ;;  %v10137_v47 = vsel %vm17220_vm7, %v14298_v34, %v10136_v10  ;;  %v10146_v35 = vrot.slane %v10027_v33, 5  ;;  %v10041_v10 = vld [vmem:[#allocation4 + $0x88] sm:$0xf] }
 0x4a9   : > { %v10145_v43 = vrot.slane %v10143_v27, 4  ;;  %v10153_v55 = vrot.slane %v10030_v30, 5  ;;  %v14299_v12 = vrot.slane %v10025_v61, 9  ;;  %v10157_v0 = vrot.slane %v10032_v59, 5 }
 0x4aa   : > { %15521 = vmatmul.mubr.bf16.gmra.mrb[16].mxu1 %v14281_v51  ;;  %v10129_v51 = vrot.slane %v10020_v23, 5  ;;  %v10152_v49 = vrot.slane %v10150_v44, 4  ;;  %v10033_v23 = vld [vmem:[#allocation4 + $0x68] sm:$0x1]  ;;  %v10178_v19 = vrot.slane %v10041_v10, 5 }
 0x4ab   : > { %15524 = vmatprep.mubr.bf16.mxu1 %v14282_v41  ;;  %v10116_v41 = vsel %vm17220_vm7, %v14295_v24, %v10115_v54  ;;  %v10028_v54 = vld [vmem:[#allocation4 + $0x54] sm:$0xe]  ;;  %v10144_v29 = vsel %vm17220_vm7, %v14299_v12, %v10143_v27  ;;  %v10159_v53 = vrot.slane %v10157_v0, 4  ;;  %v10031_v24 = vld [vmem:[#allocation4 + $0x60] sm:$0xe]  ;;  %v10160_v45 = vrot.slane %v10033_v23, 5 }
 0x4ac   : > { %v14311_v13 = vcombine.low %v10116_v41, %v10119_v2  ;;  %v10131_v1 = vrot.slane %v10129_v51, 4  ;;  %v14300_v5 = vrot.slane %v10028_v54, 9  ;;  %v10166_v2 = vrot.slane %v10164_v42, 4  ;;  %v10044_v27 = vld [vmem:[#allocation4 + $0x94] sm:$0xf] }
 0x4ad   : > { %v10167_v41 = vrot.slane %v10036_v58, 5  ;;  %v14301_v14 = vrot.slane %v10031_v24, 9  ;;  %v10161_v17 = vsel %vm17220_vm7, %v10159_v53, %v10160_v45  ;;  %v10049_v10 = vld [vmem:[#allocation4 + $0xa8] sm:$0xe] }
 0x4ae   : > { %v10133_v57 = vsel %vm17220_vm7, %v10131_v1, %v10132_v15  ;;  %v10151_v7 = vsel %vm17220_vm7, %v14300_v5, %v10150_v44  ;;  %v10039_v15 = vld [vmem:[#allocation4 + $0x80] sm:$0x1]  ;;  %v10046_v5 = vld [vmem:[#allocation4 + $0x9c] sm:$0xe] }
 0x4af   : > { %v10168_v1 = vsel %vm17220_vm7, %v10166_v2, %v10167_v41  ;;  %v10158_v56 = vsel %vm17220_vm7, %v14301_v14, %v10157_v0  ;;  %v10174_v34 = vrot.slane %v10039_v15, 5  ;;  %v10047_v44 = vld [vmem:[#allocation4 + $0xa0] sm:$0xf]  ;;  %v14306_v23 = vrot.slane %v10046_v5, 9  ;;  %v10051_v2 = vld [vmem:[#allocation4 + $0xb0] sm:$0x1] }
 0x4b0   : > { %v10192_v30 = vrot.slane %v10047_v44, 5  ;;  %v10202_v14 = vrot.slane %v10051_v2, 5  ;;  %v16621_v5 = vld [vmem:[#allocation4 + $0x90] sm:$0xff]  }
 0x4b2   : > { %15525 = vmatmul.mubr.bf16.gmra.mrb[20].mxu1 %v14283_v38  ;;  %v10140_v38 = vsel %vm17220_vm7, %v10138_v22, %v10139_v25  ;;  %v14317_v22 = vcombine.low %v10158_v56, %v10161_v17  ;;  %v10194_v12 = vrot.slane %v10192_v30, 4  ;;  %v10193_v24 = vsel %vm17220_vm7, %v14306_v23, %v10192_v30  ;;  %v10052_v17 = vld [vmem:[#allocation4 + $0xb4] sm:$0xe] }
 0x4b3   : > { %15528 = vmatprep.mubr.bf16.mxu1 %v14284_v46  ;;  %v10130_v46 = vsel %vm17220_vm7, %v14297_v52, %v10129_v51  ;;  %v14314_v32 = vcombine.low %v10137_v47, %v10140_v38  ;;  %v10038_v51 = vld [vmem:[#allocation4 + $0x7c] sm:$0xf]  ;;  %v10037_v52 = vld [vmem:[#allocation4 + $0x78] sm:$0xe]  ;;  %v10040_v38 = vld [vmem:[#allocation4 + $0x84] sm:$0xe] }
 0x4b4   : > { %v14303_v47 = vrot.slane %v10037_v52, 9  ;;  %v14308_v56 = vrot.slane %v10052_v17, 9  ;;  %v10055_v52 = vld [vmem:[#allocation4 + $0xc0] sm:$0xe]  ;;  %v16617_v30 = vld [vmem:[#allocation5 + $0x1d8] sm:$0xff]  }
 0x4ba   : > { %15529 = vmatmul.mubr.bf16.gmra.mrb[24].mxu1 %v14285_v20  ;;  %v10147_v20 = vsel %vm17220_vm7, %v10145_v43, %v10146_v35  ;;  %v10045_v35 = vld [vmem:[#allocation4 + $0x98] sm:$0x1] }
 0x4bb   : > { %15548 = vmatprep.mubr.bf16.mxu1 %v14310_v6  ;;  %v10154_v6 = vsel %vm17220_vm7, %v10152_v49, %v10153_v55  ;;  %v14315_v60 = vcombine.low %v10144_v29, %v10147_v20  ;;  %v10048_v55 = vld [vmem:[#allocation4 + $0xa4] sm:$0x1]  ;;  %v10050_v20 = vld [vmem:[#allocation4 + $0xac] sm:$0xf]  ;;  %v10188_v0 = vrot.slane %v10045_v35, 5 }
 0x4bc   : > { %v14316_v62 = vcombine.low %v10151_v7, %v10154_v6  ;;  %v10053_v6 = vld [vmem:[#allocation4 + $0xb8] sm:$0xf]  ;;  %v10199_v7 = vrot.slane %v10050_v20, 5  ;;  %v16623_v35 = vld [vmem:[#allocation5 + $0x1e8] sm:$0xff]   ;;  %v11056_v20 = vld [vmem:[#allocation4 + $0x1c] sm:$0xf] }
 0x4be   : > { %v10201_v45 = vrot.slane %v10199_v7, 4 }
 0x4c2   : > { %15549 = vmatmul.mubr.bf16.vlgmr.msra.gmra.mrb[28].mxu1 %v14311_v13  ;;  %v16604_v13 = vld [vmem:[#allocation5 + $0x1b0] sm:$0xff]  }
 0x4c3   : > { %15552 = vmatprep.mubr.bf16.mxu1 %v14312_v63  ;;  %15581 = vmatpush3.bf16.msra.mxu1 %v18770_v48  ;;  %v14313_v48 = vcombine.low %v10130_v46, %v10133_v57  ;;  %v14302_v63 = vrot.slane %v10034_v8, 9  ;;  %v10180_v57 = vrot.slane %v10178_v19, 4  ;;  %v10054_v8 = vld [vmem:[#allocation4 + $0xbc] sm:$0x1] }
 0x4c4   : > { %15582 = vmatprep.subr.bf16.mxu1 %v16599_v9 }
 0x4c5   : > { %v10165_v18 = vsel %vm17220_vm7, %v14302_v63, %v10164_v42  ;;  %v10195_v42 = vrot.slane %v10048_v55, 5  ;;  %v14307_v63 = vrot.slane %v10049_v10, 9  ;;  %v16629_v55 = vld [vmem:[#allocation5 + $0x1f8] sm:$0xff]  }
 0x4c6   : > { %v14318_v37 = vcombine.low %v10165_v18, %v10168_v1  ;;  %v10203_v1 = vsel %vm17220_vm7, %v10201_v45, %v10202_v14  ;;  %v11061_v45 = vld [vmem:[#allocation4 + $0x30] sm:$0xf]  ;;  %v11057_v14 = vld [vmem:[#allocation4 + $0x20] sm:$0x1] }
 0x4c7   : > { %15583 = vmatpush3.bf16.msra.mxu1 %v16599_v9  ;;  %v10171_v9 = vrot.slane %v10038_v51, 5  ;;  %v10200_v18 = vsel %vm17220_vm7, %v14307_v63, %v10199_v7  ;;  %v11059_v7 = vld [vmem:[#allocation4 + $0x28] sm:$0xf] }
 0x4c8   : > { %15584 = vmatprep.subr.bf16.mxu1 %v16600_v4  ;;  %v14323_v15 = vcombine.low %v10200_v18, %v10203_v1  ;;  %v11137_v2 = vshll.u32 %v11059_v7, 16  ;;  %v11155_v18 = vshll.u32 %v11061_v45, 16 }
 0x4c9   : > { %v10173_v25 = vrot.slane %v10171_v9, 4  ;;  %v10172_v61 = vsel %vm17220_vm7, %v14303_v47, %v10171_v9  ;;  %v10209_v9 = vrot.slane %v10054_v8, 5  ;;  %v16607_v47 = vld [vmem:[#allocation4 + $0x24] sm:$0xff]   ;;  %v16622_v8 = vld [vmem:[#allocation4 + $0x9c] sm:$0xff]  }
 0x4ca   : > { %15553 = vmatmul.mubr.bf16.gmra.mrb[0].mxu1 %v14313_v48  ;;  %v18839_v48 = vld [vmem:[#allocation5 + $0x1c0] sm:$0xff]  }
 0x4cb   : > { %15556 = vmatprep.mubr.bf16.mxu1 %v14314_v32  ;;  %15585 = vmatpush3.bf16.msra.mxu1 %v16600_v4  ;;  %v10042_v4 = vld [vmem:[#allocation4 + $0x8c] sm:$0x1]  ;;  %v10175_v33 = vsel %vm17220_vm7, %v10173_v25, %v10174_v34  ;;  %v14304_v32 = vrot.slane %v10040_v38, 9 }
 0x4cc   : > { %15586 = vmatprep.subr.bf16.mxu1 %v16601_v3  ;;  %v10181_v46 = vrot.slane %v10042_v4, 5  ;;  %v14319_v49 = vcombine.low %v10172_v61, %v10175_v33  ;;  %v16611_v33 = vld [vmem:[#allocation5 + $0x1c8] sm:$0xff]   ;;  %v16612_v61 = vld [vmem:[#allocation4 + $0x48] sm:$0xff]  }
 0x4cd   : > { %v10179_v59 = vsel %vm17220_vm7, %v14304_v32, %v10178_v19  ;;  %v16614_v32 = vld [vmem:[#allocation5 + $0x1d0] sm:$0xff]  }
 0x4ce   : > { %v10182_v43 = vsel %vm17220_vm7, %v10180_v57, %v10181_v46  ;;  %v16606_v46 = vld [vmem:[#allocation4 + $0x18] sm:$0xff]  }
 0x4cf   : > { %15587 = vmatpush3.bf16.msra.mxu1 %v16601_v3  ;;  %v10185_v3 = vrot.slane %v10044_v27, 5  ;;  %v14320_v54 = vcombine.low %v10179_v59, %v10182_v43  ;;  %v14309_v27 = vrot.slane %v10055_v52, 9  ;;  %v16610_v43 = vld [vmem:[#allocation4 + $0x3c] sm:$0xff]   ;;  %v16613_v59 = vld [vmem:[#allocation4 + $0x54] sm:$0xff]  }
 0x4d0   : > { %15588 = vmatprep.subr.bf16.mxu1 %v16602_v36 }
 0x4d1   : > { %v10187_v26 = vrot.slane %v10185_v3, 4 }
 0x4d2   : > { %15557 = vmatmul.mubr.bf16.gmra.mrb[4].mxu1 %v14315_v60 }
 0x4d3   : > { %15560 = vmatprep.mubr.bf16.mxu1 %v14316_v62  ;;  %15589 = vmatpush3.bf16.msra.mxu1 %v16602_v36  ;;  %v10043_v36 = vld [vmem:[#allocation4 + $0x90] sm:$0xe]  ;;  %v10189_v60 = vsel %vm17220_vm7, %v10187_v26, %v10188_v0  ;;  %v10206_v62 = vrot.slane %v10053_v6, 5  ;;  %v16619_v0 = vld [vmem:[#allocation4 + $0x84] sm:$0xff]   ;;  %v11055_v6 = vld [vmem:[#allocation4 + $0x18] sm:$0xf] }
 0x4d4   : > { %15590 = vmatprep.subr.bf16.mxu1 %v16603_v50  ;;  %v14305_v29 = vrot.slane %v10043_v36, 9  ;;  %v16616_v26 = vld [vmem:[#allocation4 + $0x6c] sm:$0xff]   ;;  %v16618_v36 = vld [vmem:[#allocation4 + $0x78] sm:$0xff]   ;;  %v11104_v23 = vshrl.u32 %v11055_v6, 16 }
 0x4d5   : > { %v10208_v41 = vrot.slane %v10206_v62, 4 }
 0x4d6   : > { %v10186_v53 = vsel %vm17220_vm7, %v14305_v29, %v10185_v3  ;;  %v16609_v3 = vld [vmem:[#allocation4 + $0x30] sm:$0xff]   ;;  %v11117_v29 = vshrl.u32 %v11056_v20, 16  ;;  %v11106_v10 = vrot.slane %v11104_v23, 4 }
 0x4d7   : > { %15591 = vmatpush3.bf16.msra.mxu1 %v16603_v50  ;;  %v10196_v50 = vsel %vm17220_vm7, %v10194_v12, %v10195_v42  ;;  %v14321_v58 = vcombine.low %v10186_v53, %v10189_v60  ;;  %v18871_v12 = vld [vmem:[#allocation5 + $0x200] sm:$0xff]   ;;  %v11113_v42 = vshll.u32 %v11056_v20, 16  ;;  %v11058_v60 = vld [vmem:[#allocation4 + $0x24] sm:$0xf] }
 0x4d8   : > { %15592 = vmatprep.subr.bf16.mxu1 %v16604_v13  ;;  %v14322_v51 = vcombine.low %v10193_v24, %v10196_v50  ;;  %v11107_v50 = vshll.u32 %v11055_v6, 16  ;;  %v11119_v53 = vrot.slane %v11117_v29, 4  ;;  %v11131_v24 = vshll.u32 %v11058_v60, 16 }
 0x4da   : > { %15561 = vmatmul.mubr.bf16.gmra.mrb[8].mxu1 %v14317_v22  ;;  %v10210_v22 = vsel %vm17220_vm7, %v10208_v41, %v10209_v9  ;;  %v11062_v41 = vld [vmem:[#allocation4 + $0x34] sm:$0xf]  ;;  %v11109_v17 = vrot.slane %v11107_v50, 5  ;;  %v11133_v1 = vrot.slane %v11131_v24, 5 }
 0x4db   : > { %15564 = vmatprep.mubr.bf16.mxu1 %v14318_v37  ;;  %15593 = vmatpush3.bf16.msra.mxu1 %v16604_v13  ;;  %v10056_v13 = vld [vmem:[#allocation4 + $0xc4] sm:$0xf]  ;;  %v10057_v37 = vld [vmem:[#allocation4 + $0xc8] sm:$0x1] }
 0x4dc   : > { %15594 = vmatprep.subr.bf16.mxu1 %v16605_v21  ;;  %v10213_v19 = vrot.slane %v10056_v13, 5  ;;  %v10216_v57 = vrot.slane %v10057_v37, 5  ;;  %v16624_v13 = vld [vmem:[#allocation4 + $0xa8] sm:$0xff]   ;;  %v11123_v37 = vshll.u32 %v11057_v14, 16  ;;  %v11070_v14 = vld [vmem:[#allocation4 + $0x54] sm:$0xf] }
 0x4de   : > { %v10215_v4 = vrot.slane %v10213_v19, 4  ;;  %v10214_v38 = vsel %vm17220_vm7, %v14309_v27, %v10213_v19  ;;  %v18877_v19 = vrot.slane %v11137_v2, 5  ;;  %v11060_v27 = vld [vmem:[#allocation4 + $0x2c] sm:$0x1] }
 0x4df   : > { %15595 = vmatpush3.bf16.msra.mxu1 %v16605_v21  ;;  %v10207_v21 = vsel %vm17220_vm7, %v14308_v56, %v10206_v62  ;;  %v18874_v62 = vrot.slane %v11113_v42, 5 }
 0x4e0   : > { %15628 = vmatprep.subr.bf16.mxu1 %v18839_v48  ;;  %v14324_v25 = vcombine.low %v10207_v21, %v10210_v22  ;;  %v10217_v34 = vsel %vm17220_vm7, %v10215_v4, %v10216_v57  ;;  %v11152_v22 = vshrl.u32 %v11061_v45, 16  ;;  %v11165_v21 = vshrl.u32 %v11062_v41, 16  ;;  %v11065_v57 = vld [vmem:[#allocation4 + $0x40] sm:$0xf] }
 0x4e1   : > { %v14325_v44 = vcombine.low %v10214_v38, %v10217_v34  ;;  %v11120_v9 = vor.u32 %v11119_v53, %v18874_v62  ;;  %v11110_v4 = vor.u32 %v11109_v17, %v11106_v10 }
 0x4e2   : > { %15565 = vmatmul.mubr.bf16.gmra.mrb[12].mxu1 %v14319_v49  ;;  %v16620_v49 = vld [vmem:[#allocation5 + $0x1e0] sm:$0xff]  }
 0x4e3   : > { %15568 = vmatprep.mubr.bf16.mxu1 %v14320_v54  ;;  %v16615_v54 = vld [vmem:[#allocation4 + $0x60] sm:$0xff]   ;;  %v11121_v52 = vrot.slane %v11120_v9, 4 }
 0x4ea   : > { %15569 = vmatmul.mubr.bf16.gmra.mrb[16].mxu1 %v14321_v58  ;;  %v11128_v58 = vshrl.u32 %v11058_v60, 16 }
 0x4eb   : > { %15572 = vmatprep.mubr.bf16.mxu1 %v14322_v51  ;;  %v11141_v51 = vshrl.u32 %v11059_v7, 16  ;;  %v11066_v7 = vld [vmem:[#allocation4 + $0x44] sm:$0x1] }
 0x4ec   : > { %v11130_v63 = vrot.slane %v11128_v58, 4 }
 0x4ed   : > { %v11143_v56 = vrot.slane %v11141_v51, 4 }
 0x4ee   : > { %v11134_v34 = vor.u32 %v11133_v1, %v11130_v63  ;;  %v11195_v1 = vshll.u32 %v11066_v7, 16 }
 0x4ef   : > { %v11144_v38 = vor.u32 %v11143_v56, %v18877_v19  ;;  %v11071_v56 = vld [vmem:[#allocation4 + $0x58] sm:$0xf] }
 0x4f1   : > { %v11145_v20 = vrot.slane %v11144_v38, 4 }
 0x4f2   : > { %15573 = vmatmul.mubr.bf16.gmra.mrb[20].mxu1 %v14323_v15  ;;  %v11161_v15 = vshll.u32 %v11062_v41, 16 }
 0x4f3   : > { %15576 = vmatprep.mubr.bf16.mxu1 %v14324_v25  ;;  %v11064_v25 = vld [vmem:[#allocation4 + $0x3c] sm:$0xf] }
 0x4fa   : > { %15577 = vmatmul.mubr.bf16.gmra.mrb[24].mxu1 %v14325_v44  ;;  %v11154_v44 = vrot.slane %v11152_v22, 4 }
 0x4fb   : > { %15596 = vmatprep.mubr.bf16.mxu1 %v16606_v46  ;;  %v11157_v46 = vrot.slane %v11155_v18, 5 }
 0x4fd   : > { %v11158_v6 = vor.u32 %v11157_v46, %v11154_v44  ;;  %v11073_v46 = vld [vmem:[#allocation4 + $0x60] sm:$0xf] }
 0x4ff   : > { %v11159_v9 = vrot.slane %v11158_v6, 4  ;;  %v11076_v6 = vld [vmem:[#allocation4 + $0x6c] sm:$0xf] }
 0x502   : > { %15597 = vmatmul.mubr.bf16.vlgmr.msra.gmra.mrb[28].mxu1 %v16607_v47  ;;  %v11063_v47 = vld [vmem:[#allocation4 + $0x38] sm:$0x1] }
 0x503   : > { %15600 = vmatprep.mubr.bf16.mxu1 %v16609_v3  ;;  %15629 = vmatpush3.bf16.msra.mxu1 %v18839_v48  ;;  %v16626_v48 = vld [vmem:[#allocation5 + $0x1f0] sm:$0xff]   ;;  %v11167_v3 = vrot.slane %v11165_v21, 4  ;;  %v11074_v21 = vld [vmem:[#allocation4 + $0x64] sm:$0xf] }
 0x504   : > { %15630 = vmatprep.subr.bf16.mxu1 %v16611_v33 }
 0x507   : > { %15631 = vmatpush3.bf16.msra.mxu1 %v16611_v33  ;;  %v18880_v33 = vrot.slane %v11161_v15, 5 }
 0x508   : > { %15632 = vmatprep.subr.bf16.mxu1 %v16614_v32 }
 0x509   : > { %v11168_v42 = vor.u32 %v11167_v3, %v18880_v33  ;;  %v11164_v38 = vsel %vm16964_vm4, %v11159_v9, %v18880_v33  ;;  %v11261_v3 = vshrl.u32 %v11074_v21, 16 }
 0x50a   : > { %15601 = vmatmul.mubr.bf16.gmra.mrb[0].mxu1 %v16610_v43  ;;  %v11179_v43 = vshll.u32 %v11064_v25, 16 }
 0x50b   : > { %15604 = vmatprep.mubr.bf16.mxu1 %v16612_v61  ;;  %15633 = vmatpush3.bf16.msra.mxu1 %v16614_v32  ;;  %v11176_v32 = vshrl.u32 %v11064_v25, 16  ;;  %v11125_v61 = vrot.slane %v11123_v37, 5  ;;  %v11169_v63 = vrot.slane %v11168_v42, 4  ;;  %v11069_v37 = vld [vmem:[#allocation4 + $0x50] sm:$0x1] }
 0x50c   : > { %15634 = vmatprep.subr.bf16.mxu1 %v16617_v30  ;;  %v11181_v60 = vrot.slane %v11179_v43, 5  ;;  %v11197_v43 = vrot.slane %v11195_v1, 5 }
 0x50d   : > { %v11178_v29 = vrot.slane %v11176_v32, 4 }
 0x50f   : > { %15635 = vmatpush3.bf16.msra.mxu1 %v16617_v30  ;;  %v16625_v30 = vld [vmem:[#allocation4 + $0xb4] sm:$0xff]   ;;  %v11182_v22 = vor.u32 %v11181_v60, %v11178_v29 }
 0x510   : > { %15636 = vmatprep.subr.bf16.mxu1 %v16620_v49 }
 0x511   : > { %v11183_v32 = vrot.slane %v11182_v22, 4 }
 0x512   : > { %15605 = vmatmul.mubr.bf16.gmra.mrb[4].mxu1 %v16613_v59  ;;  %v11189_v59 = vshrl.u32 %v11065_v57, 16 }
 0x513   : > { %15608 = vmatprep.mubr.bf16.mxu1 %v16615_v54  ;;  %15637 = vmatpush3.bf16.msra.mxu1 %v16620_v49  ;;  %v11185_v49 = vshll.u32 %v11065_v57, 16  ;;  %v11111_v54 = vrot.slane %v11110_v4, 4 }
 0x514   : > { %15638 = vmatprep.subr.bf16.mxu1 %v16623_v35  ;;  %v11191_v50 = vrot.slane %v11189_v59, 4 }
 0x515   : > { %v18885_v23 = vrot.slane %v11185_v49, 5  ;;  %v11116_v24 = vsel %vm16964_vm4, %v11111_v54, %v18874_v62  ;;  %v11077_v49 = vld [vmem:[#allocation4 + $0x70] sm:$0xf] }
 0x516   : > { %v11281_v42 = vshll.u32 %v11077_v49, 16  ;;  %v11285_v29 = vshrl.u32 %v11077_v49, 16 }
 0x517   : > { %15639 = vmatpush3.bf16.msra.mxu1 %v16623_v35  ;;  %v16627_v35 = vld [vmem:[#allocation4 + $0xc0] sm:$0xff]   ;;  %v11192_v62 = vor.u32 %v11191_v50, %v18885_v23  ;;  %v11188_v7 = vsel %vm16964_vm4, %v11183_v32, %v18885_v23 }
 0x518   : > { %15640 = vmatprep.subr.bf16.mxu1 %v16626_v48  ;;  %v16631_v50 = vld [vmem:[#allocation5 + $0x208] sm:$0xff]   ;;  %v11287_v1 = vrot.slane %v11285_v29, 4 }
 0x519   : > { %v11193_v59 = vrot.slane %v11192_v62, 4 }
 0x51a   : > { %15609 = vmatmul.mubr.bf16.gmra.mrb[8].mxu1 %v16616_v26  ;;  %v11067_v26 = vld [vmem:[#allocation4 + $0x48] sm:$0xf] }
 0x51b   : > { %15612 = vmatprep.mubr.bf16.mxu1 %v16618_v36  ;;  %15641 = vmatpush3.bf16.msra.mxu1 %v16626_v48  ;;  %v11147_v48 = vshll.u32 %v11060_v27, 16  ;;  %v11135_v36 = vrot.slane %v11134_v34, 4  ;;  %v11200_v53 = vshrl.u32 %v11067_v26, 16  ;;  %v11203_v58 = vshll.u32 %v11067_v26, 16  ;;  %v11072_v26 = vld [vmem:[#allocation4 + $0x5c] sm:$0x1] }
 0x51c   : > { %15642 = vmatprep.subr.bf16.mxu1 %v16629_v55  ;;  %v11233_v27 = vshll.u32 %v11071_v56, 16  ;;  %v11237_v34 = vshrl.u32 %v11071_v56, 16  ;;  %v11080_v56 = vld [vmem:[#allocation4 + $0x7c] sm:$0xf] }
 0x51d   : > { %v11149_v2 = vrot.slane %v11147_v48, 5  ;;  %v11140_v41 = vsel %vm16964_vm4, %v11135_v36, %v18877_v19  ;;  %v11202_v18 = vrot.slane %v11200_v53, 4  ;;  %v11205_v15 = vrot.slane %v11203_v58, 5 }
 0x51e   : > { %v11224_v19 = vshrl.u32 %v11070_v14, 16  ;;  %v11239_v33 = vrot.slane %v11237_v34, 4  ;;  %v11248_v36 = vshrl.u32 %v11073_v46, 16  ;;  %v11305_v34 = vshll.u32 %v11080_v56, 16 }
 0x51f   : > { %15643 = vmatpush3.bf16.msra.mxu1 %v16629_v55  ;;  %v11126_v55 = vsel %vm16964_vm4, %v11121_v52, %v11125_v61  ;;  %v11150_v17 = vsel %vm16964_vm4, %v11145_v20, %v11149_v2  ;;  %v11227_v52 = vshll.u32 %v11070_v14, 16  ;;  %v11219_v61 = vshll.u32 %v11069_v37, 16 }
 0x520   : > { %15676 = vmatprep.subr.bf16.mxu1 %v18871_v12  ;;  %v14358_v10 = vcombine.low %v11116_v24, %v11126_v55  ;;  %v14359_v57 = vcombine.low %v11140_v41, %v11150_v17  ;;  %v11226_v54 = vrot.slane %v11224_v19, 4  ;;  %v18904_v55 = vrot.slane %v11233_v27, 5  ;;  %v11075_v41 = vld [vmem:[#allocation4 + $0x68] sm:$0x1] }
 0x521   : > { %v11229_v48 = vrot.slane %v11227_v52, 5  ;;  %v11251_v20 = vshll.u32 %v11073_v46, 16  ;;  %v11221_v58 = vrot.slane %v11219_v61, 5  ;;  %v11198_v24 = vsel %vm16964_vm4, %v11193_v59, %v11197_v43  ;;  %v11082_v52 = vld [vmem:[#allocation4 + $0x84] sm:$0xf]  ;;  %v16633_v43 = vld [vmem:[#allocation5 + $0x218] sm:$0xff]  }
 0x522   : > { %15613 = vmatmul.mubr.bf16.gmra.mrb[12].mxu1 %v16619_v0  ;;  %v11171_v0 = vshll.u32 %v11063_v47, 16  ;;  %v11257_v47 = vshll.u32 %v11074_v21, 16  ;;  %v11272_v14 = vshrl.u32 %v11076_v6, 16  ;;  %v11275_v17 = vshll.u32 %v11076_v6, 16  ;;  %v11086_v6 = vld [vmem:[#allocation4 + $0x94] sm:$0xf] }
 0x523   : > { %15616 = vmatprep.mubr.bf16.mxu1 %v16621_v5  ;;  %v11068_v5 = vld [vmem:[#allocation4 + $0x4c] sm:$0xf]  ;;  %v11253_v23 = vrot.slane %v11251_v20, 5  ;;  %v14361_v22 = vcombine.low %v11188_v7, %v11198_v24  ;;  %v11267_v19 = vshll.u32 %v11075_v41, 16  ;;  %v11320_v49 = vshrl.u32 %v11082_v52, 16  ;;  %v16634_v24 = vld [vmem:[#allocation5 + $0x220] sm:$0xff]  }
 0x524   : > { %v11209_v51 = vshll.u32 %v11068_v5, 16  ;;  %v11213_v45 = vshrl.u32 %v11068_v5, 16  ;;  %v11263_v5 = vrot.slane %v11261_v3, 4  ;;  %v11277_v27 = vrot.slane %v11275_v17, 5 }
 0x525   : > { %v11323_v59 = vshll.u32 %v11082_v52, 16  ;;  %v18924_v20 = vrot.slane %v11305_v34, 5  ;;  %v11357_v41 = vshrl.u32 %v11086_v6, 16 }
 0x526   : > { %v18896_v25 = vrot.slane %v11209_v51, 5  ;;  %v11215_v4 = vrot.slane %v11213_v45, 4  ;;  %v11230_v51 = vor.u32 %v11229_v48, %v11226_v54  ;;  %v11243_v45 = vshll.u32 %v11072_v26, 16 }
 0x527   : > { %v11269_v54 = vrot.slane %v11267_v19, 5 }
 0x52a   : > { %15617 = vmatmul.mubr.bf16.gmra.mrb[16].mxu1 %v16622_v8  ;;  %v16628_v8 = vld [vmem:[#allocation4 + $0xcc] sm:$0xff]  }
 0x52b   : > { %15620 = vmatprep.mubr.bf16.mxu1 %v16624_v13  ;;  %v11173_v13 = vrot.slane %v11171_v0, 5  ;;  %v18906_v0 = vrot.slane %v11257_v47, 5 }
 0x52d   : > { %v11174_v44 = vsel %vm16964_vm4, %v11169_v63, %v11173_v13  ;;  %v11250_v13 = vrot.slane %v11248_v36, 4  ;;  %v11264_v9 = vor.u32 %v11263_v5, %v18906_v0  ;;  %v18916_v63 = vrot.slane %v11281_v42, 5 }
 0x52e   : > { %v14360_v60 = vcombine.low %v11164_v38, %v11174_v44  ;;  %v11309_v38 = vshrl.u32 %v11080_v56, 16  ;;  %v11083_v44 = vld [vmem:[#allocation4 + $0x88] sm:$0xf]  ;;  %v11084_v56 = vld [vmem:[#allocation4 + $0x8c] sm:$0x1] }
 0x52f   : > { %v11254_v47 = vor.u32 %v11253_v23, %v11250_v13  ;;  %v11265_v3 = vrot.slane %v11264_v9, 4  ;;  %v11288_v32 = vor.u32 %v11287_v1, %v18916_v63  ;;  %v11329_v48 = vshll.u32 %v11083_v44, 16 }
 0x530   : > { %v11333_v26 = vshrl.u32 %v11083_v44, 16  ;;  %v11311_v5 = vrot.slane %v11309_v38, 4  ;;  %v11339_v38 = vshll.u32 %v11084_v56, 16 }
 0x531   : > { %v11255_v29 = vrot.slane %v11254_v47, 4  ;;  %v11289_v7 = vrot.slane %v11288_v32, 4 }
 0x532   : > { %15621 = vmatmul.mubr.bf16.gmra.mrb[20].mxu1 %v16625_v30  ;;  %v11206_v30 = vor.u32 %v11205_v15, %v11202_v18  ;;  %v16632_v18 = vld [vmem:[#allocation5 + $0x210] sm:$0xff]   ;;  %v11312_v23 = vor.u32 %v11311_v5, %v18924_v20 }
 0x533   : > { %15624 = vmatprep.mubr.bf16.mxu1 %v16627_v35  ;;  %v11216_v35 = vor.u32 %v11215_v4, %v18896_v25  ;;  %v11245_v4 = vrot.slane %v11243_v45, 5  ;;  %v18930_v45 = vrot.slane %v11329_v48, 5  ;;  %v11260_v1 = vsel %vm16964_vm4, %v11255_v29, %v18906_v0  ;;  %v11089_v0 = vld [vmem:[#allocation4 + $0xa0] sm:$0xf] }
 0x534   : > { %v11207_v53 = vrot.slane %v11206_v30, 4  ;;  %v11313_v34 = vrot.slane %v11312_v23, 4  ;;  %v11095_v23 = vld [vmem:[#allocation4 + $0xb8] sm:$0xf] }
 0x535   : > { %v11217_v2 = vrot.slane %v11216_v35, 4 }
 0x536   : > { %v11212_v62 = vsel %vm16964_vm4, %v11207_v53, %v18896_v25  ;;  %v11078_v25 = vld [vmem:[#allocation4 + $0x74] sm:$0x1]  ;;  %v11322_v53 = vrot.slane %v11320_v49, 4  ;;  %v11381_v49 = vshrl.u32 %v11089_v0, 16 }
 0x537   : > { %v11222_v37 = vsel %vm16964_vm4, %v11217_v2, %v11221_v58  ;;  %v11291_v36 = vshll.u32 %v11078_v25, 16  ;;  %v11325_v58 = vrot.slane %v11323_v59, 5  ;;  %v11085_v2 = vld [vmem:[#allocation4 + $0x90] sm:$0xf]  ;;  %v11092_v25 = vld [vmem:[#allocation4 + $0xac] sm:$0xf] }
 0x538   : > { %v14362_v35 = vcombine.low %v11212_v62, %v11222_v37  ;;  %v11347_v62 = vshll.u32 %v11085_v2, 16  ;;  %v16636_v59 = vld [vmem:[#allocation5 + $0x230] sm:$0xff]   ;;  %v11401_v5 = vshll.u32 %v11092_v25, 16 }
 0x539   : > { %v11293_v17 = vrot.slane %v11291_v36, 5  ;;  %v11341_v36 = vrot.slane %v11339_v38, 5 }
 0x53a   : > { %15625 = vmatmul.mubr.bf16.gmra.mrb[24].mxu1 %v16628_v8  ;;  %v11079_v8 = vld [vmem:[#allocation4 + $0x78] sm:$0xf] }
 0x53b   : > { %15644 = vmatprep.mubr.bf16.mxu1 %v14358_v10  ;;  %v11240_v10 = vor.u32 %v11239_v33, %v18904_v55  ;;  %v11296_v15 = vshrl.u32 %v11079_v8, 16  ;;  %v11299_v21 = vshll.u32 %v11079_v8, 16  ;;  %v11335_v8 = vrot.slane %v11333_v26, 4  ;;  %v11091_v26 = vld [vmem:[#allocation4 + $0xa8] sm:$0xf] }
 0x53d   : > { %v11241_v46 = vrot.slane %v11240_v10, 4  ;;  %v11298_v30 = vrot.slane %v11296_v15, 4  ;;  %v11301_v61 = vrot.slane %v11299_v21, 5  ;;  %v11353_v10 = vshll.u32 %v11086_v6, 16 }
 0x53e   : > { %v11294_v15 = vsel %vm16964_vm4, %v11289_v7, %v11293_v17  ;;  %v11336_v19 = vor.u32 %v11335_v8, %v18930_v45  ;;  %v11405_v6 = vshrl.u32 %v11092_v25, 16  ;;  %v11094_v17 = vld [vmem:[#allocation4 + $0xb4] sm:$0xf] }
 0x53f   : > { %v11246_v42 = vsel %vm16964_vm4, %v11241_v46, %v11245_v4  ;;  %v11326_v4 = vor.u32 %v11325_v58, %v11322_v53  ;;  %v18942_v52 = vrot.slane %v11353_v10, 5  ;;  %v11349_v46 = vrot.slane %v11347_v62, 5  ;;  %v11098_v62 = vld [vmem:[#allocation4 + $0xc4] sm:$0xf] }
 0x540   : > { %v11392_v58 = vshrl.u32 %v11091_v26, 16  ;;  %v11449_v38 = vshll.u32 %v11098_v62, 16 }
 0x542   : > { %15645 = vmatmul.mubr.bf16.vlgmr.msra.gmra.mrb[28].mxu1 %v14359_v57  ;;  %v11274_v57 = vrot.slane %v11272_v14, 4 }
 0x543   : > { %15648 = vmatprep.mubr.bf16.mxu1 %v14360_v60  ;;  %15677 = vmatpush3.bf16.msra.mxu1 %v18871_v12  ;;  %v11231_v12 = vrot.slane %v11230_v51, 4  ;;  %v11270_v60 = vsel %vm16964_vm4, %v11265_v3, %v11269_v54  ;;  %v11081_v51 = vld [vmem:[#allocation4 + $0x80] sm:$0x1]  ;;  %v11337_v54 = vrot.slane %v11336_v19, 4  ;;  %v11425_v19 = vshll.u32 %v11095_v23, 16 }
 0x544   : > { %15678 = vmatprep.subr.bf16.mxu1 %v16631_v50  ;;  %v11278_v33 = vor.u32 %v11277_v27, %v11274_v57  ;;  %v11315_v37 = vshll.u32 %v11081_v51, 16  ;;  %v11359_v57 = vrot.slane %v11357_v41, 4 }
 0x545   : > { %v11236_v13 = vsel %vm16964_vm4, %v11231_v12, %v18904_v55  ;;  %v11088_v55 = vld [vmem:[#allocation4 + $0x9c] sm:$0xf]  ;;  %v16635_v12 = vld [vmem:[#allocation5 + $0x228] sm:$0xff]   ;;  %v11342_v8 = vsel %vm16964_vm4, %v11337_v54, %v11341_v36  ;;  %v11427_v54 = vrot.slane %v11425_v19, 5 }
 0x546   : > { %v11279_v14 = vrot.slane %v11278_v33, 4  ;;  %v14363_v9 = vcombine.low %v11236_v13, %v11246_v42  ;;  %v11368_v47 = vshrl.u32 %v11088_v55, 16  ;;  %v11371_v3 = vshll.u32 %v11088_v55, 16 }
 0x547   : > { %15679 = vmatpush3.bf16.msra.mxu1 %v16631_v50  ;;  %v11302_v50 = vor.u32 %v11301_v61, %v11298_v30  ;;  %v11087_v30 = vld [vmem:[#allocation4 + $0x98] sm:$0x1]  ;;  %v11377_v61 = vshll.u32 %v11089_v0, 16  ;;  %v11360_v48 = vor.u32 %v11359_v57, %v18942_v52  ;;  %v18960_v13 = vrot.slane %v11401_v5, 5  ;;  %v18968_v0 = vld [vmem:[%s19424_s3] sm:$0x3] }
 0x548   : > { %15680 = vmatprep.subr.bf16.mxu1 %v16632_v18  ;;  %v11284_v27 = vsel %vm16964_vm4, %v11279_v14, %v18916_v63  ;;  %v11363_v29 = vshll.u32 %v11087_v30, 16  ;;  %v11370_v7 = vrot.slane %v11368_v47, 4  ;;  %v11407_v14 = vrot.slane %v11405_v6, 4  ;;  %v11096_v5 = vld [vmem:[#allocation4 + $0xbc] sm:$0x1] }
 0x549   : > { %v11303_v21 = vrot.slane %v11302_v50, 4  ;;  %v14365_v32 = vcombine.low %v11284_v27, %v11294_v15  ;;  %v11373_v50 = vrot.slane %v11371_v3, 5  ;;  %v18953_v53 = vrot.slane %v11377_v61, 5 }
 0x54a   : > { %15649 = vmatmul.mubr.bf16.gmra.mrb[0].mxu1 %v14361_v22  ;;  %v11344_v22 = vshrl.u32 %v11085_v2, 16  ;;  %v16637_v2 = vld [vmem:[#allocation5 + $0x238] sm:$0xff]   ;;  %v11361_v10 = vrot.slane %v11360_v48, 4  ;;  %v11429_v57 = vshrl.u32 %v11095_v23, 16  ;;  %v11408_v27 = vor.u32 %v11407_v14, %v18960_v13 }
 0x54b   : > { %15652 = vmatprep.mubr.bf16.mxu1 %v14362_v35  ;;  %15681 = vmatpush3.bf16.msra.mxu1 %v16632_v18  ;;  %v14364_v18 = vcombine.low %v11260_v1, %v11270_v60  ;;  %v11308_v63 = vsel %vm16964_vm4, %v11303_v21, %v18924_v20  ;;  %v11327_v35 = vrot.slane %v11326_v4, 4  ;;  %v11090_v60 = vld [vmem:[#allocation4 + $0xa4] sm:$0x1]  ;;  %v11383_v20 = vrot.slane %v11381_v49, 4  ;;  %v11093_v21 = vld [vmem:[#allocation4 + $0xb0] sm:$0x1] }
 0x54c   : > { %15682 = vmatprep.subr.bf16.mxu1 %v16633_v43  ;;  %v11346_v44 = vrot.slane %v11344_v22, 4  ;;  %v11365_v1 = vrot.slane %v11363_v29, 5  ;;  %v11374_v56 = vor.u32 %v11373_v50, %v11370_v7  ;;  %v11387_v22 = vshll.u32 %v11090_v60, 16  ;;  %v11100_v49 = vld [vmem:[#allocation4 + $0xcc] sm:$0xf] }
 0x54d   : > { %v11332_v41 = vsel %vm16964_vm4, %v11327_v35, %v18930_v45  ;;  %v11384_v15 = vor.u32 %v11383_v20, %v18953_v53  ;;  %v11416_v4 = vshrl.u32 %v11094_v17, 16  ;;  %v11411_v25 = vshll.u32 %v11093_v21, 16 }
 0x54e   : > { %v11350_v42 = vor.u32 %v11349_v46, %v11346_v44  ;;  %v11366_v45 = vsel %vm16964_vm4, %v11361_v10, %v11365_v1  ;;  %v11453_v44 = vshrl.u32 %v11098_v62, 16  ;;  %v11375_v47 = vrot.slane %v11374_v56, 4 }
 0x54f   : > { %15683 = vmatpush3.bf16.msra.mxu1 %v16633_v43  ;;  %v11317_v43 = vrot.slane %v11315_v37, 5  ;;  %v11394_v37 = vrot.slane %v11392_v58, 4  ;;  %v11389_v3 = vrot.slane %v11387_v22, 5  ;;  %v11418_v35 = vrot.slane %v11416_v4, 4 }
 0x550   : > { %15684 = vmatprep.subr.bf16.mxu1 %v16634_v24  ;;  %v11431_v48 = vrot.slane %v11429_v57, 4  ;;  %v11455_v36 = vrot.slane %v11453_v44, 4  ;;  %v11464_v6 = vshrl.u32 %v11100_v49, 16  ;;  %v11413_v50 = vrot.slane %v11411_v25, 5 }
 0x551   : > { %v11318_v33 = vsel %vm16964_vm4, %v11313_v34, %v11317_v43  ;;  %v11419_v34 = vshll.u32 %v11094_v17, 16  ;;  %v11435_v14 = vshll.u32 %v11096_v5, 16 }
 0x552   : > { %15653 = vmatmul.mubr.bf16.gmra.mrb[4].mxu1 %v14363_v9  ;;  %v14366_v51 = vcombine.low %v11308_v63, %v11318_v33  ;;  %v11351_v9 = vrot.slane %v11350_v42, 4  ;;  %v11385_v63 = vrot.slane %v11384_v15, 4  ;;  %v11451_v33 = vrot.slane %v11449_v38, 5  ;;  %v11102_v15 = vld [vmem:[#allocation4 + $0xd4] sm:$0x1] }
 0x553   : > { %15656 = vmatprep.mubr.bf16.mxu1 %v14364_v18  ;;  %15685 = vmatpush3.bf16.msra.mxu1 %v16634_v24  ;;  %v11395_v24 = vshll.u32 %v11091_v26, 16  ;;  %v14367_v18 = vcombine.low %v11332_v41, %v11342_v8  ;;  %v11409_v26 = vrot.slane %v11408_v27, 4  ;;  %v11467_v42 = vshll.u32 %v11100_v49, 16  ;;  %v11099_v8 = vld [vmem:[#allocation4 + $0xc8] sm:$0x1] }
 0x554   : > { %15686 = vmatprep.subr.bf16.mxu1 %v16635_v12  ;;  %v11356_v46 = vsel %vm16964_vm4, %v11351_v9, %v18942_v52  ;;  %v11421_v52 = vrot.slane %v11419_v34, 5  ;;  %v11456_v17 = vor.u32 %v11455_v36, %v11451_v33  ;;  %v11466_v23 = vrot.slane %v11464_v6, 4  ;;  %v11874_v27 = vld [vmem:[#allocation4 + $0x1c] sm:$0xf]  ;;  %v11875_v49 = vld [vmem:[#allocation4 + $0x20] sm:$0x1] }
 0x555   : > { %v11397_v55 = vrot.slane %v11395_v24, 5  ;;  %v11380_v24 = vsel %vm16964_vm4, %v11375_v47, %v18953_v53  ;;  %v11414_v10 = vsel %vm16964_vm4, %v11409_v26, %v11413_v50  ;;  %v11469_v9 = vrot.slane %v11467_v42, 5  ;;  %v11880_v26 = vld [vmem:[#allocation4 + $0x34] sm:$0xf] }
 0x556   : > { %v11422_v41 = vor.u32 %v11421_v52, %v11418_v35  ;;  %v11483_v57 = vshll.u32 %v11102_v15, 16  ;;  %v11974_v52 = vrot.slane %v11875_v49, 5  ;;  %v11985_v42 = vrot.slane %v11880_v26, 5  ;;  %v11884_v15 = vld [vmem:[#allocation4 + $0x44] sm:$0x1] }
 0x557   : > { %15687 = vmatpush3.bf16.msra.mxu1 %v16635_v12  ;;  %v11097_v12 = vld [vmem:[#allocation4 + $0xc0] sm:$0xf]  ;;  %v11398_v43 = vor.u32 %v11397_v55, %v11394_v37  ;;  %v11437_v55 = vrot.slane %v11435_v14, 5  ;;  %v11470_v4 = vor.u32 %v11469_v9, %v11466_v23  ;;  %v11893_v49 = vld [vmem:[#allocation4 + $0x68] sm:$0x1] }
 0x558   : > { %15688 = vmatprep.subr.bf16.mxu1 %v16636_v59  ;;  %v11440_v30 = vshrl.u32 %v11097_v12, 16  ;;  %v11443_v61 = vshll.u32 %v11097_v12, 16  ;;  %v11457_v12 = vrot.slane %v11456_v17, 4  ;;  %v11898_v26 = vld [vmem:[#allocation4 + $0x7c] sm:$0xf] }
 0x559   : > { %v11399_v7 = vrot.slane %v11398_v43, 4 }
 0x55a   : > { %15657 = vmatmul.mubr.bf16.gmra.mrb[8].mxu1 %v14365_v32  ;;  %v14368_v32 = vcombine.low %v11356_v46, %v11366_v45  ;;  %v11442_v20 = vrot.slane %v11440_v30, 4  ;;  %v11445_v58 = vrot.slane %v11443_v61, 5  ;;  %v11423_v45 = vrot.slane %v11422_v41, 4 }
 0x55b   : > { %15660 = vmatprep.mubr.bf16.mxu1 %v14366_v51  ;;  %15689 = vmatpush3.bf16.msra.mxu1 %v16636_v59  ;;  %v11101_v59 = vld [vmem:[#allocation4 + $0xd0] sm:$0xf]  ;;  %v11432_v51 = vor.u32 %v11431_v48, %v11427_v54  ;;  %v11404_v53 = vsel %vm16964_vm4, %v11399_v7, %v18960_v13  ;;  %v11971_v46 = vrot.slane %v11874_v27, 5  ;;  %v11892_v27 = vld [vmem:[#allocation4 + $0x64] sm:$0xf] }
 0x55c   : > { %15690 = vmatprep.subr.bf16.mxu1 %v16637_v2  ;;  %v11473_v29 = vshll.u32 %v11101_v59, 16  ;;  %v11477_v60 = vshrl.u32 %v11101_v59, 16  ;;  %v11446_v62 = vor.u32 %v11445_v58, %v11442_v20  ;;  %v14370_v21 = vcombine.low %v11404_v53, %v11414_v10  ;;  %v11881_v20 = vld [vmem:[#allocation4 + $0x38] sm:$0x1]  ;;  %v11876_v58 = vld [vmem:[#allocation4 + $0x24] sm:$0xe] }
 0x55d   : > { %v11433_v37 = vrot.slane %v11432_v51, 4  ;;  %v11428_v47 = vsel %vm16964_vm4, %v11423_v45, %v11427_v54  ;;  %v11973_v59 = vrot.slane %v11971_v46, 4  ;;  %v11873_v54 = vld [vmem:[#allocation4 + $0x18] sm:$0xe]  ;;  %v11886_v10 = vld [vmem:[#allocation4 + $0x4c] sm:$0xf] }
 0x55e   : > { %v11475_v1 = vrot.slane %v11473_v29, 5  ;;  %v11479_v56 = vrot.slane %v11477_v60, 4  ;;  %v11447_v34 = vrot.slane %v11446_v62, 4  ;;  %v14382_v6 = vrot.slane %v11873_v54, 9  ;;  %v11878_v60 = vld [vmem:[#allocation4 + $0x2c] sm:$0x1] }
 0x55f   : > { %15691 = vmatpush3.bf16.msra.mxu1 %v16637_v2  ;;  %v11390_v2 = vsel %vm16964_vm4, %v11385_v63, %v11389_v3  ;;  %v11438_v44 = vsel %vm16964_vm4, %v11433_v37, %v11437_v55  ;;  %v11471_v3 = vrot.slane %v11470_v4, 4  ;;  %v11877_v63 = vld [vmem:[#allocation4 + $0x28] sm:$0xf]  ;;  %v11981_v51 = vrot.slane %v11878_v60, 5  ;;  %v11887_v55 = vld [vmem:[#allocation4 + $0x50] sm:$0x1] }
 0x560   : > { %16391 = vmatprep.subr.msk.bf16.mxu1 %vm449_vm0, %v18968_v0  ;;  %v14369_v22 = vcombine.low %v11380_v24, %v11390_v2  ;;  %v11480_v19 = vor.u32 %v11479_v56, %v11475_v1  ;;  %v14371_v43 = vcombine.low %v11428_v47, %v11438_v44  ;;  %v11452_v30 = vsel %vm16964_vm4, %v11447_v34, %v11451_v33  ;;  %v11883_v2 = vld [vmem:[#allocation4 + $0x40] sm:$0xf]  ;;  %v11889_v4 = vld [vmem:[#allocation4 + $0x58] sm:$0xf] }
 0x561   : > { %v11476_v35 = vsel %vm16964_vm4, %v11471_v3, %v11475_v1  ;;  %v11978_v36 = vrot.slane %v11877_v63, 5  ;;  %v11975_v33 = vsel %vm17220_vm7, %v11973_v59, %v11974_v52  ;;  %v11972_v29 = vsel %vm17220_vm7, %v14382_v6, %v11971_v46  ;;  %v11895_v59 = vld [vmem:[#allocation4 + $0x70] sm:$0xf]  ;;  %v11888_v63 = vld [vmem:[#allocation4 + $0x54] sm:$0xe] }
 0x562   : > { %15661 = vmatmul.mubr.bf16.gmra.mrb[12].mxu1 %v14367_v18  ;;  %v11459_v18 = vshll.u32 %v11099_v8, 16  ;;  %v11481_v25 = vrot.slane %v11480_v19, 4  ;;  %v14398_v7 = vcombine.low %v11972_v29, %v11975_v33  ;;  %v11987_v24 = vrot.slane %v11985_v42, 4  ;;  %v11879_v8 = vld [vmem:[#allocation4 + $0x30] sm:$0xe] }
 0x563   : > { %15664 = vmatprep.mubr.bf16.mxu1 %v14368_v32  ;;  %v11485_v32 = vrot.slane %v11483_v57, 5  ;;  %v11980_v50 = vrot.slane %v11978_v36, 4  ;;  %v11988_v41 = vrot.slane %v11881_v20, 5  ;;  %v14383_v14 = vrot.slane %v11876_v58, 9  ;;  %v11885_v57 = vld [vmem:[#allocation4 + $0x48] sm:$0xe] }
 0x564   : > { %v11461_v38 = vrot.slane %v11459_v18, 5  ;;  %v11992_v23 = vrot.slane %v11883_v2, 5  ;;  %v14384_v9 = vrot.slane %v11879_v8, 9  ;;  %v11999_v56 = vrot.slane %v11886_v10, 5  ;;  %v11891_v54 = vld [vmem:[#allocation4 + $0x60] sm:$0xe] }
 0x565   : > { %v11486_v48 = vsel %vm16964_vm4, %v11481_v25, %v11485_v32  ;;  %v11982_v17 = vsel %vm17220_vm7, %v11980_v50, %v11981_v51  ;;  %v11989_v1 = vsel %vm17220_vm7, %v11987_v24, %v11988_v41  ;;  %v12997_v18 = vsel %vm449_vm0, %v18968_v0, 0  ;;  %v11901_v24 = vld [vmem:[#allocation4 + $0x88] sm:$0xf]  ;;  %v11894_v51 = vld [vmem:[#allocation4 + $0x6c] sm:$0xe] }
 0x566   : > { %v11462_v13 = vsel %vm16964_vm4, %v11457_v12, %v11461_v38  ;;  %v14373_v5 = vcombine.low %v11476_v35, %v11486_v48  ;;  %v11986_v62 = vsel %vm17220_vm7, %v14384_v9, %v11985_v42  ;;  %v11994_v37 = vrot.slane %v11992_v23, 4  ;;  %v11882_v12 = vld [vmem:[#allocation4 + $0x3c] sm:$0xe]  ;;  %v11899_v8 = vld [vmem:[#allocation4 + $0x80] sm:$0x1] }
 0x567   : > { %v14372_v61 = vcombine.low %v11452_v30, %v11462_v13  ;;  %v12001_v45 = vrot.slane %v11999_v56, 4  ;;  %v11995_v19 = vrot.slane %v11884_v15, 5  ;;  %v12002_v34 = vrot.slane %v11887_v55, 5  ;;  %v11904_v10 = vld [vmem:[#allocation4 + $0x94] sm:$0xf] }
 0x568   : > { %v14385_v38 = vrot.slane %v11882_v12, 9  ;;  %v12006_v13 = vrot.slane %v11889_v4, 5  ;;  %v14386_v0 = vrot.slane %v11885_v57, 9  ;;  %v12013_v47 = vrot.slane %v11892_v27, 5  ;;  %v11900_v55 = vld [vmem:[#allocation4 + $0x84] sm:$0xe] }
 0x569   : > { %v11996_v44 = vsel %vm17220_vm7, %v11994_v37, %v11995_v19  ;;  %v12003_v46 = vsel %vm17220_vm7, %v12001_v45, %v12002_v34  ;;  %v12016_v52 = vrot.slane %v11893_v49, 5  ;;  %v14388_v33 = vrot.slane %v11891_v54, 9  ;;  %v11902_v12 = vld [vmem:[#allocation4 + $0x8c] sm:$0x1]  ;;  %v11903_v19 = vld [vmem:[#allocation4 + $0x90] sm:$0xe] }
 0x56a   : > { %15665 = vmatmul.mubr.bf16.gmra.mrb[16].mxu1 %v14369_v22  ;;  %v11979_v22 = vsel %vm17220_vm7, %v14383_v14, %v11978_v36  ;;  %v11993_v3 = vsel %vm17220_vm7, %v14385_v38, %v11992_v23  ;;  %v12000_v32 = vsel %vm17220_vm7, %v14386_v0, %v11999_v56  ;;  %v12015_v35 = vrot.slane %v12013_v47, 4  ;;  %v11905_v57 = vld [vmem:[#allocation4 + $0x98] sm:$0x1] }
 0x56b   : > { %15668 = vmatprep.mubr.bf16.mxu1 %v14370_v21  ;;  %v14399_v53 = vcombine.low %v11979_v22, %v11982_v17  ;;  %v14400_v21 = vcombine.low %v11986_v62, %v11989_v1  ;;  %v14401_v25 = vcombine.low %v11993_v3, %v11996_v44  ;;  %v14402_v30 = vcombine.low %v12000_v32, %v12003_v46  ;;  %v11897_v17 = vld [vmem:[#allocation4 + $0x78] sm:$0xe]  ;;  %v19030_v62 = vld [vmem:[#allocation4 + $0xac] sm:$0xf]  ;;  %v11906_v44 = vld [vmem:[#allocation4 + $0x9c] sm:$0xe] }
 0x56c   : > { %v12020_v36 = vrot.slane %v11895_v59, 5  ;;  %v12017_v42 = vsel %vm17220_vm7, %v12015_v35, %v12016_v52  ;;  %v12027_v29 = vrot.slane %v11898_v26, 5  ;;  %v12014_v20 = vsel %vm17220_vm7, %v14388_v33, %v12013_v47  ;;  %v11908_v3 = vld [vmem:[#allocation4 + $0xa4] sm:$0x1]  ;;  %v11912_v52 = vld [vmem:[#allocation4 + $0xb4] sm:$0xe] }
 0x56d   : > { %v14404_v2 = vcombine.low %v12014_v20, %v12017_v42  ;;  %v12034_v23 = vrot.slane %v11901_v24, 5  ;;  %v14389_v9 = vrot.slane %v11894_v51, 9  ;;  %v12030_v56 = vrot.slane %v11899_v8, 5  ;;  %v14423_v24 = vld [vmem:[%s16885_s16 + $0x1c] sm:$0xf] }
 0x56e   : > { %v12022_v58 = vrot.slane %v12020_v36, 4  ;;  %v12029_v14 = vrot.slane %v12027_v29, 4  ;;  %v12041_v22 = vrot.slane %v11904_v10, 5  ;;  %v12037_v47 = vrot.slane %v11902_v12, 5 }
 0x56f   : > { %v12021_v15 = vsel %vm17220_vm7, %v14389_v9, %v12020_v36  ;;  %v12036_v4 = vrot.slane %v12034_v23, 4  ;;  %v14391_v32 = vrot.slane %v11900_v55, 9  ;;  %v14392_v59 = vrot.slane %v11903_v19, 9 }
 0x570   : > { %v12031_v37 = vsel %vm17220_vm7, %v12029_v14, %v12030_v56  ;;  %v12043_v38 = vrot.slane %v12041_v22, 4  ;;  %v12051_v42 = vrot.slane %v11908_v3, 5  ;;  %v14395_v10 = vrot.slane %v11912_v52, 9  ;;  %v19058_v14 = vld [vmem:[#allocation4 + $0xd0] sm:$0xf] }
 0x571   : > { %v12038_v49 = vsel %vm17220_vm7, %v12036_v4, %v12037_v47  ;;  %v12042_v33 = vsel %vm17220_vm7, %v14392_v59, %v12041_v22  ;;  %v11918_v56 = vld [vmem:[#allocation4 + $0xcc] sm:$0xe]  ;;  %v19066_v22 = vld [vmem:[#allocation4 + $0xd4] sm:$0x1]  ;;  %v14428_v47 = vld [vmem:[%s16885_s16 + $0x30] sm:$0xf] }
 0x572   : > { %15669 = vmatmul.mubr.bf16.gmra.mrb[20].mxu1 %v14371_v43  ;;  %v11890_v43 = vld [vmem:[#allocation4 + $0x5c] sm:$0x1]  ;;  %v14429_v3 = vld [vmem:[%s16885_s16 + $0x34] sm:$0xf]  ;;  %v12567_v52 = vshll.u32 %v14428_v47, 16 }
 0x573   : > { %15672 = vmatprep.mubr.bf16.mxu1 %v14372_v61  ;;  %v12008_v61 = vrot.slane %v12006_v13, 4  ;;  %v12009_v48 = vrot.slane %v11890_v43, 5  ;;  %v12044_v43 = vrot.slane %v11905_v57, 5 }
 0x575   : > { %v12010_v6 = vsel %vm17220_vm7, %v12008_v61, %v12009_v48  ;;  %v11911_v61 = vld [vmem:[#allocation4 + $0xb0] sm:$0x1]  ;;  %v11914_v48 = vld [vmem:[#allocation4 + $0xbc] sm:$0x1]  ;;  %v12045_v54 = vsel %vm17220_vm7, %v12043_v38, %v12044_v43  ;;  %v14426_v38 = vld [vmem:[%s16885_s16 + $0x28] sm:$0xf] }
 0x576   : > { %v12065_v20 = vrot.slane %v11914_v48, 5  ;;  %v14432_v48 = vld [vmem:[%s16885_s16 + $0x40] sm:$0xf] }
 0x57a   : > { %15673 = vmatmul.mubr.bf16.gmra.mrb[24].mxu1 %v14373_v5  ;;  %v14387_v5 = vrot.slane %v11888_v63, 9  ;;  %v14393_v63 = vrot.slane %v11906_v44, 9 }
 0x57b   : > { %15692 = vmatprep.mubr.bf16.mxu1 %v14398_v7  ;;  %v11896_v7 = vld [vmem:[#allocation4 + $0x74] sm:$0x1] }
 0x57c   : > { %v12007_v60 = vsel %vm17220_vm7, %v14387_v5, %v12006_v13  ;;  %v12023_v41 = vrot.slane %v11896_v7, 5  ;;  %v12055_v13 = vrot.slane %v19030_v62, 5 }
 0x57d   : > { %v14403_v50 = vcombine.low %v12007_v60, %v12010_v6  ;;  %v12035_v6 = vsel %vm17220_vm7, %v14391_v32, %v12034_v23 }
 0x57e   : > { %v12024_v1 = vsel %vm17220_vm7, %v12022_v58, %v12023_v41  ;;  %v12057_v26 = vrot.slane %v12055_v13, 4  ;;  %v14407_v60 = vcombine.low %v12035_v6, %v12038_v49  ;;  %v14422_v58 = vld [vmem:[%s16885_s16 + $0x18] sm:$0xf]  ;;  %v11917_v41 = vld [vmem:[#allocation4 + $0xc8] sm:$0x1] }
 0x57f   : > { %v14405_v45 = vcombine.low %v12021_v15, %v12024_v1  ;;  %v12519_v62 = vshll.u32 %v14422_v58, 16  ;;  %v12529_v15 = vshrl.u32 %v14423_v24, 16  ;;  %v12072_v12 = vrot.slane %v11917_v41, 5 }
 0x581   : > { %v12521_v32 = vrot.slane %v12519_v62, 5 }
 0x582   : > { %15693 = vmatmul.mubr.bf16.vlgmr.msra.gmra.mrb[28].mxu1 %v14399_v53  ;;  %v11907_v53 = vld [vmem:[#allocation4 + $0xa0] sm:$0xf] }
 0x583   : > { %15696 = vmatprep.mubr.bf16.mxu1 %v14400_v21  ;;  %15725 = vmatpush3.bf16.msra.mxu1 %v12997_v18  ;;  %v19032_v18 = vld [vmem:[#allocation4 + $0xb8] sm:$0xf]  ;;  %v14390_v21 = vrot.slane %v11897_v17, 9  ;;  %v12048_v27 = vrot.slane %v11907_v53, 5  ;;  %v12516_v53 = vshrl.u32 %v14422_v58, 16 }
 0x584   : > { %v12062_v0 = vrot.slane %v19032_v18, 5  ;;  %v12525_v18 = vshll.u32 %v14423_v24, 16 }
 0x585   : > { %v12028_v34 = vsel %vm17220_vm7, %v14390_v21, %v12027_v29  ;;  %v12050_v35 = vrot.slane %v12048_v27, 4  ;;  %v11915_v29 = vld [vmem:[#allocation4 + $0xc0] sm:$0xe]  ;;  %v19052_v7 = vsel %vm17220_vm7, %v14393_v63, %v12048_v27  ;;  %v14425_v21 = vld [vmem:[%s16885_s16 + $0x24] sm:$0xf]  ;;  %v14397_v27 = vrot.slane %v11918_v56, 9 }
 0x586   : > { %v14406_v46 = vcombine.low %v12028_v34, %v12031_v37  ;;  %v12064_v36 = vrot.slane %v12062_v0, 4  ;;  %v14396_v9 = vrot.slane %v11915_v29, 9  ;;  %v19075_v19 = vsel %vm17220_vm7, %v14395_v10, %v12062_v0  ;;  %v14424_v34 = vld [vmem:[%s16885_s16 + $0x20] sm:$0x1]  ;;  %v14433_v56 = vld [vmem:[%s16885_s16 + $0x44] sm:$0x1] }
 0x587   : > { %v12052_v51 = vsel %vm17220_vm7, %v12050_v35, %v12051_v42  ;;  %v12540_v0 = vshrl.u32 %v14425_v21, 16  ;;  %v19092_v43 = vrot.slane %v12525_v18, 5  ;;  %v12543_v59 = vshll.u32 %v14425_v21, 16 }
 0x588   : > { %v19064_v23 = vsel %vm17220_vm7, %v12064_v36, %v12065_v20  ;;  %v14409_v37 = vcombine.low %v19052_v7, %v12052_v51  ;;  %v12549_v63 = vshll.u32 %v14426_v38, 16  ;;  %v12553_v35 = vshrl.u32 %v14426_v38, 16 }
 0x589   : > { %v14411_v44 = vcombine.low %v19075_v19, %v19064_v23  ;;  %v12573_v36 = vshll.u32 %v14429_v3, 16  ;;  %v12535_v6 = vshll.u32 %v14424_v34, 16  ;;  %v12601_v20 = vshrl.u32 %v14432_v48, 16 }
 0x58a   : > { %15697 = vmatmul.mubr.bf16.gmra.mrb[0].mxu1 %v14401_v25  ;;  %v11916_v25 = vld [vmem:[#allocation4 + $0xc4] sm:$0xf]  ;;  %v12545_v58 = vrot.slane %v12543_v59, 5  ;;  %v19098_v24 = vrot.slane %v12549_v63, 5  ;;  %v12569_v10 = vrot.slane %v12567_v52, 5 }
 0x58b   : > { %15700 = vmatprep.mubr.bf16.mxu1 %v14402_v30  ;;  %v11909_v30 = vld [vmem:[#allocation4 + $0xa8] sm:$0xe]  ;;  %v12069_v5 = vrot.slane %v11916_v25, 5  ;;  %v12518_v25 = vrot.slane %v12516_v53, 4  ;;  %v19100_v41 = vrot.slane %v12573_v36, 5  ;;  %v12537_v18 = vrot.slane %v12535_v6, 5 }
 0x58c   : > { %v14394_v8 = vrot.slane %v11909_v30, 9  ;;  %v12531_v30 = vrot.slane %v12529_v15, 4  ;;  %v12603_v21 = vrot.slane %v12601_v20, 4  ;;  %v14438_v36 = vld [vmem:[%s16885_s16 + $0x58] sm:$0xf] }
 0x58d   : > { %v12071_v1 = vrot.slane %v12069_v5, 4  ;;  %v19079_v57 = vsel %vm17220_vm7, %v14396_v9, %v12069_v5  ;;  %v12577_v5 = vshrl.u32 %v14429_v3, 16  ;;  %v14440_v6 = vld [vmem:[%s16885_s16 + $0x60] sm:$0xf]  ;;  %v12645_v20 = vshll.u32 %v14438_v36, 16 }
 0x58e   : > { %v12056_v55 = vsel %vm17220_vm7, %v14394_v8, %v12055_v13  ;;  %v12532_v7 = vor.u32 %v12531_v30, %v19092_v43 }
 0x58f   : > { %v19087_v13 = vsel %vm17220_vm7, %v12071_v1, %v12072_v12  ;;  %v14430_v1 = vld [vmem:[%s16885_s16 + $0x38] sm:$0x1] }
 0x590   : > { %v12533_v12 = vrot.slane %v12532_v7, 4  ;;  %v12583_v38 = vshll.u32 %v14430_v1, 16 }
 0x592   : > { %15701 = vmatmul.mubr.bf16.gmra.mrb[4].mxu1 %v14403_v50  ;;  %v12058_v50 = vrot.slane %v11911_v61, 5  ;;  %v14431_v61 = vld [vmem:[%s16885_s16 + $0x3c] sm:$0xf]  ;;  %v12538_v59 = vsel %vm16964_vm4, %v12533_v12, %v12537_v18 }
 0x593   : > { %15704 = vmatprep.mubr.bf16.mxu1 %v14404_v2  ;;  %v14408_v2 = vcombine.low %v12042_v33, %v12045_v54  ;;  %v14427_v54 = vld [vmem:[%s16885_s16 + $0x2c] sm:$0x1]  ;;  %v12542_v33 = vrot.slane %v12540_v0, 4  ;;  %v12588_v42 = vshrl.u32 %v14431_v61, 16  ;;  %v12591_v29 = vshll.u32 %v14431_v61, 16 }
 0x594   : > { %v12059_v17 = vsel %vm17220_vm7, %v12057_v26, %v12058_v50  ;;  %v12564_v26 = vshrl.u32 %v14428_v47, 16  ;;  %v12597_v50 = vshll.u32 %v14432_v48, 16  ;;  %v12559_v51 = vshll.u32 %v14427_v54, 16  ;;  %v14437_v61 = vld [vmem:[%s16885_s16 + $0x54] sm:$0xf] }
 0x595   : > { %v14410_v4 = vcombine.low %v12056_v55, %v12059_v17  ;;  %v14412_v17 = vcombine.low %v19079_v57, %v19087_v13  ;;  %v12593_v53 = vrot.slane %v12591_v29, 5  ;;  %v14435_v57 = vld [vmem:[%s16885_s16 + $0x4c] sm:$0xf]  ;;  %v12607_v13 = vshll.u32 %v14433_v56, 16  ;;  %v14439_v18 = vld [vmem:[%s16885_s16 + $0x5c] sm:$0x1] }
 0x596   : > { %v12566_v8 = vrot.slane %v12564_v26, 4  ;;  %v19114_v15 = vrot.slane %v12597_v50, 5  ;;  %v12625_v30 = vshrl.u32 %v14435_v57, 16  ;;  %v12585_v26 = vrot.slane %v12583_v38, 5  ;;  %v14436_v50 = vld [vmem:[%s16885_s16 + $0x50] sm:$0x1] }
 0x597   : > { %v12609_v52 = vrot.slane %v12607_v13, 5  ;;  %v12636_v19 = vshrl.u32 %v14437_v61, 16  ;;  %v14443_v56 = vld [vmem:[%s16885_s16 + $0x6c] sm:$0xf] }
 0x598   : > { %v12604_v3 = vor.u32 %v12603_v21, %v19114_v15  ;;  %v12627_v29 = vrot.slane %v12625_v30, 4  ;;  %v19156_v21 = vrot.slane %v12645_v20, 5 }
 0x59a   : > { %15705 = vmatmul.mubr.bf16.gmra.mrb[8].mxu1 %v14405_v45  ;;  %v12076_v45 = vrot.slane %v19058_v14, 5  ;;  %v12579_v14 = vrot.slane %v12577_v5, 4 }
 0x59b   : > { %15708 = vmatprep.mubr.bf16.mxu1 %v14406_v46  ;;  %v12079_v46 = vrot.slane %v19066_v22, 5  ;;  %v12590_v22 = vrot.slane %v12588_v42, 4 }
 0x59c   : > { %v12078_v49 = vrot.slane %v12076_v45, 4  ;;  %v19106_v9 = vsel %vm17220_vm7, %v14397_v27, %v12076_v45  ;;  %v12570_v27 = vor.u32 %v12569_v10, %v12566_v8  ;;  %v12580_v34 = vor.u32 %v12579_v14, %v19100_v41  ;;  %v14441_v8 = vld [vmem:[%s16885_s16 + $0x64] sm:$0xf] }
 0x59d   : > { %v12594_v0 = vor.u32 %v12593_v53, %v12590_v22  ;;  %v12660_v10 = vshrl.u32 %v14440_v6, 16  ;;  %v12663_v14 = vshll.u32 %v14440_v6, 16  ;;  %v12673_v12 = vshrl.u32 %v14441_v8, 16 }
 0x59e   : > { %v19112_v62 = vsel %vm17220_vm7, %v12078_v49, %v12079_v46  ;;  %v12561_v46 = vrot.slane %v12559_v51, 5  ;;  %v12571_v48 = vrot.slane %v12570_v27, 4  ;;  %v12581_v54 = vrot.slane %v12580_v34, 4 }
 0x59f   : > { %v14413_v31 = vcombine.low %v19106_v9, %v19112_v62  ;;  %v12595_v5 = vrot.slane %v12594_v0, 4  ;;  %v12638_v9 = vrot.slane %v12636_v19, 4  ;;  %v12631_v62 = vshll.u32 %v14436_v50, 16 }
 0x5a0   : > { %v12576_v51 = vsel %vm16964_vm4, %v12571_v48, %v19100_v41  ;;  %v12687_v27 = vshll.u32 %v14443_v56, 16  ;;  %v12675_v30 = vrot.slane %v12673_v12, 4 }
 0x5a2   : > { %15709 = vmatmul.mubr.bf16.gmra.mrb[12].mxu1 %v14407_v60  ;;  %v12522_v60 = vor.u32 %v12521_v32, %v12518_v25  ;;  %v12621_v32 = vshll.u32 %v14435_v57, 16  ;;  %v12684_v57 = vshrl.u32 %v14443_v56, 16 }
 0x5a3   : > { %15712 = vmatprep.mubr.bf16.mxu1 %v14408_v2  ;;  %v12555_v2 = vrot.slane %v12553_v35, 4 }
 0x5a4   : > { %v12523_v55 = vrot.slane %v12522_v60, 4  ;;  %v19134_v42 = vrot.slane %v12621_v32, 5 }
 0x5a5   : > { %v12556_v45 = vor.u32 %v12555_v2, %v19098_v24 }
 0x5a6   : > { %v12528_v49 = vsel %vm16964_vm4, %v12523_v55, %v19092_v43  ;;  %v12628_v41 = vor.u32 %v12627_v29, %v19134_v42  ;;  %v12669_v55 = vshll.u32 %v14441_v8, 16  ;;  %v14449_v29 = vld [vmem:[%s16885_s16 + $0x84] sm:$0xf] }
 0x5a7   : > { %v12557_v35 = vrot.slane %v12556_v45, 4  ;;  %v14470_v60 = vcombine.low %v12528_v49, %v12538_v59  ;;  %v14444_v45 = vld [vmem:[%s16885_s16 + $0x70] sm:$0xf]  ;;  %v14447_v59 = vld [vmem:[%s16885_s16 + $0x7c] sm:$0xf] }
 0x5a8   : > { %v19163_v32 = vrot.slane %v12669_v55, 5  ;;  %v12697_v49 = vshrl.u32 %v14444_v45, 16 }
 0x5a9   : > { %v12562_v2 = vsel %vm16964_vm4, %v12557_v35, %v12561_v46  ;;  %v12655_v46 = vshll.u32 %v14439_v18, 16  ;;  %v14442_v35 = vld [vmem:[%s16885_s16 + $0x68] sm:$0x1] }
 0x5aa   : > { %15713 = vmatmul.mubr.bf16.gmra.mrb[16].mxu1 %v14409_v37  ;;  %v14434_v37 = vld [vmem:[%s16885_s16 + $0x48] sm:$0xf]  ;;  %v12679_v50 = vshll.u32 %v14442_v35, 16 }
 0x5ab   : > { %15716 = vmatprep.mubr.bf16.mxu1 %v14410_v4  ;;  %v12546_v4 = vor.u32 %v12545_v58, %v12542_v33  ;;  %v12612_v47 = vshrl.u32 %v14434_v37, 16  ;;  %v12615_v25 = vshll.u32 %v14434_v37, 16  ;;  %v12605_v33 = vrot.slane %v12604_v3, 4 }
 0x5ac   : > { %v12649_v58 = vshrl.u32 %v14438_v36, 16  ;;  %v12633_v3 = vrot.slane %v12631_v62, 5  ;;  %v12657_v36 = vrot.slane %v12655_v46, 5  ;;  %v12681_v62 = vrot.slane %v12679_v50, 5 }
 0x5ad   : > { %v12547_v63 = vrot.slane %v12546_v4, 4  ;;  %v12614_v23 = vrot.slane %v12612_v47, 4  ;;  %v12617_v43 = vrot.slane %v12615_v25, 5  ;;  %v12610_v22 = vsel %vm16964_vm4, %v12605_v33, %v12609_v52  ;;  %v14446_v25 = vld [vmem:[%s16885_s16 + $0x78] sm:$0xf] }
 0x5ae   : > { %v12651_v37 = vrot.slane %v12649_v58, 4  ;;  %v12665_v4 = vrot.slane %v12663_v14, 5  ;;  %v12629_v47 = vrot.slane %v12628_v41, 4  ;;  %v12711_v19 = vshll.u32 %v14446_v25, 16 }
 0x5af   : > { %v12552_v7 = vsel %vm16964_vm4, %v12547_v63, %v19098_v24  ;;  %v12600_v24 = vsel %vm16964_vm4, %v12595_v5, %v19114_v15  ;;  %v12618_v53 = vor.u32 %v12617_v43, %v12614_v23  ;;  %v12662_v15 = vrot.slane %v12660_v10, 4  ;;  %v14445_v5 = vld [vmem:[%s16885_s16 + $0x74] sm:$0x1] }
 0x5b0   : > { %v14471_v34 = vcombine.low %v12552_v7, %v12562_v2  ;;  %v12652_v63 = vor.u32 %v12651_v37, %v19156_v21  ;;  %v12708_v23 = vshrl.u32 %v14446_v25, 16  ;;  %v12634_v6 = vsel %vm16964_vm4, %v12629_v47, %v12633_v3  ;;  %v14448_v37 = vld [vmem:[%s16885_s16 + $0x80] sm:$0x1]  ;;  %v14451_v3 = vld [vmem:[%s16885_s16 + $0x8c] sm:$0x1] }
 0x5b1   : > { %v12619_v0 = vrot.slane %v12618_v53, 4  ;;  %v12666_v48 = vor.u32 %v12665_v4, %v12662_v15  ;;  %v12717_v33 = vshll.u32 %v14447_v59, 16  ;;  %v12721_v43 = vshrl.u32 %v14447_v59, 16 }
 0x5b2   : > { %15717 = vmatmul.mubr.bf16.gmra.mrb[20].mxu1 %v14411_v44  ;;  %v12639_v44 = vshll.u32 %v14437_v61, 16  ;;  %v12693_v61 = vshll.u32 %v14444_v45, 16  ;;  %v12676_v7 = vor.u32 %v12675_v30, %v19163_v32  ;;  %v12699_v58 = vrot.slane %v12697_v49, 4  ;;  %v14452_v45 = vld [vmem:[%s16885_s16 + $0x90] sm:$0xf] }
 0x5b3   : > { %15720 = vmatprep.mubr.bf16.mxu1 %v14412_v17  ;;  %v12586_v17 = vsel %vm16964_vm4, %v12581_v54, %v12585_v26  ;;  %v12686_v54 = vrot.slane %v12684_v57, 4  ;;  %v12689_v26 = vrot.slane %v12687_v27, 5  ;;  %v12653_v2 = vrot.slane %v12652_v63, 4 }
 0x5b4   : > { %v12641_v1 = vrot.slane %v12639_v44, 5  ;;  %v14472_v38 = vcombine.low %v12576_v51, %v12586_v17  ;;  %v12624_v44 = vsel %vm16964_vm4, %v12619_v0, %v19134_v42  ;;  %v19178_v20 = vrot.slane %v12693_v61, 5 }
 0x5b5   : > { %v12667_v42 = vrot.slane %v12666_v48, 4  ;;  %v12690_v51 = vor.u32 %v12689_v26, %v12686_v54  ;;  %v12703_v8 = vshll.u32 %v14445_v5, 16  ;;  %v12732_v10 = vshrl.u32 %v14449_v29, 16  ;;  %v14455_v26 = vld [vmem:[%s16885_s16 + $0x9c] sm:$0xf] }
 0x5b6   : > { %v12642_v13 = vor.u32 %v12641_v1, %v12638_v9  ;;  %v12735_v14 = vshll.u32 %v14449_v29, 16  ;;  %v12710_v9 = vrot.slane %v12708_v23, 4  ;;  %v12713_v1 = vrot.slane %v12711_v19, 5  ;;  %v14454_v23 = vld [vmem:[%s16885_s16 + $0x98] sm:$0x1] }
 0x5b7   : > { %v19181_v56 = vrot.slane %v12717_v33, 5  ;;  %v14474_v53 = vcombine.low %v12624_v44, %v12634_v6  ;;  %v12677_v41 = vrot.slane %v12676_v7, 4  ;;  %v12700_v18 = vor.u32 %v12699_v58, %v19178_v20  ;;  %v14458_v29 = vld [vmem:[%s16885_s16 + $0xa8] sm:$0xf] }
 0x5b8   : > { %v12643_v52 = vrot.slane %v12642_v13, 4  ;;  %v12658_v12 = vsel %vm16964_vm4, %v12653_v2, %v12657_v36  ;;  %v12672_v15 = vsel %vm16964_vm4, %v12667_v42, %v19163_v32  ;;  %v19193_v4 = vrot.slane %v12703_v8, 5  ;;  %v14453_v13 = vld [vmem:[%s16885_s16 + $0x94] sm:$0xf]  ;;  %v14459_v2 = vld [vmem:[%s16885_s16 + $0xac] sm:$0xf] }
 0x5b9   : > { %v12734_v57 = vrot.slane %v12732_v10, 4  ;;  %v12737_v27 = vrot.slane %v12735_v14, 5  ;;  %v12691_v46 = vrot.slane %v12690_v51, 4  ;;  %v12714_v0 = vor.u32 %v12713_v1, %v12710_v9 }
 0x5ba   : > { %15721 = vmatmul.mubr.bf16.gmra.mrb[24].mxu1 %v14413_v31  ;;  %v19160_v31 = vcombine.low %v12600_v24, %v12610_v22  ;;  %v12723_v22 = vrot.slane %v12721_v43, 4  ;;  %v12648_v55 = vsel %vm16964_vm4, %v12643_v52, %v19156_v21  ;;  %v12727_v47 = vshll.u32 %v14448_v37, 16  ;;  %v14456_v43 = vld [vmem:[%s16885_s16 + $0xa0] sm:$0xf] }
 0x5bb   : > { %15726 = vmatprep.mubr.msk.bf16.mxu1 %vm394_vm1, %v14470_v60  ;;  %v14450_v60 = vld [vmem:[%s16885_s16 + $0x88] sm:$0xf]  ;;  %v12682_v25 = vsel %vm16964_vm4, %v12677_v41, %v12681_v62  ;;  %v12701_v32 = vrot.slane %v12700_v18, 4  ;;  %v12756_v30 = vshrl.u32 %v14452_v45, 16  ;;  %v12759_v61 = vshll.u32 %v14452_v45, 16 }
 0x5bc   : > { %v12741_v17 = vshll.u32 %v14450_v60, 16  ;;  %v12745_v24 = vshrl.u32 %v14450_v60, 16  ;;  %v12724_v21 = vor.u32 %v12723_v22, %v19181_v56  ;;  %v12765_v49 = vshll.u32 %v14453_v13, 16 }
 0x5bd   : > { %v12769_v59 = vshrl.u32 %v14453_v13, 16  ;;  %v14475_v63 = vcombine.low %v12648_v55, %v12658_v12  ;;  %v12738_v35 = vor.u32 %v12737_v27, %v12734_v57  ;;  %v12751_v54 = vshll.u32 %v14451_v3, 16 }
 0x5be   : > { %v12715_v52 = vrot.slane %v12714_v0, 4  ;;  %v12725_v36 = vrot.slane %v12724_v21, 4  ;;  %v12729_v5 = vrot.slane %v12727_v47, 5  ;;  %v12696_v19 = vsel %vm16964_vm4, %v12691_v46, %v19178_v20  ;;  %v14460_v46 = vld [vmem:[%s16885_s16 + $0xb0] sm:$0x1] }
 0x5bf   : > { %v12706_v44 = vsel %vm16964_vm4, %v12701_v32, %v19193_v4  ;;  %v12758_v6 = vrot.slane %v12756_v30, 4  ;;  %v12761_v33 = vrot.slane %v12759_v61, 5  ;;  %v19217_v60 = vrot.slane %v12765_v49, 5  ;;  %v14462_v30 = vld [vmem:[%s16885_s16 + $0xb8] sm:$0xf] }
 0x5c0   : > { %v12771_v7 = vrot.slane %v12769_v59, 4  ;;  %v12780_v50 = vshrl.u32 %v14455_v26, 16  ;;  %v12783_v58 = vshll.u32 %v14455_v26, 16  ;;  %v12739_v42 = vrot.slane %v12738_v35, 4 }
 0x5c1   : > { %v12753_v8 = vrot.slane %v12751_v54, 5  ;;  %v12775_v10 = vshll.u32 %v14454_v23, 16  ;;  %v12789_v14 = vshll.u32 %v14456_v43, 16  ;;  %v12793_v20 = vshrl.u32 %v14456_v43, 16  ;;  %v14465_v54 = vld [vmem:[%s16885_s16 + $0xc4] sm:$0xf] }
 0x5c2   : > { %15727 = vmatmul.mubr.msk.bf16.vlgmr.msra.gmra.mrb[28].mxu1 %vm394_vm1, %v14471_v34  ;;  %v19196_v34 = vrot.slane %v12741_v17, 5  ;;  %v12804_v17 = vshrl.u32 %v14458_v29, 16  ;;  %v12720_v9 = vsel %vm16964_vm4, %v12715_v52, %v19181_v56  ;;  %v12730_v1 = vsel %vm16964_vm4, %v12725_v36, %v12729_v5 }
 0x5c3   : > { %15730 = vmatprep.mubr.msk.bf16.mxu1 %vm394_vm1, %v14472_v38  ;;  %v12747_v38 = vrot.slane %v12745_v24, 4  ;;  %v12807_v24 = vshll.u32 %v14458_v29, 16  ;;  %v12813_v22 = vshll.u32 %v14459_v2, 16  ;;  %v12762_v41 = vor.u32 %v12761_v33, %v12758_v6 }
 0x5c4   : > { %v12772_v62 = vor.u32 %v12771_v7, %v19217_v60  ;;  %v12782_v18 = vrot.slane %v12780_v50, 4  ;;  %v12785_v37 = vrot.slane %v12783_v58, 5  ;;  %v12744_v55 = vsel %vm16964_vm4, %v12739_v42, %v19196_v34 }
 0x5c5   : > { %v12748_v48 = vor.u32 %v12747_v38, %v19196_v34  ;;  %v12777_v12 = vrot.slane %v12775_v10, 5  ;;  %v19234_v4 = vrot.slane %v12789_v14, 5  ;;  %v12795_v45 = vrot.slane %v12793_v20, 4  ;;  %v14461_v34 = vld [vmem:[%s16885_s16 + $0xb4] sm:$0xf] }
 0x5c6   : > { %v12806_v57 = vrot.slane %v12804_v17, 4  ;;  %v12809_v27 = vrot.slane %v12807_v24, 5  ;;  %v14477_v38 = vcombine.low %v12696_v19, %v12706_v44  ;;  %v14478_v13 = vcombine.low %v12720_v9, %v12730_v1  ;;  %v14467_v20 = vld [vmem:[%s16885_s16 + $0xcc] sm:$0xf] }
 0x5c7   : > { %v12749_v51 = vrot.slane %v12748_v48, 4  ;;  %v19237_v0 = vrot.slane %v12813_v22, 5  ;;  %v12763_v47 = vrot.slane %v12762_v41, 4  ;;  %v12773_v3 = vrot.slane %v12772_v62, 4  ;;  %v14464_v48 = vld [vmem:[%s16885_s16 + $0xc0] sm:$0xf] }
 0x5c8   : > { %v12796_v49 = vor.u32 %v12795_v45, %v19234_v4  ;;  %v12810_v59 = vor.u32 %v12809_v27, %v12806_v57  ;;  %v12828_v35 = vshrl.u32 %v14461_v34, 16  ;;  %v12837_v52 = vshll.u32 %v14462_v30, 16  ;;  %v14468_v22 = vld [vmem:[%s16885_s16 + $0xd0] sm:$0xf] }
 0x5c9   : > { %v12754_v56 = vsel %vm16964_vm4, %v12749_v51, %v12753_v8  ;;  %v12841_v36 = vshrl.u32 %v14462_v30, 16  ;;  %v12768_v5 = vsel %vm16964_vm4, %v12763_v47, %v19217_v60  ;;  %v12778_v23 = vsel %vm16964_vm4, %v12773_v3, %v12777_v12  ;;  %v14463_v51 = vld [vmem:[%s16885_s16 + $0xbc] sm:$0x1] }
 0x5ca   : > { %15731 = vmatmul.mubr.msk.bf16.gmra.mrb[0].mxu1 %vm394_vm1, %v19160_v31  ;;  %v14476_v31 = vcombine.low %v12672_v15, %v12682_v25  ;;  %v14457_v15 = vld [vmem:[%s16885_s16 + $0xa4] sm:$0x1]  ;;  %v12786_v25 = vor.u32 %v12785_v37, %v12782_v18  ;;  %v14479_v61 = vcombine.low %v12744_v55, %v12754_v56  ;;  %v12852_v6 = vshrl.u32 %v14464_v48, 16  ;;  %v14466_v18 = vld [vmem:[%s16885_s16 + $0xc8] sm:$0x1] }
 0x5cb   : > { %15734 = vmatprep.mubr.msk.bf16.mxu1 %vm394_vm1, %v14474_v53  ;;  %v12817_v53 = vshrl.u32 %v14459_v2, 16  ;;  %v12799_v32 = vshll.u32 %v14457_v15, 16  ;;  %v12855_v33 = vshll.u32 %v14464_v48, 16  ;;  %v12861_v43 = vshll.u32 %v14465_v54, 16 }
 0x5cc   : > { %v12787_v19 = vrot.slane %v12786_v25, 4  ;;  %v12865_v29 = vshrl.u32 %v14465_v54, 16  ;;  %v12797_v7 = vrot.slane %v12796_v49, 4  ;;  %v12811_v50 = vrot.slane %v12810_v59, 4 }
 0x5cd   : > { %v12819_v21 = vrot.slane %v12817_v53, 4  ;;  %v12801_v44 = vrot.slane %v12799_v32, 5  ;;  %v12830_v2 = vrot.slane %v12828_v35, 4  ;;  %v12839_v60 = vrot.slane %v12837_v52, 5 }
 0x5ce   : > { %v12843_v10 = vrot.slane %v12841_v36, 4  ;;  %v14480_v14 = vcombine.low %v12768_v5, %v12778_v23  ;;  %v12854_v17 = vrot.slane %v12852_v6, 4  ;;  %v12857_v24 = vrot.slane %v12855_v33, 5 }
 0x5cf   : > { %v12820_v26 = vor.u32 %v12819_v21, %v19237_v0  ;;  %v12863_v9 = vrot.slane %v12861_v43, 5  ;;  %v12867_v1 = vrot.slane %v12865_v29, 4  ;;  %v12792_v53 = vsel %vm16964_vm4, %v12787_v19, %v19234_v4 }
 0x5d0   : > { %v12802_v41 = vsel %vm16964_vm4, %v12797_v7, %v12801_v44  ;;  %v12847_v62 = vshll.u32 %v14463_v51, 16  ;;  %v12816_v37 = vsel %vm16964_vm4, %v12811_v50, %v19237_v0  ;;  %v12844_v12 = vor.u32 %v12843_v10, %v12839_v60  ;;  %v19290_v50 = vld [vmem:[%s19425_s4 + $0x1] ss:$0 sm:$0xff] }
 0x5d1   : > { %v12821_v42 = vrot.slane %v12820_v26, 4  ;;  %v12876_v15 = vshrl.u32 %v14467_v20, 16  ;;  %v12879_v4 = vshll.u32 %v14467_v20, 16  ;;  %v12885_v45 = vshll.u32 %v14468_v22, 16 }
 0x5d2   : > { %15735 = vmatmul.mubr.msk.bf16.gmra.mrb[4].mxu1 %vm394_vm1, %v14475_v63  ;;  %v12823_v63 = vshll.u32 %v14460_v46, 16  ;;  %v12889_v57 = vshrl.u32 %v14468_v22, 16  ;;  %v12858_v27 = vor.u32 %v12857_v24, %v12854_v17  ;;  %v14481_v46 = vcombine.low %v12792_v53, %v12802_v41 }
 0x5d3   : > { %15738 = vmatprep.mubr.msk.bf16.mxu1 %vm394_vm1, %v14476_v31  ;;  %v12831_v31 = vshll.u32 %v14461_v34, 16  ;;  %v12845_v47 = vrot.slane %v12844_v12, 4  ;;  %v12849_v0 = vrot.slane %v12847_v62, 5  ;;  %v12878_v3 = vrot.slane %v12876_v15, 4 }
 0x5d4   : > { %v12825_v58 = vrot.slane %v12823_v63, 5  ;;  %v12881_v25 = vrot.slane %v12879_v4, 5  ;;  %v12887_v32 = vrot.slane %v12885_v45, 5  ;;  %v12891_v30 = vrot.slane %v12889_v57, 4  ;;  %v14469_v63 = vld [vmem:[%s16885_s16 + $0xd4] sm:$0x1] }
 0x5d5   : > { %v12833_v8 = vrot.slane %v12831_v31, 5  ;;  %v12850_v48 = vsel %vm16964_vm4, %v12845_v47, %v12849_v0  ;;  %v12895_v31 = vshll.u32 %v14469_v63, 16  ;;  %s254_s16 = sand.u32 1, %s16732_s19  }
 0x5d6   : > { %v12826_v55 = vsel %vm16964_vm4, %v12821_v42, %v12825_v58  ;;  %v12882_v54 = vor.u32 %v12881_v25, %v12878_v3  ;;  %v12892_v26 = vor.u32 %v12891_v30, %v12887_v32  ;;  %s13445_s13 = sshll.u32 %s254_s16, 8  ;;  %s19375_s21 = scalar_lea.sflag [#allocation7], %s254_s16 }
 0x5d7   : > { %v12834_v56 = vor.u32 %v12833_v8, %v12830_v2  ;;  %v14482_v21 = vcombine.low %v12816_v37, %v12826_v55  ;;  %v12897_v6 = vrot.slane %v12895_v31, 5  ;;  %s19302_s14 = scalar_lea.vmem [#allocation8], %s13445_s13 }
 0x5d8   : > { %v12883_v19 = vrot.slane %v12882_v54, 4  ;;  %v12893_v44 = vrot.slane %v12892_v26, 4  ;;  %s13344_s15 = sshll.u32 %s19302_s14, 4  ;;  %s19368_s15 = int_to_ptr.vmem [resolvable:$true] %s13344_s15 }
 0x5d9   : > { %v12835_v34 = vrot.slane %v12834_v56, 4  ;;  %s16666_s17 = scalar_lea.vmem %s19368_s15, 4096  ;;  %p16673_p1 = scmp.lt.s32.totalorder %s19368_s15, %s16671_s25 }
 0x5da   : > { %15739 = vmatmul.mubr.msk.bf16.gmra.mrb[8].mxu1 %vm394_vm1, %v14477_v38  ;;  %v12868_v38 = vor.u32 %v12867_v1, %v12863_v9  ;;  %v12888_v33 = vsel %vm16964_vm4, %v12883_v19, %v12887_v32  ;;  %v12898_v43 = vsel %vm16964_vm4, %v12893_v44, %v12897_v6  ;;  %p16667_p8 = scmp.ne.s32.totalorder %s19368_s15, %s16666_s17  ;;  %p16674_p3 = scmp.lt.s32.totalorder %s16672_s27, %s16666_s17 }
 0x5db   : > { %15742 = vmatprep.mubr.msk.bf16.mxu1 %vm394_vm1, %v14478_v13  ;;  %v12871_v13 = vshll.u32 %v14466_v18, 16  ;;  %v12840_v35 = vsel %vm16964_vm4, %v12835_v34, %v12839_v60  ;;  %v14485_v29 = vcombine.low %v12888_v33, %v12898_v43 }
 0x5dc   : > { %v12869_v49 = vrot.slane %v12868_v38, 4  ;;  %v14483_v5 = vcombine.low %v12840_v35, %v12850_v48  ;;  %p16668_p11 = pnand %p16667_p8, %p19448_p10  ;;  %p16675_p5 = por %p16674_p3, %p16673_p1 }
 0x5dd   : > { %v12873_v59 = vrot.slane %v12871_v13, 5 }
 0x5de   : > { %p16669_p13 = pneg %p16668_p11 }
 0x5df   : > { %v12874_v36 = vsel %vm16964_vm4, %v12869_v49, %v12873_v59 }
 0x5e0   : > { %p16676_p6 = pnand %p16675_p5, %p16669_p13 }
 0x5e2   : > { %15743 = vmatmul.mubr.msk.bf16.gmra.mrb[12].mxu1 %vm394_vm1, %v14479_v61  ;;  %v12859_v61 = vrot.slane %v12858_v27, 4 }
 0x5e3   : > { %15746 = vmatprep.mubr.msk.bf16.mxu1 %vm394_vm1, %v14480_v14 }
 0x5e4   : > { %v12864_v52 = vsel %vm16964_vm4, %v12859_v61, %v12863_v9 }
 0x5e5   : > { %v14484_v23 = vcombine.low %v12864_v52, %v12874_v36 }
 0x5ea   : > { %15747 = vmatmul.mubr.msk.bf16.gmra.mrb[16].mxu1 %vm394_vm1, %v14481_v46 }
 0x5eb   : > { %15750 = vmatprep.mubr.msk.bf16.mxu1 %vm394_vm1, %v14482_v21 }
 0x5f2   : > { %15751 = vmatmul.mubr.msk.bf16.gmra.mrb[20].mxu1 %vm394_vm1, %v14483_v5 }
 0x5f3   : > { %15754 = vmatprep.mubr.msk.bf16.mxu1 %vm394_vm1, %v14484_v23 }
 0x5fa   : > { %15755 = vmatmul.mubr.msk.bf16.gmra.mrb[24].mxu1 %vm394_vm1, %v14485_v29 }
 0x695   : > { %v15728_v7 = vpop.f32.mrb[28].mxu1 }
 0x696   : > { %v15774_v58 = vadd.f32 %v15728_v7, %v18671_v11  ;;  %v13033_v2 = vpop.f32.mrb[29].mxu1 }
 0x697   : > { %v15776_v42 = vadd.f32 %v13033_v2, %v18673_v39  ;;  %v15729_v51 = vpop.f32.mrb[30].mxu1 }
 0x698   : > { %v15775_v28 = vadd.f32 %v15774_v58, %v19290_v50  ;;  %v15778_v8 = vadd.f32 %v15729_v51, %v18675_v40  ;;  %v13036_v60 = vpop.f32.mrb[31].mxu1 }
 0x699   : > { %v15777_v10 = vadd.f32 %v15776_v42, %v19290_v50  ;;  %v15780_v14 = vadd.f32 %v13036_v60, %v18677_v16 }
 0x69a   : > { %v13266_v20 = vmax.f32 %v15775_v28, 0.0  ;;  %v15779_v17 = vadd.f32 %v15778_v8, %v19290_v50 }
 0x69b   : > { %v13264_v24 = vmax.f32 %v15777_v10, 0.0  ;;  %v15781_v9 = vadd.f32 %v15780_v14, %v19290_v50 }
 0x69c   : > { %13298 = vst [vmem:[%s19302_s14 + $0x10] sm:$0xff] %v13266_v20  ;;  %v13267_v11 = vmax.f32 %v15779_v17, 0.0 }
 0x69d   : > { %13296 = vst [vmem:[%s19302_s14] sm:$0xff] %v13264_v24  ;;  %v13265_v39 = vmax.f32 %v15781_v9, 0.0  ;;  %v15732_v40 = vpop.f32.mrb[0].mxu1 }
 0x69e   : > { %13299 = vst [vmem:[%s19302_s14 + $0x18] sm:$0xff] %v13267_v11  ;;  %v15782_v16 = vadd.f32 %v15732_v40, %v19290_v50  ;;  %v13049_v1 = vpop.f32.mrb[1].mxu1 }
 0x69f   : > { %13297 = vst [vmem:[%s19302_s14 + $0x8] sm:$0xff] %v13265_v39  ;;  %v15783_v22 = vadd.f32 %v19290_v50, %v13049_v1  ;;  %v15733_v53 = vpop.f32.mrb[2].mxu1 }
 0x6a0   : > { %v13270_v41 = vmax.f32 %v15782_v16, 0.0  ;;  %v15784_v62 = vadd.f32 %v15733_v53, %v19290_v50  ;;  %v13052_v18 = vpop.f32.mrb[3].mxu1 }
 0x6a1   : > { %v13268_v37 = vmax.f32 %v15783_v22, 0.0  ;;  %v15785_v55 = vadd.f32 %v19290_v50, %v13052_v18 }
 0x6a2   : > { %13302 = vst [vmem:[%s19302_s14 + $0x30] sm:$0xff] %v13270_v41  ;;  %v13271_v56 = vmax.f32 %v15784_v62, 0.0 }
 0x6a3   : > { %13300 = vst [vmem:[%s19302_s14 + $0x20] sm:$0xff] %v13268_v37  ;;  %v13269_v12 = vmax.f32 %v15785_v55, 0.0 }
 0x6a4   : > { %13303 = vst [vmem:[%s19302_s14 + $0x38] sm:$0xff] %v13271_v56 }
 0x6a5   : > { %13301 = vst [vmem:[%s19302_s14 + $0x28] sm:$0xff] %v13269_v12  ;;  %v15736_v15 = vpop.f32.mrb[4].mxu1 }
 0x6a6   : > { %v15786_v4 = vadd.f32 %v15736_v15, %v19290_v50  ;;  %v13065_v45 = vpop.f32.mrb[5].mxu1 }
 0x6a7   : > { %v15787_v57 = vadd.f32 %v19290_v50, %v13065_v45  ;;  %v15737_v27 = vpop.f32.mrb[6].mxu1 }
 0x6a8   : > { %v13274_v38 = vmax.f32 %v15786_v4, 0.0  ;;  %v15788_v13 = vadd.f32 %v15737_v27, %v19290_v50  ;;  %v13068_v46 = vpop.f32.mrb[7].mxu1 }
 0x6a9   : > { %v13272_v21 = vmax.f32 %v15787_v57, 0.0  ;;  %v15789_v34 = vadd.f32 %v19290_v50, %v13068_v46 }
 0x6aa   : > { %13306 = vst [vmem:[%s19302_s14 + $0x50] sm:$0xff] %v13274_v38  ;;  %v13275_v47 = vmax.f32 %v15788_v13, 0.0 }
 0x6ab   : > { %13304 = vst [vmem:[%s19302_s14 + $0x40] sm:$0xff] %v13272_v21  ;;  %v13273_v0 = vmax.f32 %v15789_v34, 0.0 }
 0x6ac   : > { %13307 = vst [vmem:[%s19302_s14 + $0x58] sm:$0xff] %v13275_v47 }
 0x6ad   : > { %13305 = vst [vmem:[%s19302_s14 + $0x48] sm:$0xff] %v13273_v0  ;;  %v15740_v3 = vpop.f32.mrb[8].mxu1 }
 0x6ae   : > { %v15790_v25 = vadd.f32 %v15740_v3, %v19290_v50  ;;  %v13081_v32 = vpop.f32.mrb[9].mxu1 }
 0x6af   : > { %v15791_v30 = vadd.f32 %v19290_v50, %v13081_v32  ;;  %v15741_v61 = vpop.f32.mrb[10].mxu1 }
 0x6b0   : > { %v13278_v49 = vmax.f32 %v15790_v25, 0.0  ;;  %v15792_v59 = vadd.f32 %v15741_v61, %v19290_v50  ;;  %v13084_v63 = vpop.f32.mrb[11].mxu1 }
 0x6b1   : > { %v13276_v35 = vmax.f32 %v15791_v30, 0.0  ;;  %v15793_v48 = vadd.f32 %v19290_v50, %v13084_v63 }
 0x6b2   : > { %13310 = vst [vmem:[%s19302_s14 + $0x70] sm:$0xff] %v13278_v49  ;;  %v13279_v54 = vmax.f32 %v15792_v59, 0.0 }
 0x6b3   : > { %13308 = vst [vmem:[%s19302_s14 + $0x60] sm:$0xff] %v13276_v35  ;;  %v13277_v26 = vmax.f32 %v15793_v48, 0.0 }
 0x6b4   : > { %13311 = vst [vmem:[%s19302_s14 + $0x78] sm:$0xff] %v13279_v54 }
 0x6b5   : > { %13309 = vst [vmem:[%s19302_s14 + $0x68] sm:$0xff] %v13277_v26  ;;  %v15744_v31 = vpop.f32.mrb[12].mxu1 }
 0x6b6   : > { %v15794_v52 = vadd.f32 %v15744_v31, %v19290_v50  ;;  %v13097_v36 = vpop.f32.mrb[13].mxu1 }
 0x6b7   : > { %v15795_v5 = vadd.f32 %v19290_v50, %v13097_v36  ;;  %v15745_v23 = vpop.f32.mrb[14].mxu1 }
 0x6b8   : > { %v13282_v19 = vmax.f32 %v15794_v52, 0.0  ;;  %v15796_v44 = vadd.f32 %v15745_v23, %v19290_v50  ;;  %v13100_v6 = vpop.f32.mrb[15].mxu1 }
 0x6b9   : > { %v13280_v33 = vmax.f32 %v15795_v5, 0.0  ;;  %v15797_v43 = vadd.f32 %v19290_v50, %v13100_v6 }
 0x6ba   : > { %13314 = vst [vmem:[%s19302_s14 + $0x90] sm:$0xff] %v13282_v19  ;;  %v13283_v29 = vmax.f32 %v15796_v44, 0.0 }
 0x6bb   : > { %13312 = vst [vmem:[%s19302_s14 + $0x80] sm:$0xff] %v13280_v33  ;;  %v13281_v7 = vmax.f32 %v15797_v43, 0.0 }
 0x6bc   : > { %13315 = vst [vmem:[%s19302_s14 + $0x98] sm:$0xff] %v13283_v29 }
 0x6bd   : > { %13313 = vst [vmem:[%s19302_s14 + $0x88] sm:$0xff] %v13281_v7  ;;  %v15748_v58 = vpop.f32.mrb[16].mxu1 }
 0x6be   : > { %v15798_v2 = vadd.f32 %v15748_v58, %v19290_v50  ;;  %v13113_v42 = vpop.f32.mrb[17].mxu1 }
 0x6bf   : > { %v15799_v51 = vadd.f32 %v19290_v50, %v13113_v42  ;;  %v15749_v28 = vpop.f32.mrb[18].mxu1 }
 0x6c0   : > { %v13286_v8 = vmax.f32 %v15798_v2, 0.0  ;;  %v15800_v60 = vadd.f32 %v15749_v28, %v19290_v50  ;;  %v13116_v10 = vpop.f32.mrb[19].mxu1 }
 0x6c1   : > { %v13284_v14 = vmax.f32 %v15799_v51, 0.0  ;;  %v15801_v20 = vadd.f32 %v19290_v50, %v13116_v10 }
 0x6c2   : > { %13318 = vst [vmem:[%s19302_s14 + $0xb0] sm:$0xff] %v13286_v8  ;;  %v13287_v17 = vmax.f32 %v15800_v60, 0.0 }
 0x6c3   : > { %13316 = vst [vmem:[%s19302_s14 + $0xa0] sm:$0xff] %v13284_v14  ;;  %v13285_v24 = vmax.f32 %v15801_v20, 0.0 }
 0x6c4   : > { %13319 = vst [vmem:[%s19302_s14 + $0xb8] sm:$0xff] %v13287_v17 }
 0x6c5   : > { %13317 = vst [vmem:[%s19302_s14 + $0xa8] sm:$0xff] %v13285_v24  ;;  %v15752_v9 = vpop.f32.mrb[20].mxu1 }
 0x6c6   : > { %v15802_v11 = vadd.f32 %v15752_v9, %v19290_v50  ;;  %v13129_v39 = vpop.f32.mrb[21].mxu1 }
 0x6c7   : > { %v15803_v40 = vadd.f32 %v19290_v50, %v13129_v39  ;;  %v15753_v16 = vpop.f32.mrb[22].mxu1 }
 0x6c8   : > { %v13290_v1 = vmax.f32 %v15802_v11, 0.0  ;;  %v15804_v22 = vadd.f32 %v15753_v16, %v19290_v50  ;;  %v13132_v53 = vpop.f32.mrb[23].mxu1 }
 0x6c9   : > { %v13288_v41 = vmax.f32 %v15803_v40, 0.0  ;;  %v15805_v62 = vadd.f32 %v19290_v50, %v13132_v53 }
 0x6ca   : > { %13322 = vst [vmem:[%s19302_s14 + $0xd0] sm:$0xff] %v13290_v1  ;;  %v13291_v18 = vmax.f32 %v15804_v22, 0.0 }
 0x6cb   : > { %13320 = vst [vmem:[%s19302_s14 + $0xc0] sm:$0xff] %v13288_v41  ;;  %v13289_v37 = vmax.f32 %v15805_v62, 0.0 }
 0x6cc   : > { %13323 = vst [vmem:[%s19302_s14 + $0xd8] sm:$0xff] %v13291_v18 }
 0x6cd   : > { %13321 = vst [vmem:[%s19302_s14 + $0xc8] sm:$0xff] %v13289_v37  ;;  %v15756_v55 = vpop.f32.mrb[24].mxu1 }
 0x6ce   : > { %v15806_v56 = vadd.f32 %v15756_v55, %v19290_v50  ;;  %v13145_v12 = vpop.f32.mrb[25].mxu1 }
 0x6cf   : > { %v15807_v15 = vadd.f32 %v19290_v50, %v13145_v12  ;;  %v15757_v4 = vpop.f32.mrb[26].mxu1 }
 0x6d0   : > { %v13294_v45 = vmax.f32 %v15806_v56, 0.0  ;;  %v15808_v57 = vadd.f32 %v15757_v4, %v19290_v50  ;;  %v13148_v27 = vpop.f32.mrb[27].mxu1 }
 0x6d1   : > { %v13292_v38 = vmax.f32 %v15807_v15, 0.0  ;;  %v15809_v13 = vadd.f32 %v19290_v50, %v13148_v27 }
 0x6d2   : > { %13326 = vst [vmem:[%s19302_s14 + $0xf0] sm:$0xff] %v13294_v45  ;;  %v13295_v46 = vmax.f32 %v15808_v57, 0.0 }
 0x6d3   : > { %13324 = vst [vmem:[%s19302_s14 + $0xe0] sm:$0xff] %v13292_v38  ;;  %v13293_v21 = vmax.f32 %v15809_v13, 0.0 }
 0x6d4   : > { %13327 = vst [vmem:[%s19302_s14 + $0xf8] sm:$0xff] %v13295_v46 }
 0x6d5   : > { %13325 = vst [vmem:[%s19302_s14 + $0xe8] sm:$0xff] %v13293_v21 }
 0x6d6   : > { %16679 = shalt.err (!%p16676_p6)
}
 0x6d7   : > { %s16680_s29 = scalar_lea.hbm %s19366_s8, 4096  ;;  %s16684_s12 = scalar_lea.hbm %s19426_s5, 8192 }
 0x6d8   : > { %p16681_p7 = scmp.ne.s32.totalorder %s19366_s8, %s16680_s29  ;;  %p16685_p0 = scmp.lt.u32.totalorder %s19366_s8, %s19426_s5 }
 0x6d9   : > { %p16686_p2 = scmp.lt.u32.totalorder %s16684_s12, %s16680_s29  ;;  %p16688_p8 = scmp.lt.u32.totalorder %s16680_s29, %s19366_s8 }
 0x6da   : > { %p16682_p9 = pnand %p16681_p7, %p19448_p10 }
 0x6db   : > { %p16687_p4 = por %p16686_p2, %p16685_p0 }
 0x6dc   : > { %p16683_p12 = pneg %p16682_p9 }
 0x6dd   : > { %p16689_p11 = por %p16688_p8, %p16687_p4 }
 0x6df   : > { %p16690_p13 = pnand %p16689_p11, %p16683_p12 }
 0x6e1   : > { %16693 = shalt.err (!%p16690_p13)
}
 0x6e2   : > { %s16755_s11 = smov 128   ;;  %s16756_s7 = smov 8  }
 0x6e3   : > { %16397 = dma.vmem_to_hbm [thread:$0]  (%p19448_p10), %s19368_s15, 4096, %s19366_s8, %s19375_s21, %s16755_s11, %s16755_s11, %s16756_s7  }
 0x6e4 PF: > { %p16409_p1 = scmp.ge.s32.totalorder %s16748_s23, 2  ;;  %s13359_s10 = sand.u32 1, %s16728_s18  }
 0x6e5   : > { %p19449_p3 = scmp.ne.s32.totalorder %s19432_s30, 0  ;;  %s13360_s17 = scalar_lea.sflag [#allocation7], %s13359_s10 }
 0x6e7   : > { %p16404_p5 = pnand %p16409_p1, %p19449_p3 }
 0x6e9   : > { %16723 = dma.done.wait (!%p16404_p5), %s13360_s17, 4096  }
 0x6ea   : > { %16725 = vsyncadd (!%p16404_p5), %s13360_s17, 4294963200  ;;  %s19_s23 = sadd.s32 1, %s16748_s23   ;;  %s19450_s18 = smov %s16732_s19 }
 0x6eb   : > { %p16_p6 = scmp.ge.s32.totalorder %s19_s23, 4   ;;  %s19451_s19 = smov %s16736_s20 }
 0x6ec   : > { %s19452_s20 = smov %s16840_s6  ;;  %s19453_s21 = smov %s16744_s22 }
 0x6ed   : > { %s19454_s22 = smov %s19456_s26  ;;  %18 = sbr.rel (!%p16_p6) target bundleno = 5 (0x5), region = 106 }
 0x6f4   :  { %13365 = vsyncpa [#allocation6], 1 }
 0x6f5   :  { %13367 = vsyncpa [#allocation6 + $0x1], 1 }
 0x6f6   :  { %13368 = vsyncpa [#allocation7], 1 }
 0x6f7   :  { %13370 = vsyncpa [#allocation7 + $0x1], 1 }

</bundles_post_ra>
